<compile_context>
chip_gen: v7x
topology: tpu7x:2x2x1
jax: 0.10.0
libtpu: 0.0.40
codegen_flags: <defaults>
</compile_context>

<pallas_src>
import functools

import jax
import jax.numpy as jnp
from jax import lax
from jax.experimental import pallas as pl
from jax.experimental.pallas import tpu as pltpu


# ----------------------------------------------------------------------------
# Layout helpers: padded-flat layout = (channels, Mp) with channels on sublanes
# and the zero-padded H x W plane flattened onto Mp lanes.
# ----------------------------------------------------------------------------
def _round_up(x, m):
    return (x + m - 1) // m * m


def _to_flat(x_nhwc, ph, pw, mp):
    """(N, H, W, C) -> (N, C, Mp): zero spatial border, zero lane tail."""
    n, h, w, c = x_nhwc.shape
    hp, wp = h + 2 * ph, w + 2 * pw
    xp = jnp.pad(x_nhwc, ((0, 0), (ph, ph), (pw, pw), (0, 0)))
    xf = xp.transpose(0, 3, 1, 2).reshape(n, c, hp * wp)
    return jnp.pad(xf, ((0, 0), (0, 0), (0, mp - hp * wp)))


def _from_flat(xf, h, w, ph, pw):
    """(..., C, Mp) -> (..., H, W, C): extract the valid interior."""
    *lead, c, _ = xf.shape
    hp, wp = h + 2 * ph, w + 2 * pw
    xi = xf[..., :hp * wp].reshape(*lead, c, hp, wp)[..., ph:ph + h, pw:pw + w]
    return jnp.moveaxis(xi, -3, -1)


def _tap_shifts(kh_size, kw_size, wp, mp):
    """Lane-roll amount per conv tap on the flattened padded plane."""
    ph, pw = kh_size // 2, kw_size // 2
    return tuple(int((-((kh - ph) * wp + (kw - pw))) % mp)
                 for kh in range(kh_size) for kw in range(kw_size))


def _interior_mask(h, w, ph, pw, mp):
    """(1, Mp) float32: 1 on valid pixels, 0 on the zero border / lane tail."""
    hp, wp = h + 2 * ph, w + 2 * pw
    p = jnp.arange(mp)
    ii, jj = p // wp, p % wp
    valid = ((p < hp * wp) & (ii >= ph) & (ii < hp - ph)
             & (jj >= pw) & (jj < wp - pw))
    return valid.astype(jnp.float32).reshape(1, mp)


# ----------------------------------------------------------------------------
# Non-recurrent "same" conv over a whole sequence (hoisted off the recurrence).
# Used for the x -> gate projection of every layer and the final out_conv.
# ----------------------------------------------------------------------------
def _conv_seq_kernel(x_ref, w_ref, b_ref, out_ref, patch_scr, *,
                     T, C, shifts, apply_sigmoid):
    """out[t] = w @ im2col(x[t]) + b  (optionally followed by sigmoid).

    x_ref  : (T, C, Mp)      zero-bordered padded-flat input
    w_ref  : (Cout, KH*KW*C) transposed conv weights (MXU dtype)
    b_ref  : (Cout, 1)
    out_ref: (T, Cout, Mp)   border / tail lanes are don't-care
    """
    def step(t, _):
        xt = x_ref[t]                                          # (C, Mp)
        for k, s in enumerate(shifts):
            tap = xt if s == 0 else pltpu.roll(xt, shift=s, axis=1)
            patch_scr[k * C:(k + 1) * C, :] = tap.astype(patch_scr.dtype)
        acc = jnp.dot(w_ref[...], patch_scr[...],
                      preferred_element_type=jnp.float32)      # (Cout, Mp)
        acc = acc + b_ref[...]
        if apply_sigmoid:
            acc = jax.nn.sigmoid(acc)
        out_ref[t] = acc.astype(out_ref.dtype)
        return 0

    lax.fori_loop(0, T, step, 0)


def _conv_seq(x_flat, w_t, bias, *, shifts, apply_sigmoid, mxu_dtype,
              out_dtype):
    """x_flat (B, T, C, Mp), w_t (Cout, KH*KW*C), bias (Cout, 1)."""
    B, T, C, Mp = x_flat.shape
    Cout, K = w_t.shape
    kernel = functools.partial(_conv_seq_kernel, T=T, C=C, shifts=shifts,
                               apply_sigmoid=apply_sigmoid)
    return pl.pallas_call(
        kernel,
        out_shape=jax.ShapeDtypeStruct((B, T, Cout, Mp), out_dtype),
        grid_spec=pltpu.PrefetchScalarGridSpec(
            num_scalar_prefetch=0,
            grid=(B,),
            in_specs=[
                pl.BlockSpec((None, T, C, Mp), lambda b: (b, 0, 0, 0)),
                pl.BlockSpec((Cout, K), lambda b: (0, 0)),
                pl.BlockSpec((Cout, 1), lambda b: (0, 0)),
            ],
            out_specs=pl.BlockSpec((None, T, Cout, Mp),
                                   lambda b: (b, 0, 0, 0)),
            scratch_shapes=[pltpu.VMEM((K, Mp), mxu_dtype)],
        ),
        compiler_params=pltpu.CompilerParams(
            dimension_semantics=("parallel",)),
    )(x_flat, w_t.astype(mxu_dtype), bias.astype(jnp.float32))


# ----------------------------------------------------------------------------
# Recurrent kernel: one layer's LSTM recurrence over the full sequence for one
# batch element.  grid=(B,); T is an in-kernel fori_loop.
# ----------------------------------------------------------------------------
def _lstm_seq_kernel(gx_ref, wh_ref, mask_ref, hseq_ref, c_ref, patch_scr, *,
                     T, Hd, shifts):
    """
    gx_ref   : (T, 4*Hd, Mp)    precomputed conv(x_t, Wx) + b
    wh_ref   : (4*Hd, KH*KW*Hd) recurrent weights (MXU dtype)
    mask_ref : (1, Mp) f32      1 on valid pixels, 0 on border / lane tail
    hseq_ref : (T, Hd, Mp) f32  h_t for every step (padded-flat layout)
    c_ref    : (Hd, Mp) f32     resident cell state -> c_T
    patch_scr: (KH*KW*Hd, Mp)   h_{t-1} taps for the single gate matmul
    """
    patch_scr[...] = jnp.zeros_like(patch_scr)    # h_{-1} = 0
    c_ref[...] = jnp.zeros_like(c_ref)            # c_{-1} = 0
    mask = mask_ref[...]

    def step(t, _):
        # gates = Wh @ im2col(h_{t-1}) + precomputed x contribution
        acc = jnp.dot(wh_ref[...], patch_scr[...],
                      preferred_element_type=jnp.float32)      # (4*Hd, Mp)
        acc = acc + gx_ref[t]
        i = jax.nn.sigmoid(acc[0 * Hd:1 * Hd])
        f = jax.nn.sigmoid(acc[1 * Hd:2 * Hd])
        o = jax.nn.sigmoid(acc[2 * Hd:3 * Hd])
        g = jnp.tanh(acc[3 * Hd:4 * Hd])
        c_next = f * c_ref[...] + i * g
        h_next = o * jnp.tanh(c_next) * mask      # zero border => same padding
        c_ref[...] = c_next
        hseq_ref[t] = h_next.astype(hseq_ref.dtype)
        # Rebuild the h taps for the next step: XLU lane rolls, sublane-aligned
        # stores at multiples of Hd.
        for k, s in enumerate(shifts):
            tap = h_next if s == 0 else pltpu.roll(h_next, shift=s, axis=1)
            patch_scr[k * Hd:(k + 1) * Hd, :] = tap.astype(patch_scr.dtype)
        return 0

    lax.fori_loop(0, T, step, 0)


def _lstm_seq(gx, wh_t, mask, *, Hd, shifts, mxu_dtype):
    """gx (B, T, 4*Hd, Mp), wh_t (4*Hd, KH*KW*Hd), mask (1, Mp)."""
    B, T, G, Mp = gx.shape
    K = wh_t.shape[1]
    kernel = functools.partial(_lstm_seq_kernel, T=T, Hd=Hd, shifts=shifts)
    return pl.pallas_call(
        kernel,
        out_shape=(jax.ShapeDtypeStruct((B, T, Hd, Mp), jnp.float32),
                   jax.ShapeDtypeStruct((B, Hd, Mp), jnp.float32)),
        grid_spec=pltpu.PrefetchScalarGridSpec(
            num_scalar_prefetch=0,
            grid=(B,),
            in_specs=[
                pl.BlockSpec((None, T, G, Mp), lambda b: (b, 0, 0, 0)),
                pl.BlockSpec((G, K), lambda b: (0, 0)),
                pl.BlockSpec((1, Mp), lambda b: (0, 0)),
            ],
            out_specs=(
                pl.BlockSpec((None, T, Hd, Mp), lambda b: (b, 0, 0, 0)),
                pl.BlockSpec((None, Hd, Mp), lambda b: (b, 0, 0)),
            ),
            scratch_shapes=[pltpu.VMEM((K, Mp), mxu_dtype)],
        ),
        compiler_params=pltpu.CompilerParams(
            dimension_semantics=("parallel",)),
    )(gx, wh_t.astype(mxu_dtype), mask)


# ----------------------------------------------------------------------------
# Full forward (ConvLSTM(..., batch_first=True, return_all_layers=False))
# ----------------------------------------------------------------------------
def convlstm_forward(x, cell_params, out_conv_params, *,
                     hidden_dims, kernel_size=(3, 3),
                     mxu_dtype=jnp.bfloat16):
    """x: (B, T, H, W, C) NHWC.  Returns ([layer_output], [(h_T, c_T)],
    final_out) with the same semantics as the PyTorch module."""
    B, T, H, W, C0 = x.shape
    KH, KW = kernel_size
    ph, pw = KH // 2, KW // 2
    Hp, Wp = H + 2 * ph, W + 2 * pw
    Mp = _round_up(Hp * Wp, 128)            # lane-dense flattened padded plane

    shifts = _tap_shifts(KH, KW, Wp, Mp)
    mask = _interior_mask(H, W, ph, pw, Mp)

    # One-time layout change into the lane-dense padded-flat layout; deeper
    # layers consume the previous layer's h sequence directly (no re-padding).
    cur = _to_flat(x.reshape(B * T, H, W, C0), ph, pw, Mp).reshape(B, T, C0, Mp)

    Cx = C0
    h_seq = c_last = None
    for l, Hd in enumerate(hidden_dims):
        w, b = cell_params[l]               # (KH, KW, Cx+Hd, 4*Hd), (1, 4*Hd)
        wx_t = w[:, :, :Cx, :].transpose(3, 0, 1, 2).reshape(
            4 * Hd, KH * KW * Cx)
        wh_t = w[:, :, Cx:, :].transpose(3, 0, 1, 2).reshape(
            4 * Hd, KH * KW * Hd)
        bias = b.reshape(4 * Hd, 1)
        # Input -> gate projection for the whole sequence, off the recurrence.
        gx = _conv_seq(cur, wx_t, bias, shifts=shifts, apply_sigmoid=False,
                       mxu_dtype=mxu_dtype, out_dtype=mxu_dtype)
        # Recurrence: grid over B only; T folded into the kernel.
        h_seq, c_last = _lstm_seq(gx, wh_t, mask, Hd=Hd, shifts=shifts,
                                  mxu_dtype=mxu_dtype)
        cur = h_seq
        Cx = Hd

    # Final out_conv + sigmoid (temperature == 1), also off the recurrence.
    w_out, b_out = out_conv_params          # (KH, KW, Hd_last, C0), (1, C0)
    wo_t = w_out.transpose(3, 0, 1, 2).reshape(C0, KH * KW * hidden_dims[-1])
    fo = _conv_seq(h_seq, wo_t, b_out.reshape(C0, 1), shifts=shifts,
                   apply_sigmoid=True, mxu_dtype=mxu_dtype,
                   out_dtype=jnp.float32)

    layer_out = _from_flat(h_seq, H, W, ph, pw)      # (B, T, H, W, Hd_last)
    h_last = layer_out[:, -1]
    c_last = _from_flat(c_last, H, W, ph, pw)        # (B, H, W, Hd_last)
    final_out = _from_flat(fo, H, W, ph, pw)         # (B, T, H, W, C0)
    # TODO(synk): the optional non-None `hidden_state` argument of the PyTorch
    # forward is not wired; only the default zero-init path is implemented.
    return [layer_out], [(h_last, c_last)], final_out


# ----------------------------------------------------------------------------
# Pure-JAX reference (numerical verification of the kernels)
# ----------------------------------------------------------------------------
def _conv2d_ref(x, w, b):
    KH, KW = w.shape[0], w.shape[1]
    y = lax.conv_general_dilated(
        x, w, window_strides=(1, 1),
        padding=[(KH // 2, KH // 2), (KW // 2, KW // 2)],
        dimension_numbers=('NHWC', 'HWIO', 'NHWC'),
        precision=lax.Precision.HIGHEST)
    return y + b.reshape(1, 1, 1, -1)


def _cell_ref(x, h, c, w, b):
    comb = jnp.concatenate([x, h], axis=-1)
    cc = _conv2d_ref(comb, w, b)
    Hd = h.shape[-1]
    i = jax.nn.sigmoid(cc[..., 0 * Hd:1 * Hd])
    f = jax.nn.sigmoid(cc[..., 1 * Hd:2 * Hd])
    o = jax.nn.sigmoid(cc[..., 2 * Hd:3 * Hd])
    g = jnp.tanh(cc[..., 3 * Hd:4 * Hd])
    c_next = f * c + i * g
    h_next = o * jnp.tanh(c_next)
    return h_next, c_next


def _forward_ref(x, cell_params, out_conv_params, hidden_dims, input_dim):
    B, T, H, W, _ = x.shape
    cur_input = x
    last = None
    for l, Hd in enumerate(hidden_dims):
        w, b = cell_params[l]
        h = jnp.zeros((B, H, W, Hd), x.dtype)
        c = jnp.zeros((B, H, W, Hd), x.dtype)
        outs = []
        for t in range(T):
            h, c = _cell_ref(cur_input[:, t], h, c, w, b)
            outs.append(h)
        cur_input = jnp.stack(outs, axis=1)
        last = (h, c)
    w_o, b_o = out_conv_params
    flat = cur_input.reshape(B * T, H, W, hidden_dims[-1])
    final = jax.nn.sigmoid(_conv2d_ref(flat, w_o, b_o))
    return cur_input, last, final.reshape(B, T, H, W, input_dim)


# ----------------------------------------------------------------------------
# Main
# ----------------------------------------------------------------------------
if __name__ == "__main__":
    # Mirrors ConvLSTM(input_dim=4, hidden_dim=32, kernel_size=(3,3),
    # num_layers=2, batch_first=True, bias=True, return_all_layers=False).
    B, T, H, W = 2, 8, 16, 16
    input_dim = 4
    hidden_dims = [32, 32]
    KH, KW = 3, 3
    dtype = jnp.float32

    key = jax.random.PRNGKey(0)
    keys = jax.random.split(key, 2 * len(hidden_dims) + 3)

    # Deterministic parameters (shapes follow nn.Conv2d of ConvLSTMCell /
    # out_conv, stored HWIO / NHWC instead of OIHW / NCHW).
    cell_params = []
    kidx = 0
    for l, Hd in enumerate(hidden_dims):
        cin = (input_dim if l == 0 else hidden_dims[l - 1]) + Hd
        w = 0.1 * jax.random.normal(keys[kidx], (KH, KW, cin, 4 * Hd), dtype)
        b = 0.1 * jax.random.normal(keys[kidx + 1], (1, 4 * Hd), dtype)
        cell_params.append((w, b))
        kidx += 2
    w_out = 0.1 * jax.random.normal(
        keys[kidx], (KH, KW, hidden_dims[-1], input_dim), dtype)
    b_out = 0.1 * jax.random.normal(keys[kidx + 1], (1, input_dim), dtype)
    x = jax.random.normal(keys[kidx + 2], (B, T, H, W, input_dim), dtype)

    ref_layer_out, (ref_h, ref_c), ref_final = _forward_ref(
        x, cell_params, (w_out, b_out), hidden_dims, input_dim)

    # Default (performance) path: bf16 MXU inputs, f32 accumulation/state.
    fwd_bf16 = jax.jit(functools.partial(
        convlstm_forward, hidden_dims=tuple(hidden_dims),
        kernel_size=(KH, KW), mxu_dtype=jnp.bfloat16))
    layer_output_list, last_state_list, final_out = fwd_bf16(
        x, tuple(cell_params), (w_out, b_out))
    jax.block_until_ready(final_out)
    jax.block_until_ready(last_state_list[-1][0])

    assert jnp.allclose(layer_output_list[-1], ref_layer_out,
                        atol=5e-2, rtol=5e-2)
    assert jnp.allclose(last_state_list[-1][0], ref_h, atol=5e-2, rtol=5e-2)
    assert jnp.allclose(last_state_list[-1][1], ref_c, atol=5e-2, rtol=5e-2)
    assert jnp.allclose(final_out, ref_final, atol=5e-2, rtol=5e-2)

    # f32 MXU path: strict numerical check against the pure-JAX reference.
    fwd_f32 = jax.jit(functools.partial(
        convlstm_forward, hidden_dims=tuple(hidden_dims),
        kernel_size=(KH, KW), mxu_dtype=jnp.float32))
    lo32, ls32, fo32 = fwd_f32(x, tuple(cell_params), (w_out, b_out))
    jax.block_until_ready(fo32)

    assert jnp.allclose(lo32[-1], ref_layer_out, atol=1e-3, rtol=1e-3)
    assert jnp.allclose(ls32[-1][0], ref_h, atol=1e-3, rtol=1e-3)
    assert jnp.allclose(ls32[-1][1], ref_c, atol=1e-3, rtol=1e-3)
    assert jnp.allclose(fo32, ref_final, atol=1e-3, rtol=1e-3)

    print("KERNEL_OK")
</pallas_src>

<mosaic_0001>
module attributes {stable_mosaic.version = 11 : i64} {
  func.func @_lstm_seq_kernel(%arg0: i32, %arg1: memref<1x8x128x384xbf16, #tpu.memory_space<vmem>>, %arg2: memref<128x288xbf16, #tpu.memory_space<vmem>>, %arg3: memref<1x384xf32, #tpu.memory_space<vmem>>, %arg4: memref<1x8x32x384xf32, #tpu.memory_space<vmem>>, %arg5: memref<1x32x384xf32, #tpu.memory_space<vmem>>, %arg6: memref<288x384xbf16, #tpu.memory_space<vmem>>) attributes {dimension_semantics = [#tpu.dimension_semantics<parallel>], iteration_bounds = array<i64: 2>, scalar_prefetch = 0 : i64, scratch_operands = 1 : i64, tpu.core_type = #tpu.core_type<tc>, window_params = [{transform_indices = @transform_0, window_bounds = array<i64: 1, 8, 128, 384>}, {pipeline_mode = #tpu.pipeline_mode<synchronous>, transform_indices = @transform_1, window_bounds = array<i64: 128, 288>}, {pipeline_mode = #tpu.pipeline_mode<synchronous>, transform_indices = @transform_2, window_bounds = array<i64: 1, 384>}, {transform_indices = @transform_3, window_bounds = array<i64: 1, 8, 32, 384>}, {transform_indices = @transform_4, window_bounds = array<i64: 1, 32, 384>}]} {
    %cst = arith.constant 0.000000e+00 : bf16
    %0 = vector.broadcast %cst : bf16 to vector<288x384xbf16>
    %c0 = arith.constant 0 : index
    %c0_0 = arith.constant 0 : index
    %1 = vector.load %arg6[%c0, %c0_0] : memref<288x384xbf16, #tpu.memory_space<vmem>>, vector<288x384xbf16>
    tpu.vector_store %arg6[%c0, %c0_0], %0 {strides = array<i32>} : memref<288x384xbf16, #tpu.memory_space<vmem>>, vector<288x384xbf16>,
    %cst_1 = arith.constant 0.000000e+00 : f32
    %2 = vector.broadcast %cst_1 : f32 to vector<32x384xf32>
    %c0_2 = arith.constant 0 : index
    %c0_3 = arith.constant 0 : index
    %c0_4 = arith.constant 0 : index
    %3 = vector.load %arg5[%c0_2, %c0_3, %c0_4] : memref<1x32x384xf32, #tpu.memory_space<vmem>>, vector<1x32x384xf32>
    %4 = vector.shape_cast %3 : vector<1x32x384xf32> to vector<32x384xf32>
    %5 = vector.shape_cast %2 : vector<32x384xf32> to vector<1x32x384xf32>
    tpu.vector_store %arg5[%c0_2, %c0_3, %c0_4], %5 {strides = array<i32>} : memref<1x32x384xf32, #tpu.memory_space<vmem>>, vector<1x32x384xf32>,
    %c0_5 = arith.constant 0 : index
    %c0_6 = arith.constant 0 : index
    %6 = vector.load %arg3[%c0_5, %c0_6] : memref<1x384xf32, #tpu.memory_space<vmem>>, vector<1x384xf32>
    %c0_i32 = arith.constant 0 : i32
    %c8_i32 = arith.constant 8 : i32
    %7 = arith.addi %c0_i32, %c8_i32 : i32
    %c1_i32 = arith.constant 1 : i32
    scf.for %arg7 = %c0_i32 to %7 step %c1_i32  : i32 {
      %c0_8 = arith.constant 0 : index
      %c0_9 = arith.constant 0 : index
      %8 = vector.load %arg2[%c0_8, %c0_9] : memref<128x288xbf16, #tpu.memory_space<vmem>>, vector<128x288xbf16>
      %c0_10 = arith.constant 0 : index
      %c0_11 = arith.constant 0 : index
      %9 = vector.load %arg6[%c0_10, %c0_11] : memref<288x384xbf16, #tpu.memory_space<vmem>>, vector<288x384xbf16>
      %cst_12 = arith.constant dense<0.000000e+00> : vector<128x384xf32>
      %10 = tpu.matmul %8, %9, %cst_12 {dimension_numbers = #tpu.dot_dimension_numbers<[1], [0], [0], [1], [0, 0, 1, 1], [], []>} : vector<128x288xbf16>, vector<288x384xbf16>, vector<128x384xf32> -> vector<128x384xf32>
      %c0_13 = arith.constant 0 : index
      %11 = arith.index_cast %arg7 : i32 to index
      %c0_14 = arith.constant 0 : index
      %c0_15 = arith.constant 0 : index
      %12 = vector.load %arg1[%c0_13, %11, %c0_14, %c0_15] : memref<1x8x128x384xbf16, #tpu.memory_space<vmem>>, vector<1x1x128x384xbf16>
      %13 = vector.shape_cast %12 : vector<1x1x128x384xbf16> to vector<128x384xbf16>
      %14 = arith.extf %13 : vector<128x384xbf16> to vector<128x384xf32>
      %15 = arith.addf %10, %14 : vector<128x384xf32>
      %16 = vector.extract_strided_slice %15 {offsets = [0, 0], sizes = [32, 384], strides = [1, 1]} : vector<128x384xf32> to vector<32x384xf32>
      %17 = arith.negf %16 : vector<32x384xf32>
      %18 = math.exp %17 : vector<32x384xf32>
      %cst_16 = arith.constant 1.000000e+00 : f32
      %19 = vector.broadcast %cst_16 : f32 to vector<32x384xf32>
      %20 = arith.addf %19, %18 : vector<32x384xf32>
      %21 = arith.divf %19, %20 : vector<32x384xf32>
      %22 = vector.extract_strided_slice %15 {offsets = [32, 0], sizes = [32, 384], strides = [1, 1]} : vector<128x384xf32> to vector<32x384xf32>
      %23 = arith.negf %22 : vector<32x384xf32>
      %24 = math.exp %23 : vector<32x384xf32>
      %cst_17 = arith.constant 1.000000e+00 : f32
      %25 = vector.broadcast %cst_17 : f32 to vector<32x384xf32>
      %26 = arith.addf %25, %24 : vector<32x384xf32>
      %27 = arith.divf %25, %26 : vector<32x384xf32>
      %28 = vector.extract_strided_slice %15 {offsets = [64, 0], sizes = [32, 384], strides = [1, 1]} : vector<128x384xf32> to vector<32x384xf32>
      %29 = arith.negf %28 : vector<32x384xf32>
      %30 = math.exp %29 : vector<32x384xf32>
      %cst_18 = arith.constant 1.000000e+00 : f32
      %31 = vector.broadcast %cst_18 : f32 to vector<32x384xf32>
      %32 = arith.addf %31, %30 : vector<32x384xf32>
      %33 = arith.divf %31, %32 : vector<32x384xf32>
      %34 = vector.extract_strided_slice %15 {offsets = [96, 0], sizes = [32, 384], strides = [1, 1]} : vector<128x384xf32> to vector<32x384xf32>
      %35 = math.tanh %34 : vector<32x384xf32>
      %c0_19 = arith.constant 0 : index
      %c0_20 = arith.constant 0 : index
      %c0_21 = arith.constant 0 : index
      %36 = vector.load %arg5[%c0_19, %c0_20, %c0_21] : memref<1x32x384xf32, #tpu.memory_space<vmem>>, vector<1x32x384xf32>
      %37 = vector.shape_cast %36 : vector<1x32x384xf32> to vector<32x384xf32>
      %38 = arith.mulf %27, %37 : vector<32x384xf32>
      %39 = arith.mulf %21, %35 : vector<32x384xf32>
      %40 = arith.addf %38, %39 : vector<32x384xf32>
      %41 = math.tanh %40 : vector<32x384xf32>
      %42 = arith.mulf %33, %41 : vector<32x384xf32>
      %43 = vector.broadcast %6 : vector<1x384xf32> to vector<32x384xf32>
      %44 = arith.mulf %42, %43 : vector<32x384xf32>
      %c0_22 = arith.constant 0 : index
      %c0_23 = arith.constant 0 : index
      %c0_24 = arith.constant 0 : index
      %45 = vector.load %arg5[%c0_22, %c0_23, %c0_24] : memref<1x32x384xf32, #tpu.memory_space<vmem>>, vector<1x32x384xf32>
      %46 = vector.shape_cast %45 : vector<1x32x384xf32> to vector<32x384xf32>
      %47 = vector.shape_cast %40 : vector<32x384xf32> to vector<1x32x384xf32>
      tpu.vector_store %arg5[%c0_22, %c0_23, %c0_24], %47 {strides = array<i32>} : memref<1x32x384xf32, #tpu.memory_space<vmem>>, vector<1x32x384xf32>,
      %c0_25 = arith.constant 0 : index
      %48 = arith.index_cast %arg7 : i32 to index
      %c0_26 = arith.constant 0 : index
      %c0_27 = arith.constant 0 : index
      %49 = vector.load %arg4[%c0_25, %48, %c0_26, %c0_27] : memref<1x8x32x384xf32, #tpu.memory_space<vmem>>, vector<1x1x32x384xf32>
      %50 = vector.shape_cast %49 : vector<1x1x32x384xf32> to vector<32x384xf32>
      %51 = vector.shape_cast %44 : vector<32x384xf32> to vector<1x1x32x384xf32>
      tpu.vector_store %arg4[%c0_25, %48, %c0_26, %c0_27], %51 {strides = array<i32>} : memref<1x8x32x384xf32, #tpu.memory_space<vmem>>, vector<1x1x32x384xf32>,
      %c19_i32 = arith.constant 19 : i32
      %52 = tpu.dynamic_rotate %44 by %c19_i32 dim 1 : vector<32x384xf32>, i32 -> vector<32x384xf32>
      %53 = arith.truncf %52 : vector<32x384xf32> to vector<32x384xbf16>
      %c0_28 = arith.constant 0 : index
      %c0_29 = arith.constant 0 : index
      %54 = vector.load %arg6[%c0_28, %c0_29] : memref<288x384xbf16, #tpu.memory_space<vmem>>, vector<32x384xbf16>
      tpu.vector_store %arg6[%c0_28, %c0_29], %53 {strides = array<i32>} : memref<288x384xbf16, #tpu.memory_space<vmem>>, vector<32x384xbf16>,
      %c18_i32 = arith.constant 18 : i32
      %55 = tpu.dynamic_rotate %44 by %c18_i32 dim 1 : vector<32x384xf32>, i32 -> vector<32x384xf32>
      %56 = arith.truncf %55 : vector<32x384xf32> to vector<32x384xbf16>
      %c32 = arith.constant 32 : index
      %c0_30 = arith.constant 0 : index
      %57 = vector.load %arg6[%c32, %c0_30] : memref<288x384xbf16, #tpu.memory_space<vmem>>, vector<32x384xbf16>
      tpu.vector_store %arg6[%c32, %c0_30], %56 {strides = array<i32>} : memref<288x384xbf16, #tpu.memory_space<vmem>>, vector<32x384xbf16>,
      %c17_i32 = arith.constant 17 : i32
      %58 = tpu.dynamic_rotate %44 by %c17_i32 dim 1 : vector<32x384xf32>, i32 -> vector<32x384xf32>
      %59 = arith.truncf %58 : vector<32x384xf32> to vector<32x384xbf16>
      %c64 = arith.constant 64 : index
      %c0_31 = arith.constant 0 : index
      %60 = vector.load %arg6[%c64, %c0_31] : memref<288x384xbf16, #tpu.memory_space<vmem>>, vector<32x384xbf16>
      tpu.vector_store %arg6[%c64, %c0_31], %59 {strides = array<i32>} : memref<288x384xbf16, #tpu.memory_space<vmem>>, vector<32x384xbf16>,
      %c1_i32_32 = arith.constant 1 : i32
      %61 = tpu.dynamic_rotate %44 by %c1_i32_32 dim 1 : vector<32x384xf32>, i32 -> vector<32x384xf32>
      %62 = arith.truncf %61 : vector<32x384xf32> to vector<32x384xbf16>
      %c96 = arith.constant 96 : index
      %c0_33 = arith.constant 0 : index
      %63 = vector.load %arg6[%c96, %c0_33] : memref<288x384xbf16, #tpu.memory_space<vmem>>, vector<32x384xbf16>
      tpu.vector_store %arg6[%c96, %c0_33], %62 {strides = array<i32>} : memref<288x384xbf16, #tpu.memory_space<vmem>>, vector<32x384xbf16>,
      %64 = arith.truncf %44 : vector<32x384xf32> to vector<32x384xbf16>
      %c128 = arith.constant 128 : index
      %c0_34 = arith.constant 0 : index
      %65 = vector.load %arg6[%c128, %c0_34] : memref<288x384xbf16, #tpu.memory_space<vmem>>, vector<32x384xbf16>
      tpu.vector_store %arg6[%c128, %c0_34], %64 {strides = array<i32>} : memref<288x384xbf16, #tpu.memory_space<vmem>>, vector<32x384xbf16>,
      %c383_i32 = arith.constant 383 : i32
      %66 = tpu.dynamic_rotate %44 by %c383_i32 dim 1 : vector<32x384xf32>, i32 -> vector<32x384xf32>
      %67 = arith.truncf %66 : vector<32x384xf32> to vector<32x384xbf16>
      %c160 = arith.constant 160 : index
      %c0_35 = arith.constant 0 : index
      %68 = vector.load %arg6[%c160, %c0_35] : memref<288x384xbf16, #tpu.memory_space<vmem>>, vector<32x384xbf16>
      tpu.vector_store %arg6[%c160, %c0_35], %67 {strides = array<i32>} : memref<288x384xbf16, #tpu.memory_space<vmem>>, vector<32x384xbf16>,
      %c367_i32 = arith.constant 367 : i32
      %69 = tpu.dynamic_rotate %44 by %c367_i32 dim 1 : vector<32x384xf32>, i32 -> vector<32x384xf32>
      %70 = arith.truncf %69 : vector<32x384xf32> to vector<32x384xbf16>
      %c192 = arith.constant 192 : index
      %c0_36 = arith.constant 0 : index
      %71 = vector.load %arg6[%c192, %c0_36] : memref<288x384xbf16, #tpu.memory_space<vmem>>, vector<32x384xbf16>
      tpu.vector_store %arg6[%c192, %c0_36], %70 {strides = array<i32>} : memref<288x384xbf16, #tpu.memory_space<vmem>>, vector<32x384xbf16>,
      %c366_i32 = arith.constant 366 : i32
      %72 = tpu.dynamic_rotate %44 by %c366_i32 dim 1 : vector<32x384xf32>, i32 -> vector<32x384xf32>
      %73 = arith.truncf %72 : vector<32x384xf32> to vector<32x384xbf16>
      %c224 = arith.constant 224 : index
      %c0_37 = arith.constant 0 : index
      %74 = vector.load %arg6[%c224, %c0_37] : memref<288x384xbf16, #tpu.memory_space<vmem>>, vector<32x384xbf16>
      tpu.vector_store %arg6[%c224, %c0_37], %73 {strides = array<i32>} : memref<288x384xbf16, #tpu.memory_space<vmem>>, vector<32x384xbf16>,
      %c365_i32 = arith.constant 365 : i32
      %75 = tpu.dynamic_rotate %44 by %c365_i32 dim 1 : vector<32x384xf32>, i32 -> vector<32x384xf32>
      %76 = arith.truncf %75 : vector<32x384xf32> to vector<32x384xbf16>
      %c256 = arith.constant 256 : index
      %c0_38 = arith.constant 0 : index
      %77 = vector.load %arg6[%c256, %c0_38] : memref<288x384xbf16, #tpu.memory_space<vmem>>, vector<32x384xbf16>
      tpu.vector_store %arg6[%c256, %c0_38], %76 {strides = array<i32>} : memref<288x384xbf16, #tpu.memory_space<vmem>>, vector<32x384xbf16>,
    }
    %c8_i32_7 = arith.constant 8 : i32
    return
  }
  func.func @transform_0(%arg0: i32) -> (i32, i32, i32, i32) {
    %c0_i32 = arith.constant 0 : i32
    %c0_i32_0 = arith.constant 0 : i32
    %c0_i32_1 = arith.constant 0 : i32
    %c0_i32_2 = arith.constant 0 : i32
    return %arg0, %c0_i32, %c0_i32_0, %c0_i32_1 : i32, i32, i32, i32
  }
  func.func @transform_1(%arg0: i32) -> (i32, i32) {
    %c0_i32 = arith.constant 0 : i32
    %c0_i32_0 = arith.constant 0 : i32
    %c0_i32_1 = arith.constant 0 : i32
    return %c0_i32, %c0_i32_0 : i32, i32
  }
  func.func @transform_2(%arg0: i32) -> (i32, i32) {
    %c0_i32 = arith.constant 0 : i32
    %c0_i32_0 = arith.constant 0 : i32
    %c0_i32_1 = arith.constant 0 : i32
    return %c0_i32, %c0_i32_0 : i32, i32
  }
  func.func @transform_3(%arg0: i32) -> (i32, i32, i32, i32) {
    %c0_i32 = arith.constant 0 : i32
    %c0_i32_0 = arith.constant 0 : i32
    %c0_i32_1 = arith.constant 0 : i32
    %c0_i32_2 = arith.constant 0 : i32
    return %arg0, %c0_i32, %c0_i32_0, %c0_i32_1 : i32, i32, i32, i32
  }
  func.func @transform_4(%arg0: i32) -> (i32, i32, i32) {
    %c0_i32 = arith.constant 0 : i32
    %c0_i32_0 = arith.constant 0 : i32
    %c0_i32_1 = arith.constant 0 : i32
    return %arg0, %c0_i32, %c0_i32_0 : i32, i32, i32
  }
}

module attributes {stable_mosaic.version = 11 : i64} {
  func.func @_conv_seq_kernel(%arg0: i32, %arg1: memref<1x8x4x384xf32, #tpu.memory_space<vmem>>, %arg2: memref<128x36xbf16, #tpu.memory_space<vmem>>, %arg3: memref<128x1xf32, #tpu.memory_space<vmem>>, %arg4: memref<1x8x128x384xbf16, #tpu.memory_space<vmem>>, %arg5: memref<36x384xbf16, #tpu.memory_space<vmem>>) attributes {dimension_semantics = [#tpu.dimension_semantics<parallel>], iteration_bounds = array<i64: 2>, scalar_prefetch = 0 : i64, scratch_operands = 1 : i64, tpu.core_type = #tpu.core_type<tc>, window_params = [{transform_indices = @transform_0, window_bounds = array<i64: 1, 8, 4, 384>}, {pipeline_mode = #tpu.pipeline_mode<synchronous>, transform_indices = @transform_1, window_bounds = array<i64: 128, 36>}, {pipeline_mode = #tpu.pipeline_mode<synchronous>, transform_indices = @transform_2, window_bounds = array<i64: 128, 1>}, {transform_indices = @transform_3, window_bounds = array<i64: 1, 8, 128, 384>}]} {
    %c0_i32 = arith.constant 0 : i32
    %c8_i32 = arith.constant 8 : i32
    %0 = arith.addi %c0_i32, %c8_i32 : i32
    %c1_i32 = arith.constant 1 : i32
    scf.for %arg6 = %c0_i32 to %0 step %c1_i32  : i32 {
      %c0 = arith.constant 0 : index
      %1 = arith.index_cast %arg6 : i32 to index
      %c0_1 = arith.constant 0 : index
      %c0_2 = arith.constant 0 : index
      %2 = vector.load %arg1[%c0, %1, %c0_1, %c0_2] : memref<1x8x4x384xf32, #tpu.memory_space<vmem>>, vector<1x1x4x384xf32>
      %3 = vector.shape_cast %2 : vector<1x1x4x384xf32> to vector<4x384xf32>
      %c19_i32 = arith.constant 19 : i32
      %4 = tpu.dynamic_rotate %3 by %c19_i32 dim 1 : vector<4x384xf32>, i32 -> vector<4x384xf32>
      %5 = arith.truncf %4 : vector<4x384xf32> to vector<4x384xbf16>
      %c0_3 = arith.constant 0 : index
      %c0_4 = arith.constant 0 : index
      %6 = vector.load %arg5[%c0_3, %c0_4] : memref<36x384xbf16, #tpu.memory_space<vmem>>, vector<4x384xbf16>
      tpu.vector_store %arg5[%c0_3, %c0_4], %5 {strides = array<i32>} : memref<36x384xbf16, #tpu.memory_space<vmem>>, vector<4x384xbf16>,
      %c18_i32 = arith.constant 18 : i32
      %7 = tpu.dynamic_rotate %3 by %c18_i32 dim 1 : vector<4x384xf32>, i32 -> vector<4x384xf32>
      %8 = arith.truncf %7 : vector<4x384xf32> to vector<4x384xbf16>
      %c4 = arith.constant 4 : index
      %c0_5 = arith.constant 0 : index
      %9 = vector.load %arg5[%c4, %c0_5] : memref<36x384xbf16, #tpu.memory_space<vmem>>, vector<4x384xbf16>
      tpu.vector_store %arg5[%c4, %c0_5], %8 {strides = array<i32>} : memref<36x384xbf16, #tpu.memory_space<vmem>>, vector<4x384xbf16>,
      %c17_i32 = arith.constant 17 : i32
      %10 = tpu.dynamic_rotate %3 by %c17_i32 dim 1 : vector<4x384xf32>, i32 -> vector<4x384xf32>
      %11 = arith.truncf %10 : vector<4x384xf32> to vector<4x384xbf16>
      %c8 = arith.constant 8 : index
      %c0_6 = arith.constant 0 : index
      %12 = vector.load %arg5[%c8, %c0_6] : memref<36x384xbf16, #tpu.memory_space<vmem>>, vector<4x384xbf16>
      tpu.vector_store %arg5[%c8, %c0_6], %11 {strides = array<i32>} : memref<36x384xbf16, #tpu.memory_space<vmem>>, vector<4x384xbf16>,
      %c1_i32_7 = arith.constant 1 : i32
      %13 = tpu.dynamic_rotate %3 by %c1_i32_7 dim 1 : vector<4x384xf32>, i32 -> vector<4x384xf32>
      %14 = arith.truncf %13 : vector<4x384xf32> to vector<4x384xbf16>
      %c12 = arith.constant 12 : index
      %c0_8 = arith.constant 0 : index
      %15 = vector.load %arg5[%c12, %c0_8] : memref<36x384xbf16, #tpu.memory_space<vmem>>, vector<4x384xbf16>
      tpu.vector_store %arg5[%c12, %c0_8], %14 {strides = array<i32>} : memref<36x384xbf16, #tpu.memory_space<vmem>>, vector<4x384xbf16>,
      %16 = arith.truncf %3 : vector<4x384xf32> to vector<4x384xbf16>
      %c16 = arith.constant 16 : index
      %c0_9 = arith.constant 0 : index
      %17 = vector.load %arg5[%c16, %c0_9] : memref<36x384xbf16, #tpu.memory_space<vmem>>, vector<4x384xbf16>
      tpu.vector_store %arg5[%c16, %c0_9], %16 {strides = array<i32>} : memref<36x384xbf16, #tpu.memory_space<vmem>>, vector<4x384xbf16>,
      %c383_i32 = arith.constant 383 : i32
      %18 = tpu.dynamic_rotate %3 by %c383_i32 dim 1 : vector<4x384xf32>, i32 -> vector<4x384xf32>
      %19 = arith.truncf %18 : vector<4x384xf32> to vector<4x384xbf16>
      %c20 = arith.constant 20 : index
      %c0_10 = arith.constant 0 : index
      %20 = vector.load %arg5[%c20, %c0_10] : memref<36x384xbf16, #tpu.memory_space<vmem>>, vector<4x384xbf16>
      tpu.vector_store %arg5[%c20, %c0_10], %19 {strides = array<i32>} : memref<36x384xbf16, #tpu.memory_space<vmem>>, vector<4x384xbf16>,
      %c367_i32 = arith.constant 367 : i32
      %21 = tpu.dynamic_rotate %3 by %c367_i32 dim 1 : vector<4x384xf32>, i32 -> vector<4x384xf32>
      %22 = arith.truncf %21 : vector<4x384xf32> to vector<4x384xbf16>
      %c24 = arith.constant 24 : index
      %c0_11 = arith.constant 0 : index
      %23 = vector.load %arg5[%c24, %c0_11] : memref<36x384xbf16, #tpu.memory_space<vmem>>, vector<4x384xbf16>
      tpu.vector_store %arg5[%c24, %c0_11], %22 {strides = array<i32>} : memref<36x384xbf16, #tpu.memory_space<vmem>>, vector<4x384xbf16>,
      %c366_i32 = arith.constant 366 : i32
      %24 = tpu.dynamic_rotate %3 by %c366_i32 dim 1 : vector<4x384xf32>, i32 -> vector<4x384xf32>
      %25 = arith.truncf %24 : vector<4x384xf32> to vector<4x384xbf16>
      %c28 = arith.constant 28 : index
      %c0_12 = arith.constant 0 : index
      %26 = vector.load %arg5[%c28, %c0_12] : memref<36x384xbf16, #tpu.memory_space<vmem>>, vector<4x384xbf16>
      tpu.vector_store %arg5[%c28, %c0_12], %25 {strides = array<i32>} : memref<36x384xbf16, #tpu.memory_space<vmem>>, vector<4x384xbf16>,
      %c365_i32 = arith.constant 365 : i32
      %27 = tpu.dynamic_rotate %3 by %c365_i32 dim 1 : vector<4x384xf32>, i32 -> vector<4x384xf32>
      %28 = arith.truncf %27 : vector<4x384xf32> to vector<4x384xbf16>
      %c32 = arith.constant 32 : index
      %c0_13 = arith.constant 0 : index
      %29 = vector.load %arg5[%c32, %c0_13] : memref<36x384xbf16, #tpu.memory_space<vmem>>, vector<4x384xbf16>
      tpu.vector_store %arg5[%c32, %c0_13], %28 {strides = array<i32>} : memref<36x384xbf16, #tpu.memory_space<vmem>>, vector<4x384xbf16>,
      %c0_14 = arith.constant 0 : index
      %c0_15 = arith.constant 0 : index
      %30 = vector.load %arg2[%c0_14, %c0_15] : memref<128x36xbf16, #tpu.memory_space<vmem>>, vector<128x36xbf16>
      %c0_16 = arith.constant 0 : index
      %c0_17 = arith.constant 0 : index
      %31 = vector.load %arg5[%c0_16, %c0_17] : memref<36x384xbf16, #tpu.memory_space<vmem>>, vector<36x384xbf16>
      %cst = arith.constant dense<0.000000e+00> : vector<128x384xf32>
      %32 = tpu.matmul %30, %31, %cst {dimension_numbers = #tpu.dot_dimension_numbers<[1], [0], [0], [1], [0, 0, 1, 1], [], []>} : vector<128x36xbf16>, vector<36x384xbf16>, vector<128x384xf32> -> vector<128x384xf32>
      %c0_18 = arith.constant 0 : index
      %c0_19 = arith.constant 0 : index
      %33 = vector.load %arg3[%c0_18, %c0_19] : memref<128x1xf32, #tpu.memory_space<vmem>>, vector<128x1xf32>
      %34 = vector.broadcast %33 : vector<128x1xf32> to vector<128x384xf32>
      %35 = arith.addf %32, %34 : vector<128x384xf32>
      %36 = arith.truncf %35 : vector<128x384xf32> to vector<128x384xbf16>
      %c0_20 = arith.constant 0 : index
      %37 = arith.index_cast %arg6 : i32 to index
      %c0_21 = arith.constant 0 : index
      %c0_22 = arith.constant 0 : index
      %38 = vector.load %arg4[%c0_20, %37, %c0_21, %c0_22] : memref<1x8x128x384xbf16, #tpu.memory_space<vmem>>, vector<1x1x128x384xbf16>
      %39 = vector.shape_cast %38 : vector<1x1x128x384xbf16> to vector<128x384xbf16>
      %40 = vector.shape_cast %36 : vector<128x384xbf16> to vector<1x1x128x384xbf16>
      tpu.vector_store %arg4[%c0_20, %37, %c0_21, %c0_22], %40 {strides = array<i32>} : memref<1x8x128x384xbf16, #tpu.memory_space<vmem>>, vector<1x1x128x384xbf16>,
    }
    %c8_i32_0 = arith.constant 8 : i32
    return
  }
  func.func @transform_0(%arg0: i32) -> (i32, i32, i32, i32) {
    %c0_i32 = arith.constant 0 : i32
    %c0_i32_0 = arith.constant 0 : i32
    %c0_i32_1 = arith.constant 0 : i32
    %c0_i32_2 = arith.constant 0 : i32
    return %arg0, %c0_i32, %c0_i32_0, %c0_i32_1 : i32, i32, i32, i32
  }
  func.func @transform_1(%arg0: i32) -> (i32, i32) {
    %c0_i32 = arith.constant 0 : i32
    %c0_i32_0 = arith.constant 0 : i32
    %c0_i32_1 = arith.constant 0 : i32
    return %c0_i32, %c0_i32_0 : i32, i32
  }
  func.func @transform_2(%arg0: i32) -> (i32, i32) {
    %c0_i32 = arith.constant 0 : i32
    %c0_i32_0 = arith.constant 0 : i32
    %c0_i32_1 = arith.constant 0 : i32
    return %c0_i32, %c0_i32_0 : i32, i32
  }
  func.func @transform_3(%arg0: i32) -> (i32, i32, i32, i32) {
    %c0_i32 = arith.constant 0 : i32
    %c0_i32_0 = arith.constant 0 : i32
    %c0_i32_1 = arith.constant 0 : i32
    %c0_i32_2 = arith.constant 0 : i32
    return %arg0, %c0_i32, %c0_i32_0, %c0_i32_1 : i32, i32, i32, i32
  }
}

module attributes {stable_mosaic.version = 11 : i64} {
  func.func @_conv_seq_kernel(%arg0: i32, %arg1: memref<1x8x32x384xf32, #tpu.memory_space<vmem>>, %arg2: memref<128x288xbf16, #tpu.memory_space<vmem>>, %arg3: memref<128x1xf32, #tpu.memory_space<vmem>>, %arg4: memref<1x8x128x384xbf16, #tpu.memory_space<vmem>>, %arg5: memref<288x384xbf16, #tpu.memory_space<vmem>>) attributes {dimension_semantics = [#tpu.dimension_semantics<parallel>], iteration_bounds = array<i64: 2>, scalar_prefetch = 0 : i64, scratch_operands = 1 : i64, tpu.core_type = #tpu.core_type<tc>, window_params = [{transform_indices = @transform_0, window_bounds = array<i64: 1, 8, 32, 384>}, {pipeline_mode = #tpu.pipeline_mode<synchronous>, transform_indices = @transform_1, window_bounds = array<i64: 128, 288>}, {pipeline_mode = #tpu.pipeline_mode<synchronous>, transform_indices = @transform_2, window_bounds = array<i64: 128, 1>}, {transform_indices = @transform_3, window_bounds = array<i64: 1, 8, 128, 384>}]} {
    %c0_i32 = arith.constant 0 : i32
    %c8_i32 = arith.constant 8 : i32
    %0 = arith.addi %c0_i32, %c8_i32 : i32
    %c1_i32 = arith.constant 1 : i32
    scf.for %arg6 = %c0_i32 to %0 step %c1_i32  : i32 {
      %c0 = arith.constant 0 : index
      %1 = arith.index_cast %arg6 : i32 to index
      %c0_1 = arith.constant 0 : index
      %c0_2 = arith.constant 0 : index
      %2 = vector.load %arg1[%c0, %1, %c0_1, %c0_2] : memref<1x8x32x384xf32, #tpu.memory_space<vmem>>, vector<1x1x32x384xf32>
      %3 = vector.shape_cast %2 : vector<1x1x32x384xf32> to vector<32x384xf32>
      %c19_i32 = arith.constant 19 : i32
      %4 = tpu.dynamic_rotate %3 by %c19_i32 dim 1 : vector<32x384xf32>, i32 -> vector<32x384xf32>
      %5 = arith.truncf %4 : vector<32x384xf32> to vector<32x384xbf16>
      %c0_3 = arith.constant 0 : index
      %c0_4 = arith.constant 0 : index
      %6 = vector.load %arg5[%c0_3, %c0_4] : memref<288x384xbf16, #tpu.memory_space<vmem>>, vector<32x384xbf16>
      tpu.vector_store %arg5[%c0_3, %c0_4], %5 {strides = array<i32>} : memref<288x384xbf16, #tpu.memory_space<vmem>>, vector<32x384xbf16>,
      %c18_i32 = arith.constant 18 : i32
      %7 = tpu.dynamic_rotate %3 by %c18_i32 dim 1 : vector<32x384xf32>, i32 -> vector<32x384xf32>
      %8 = arith.truncf %7 : vector<32x384xf32> to vector<32x384xbf16>
      %c32 = arith.constant 32 : index
      %c0_5 = arith.constant 0 : index
      %9 = vector.load %arg5[%c32, %c0_5] : memref<288x384xbf16, #tpu.memory_space<vmem>>, vector<32x384xbf16>
      tpu.vector_store %arg5[%c32, %c0_5], %8 {strides = array<i32>} : memref<288x384xbf16, #tpu.memory_space<vmem>>, vector<32x384xbf16>,
      %c17_i32 = arith.constant 17 : i32
      %10 = tpu.dynamic_rotate %3 by %c17_i32 dim 1 : vector<32x384xf32>, i32 -> vector<32x384xf32>
      %11 = arith.truncf %10 : vector<32x384xf32> to vector<32x384xbf16>
      %c64 = arith.constant 64 : index
      %c0_6 = arith.constant 0 : index
      %12 = vector.load %arg5[%c64, %c0_6] : memref<288x384xbf16, #tpu.memory_space<vmem>>, vector<32x384xbf16>
      tpu.vector_store %arg5[%c64, %c0_6], %11 {strides = array<i32>} : memref<288x384xbf16, #tpu.memory_space<vmem>>, vector<32x384xbf16>,
      %c1_i32_7 = arith.constant 1 : i32
      %13 = tpu.dynamic_rotate %3 by %c1_i32_7 dim 1 : vector<32x384xf32>, i32 -> vector<32x384xf32>
      %14 = arith.truncf %13 : vector<32x384xf32> to vector<32x384xbf16>
      %c96 = arith.constant 96 : index
      %c0_8 = arith.constant 0 : index
      %15 = vector.load %arg5[%c96, %c0_8] : memref<288x384xbf16, #tpu.memory_space<vmem>>, vector<32x384xbf16>
      tpu.vector_store %arg5[%c96, %c0_8], %14 {strides = array<i32>} : memref<288x384xbf16, #tpu.memory_space<vmem>>, vector<32x384xbf16>,
      %16 = arith.truncf %3 : vector<32x384xf32> to vector<32x384xbf16>
      %c128 = arith.constant 128 : index
      %c0_9 = arith.constant 0 : index
      %17 = vector.load %arg5[%c128, %c0_9] : memref<288x384xbf16, #tpu.memory_space<vmem>>, vector<32x384xbf16>
      tpu.vector_store %arg5[%c128, %c0_9], %16 {strides = array<i32>} : memref<288x384xbf16, #tpu.memory_space<vmem>>, vector<32x384xbf16>,
      %c383_i32 = arith.constant 383 : i32
      %18 = tpu.dynamic_rotate %3 by %c383_i32 dim 1 : vector<32x384xf32>, i32 -> vector<32x384xf32>
      %19 = arith.truncf %18 : vector<32x384xf32> to vector<32x384xbf16>
      %c160 = arith.constant 160 : index
      %c0_10 = arith.constant 0 : index
      %20 = vector.load %arg5[%c160, %c0_10] : memref<288x384xbf16, #tpu.memory_space<vmem>>, vector<32x384xbf16>
      tpu.vector_store %arg5[%c160, %c0_10], %19 {strides = array<i32>} : memref<288x384xbf16, #tpu.memory_space<vmem>>, vector<32x384xbf16>,
      %c367_i32 = arith.constant 367 : i32
      %21 = tpu.dynamic_rotate %3 by %c367_i32 dim 1 : vector<32x384xf32>, i32 -> vector<32x384xf32>
      %22 = arith.truncf %21 : vector<32x384xf32> to vector<32x384xbf16>
      %c192 = arith.constant 192 : index
      %c0_11 = arith.constant 0 : index
      %23 = vector.load %arg5[%c192, %c0_11] : memref<288x384xbf16, #tpu.memory_space<vmem>>, vector<32x384xbf16>
      tpu.vector_store %arg5[%c192, %c0_11], %22 {strides = array<i32>} : memref<288x384xbf16, #tpu.memory_space<vmem>>, vector<32x384xbf16>,
      %c366_i32 = arith.constant 366 : i32
      %24 = tpu.dynamic_rotate %3 by %c366_i32 dim 1 : vector<32x384xf32>, i32 -> vector<32x384xf32>
      %25 = arith.truncf %24 : vector<32x384xf32> to vector<32x384xbf16>
      %c224 = arith.constant 224 : index
      %c0_12 = arith.constant 0 : index
      %26 = vector.load %arg5[%c224, %c0_12] : memref<288x384xbf16, #tpu.memory_space<vmem>>, vector<32x384xbf16>
      tpu.vector_store %arg5[%c224, %c0_12], %25 {strides = array<i32>} : memref<288x384xbf16, #tpu.memory_space<vmem>>, vector<32x384xbf16>,
      %c365_i32 = arith.constant 365 : i32
      %27 = tpu.dynamic_rotate %3 by %c365_i32 dim 1 : vector<32x384xf32>, i32 -> vector<32x384xf32>
      %28 = arith.truncf %27 : vector<32x384xf32> to vector<32x384xbf16>
      %c256 = arith.constant 256 : index
      %c0_13 = arith.constant 0 : index
      %29 = vector.load %arg5[%c256, %c0_13] : memref<288x384xbf16, #tpu.memory_space<vmem>>, vector<32x384xbf16>
      tpu.vector_store %arg5[%c256, %c0_13], %28 {strides = array<i32>} : memref<288x384xbf16, #tpu.memory_space<vmem>>, vector<32x384xbf16>,
      %c0_14 = arith.constant 0 : index
      %c0_15 = arith.constant 0 : index
      %30 = vector.load %arg2[%c0_14, %c0_15] : memref<128x288xbf16, #tpu.memory_space<vmem>>, vector<128x288xbf16>
      %c0_16 = arith.constant 0 : index
      %c0_17 = arith.constant 0 : index
      %31 = vector.load %arg5[%c0_16, %c0_17] : memref<288x384xbf16, #tpu.memory_space<vmem>>, vector<288x384xbf16>
      %cst = arith.constant dense<0.000000e+00> : vector<128x384xf32>
      %32 = tpu.matmul %30, %31, %cst {dimension_numbers = #tpu.dot_dimension_numbers<[1], [0], [0], [1], [0, 0, 1, 1], [], []>} : vector<128x288xbf16>, vector<288x384xbf16>, vector<128x384xf32> -> vector<128x384xf32>
      %c0_18 = arith.constant 0 : index
      %c0_19 = arith.constant 0 : index
      %33 = vector.load %arg3[%c0_18, %c0_19] : memref<128x1xf32, #tpu.memory_space<vmem>>, vector<128x1xf32>
      %34 = vector.broadcast %33 : vector<128x1xf32> to vector<128x384xf32>
      %35 = arith.addf %32, %34 : vector<128x384xf32>
      %36 = arith.truncf %35 : vector<128x384xf32> to vector<128x384xbf16>
      %c0_20 = arith.constant 0 : index
      %37 = arith.index_cast %arg6 : i32 to index
      %c0_21 = arith.constant 0 : index
      %c0_22 = arith.constant 0 : index
      %38 = vector.load %arg4[%c0_20, %37, %c0_21, %c0_22] : memref<1x8x128x384xbf16, #tpu.memory_space<vmem>>, vector<1x1x128x384xbf16>
      %39 = vector.shape_cast %38 : vector<1x1x128x384xbf16> to vector<128x384xbf16>
      %40 = vector.shape_cast %36 : vector<128x384xbf16> to vector<1x1x128x384xbf16>
      tpu.vector_store %arg4[%c0_20, %37, %c0_21, %c0_22], %40 {strides = array<i32>} : memref<1x8x128x384xbf16, #tpu.memory_space<vmem>>, vector<1x1x128x384xbf16>,
    }
    %c8_i32_0 = arith.constant 8 : i32
    return
  }
  func.func @transform_0(%arg0: i32) -> (i32, i32, i32, i32) {
    %c0_i32 = arith.constant 0 : i32
    %c0_i32_0 = arith.constant 0 : i32
    %c0_i32_1 = arith.constant 0 : i32
    %c0_i32_2 = arith.constant 0 : i32
    return %arg0, %c0_i32, %c0_i32_0, %c0_i32_1 : i32, i32, i32, i32
  }
  func.func @transform_1(%arg0: i32) -> (i32, i32) {
    %c0_i32 = arith.constant 0 : i32
    %c0_i32_0 = arith.constant 0 : i32
    %c0_i32_1 = arith.constant 0 : i32
    return %c0_i32, %c0_i32_0 : i32, i32
  }
  func.func @transform_2(%arg0: i32) -> (i32, i32) {
    %c0_i32 = arith.constant 0 : i32
    %c0_i32_0 = arith.constant 0 : i32
    %c0_i32_1 = arith.constant 0 : i32
    return %c0_i32, %c0_i32_0 : i32, i32
  }
  func.func @transform_3(%arg0: i32) -> (i32, i32, i32, i32) {
    %c0_i32 = arith.constant 0 : i32
    %c0_i32_0 = arith.constant 0 : i32
    %c0_i32_1 = arith.constant 0 : i32
    %c0_i32_2 = arith.constant 0 : i32
    return %arg0, %c0_i32, %c0_i32_0, %c0_i32_1 : i32, i32, i32, i32
  }
}

module attributes {stable_mosaic.version = 11 : i64} {
  func.func @_lstm_seq_kernel(%arg0: i32, %arg1: memref<1x8x128x384xbf16, #tpu.memory_space<vmem>>, %arg2: memref<128x288xbf16, #tpu.memory_space<vmem>>, %arg3: memref<1x384xf32, #tpu.memory_space<vmem>>, %arg4: memref<1x8x32x384xf32, #tpu.memory_space<vmem>>, %arg5: memref<1x32x384xf32, #tpu.memory_space<vmem>>, %arg6: memref<288x384xbf16, #tpu.memory_space<vmem>>) attributes {dimension_semantics = [#tpu.dimension_semantics<parallel>], iteration_bounds = array<i64: 2>, scalar_prefetch = 0 : i64, scratch_operands = 1 : i64, tpu.core_type = #tpu.core_type<tc>, window_params = [{transform_indices = @transform_0, window_bounds = array<i64: 1, 8, 128, 384>}, {pipeline_mode = #tpu.pipeline_mode<synchronous>, transform_indices = @transform_1, window_bounds = array<i64: 128, 288>}, {pipeline_mode = #tpu.pipeline_mode<synchronous>, transform_indices = @transform_2, window_bounds = array<i64: 1, 384>}, {transform_indices = @transform_3, window_bounds = array<i64: 1, 8, 32, 384>}, {transform_indices = @transform_4, window_bounds = array<i64: 1, 32, 384>}]} {
    %cst = arith.constant 0.000000e+00 : bf16
    %0 = vector.broadcast %cst : bf16 to vector<288x384xbf16>
    %c0 = arith.constant 0 : index
    %c0_0 = arith.constant 0 : index
    %1 = vector.load %arg6[%c0, %c0_0] : memref<288x384xbf16, #tpu.memory_space<vmem>>, vector<288x384xbf16>
    tpu.vector_store %arg6[%c0, %c0_0], %0 {strides = array<i32>} : memref<288x384xbf16, #tpu.memory_space<vmem>>, vector<288x384xbf16>,
    %cst_1 = arith.constant 0.000000e+00 : f32
    %2 = vector.broadcast %cst_1 : f32 to vector<32x384xf32>
    %c0_2 = arith.constant 0 : index
    %c0_3 = arith.constant 0 : index
    %c0_4 = arith.constant 0 : index
    %3 = vector.load %arg5[%c0_2, %c0_3, %c0_4] : memref<1x32x384xf32, #tpu.memory_space<vmem>>, vector<1x32x384xf32>
    %4 = vector.shape_cast %3 : vector<1x32x384xf32> to vector<32x384xf32>
    %5 = vector.shape_cast %2 : vector<32x384xf32> to vector<1x32x384xf32>
    tpu.vector_store %arg5[%c0_2, %c0_3, %c0_4], %5 {strides = array<i32>} : memref<1x32x384xf32, #tpu.memory_space<vmem>>, vector<1x32x384xf32>,
    %c0_5 = arith.constant 0 : index
    %c0_6 = arith.constant 0 : index
    %6 = vector.load %arg3[%c0_5, %c0_6] : memref<1x384xf32, #tpu.memory_space<vmem>>, vector<1x384xf32>
    %c0_i32 = arith.constant 0 : i32
    %c8_i32 = arith.constant 8 : i32
    %7 = arith.addi %c0_i32, %c8_i32 : i32
    %c1_i32 = arith.constant 1 : i32
    scf.for %arg7 = %c0_i32 to %7 step %c1_i32  : i32 {
      %c0_8 = arith.constant 0 : index
      %c0_9 = arith.constant 0 : index
      %8 = vector.load %arg2[%c0_8, %c0_9] : memref<128x288xbf16, #tpu.memory_space<vmem>>, vector<128x288xbf16>
      %c0_10 = arith.constant 0 : index
      %c0_11 = arith.constant 0 : index
      %9 = vector.load %arg6[%c0_10, %c0_11] : memref<288x384xbf16, #tpu.memory_space<vmem>>, vector<288x384xbf16>
      %cst_12 = arith.constant dense<0.000000e+00> : vector<128x384xf32>
      %10 = tpu.matmul %8, %9, %cst_12 {dimension_numbers = #tpu.dot_dimension_numbers<[1], [0], [0], [1], [0, 0, 1, 1], [], []>} : vector<128x288xbf16>, vector<288x384xbf16>, vector<128x384xf32> -> vector<128x384xf32>
      %c0_13 = arith.constant 0 : index
      %11 = arith.index_cast %arg7 : i32 to index
      %c0_14 = arith.constant 0 : index
      %c0_15 = arith.constant 0 : index
      %12 = vector.load %arg1[%c0_13, %11, %c0_14, %c0_15] : memref<1x8x128x384xbf16, #tpu.memory_space<vmem>>, vector<1x1x128x384xbf16>
      %13 = vector.shape_cast %12 : vector<1x1x128x384xbf16> to vector<128x384xbf16>
      %14 = arith.extf %13 : vector<128x384xbf16> to vector<128x384xf32>
      %15 = arith.addf %10, %14 : vector<128x384xf32>
      %16 = vector.extract_strided_slice %15 {offsets = [0, 0], sizes = [32, 384], strides = [1, 1]} : vector<128x384xf32> to vector<32x384xf32>
      %17 = arith.negf %16 : vector<32x384xf32>
      %18 = math.exp %17 : vector<32x384xf32>
      %cst_16 = arith.constant 1.000000e+00 : f32
      %19 = vector.broadcast %cst_16 : f32 to vector<32x384xf32>
      %20 = arith.addf %19, %18 : vector<32x384xf32>
      %21 = arith.divf %19, %20 : vector<32x384xf32>
      %22 = vector.extract_strided_slice %15 {offsets = [32, 0], sizes = [32, 384], strides = [1, 1]} : vector<128x384xf32> to vector<32x384xf32>
      %23 = arith.negf %22 : vector<32x384xf32>
      %24 = math.exp %23 : vector<32x384xf32>
      %cst_17 = arith.constant 1.000000e+00 : f32
      %25 = vector.broadcast %cst_17 : f32 to vector<32x384xf32>
      %26 = arith.addf %25, %24 : vector<32x384xf32>
      %27 = arith.divf %25, %26 : vector<32x384xf32>
      %28 = vector.extract_strided_slice %15 {offsets = [64, 0], sizes = [32, 384], strides = [1, 1]} : vector<128x384xf32> to vector<32x384xf32>
      %29 = arith.negf %28 : vector<32x384xf32>
      %30 = math.exp %29 : vector<32x384xf32>
      %cst_18 = arith.constant 1.000000e+00 : f32
      %31 = vector.broadcast %cst_18 : f32 to vector<32x384xf32>
      %32 = arith.addf %31, %30 : vector<32x384xf32>
      %33 = arith.divf %31, %32 : vector<32x384xf32>
      %34 = vector.extract_strided_slice %15 {offsets = [96, 0], sizes = [32, 384], strides = [1, 1]} : vector<128x384xf32> to vector<32x384xf32>
      %35 = math.tanh %34 : vector<32x384xf32>
      %c0_19 = arith.constant 0 : index
      %c0_20 = arith.constant 0 : index
      %c0_21 = arith.constant 0 : index
      %36 = vector.load %arg5[%c0_19, %c0_20, %c0_21] : memref<1x32x384xf32, #tpu.memory_space<vmem>>, vector<1x32x384xf32>
      %37 = vector.shape_cast %36 : vector<1x32x384xf32> to vector<32x384xf32>
      %38 = arith.mulf %27, %37 : vector<32x384xf32>
      %39 = arith.mulf %21, %35 : vector<32x384xf32>
      %40 = arith.addf %38, %39 : vector<32x384xf32>
      %41 = math.tanh %40 : vector<32x384xf32>
      %42 = arith.mulf %33, %41 : vector<32x384xf32>
      %43 = vector.broadcast %6 : vector<1x384xf32> to vector<32x384xf32>
      %44 = arith.mulf %42, %43 : vector<32x384xf32>
      %c0_22 = arith.constant 0 : index
      %c0_23 = arith.constant 0 : index
      %c0_24 = arith.constant 0 : index
      %45 = vector.load %arg5[%c0_22, %c0_23, %c0_24] : memref<1x32x384xf32, #tpu.memory_space<vmem>>, vector<1x32x384xf32>
      %46 = vector.shape_cast %45 : vector<1x32x384xf32> to vector<32x384xf32>
      %47 = vector.shape_cast %40 : vector<32x384xf32> to vector<1x32x384xf32>
      tpu.vector_store %arg5[%c0_22, %c0_23, %c0_24], %47 {strides = array<i32>} : memref<1x32x384xf32, #tpu.memory_space<vmem>>, vector<1x32x384xf32>,
      %c0_25 = arith.constant 0 : index
      %48 = arith.index_cast %arg7 : i32 to index
      %c0_26 = arith.constant 0 : index
      %c0_27 = arith.constant 0 : index
      %49 = vector.load %arg4[%c0_25, %48, %c0_26, %c0_27] : memref<1x8x32x384xf32, #tpu.memory_space<vmem>>, vector<1x1x32x384xf32>
      %50 = vector.shape_cast %49 : vector<1x1x32x384xf32> to vector<32x384xf32>
      %51 = vector.shape_cast %44 : vector<32x384xf32> to vector<1x1x32x384xf32>
      tpu.vector_store %arg4[%c0_25, %48, %c0_26, %c0_27], %51 {strides = array<i32>} : memref<1x8x32x384xf32, #tpu.memory_space<vmem>>, vector<1x1x32x384xf32>,
      %c19_i32 = arith.constant 19 : i32
      %52 = tpu.dynamic_rotate %44 by %c19_i32 dim 1 : vector<32x384xf32>, i32 -> vector<32x384xf32>
      %53 = arith.truncf %52 : vector<32x384xf32> to vector<32x384xbf16>
      %c0_28 = arith.constant 0 : index
      %c0_29 = arith.constant 0 : index
      %54 = vector.load %arg6[%c0_28, %c0_29] : memref<288x384xbf16, #tpu.memory_space<vmem>>, vector<32x384xbf16>
      tpu.vector_store %arg6[%c0_28, %c0_29], %53 {strides = array<i32>} : memref<288x384xbf16, #tpu.memory_space<vmem>>, vector<32x384xbf16>,
      %c18_i32 = arith.constant 18 : i32
      %55 = tpu.dynamic_rotate %44 by %c18_i32 dim 1 : vector<32x384xf32>, i32 -> vector<32x384xf32>
      %56 = arith.truncf %55 : vector<32x384xf32> to vector<32x384xbf16>
      %c32 = arith.constant 32 : index
      %c0_30 = arith.constant 0 : index
      %57 = vector.load %arg6[%c32, %c0_30] : memref<288x384xbf16, #tpu.memory_space<vmem>>, vector<32x384xbf16>
      tpu.vector_store %arg6[%c32, %c0_30], %56 {strides = array<i32>} : memref<288x384xbf16, #tpu.memory_space<vmem>>, vector<32x384xbf16>,
      %c17_i32 = arith.constant 17 : i32
      %58 = tpu.dynamic_rotate %44 by %c17_i32 dim 1 : vector<32x384xf32>, i32 -> vector<32x384xf32>
      %59 = arith.truncf %58 : vector<32x384xf32> to vector<32x384xbf16>
      %c64 = arith.constant 64 : index
      %c0_31 = arith.constant 0 : index
      %60 = vector.load %arg6[%c64, %c0_31] : memref<288x384xbf16, #tpu.memory_space<vmem>>, vector<32x384xbf16>
      tpu.vector_store %arg6[%c64, %c0_31], %59 {strides = array<i32>} : memref<288x384xbf16, #tpu.memory_space<vmem>>, vector<32x384xbf16>,
      %c1_i32_32 = arith.constant 1 : i32
      %61 = tpu.dynamic_rotate %44 by %c1_i32_32 dim 1 : vector<32x384xf32>, i32 -> vector<32x384xf32>
      %62 = arith.truncf %61 : vector<32x384xf32> to vector<32x384xbf16>
      %c96 = arith.constant 96 : index
      %c0_33 = arith.constant 0 : index
      %63 = vector.load %arg6[%c96, %c0_33] : memref<288x384xbf16, #tpu.memory_space<vmem>>, vector<32x384xbf16>
      tpu.vector_store %arg6[%c96, %c0_33], %62 {strides = array<i32>} : memref<288x384xbf16, #tpu.memory_space<vmem>>, vector<32x384xbf16>,
      %64 = arith.truncf %44 : vector<32x384xf32> to vector<32x384xbf16>
      %c128 = arith.constant 128 : index
      %c0_34 = arith.constant 0 : index
      %65 = vector.load %arg6[%c128, %c0_34] : memref<288x384xbf16, #tpu.memory_space<vmem>>, vector<32x384xbf16>
      tpu.vector_store %arg6[%c128, %c0_34], %64 {strides = array<i32>} : memref<288x384xbf16, #tpu.memory_space<vmem>>, vector<32x384xbf16>,
      %c383_i32 = arith.constant 383 : i32
      %66 = tpu.dynamic_rotate %44 by %c383_i32 dim 1 : vector<32x384xf32>, i32 -> vector<32x384xf32>
      %67 = arith.truncf %66 : vector<32x384xf32> to vector<32x384xbf16>
      %c160 = arith.constant 160 : index
      %c0_35 = arith.constant 0 : index
      %68 = vector.load %arg6[%c160, %c0_35] : memref<288x384xbf16, #tpu.memory_space<vmem>>, vector<32x384xbf16>
      tpu.vector_store %arg6[%c160, %c0_35], %67 {strides = array<i32>} : memref<288x384xbf16, #tpu.memory_space<vmem>>, vector<32x384xbf16>,
      %c367_i32 = arith.constant 367 : i32
      %69 = tpu.dynamic_rotate %44 by %c367_i32 dim 1 : vector<32x384xf32>, i32 -> vector<32x384xf32>
      %70 = arith.truncf %69 : vector<32x384xf32> to vector<32x384xbf16>
      %c192 = arith.constant 192 : index
      %c0_36 = arith.constant 0 : index
      %71 = vector.load %arg6[%c192, %c0_36] : memref<288x384xbf16, #tpu.memory_space<vmem>>, vector<32x384xbf16>
      tpu.vector_store %arg6[%c192, %c0_36], %70 {strides = array<i32>} : memref<288x384xbf16, #tpu.memory_space<vmem>>, vector<32x384xbf16>,
      %c366_i32 = arith.constant 366 : i32
      %72 = tpu.dynamic_rotate %44 by %c366_i32 dim 1 : vector<32x384xf32>, i32 -> vector<32x384xf32>
      %73 = arith.truncf %72 : vector<32x384xf32> to vector<32x384xbf16>
      %c224 = arith.constant 224 : index
      %c0_37 = arith.constant 0 : index
      %74 = vector.load %arg6[%c224, %c0_37] : memref<288x384xbf16, #tpu.memory_space<vmem>>, vector<32x384xbf16>
      tpu.vector_store %arg6[%c224, %c0_37], %73 {strides = array<i32>} : memref<288x384xbf16, #tpu.memory_space<vmem>>, vector<32x384xbf16>,
      %c365_i32 = arith.constant 365 : i32
      %75 = tpu.dynamic_rotate %44 by %c365_i32 dim 1 : vector<32x384xf32>, i32 -> vector<32x384xf32>
      %76 = arith.truncf %75 : vector<32x384xf32> to vector<32x384xbf16>
      %c256 = arith.constant 256 : index
      %c0_38 = arith.constant 0 : index
      %77 = vector.load %arg6[%c256, %c0_38] : memref<288x384xbf16, #tpu.memory_space<vmem>>, vector<32x384xbf16>
      tpu.vector_store %arg6[%c256, %c0_38], %76 {strides = array<i32>} : memref<288x384xbf16, #tpu.memory_space<vmem>>, vector<32x384xbf16>,
    }
    %c8_i32_7 = arith.constant 8 : i32
    return
  }
  func.func @transform_0(%arg0: i32) -> (i32, i32, i32, i32) {
    %c0_i32 = arith.constant 0 : i32
    %c0_i32_0 = arith.constant 0 : i32
    %c0_i32_1 = arith.constant 0 : i32
    %c0_i32_2 = arith.constant 0 : i32
    return %arg0, %c0_i32, %c0_i32_0, %c0_i32_1 : i32, i32, i32, i32
  }
  func.func @transform_1(%arg0: i32) -> (i32, i32) {
    %c0_i32 = arith.constant 0 : i32
    %c0_i32_0 = arith.constant 0 : i32
    %c0_i32_1 = arith.constant 0 : i32
    return %c0_i32, %c0_i32_0 : i32, i32
  }
  func.func @transform_2(%arg0: i32) -> (i32, i32) {
    %c0_i32 = arith.constant 0 : i32
    %c0_i32_0 = arith.constant 0 : i32
    %c0_i32_1 = arith.constant 0 : i32
    return %c0_i32, %c0_i32_0 : i32, i32
  }
  func.func @transform_3(%arg0: i32) -> (i32, i32, i32, i32) {
    %c0_i32 = arith.constant 0 : i32
    %c0_i32_0 = arith.constant 0 : i32
    %c0_i32_1 = arith.constant 0 : i32
    %c0_i32_2 = arith.constant 0 : i32
    return %arg0, %c0_i32, %c0_i32_0, %c0_i32_1 : i32, i32, i32, i32
  }
  func.func @transform_4(%arg0: i32) -> (i32, i32, i32) {
    %c0_i32 = arith.constant 0 : i32
    %c0_i32_0 = arith.constant 0 : i32
    %c0_i32_1 = arith.constant 0 : i32
    return %arg0, %c0_i32, %c0_i32_0 : i32, i32, i32
  }
}

module attributes {stable_mosaic.version = 11 : i64} {
  func.func @_conv_seq_kernel(%arg0: i32, %arg1: memref<1x8x32x384xf32, #tpu.memory_space<vmem>>, %arg2: memref<4x288xbf16, #tpu.memory_space<vmem>>, %arg3: memref<4x1xf32, #tpu.memory_space<vmem>>, %arg4: memref<1x8x4x384xf32, #tpu.memory_space<vmem>>, %arg5: memref<288x384xbf16, #tpu.memory_space<vmem>>) attributes {dimension_semantics = [#tpu.dimension_semantics<parallel>], iteration_bounds = array<i64: 2>, scalar_prefetch = 0 : i64, scratch_operands = 1 : i64, tpu.core_type = #tpu.core_type<tc>, window_params = [{transform_indices = @transform_0, window_bounds = array<i64: 1, 8, 32, 384>}, {pipeline_mode = #tpu.pipeline_mode<synchronous>, transform_indices = @transform_1, window_bounds = array<i64: 4, 288>}, {pipeline_mode = #tpu.pipeline_mode<synchronous>, transform_indices = @transform_2, window_bounds = array<i64: 4, 1>}, {transform_indices = @transform_3, window_bounds = array<i64: 1, 8, 4, 384>}]} {
    %c0_i32 = arith.constant 0 : i32
    %c8_i32 = arith.constant 8 : i32
    %0 = arith.addi %c0_i32, %c8_i32 : i32
    %c1_i32 = arith.constant 1 : i32
    scf.for %arg6 = %c0_i32 to %0 step %c1_i32  : i32 {
      %c0 = arith.constant 0 : index
      %1 = arith.index_cast %arg6 : i32 to index
      %c0_1 = arith.constant 0 : index
      %c0_2 = arith.constant 0 : index
      %2 = vector.load %arg1[%c0, %1, %c0_1, %c0_2] : memref<1x8x32x384xf32, #tpu.memory_space<vmem>>, vector<1x1x32x384xf32>
      %3 = vector.shape_cast %2 : vector<1x1x32x384xf32> to vector<32x384xf32>
      %c19_i32 = arith.constant 19 : i32
      %4 = tpu.dynamic_rotate %3 by %c19_i32 dim 1 : vector<32x384xf32>, i32 -> vector<32x384xf32>
      %5 = arith.truncf %4 : vector<32x384xf32> to vector<32x384xbf16>
      %c0_3 = arith.constant 0 : index
      %c0_4 = arith.constant 0 : index
      %6 = vector.load %arg5[%c0_3, %c0_4] : memref<288x384xbf16, #tpu.memory_space<vmem>>, vector<32x384xbf16>
      tpu.vector_store %arg5[%c0_3, %c0_4], %5 {strides = array<i32>} : memref<288x384xbf16, #tpu.memory_space<vmem>>, vector<32x384xbf16>,
      %c18_i32 = arith.constant 18 : i32
      %7 = tpu.dynamic_rotate %3 by %c18_i32 dim 1 : vector<32x384xf32>, i32 -> vector<32x384xf32>
      %8 = arith.truncf %7 : vector<32x384xf32> to vector<32x384xbf16>
      %c32 = arith.constant 32 : index
      %c0_5 = arith.constant 0 : index
      %9 = vector.load %arg5[%c32, %c0_5] : memref<288x384xbf16, #tpu.memory_space<vmem>>, vector<32x384xbf16>
      tpu.vector_store %arg5[%c32, %c0_5], %8 {strides = array<i32>} : memref<288x384xbf16, #tpu.memory_space<vmem>>, vector<32x384xbf16>,
      %c17_i32 = arith.constant 17 : i32
      %10 = tpu.dynamic_rotate %3 by %c17_i32 dim 1 : vector<32x384xf32>, i32 -> vector<32x384xf32>
      %11 = arith.truncf %10 : vector<32x384xf32> to vector<32x384xbf16>
      %c64 = arith.constant 64 : index
      %c0_6 = arith.constant 0 : index
      %12 = vector.load %arg5[%c64, %c0_6] : memref<288x384xbf16, #tpu.memory_space<vmem>>, vector<32x384xbf16>
      tpu.vector_store %arg5[%c64, %c0_6], %11 {strides = array<i32>} : memref<288x384xbf16, #tpu.memory_space<vmem>>, vector<32x384xbf16>,
      %c1_i32_7 = arith.constant 1 : i32
      %13 = tpu.dynamic_rotate %3 by %c1_i32_7 dim 1 : vector<32x384xf32>, i32 -> vector<32x384xf32>
      %14 = arith.truncf %13 : vector<32x384xf32> to vector<32x384xbf16>
      %c96 = arith.constant 96 : index
      %c0_8 = arith.constant 0 : index
      %15 = vector.load %arg5[%c96, %c0_8] : memref<288x384xbf16, #tpu.memory_space<vmem>>, vector<32x384xbf16>
      tpu.vector_store %arg5[%c96, %c0_8], %14 {strides = array<i32>} : memref<288x384xbf16, #tpu.memory_space<vmem>>, vector<32x384xbf16>,
      %16 = arith.truncf %3 : vector<32x384xf32> to vector<32x384xbf16>
      %c128 = arith.constant 128 : index
      %c0_9 = arith.constant 0 : index
      %17 = vector.load %arg5[%c128, %c0_9] : memref<288x384xbf16, #tpu.memory_space<vmem>>, vector<32x384xbf16>
      tpu.vector_store %arg5[%c128, %c0_9], %16 {strides = array<i32>} : memref<288x384xbf16, #tpu.memory_space<vmem>>, vector<32x384xbf16>,
      %c383_i32 = arith.constant 383 : i32
      %18 = tpu.dynamic_rotate %3 by %c383_i32 dim 1 : vector<32x384xf32>, i32 -> vector<32x384xf32>
      %19 = arith.truncf %18 : vector<32x384xf32> to vector<32x384xbf16>
      %c160 = arith.constant 160 : index
      %c0_10 = arith.constant 0 : index
      %20 = vector.load %arg5[%c160, %c0_10] : memref<288x384xbf16, #tpu.memory_space<vmem>>, vector<32x384xbf16>
      tpu.vector_store %arg5[%c160, %c0_10], %19 {strides = array<i32>} : memref<288x384xbf16, #tpu.memory_space<vmem>>, vector<32x384xbf16>,
      %c367_i32 = arith.constant 367 : i32
      %21 = tpu.dynamic_rotate %3 by %c367_i32 dim 1 : vector<32x384xf32>, i32 -> vector<32x384xf32>
      %22 = arith.truncf %21 : vector<32x384xf32> to vector<32x384xbf16>
      %c192 = arith.constant 192 : index
      %c0_11 = arith.constant 0 : index
      %23 = vector.load %arg5[%c192, %c0_11] : memref<288x384xbf16, #tpu.memory_space<vmem>>, vector<32x384xbf16>
      tpu.vector_store %arg5[%c192, %c0_11], %22 {strides = array<i32>} : memref<288x384xbf16, #tpu.memory_space<vmem>>, vector<32x384xbf16>,
      %c366_i32 = arith.constant 366 : i32
      %24 = tpu.dynamic_rotate %3 by %c366_i32 dim 1 : vector<32x384xf32>, i32 -> vector<32x384xf32>
      %25 = arith.truncf %24 : vector<32x384xf32> to vector<32x384xbf16>
      %c224 = arith.constant 224 : index
      %c0_12 = arith.constant 0 : index
      %26 = vector.load %arg5[%c224, %c0_12] : memref<288x384xbf16, #tpu.memory_space<vmem>>, vector<32x384xbf16>
      tpu.vector_store %arg5[%c224, %c0_12], %25 {strides = array<i32>} : memref<288x384xbf16, #tpu.memory_space<vmem>>, vector<32x384xbf16>,
      %c365_i32 = arith.constant 365 : i32
      %27 = tpu.dynamic_rotate %3 by %c365_i32 dim 1 : vector<32x384xf32>, i32 -> vector<32x384xf32>
      %28 = arith.truncf %27 : vector<32x384xf32> to vector<32x384xbf16>
      %c256 = arith.constant 256 : index
      %c0_13 = arith.constant 0 : index
      %29 = vector.load %arg5[%c256, %c0_13] : memref<288x384xbf16, #tpu.memory_space<vmem>>, vector<32x384xbf16>
      tpu.vector_store %arg5[%c256, %c0_13], %28 {strides = array<i32>} : memref<288x384xbf16, #tpu.memory_space<vmem>>, vector<32x384xbf16>,
      %c0_14 = arith.constant 0 : index
      %c0_15 = arith.constant 0 : index
      %30 = vector.load %arg2[%c0_14, %c0_15] : memref<4x288xbf16, #tpu.memory_space<vmem>>, vector<4x288xbf16>
      %c0_16 = arith.constant 0 : index
      %c0_17 = arith.constant 0 : index
      %31 = vector.load %arg5[%c0_16, %c0_17] : memref<288x384xbf16, #tpu.memory_space<vmem>>, vector<288x384xbf16>
      %cst = arith.constant dense<0.000000e+00> : vector<4x384xf32>
      %32 = tpu.matmul %30, %31, %cst {dimension_numbers = #tpu.dot_dimension_numbers<[1], [0], [0], [1], [0, 0, 1, 1], [], []>} : vector<4x288xbf16>, vector<288x384xbf16>, vector<4x384xf32> -> vector<4x384xf32>
      %c0_18 = arith.constant 0 : index
      %c0_19 = arith.constant 0 : index
      %33 = vector.load %arg3[%c0_18, %c0_19] : memref<4x1xf32, #tpu.memory_space<vmem>>, vector<4x1xf32>
      %34 = vector.broadcast %33 : vector<4x1xf32> to vector<4x384xf32>
      %35 = arith.addf %32, %34 : vector<4x384xf32>
      %36 = arith.negf %35 : vector<4x384xf32>
      %37 = math.exp %36 : vector<4x384xf32>
      %cst_20 = arith.constant 1.000000e+00 : f32
      %38 = vector.broadcast %cst_20 : f32 to vector<4x384xf32>
      %39 = arith.addf %38, %37 : vector<4x384xf32>
      %40 = arith.divf %38, %39 : vector<4x384xf32>
      %c0_21 = arith.constant 0 : index
      %41 = arith.index_cast %arg6 : i32 to index
      %c0_22 = arith.constant 0 : index
      %c0_23 = arith.constant 0 : index
      %42 = vector.load %arg4[%c0_21, %41, %c0_22, %c0_23] : memref<1x8x4x384xf32, #tpu.memory_space<vmem>>, vector<1x1x4x384xf32>
      %43 = vector.shape_cast %42 : vector<1x1x4x384xf32> to vector<4x384xf32>
      %44 = vector.shape_cast %40 : vector<4x384xf32> to vector<1x1x4x384xf32>
      tpu.vector_store %arg4[%c0_21, %41, %c0_22, %c0_23], %44 {strides = array<i32>} : memref<1x8x4x384xf32, #tpu.memory_space<vmem>>, vector<1x1x4x384xf32>,
    }
    %c8_i32_0 = arith.constant 8 : i32
    return
  }
  func.func @transform_0(%arg0: i32) -> (i32, i32, i32, i32) {
    %c0_i32 = arith.constant 0 : i32
    %c0_i32_0 = arith.constant 0 : i32
    %c0_i32_1 = arith.constant 0 : i32
    %c0_i32_2 = arith.constant 0 : i32
    return %arg0, %c0_i32, %c0_i32_0, %c0_i32_1 : i32, i32, i32, i32
  }
  func.func @transform_1(%arg0: i32) -> (i32, i32) {
    %c0_i32 = arith.constant 0 : i32
    %c0_i32_0 = arith.constant 0 : i32
    %c0_i32_1 = arith.constant 0 : i32
    return %c0_i32, %c0_i32_0 : i32, i32
  }
  func.func @transform_2(%arg0: i32) -> (i32, i32) {
    %c0_i32 = arith.constant 0 : i32
    %c0_i32_0 = arith.constant 0 : i32
    %c0_i32_1 = arith.constant 0 : i32
    return %c0_i32, %c0_i32_0 : i32, i32
  }
  func.func @transform_3(%arg0: i32) -> (i32, i32, i32, i32) {
    %c0_i32 = arith.constant 0 : i32
    %c0_i32_0 = arith.constant 0 : i32
    %c0_i32_1 = arith.constant 0 : i32
    %c0_i32_2 = arith.constant 0 : i32
    return %arg0, %c0_i32, %c0_i32_0, %c0_i32_1 : i32, i32, i32, i32
  }
}

</mosaic_0001>

<bundles_post_ra>
// kernel: convlstm_forward.5
= control target key start
LH: loop header
LB: loop body
LE: loop exit
PB: predicated region body
PF: predicated region fallthrough
CT: control target
= control target key end

     0   :  { %s1438_s12 = smov 0   ;;  %s1710_s0 = inlined_call_operand.vmem [shape: f32[2,8,4,384], index: 0, kind: input, shape index: {}]   ;;  %s1711_s1 = inlined_call_operand.vmem [shape: bf16[128,36], index: 1, kind: input, shape index: {}]   ;;  %s1712_s2 = inlined_call_operand.vmem [shape: f32[128,1], index: 2, kind: input, shape index: {}]   ;;  %s1713_s3 = inlined_call_operand.vmem [shape: bf16[2,8,128,384], index: 3, kind: output, shape index: {}]  }
   0x1 LB: > { %s1117_s13 = sadd.s32 4294967295, %s1403_s12   ;;  %p1121_p0 = scmp.ge.s32.totalorder %s1403_s12, 1  ;;  %s1403_s12 = sphi %s1438_s12, %s13_s12  }
   0x2   : > { %p137_p1 = scmp.lt.s32.totalorder %s1403_s12, 3 }
   0x4   : > { %p138_p2 = pnand %p1121_p0, %p137_p1 }
   0x5   : > { %p161_p3 = scmp.lt.s32.totalorder (!%p138_p2), %s1117_s13, 1  ;;  %s1456_s22 = smov (!%p138_p2), 0  }
   0x6   : > { %141 = sbr.rel (%p138_p2) target bundleno = 444 (0x1bc), region = 32 }
   0xd   : > { %s1715_s13 = smov (!%p161_p3, %s1117_s13), 1 }
   0xe   : > { %s1304_s14 = smul.u32 96, %s1715_s13 }
   0xf   : > { %s1305_s15 = smul.u32 1536, %s1715_s13 }
  0x10   : > { %s1449_s18 = scalar_lea.vmem %s1710_s0, %s1304_s14 }
  0x11   : > { %s1454_s21 = scalar_lea.vmem %s1713_s3, %s1305_s15 }
  0x12 LB: >> { %s1212_s23 = smul.u32 12, %s1407_s22  ;;  %s1409_s25 = smov 1   ;;  %v1417_v6 = vmov 0   ;;  %v438_v7 = vld [vmem:[%s1712_s2 + $0x8] sm:$0xff]  ;;  %v437_v8 = vld [vmem:[%s1712_s2] sm:$0xff]  ;;  %v439_v9 = vld [vmem:[%s1712_s2 + $0x10] sm:$0xff]  ;;  %v192_v23 = vlaneseq  ;;  %s1407_s22 = sphi %s1456_s22, %s177_s22  }
  0x13   : >> { %s1410_s26 = smov 18   ;;  %s1411_s27 = smov 19   ;;  %680 = vmatprep.mubr.bf16.mxu0 %v1417_v6  ;;  %740 = vmatprep.mubr.bf16.mxu1 %v1417_v6  ;;  %v440_v10 = vld [vmem:[%s1712_s2 + $0x18] sm:$0xff]  ;;  %v441_v11 = vld [vmem:[%s1712_s2 + $0x20] sm:$0xff]  ;;  %v442_v12 = vld [vmem:[%s1712_s2 + $0x28] sm:$0xff]  ;;  %vm638_vm8 = vcmask 1041408  }
  0x14   : >> { %s180_s24 = scalar_lea.vmem %s1449_s18, %s1212_s23  ;;  %s1412_s28 = smov 17   ;;  %1372 = vset.pattern.permute.xlu1 %v1417_v6  ;;  %1371 = vset.pattern.permute.xlu0 %v1417_v6  ;;  %v443_v13 = vld [vmem:[%s1712_s2 + $0x30] sm:$0xff]  ;;  %v444_v14 = vld [vmem:[%s1712_s2 + $0x38] sm:$0xff]  ;;  %v445_v15 = vld [vmem:[%s1712_s2 + $0x40] sm:$0xff]  ;;  %v1515_v26 = vand.u32 127, %v192_v23  ;;  %vm613_vm9 = vcmask 293888  }
  0x15   : >> { %v182_v0 = vld [vmem:[%s180_s24 + $0x8] sm:$0xf]  ;;  %v181_v1 = vld [vmem:[%s180_s24] sm:$0xff]  ;;  %s1413_s29 = smov 127   ;;  %s1414_s30 = smov 110   ;;  %v447_v17 = vld [vmem:[%s1712_s2 + $0x50] sm:$0xff] }
  0x16   : >> { %269 = vrot.lane.b32.xlu1 %v182_v0, %s1409_s25  ;;  %217 = vrot.lane.b32.xlu0 %v182_v0, %s1410_s26  ;;  %v184_v2 = vcombine.high %v181_v1, %v181_v1  ;;  %v1222_v5 = vpack.c.bf16 %v182_v0, %v182_v0  ;;  %s1415_s4 = smov 111   ;;  %s1416_s5 = smov 109   ;;  %v446_v16 = vld [vmem:[%s1712_s2 + $0x48] sm:$0xff]  ;;  %v448_v18 = vld [vmem:[%s1712_s2 + $0x58] sm:$0xff]  ;;  %vm219_vm0 = vcmp.lt.s32.totalorder %v1515_v26, 18  ;;  %vm271_vm1 = vcmp.lt.s32.totalorder %v1515_v26, 1 }
  0x17   : >> { %v449_v19 = vld [vmem:[%s1712_s2 + $0x60] sm:$0xff]  ;;  %v450_v20 = vld [vmem:[%s1712_s2 + $0x68] sm:$0xff]  ;;  %v451_v21 = vld [vmem:[%s1712_s2 + $0x70] sm:$0xff]  ;;  %vm194_vm2 = vcmp.lt.s32.totalorder %v1515_v26, 19  ;;  %vm246_vm3 = vcmp.lt.s32.totalorder %v1515_v26, 17  ;;  %vm313_vm4 = vcmp.lt.s32.totalorder %v1515_v26, 127 }
  0x18   : >> { %v1331_v3 = vpack.i.bf16 %v184_v2, %v181_v1  ;;  %v1221_v4 = vpack.c.bf16 %v184_v2, %v181_v1  ;;  %306 = vst [vmem:[#allocation2 + $0x20] sm:$0x3] %v1222_v5  ;;  %v452_v22 = vld [vmem:[%s1712_s2 + $0x78] sm:$0xff]  ;;  %vm365_vm5 = vcmp.lt.s32.totalorder %v1515_v26, 110  ;;  %vm340_vm6 = vcmp.lt.s32.totalorder %v1515_v26, 111  ;;  %s1263_s8 = smul.u32 192, %s1407_s22 }
  0x19   : >> { %vm392_vm7 = vcmp.lt.s32.totalorder %v1515_v26, 109  ;;  %s177_s22 = sadd.s32 1, %s1407_s22  }
  0x1a   : >> { %190 = vrot.lane.b32.xlu1 %v182_v0, %s1411_s27  ;;  %1332 = vrot.lane.b32.xlu0 %v1331_v3, %s1410_s26  ;;  %305 = vst [vmem:[#allocation2 + $0x18] sm:$0x33] %v1221_v4  ;;  %s1622_s9 = scalar_lea.vmem %s1454_s21, %s1263_s8  ;;  %p174_p4 = scmp.ge.s32.totalorder %s177_s22, 8  }
  0x1e   : >> { %1337 = vrot.lane.b32.xlu1 %v1331_v3, %s1409_s25  ;;  %1342 = vrot.lane.b32.xlu0 %v1331_v3, %s1411_s27 }
  0x22   : >> { %1347 = vrot.lane.b32.xlu0 %v1331_v3, %s1412_s28  ;;  %244 = vrot.lane.b32.xlu1 %v182_v0, %s1412_s28 }
  0x26   : >> { %1352 = vrot.lane.b32.xlu0 %v1331_v3, %s1413_s29  ;;  %311 = vrot.lane.b32.xlu1 %v182_v0, %s1413_s29 }
  0x2a   : >> { %1357 = vrot.lane.b32.xlu0 %v1331_v3, %s1414_s30  ;;  %363 = vrot.lane.b32.xlu1 %v182_v0, %s1414_s30 }
  0x2e   : >> { %1362 = vrot.lane.b32.xlu0 %v1331_v3, %s1415_s4  ;;  %338 = vrot.lane.b32.xlu1 %v182_v0, %s1415_s4 }
  0x32   : >> { %1367 = vrot.lane.b32.xlu0 %v1331_v3, %s1416_s5  ;;  %390 = vrot.lane.b32.xlu1 %v182_v0, %s1416_s5 }
  0x36   : >> { %460 = vperm.xlu1 %1372, %v438_v7   ;;  %455 = vperm.xlu0 %1371, %v437_v8  }
  0x3a   : >> { %465 = vperm.xlu1 %1372, %v439_v9   ;;  %470 = vperm.xlu0 %1371, %v440_v10  }
  0x3e   : >> { %475 = vperm.xlu1 %1372, %v441_v11   ;;  %480 = vperm.xlu0 %1371, %v442_v12  }
  0x42   : >> { %485 = vperm.xlu1 %1372, %v443_v13   ;;  %490 = vperm.xlu0 %1371, %v444_v14  }
  0x46   : >> { %495 = vperm.xlu1 %1372, %v445_v15   ;;  %500 = vperm.xlu0 %1371, %v446_v16  }
  0x4a   : >> { %505 = vperm.xlu1 %1372, %v447_v17   ;;  %510 = vperm.xlu0 %1371, %v448_v18  }
  0x4e   : >> { %515 = vperm.xlu1 %1372, %v449_v19   ;;  %520 = vperm.xlu0 %1371, %v450_v20  }
  0x52   : >> { %525 = vperm.xlu1 %1372, %v451_v21   ;;  %530 = vperm.xlu0 %1371, %v452_v22  }
  0x88   : >> { %v270_v24 = vpop.permute.xlu1 %269  ;;  %v218_v25 = vpop.permute.xlu0 %217 }
  0x8c   : >> { %v191_v27 = vpop.permute.xlu1 %190  ;;  %v1333_v28 = vpop.permute.xlu0 %1332 }
  0x8d   : >> { %v1335_v29 = vunpack.i.h.bf16 %v1333_v28  ;;  %v1334_v30 = vunpack.i.l.bf16 %v1333_v28 }
  0x8f   : >> { %v220_v31 = vsel %vm219_vm0, %v1335_v29, %v218_v25  ;;  %v221_v32 = vsel %vm219_vm0, %v1334_v30, %v1335_v29  ;;  %v222_v33 = vsel %vm219_vm0, %v218_v25, %v1334_v30 }
  0x90   : >> { %v1216_v34 = vpack.c.bf16 %v220_v31, %v220_v31  ;;  %v1215_v35 = vpack.c.bf16 %v221_v32, %v222_v33  ;;  %v1338_v36 = vpop.permute.xlu1 %1337  ;;  %v1343_v37 = vpop.permute.xlu0 %1342 }
  0x91   : >> { %v1340_v38 = vunpack.i.h.bf16 %v1338_v36  ;;  %v1339_v39 = vunpack.i.l.bf16 %v1338_v36  ;;  %v1345_v40 = vunpack.i.h.bf16 %v1343_v37  ;;  %v1344_v41 = vunpack.i.l.bf16 %v1343_v37 }
  0x92   : >> { %v235_v42 = vrot.slane %v1216_v34, 6  ;;  %v234_v43 = vrot.slane %v1215_v35, 6 }
  0x93   : >> { %v272_v44 = vsel %vm271_vm1, %v1340_v38, %v270_v24  ;;  %v273_v45 = vsel %vm271_vm1, %v1339_v39, %v1340_v38  ;;  %v274_v46 = vsel %vm271_vm1, %v270_v24, %v1339_v39  ;;  %v195_v47 = vsel %vm194_vm2, %v1345_v40, %v191_v27 }
  0x94   : >> { %239 = vst [vmem:[#allocation2 + $0x8] sm:$0xc] %v235_v42  ;;  %238 = vst [vmem:[#allocation2] sm:$0xcc] %v234_v43  ;;  %v1220_v48 = vpack.c.bf16 %v272_v44, %v272_v44  ;;  %v1219_v49 = vpack.c.bf16 %v273_v45, %v274_v46  ;;  %v1214_v50 = vpack.c.bf16 %v195_v47, %v195_v47  ;;  %v1348_v52 = vpop.permute.xlu0 %1347  ;;  %v245_v53 = vpop.permute.xlu1 %244 }
  0x95   : >> { %v196_v51 = vsel %vm194_vm2, %v1344_v41, %v1345_v40  ;;  %v197_v54 = vsel %vm194_vm2, %v191_v27, %v1344_v41  ;;  %v1350_v55 = vunpack.i.h.bf16 %v1348_v52  ;;  %v1349_v56 = vunpack.i.l.bf16 %v1348_v52  ;;  %v1384_v52 = vld [vmem:[%s1711_s1 + $0x30] sm:$0xff]  }
  0x96   : >> { %v287_v57 = vrot.slane %v1220_v48, 6  ;;  %v286_v58 = vrot.slane %v1219_v49, 6  ;;  %212 = vst [vmem:[#allocation2 + $0x8] sm:$0x3] %v1214_v50  ;;  %v1213_v59 = vpack.c.bf16 %v196_v51, %v197_v54  ;;  %v1383_v51 = vld [vmem:[%s1711_s1] sm:$0xff]  }
  0x97   : >> { %v247_v60 = vsel %vm246_vm3, %v1350_v55, %v245_v53  ;;  %v248_v61 = vsel %vm246_vm3, %v1349_v56, %v1350_v55  ;;  %v249_v62 = vsel %vm246_vm3, %v245_v53, %v1349_v56  ;;  %v1387_v55 = vld [vmem:[%s1711_s1 + $0x8] sm:$0xff]   ;;  %v1388_v56 = vld [vmem:[%s1711_s1 + $0x38] sm:$0xff]  }
  0x98   : >> { %291 = vst [vmem:[#allocation2 + $0x14] sm:$0xc] %v287_v57  ;;  %290 = vst [vmem:[#allocation2 + $0xc] sm:$0xcc] %v286_v58  ;;  %v1217_v63 = vpack.c.bf16 %v248_v61, %v249_v62  ;;  %v1218_v0 = vpack.c.bf16 %v247_v60, %v247_v60  ;;  %v1353_v1 = vpop.permute.xlu0 %1352  ;;  %v312_v2 = vpop.permute.xlu1 %311  ;;  %v1389_v58 = vld [vmem:[%s1711_s1 + $0x10] sm:$0xff]   ;;  %v1391_v60 = vld [vmem:[%s1711_s1 + $0x20] sm:$0xff]  }
  0x99   : >> { %211 = vst [vmem:[#allocation2] sm:$0x33] %v1213_v59  ;;  %v1355_v3 = vunpack.i.h.bf16 %v1353_v1  ;;  %v1354_v4 = vunpack.i.l.bf16 %v1353_v1  ;;  %v1390_v59 = vld [vmem:[%s1711_s1 + $0x18] sm:$0xff]   ;;  %v1392_v61 = vld [vmem:[%s1711_s1 + $0x28] sm:$0xff]  }
  0x9a   : >> { %263 = vst [vmem:[#allocation2 + $0xc] sm:$0x33] %v1217_v63  ;;  %264 = vst [vmem:[#allocation2 + $0x14] sm:$0x3] %v1218_v0 }
  0x9b   : >> { %v314_v5 = vsel %vm313_vm4, %v1355_v3, %v312_v2  ;;  %v315_v7 = vsel %vm313_vm4, %v1354_v4, %v1355_v3  ;;  %v316_v8 = vsel %vm313_vm4, %v312_v2, %v1354_v4 }
  0x9c   : >> { %v1223_v9 = vpack.c.bf16 %v314_v5, %v315_v7  ;;  %v1224_v10 = vpack.c.bf16 %v316_v8, %v316_v8  ;;  %v1358_v11 = vpop.permute.xlu0 %1357  ;;  %v364_v12 = vpop.permute.xlu1 %363 }
  0x9d   : >> { %v1360_v13 = vunpack.i.h.bf16 %v1358_v11  ;;  %v1359_v14 = vunpack.i.l.bf16 %v1358_v11 }
  0x9e   : >> { %v328_v15 = vrot.slane %v1223_v9, 6  ;;  %v329_v16 = vrot.slane %v1224_v10, 6 }
  0x9f   : >> { %v366_v17 = vsel %vm365_vm5, %v1360_v13, %v364_v12  ;;  %v367_v18 = vsel %vm365_vm5, %v1359_v14, %v1360_v13  ;;  %v368_v19 = vsel %vm365_vm5, %v364_v12, %v1359_v14 }
  0xa0   : >> { %332 = vst [vmem:[#allocation2 + $0x18] sm:$0xcc] %v328_v15  ;;  %333 = vst [vmem:[#allocation2 + $0x20] sm:$0xc] %v329_v16  ;;  %v1227_v20 = vpack.c.bf16 %v366_v17, %v367_v18  ;;  %v1228_v21 = vpack.c.bf16 %v368_v19, %v368_v19  ;;  %v1363_v22 = vpop.permute.xlu0 %1362  ;;  %v339_v23 = vpop.permute.xlu1 %338 }
  0xa1   : >> { %v1365_v24 = vunpack.i.h.bf16 %v1363_v22  ;;  %v1364_v25 = vunpack.i.l.bf16 %v1363_v22  ;;  %v1374_v27 = vld [vmem:[#allocation2 + $0x4] ss:$12 sps:$4 sm:$0xff]   ;;  %v1376_v28 = vld [vmem:[#allocation2] ss:$12 sps:$4 sm:$0xff]   ;;  %v1382_v50 = vld [vmem:[#allocation2 + $0x8] ss:$12 sps:$4 sm:$0xff]  }
  0xa2   : >> { %v380_v29 = vrot.slane %v1227_v20, 6  ;;  %v381_v30 = vrot.slane %v1228_v21, 6  ;;  %648 = vmatprep.subr.bf16.mxu0 %v1374_v27  ;;  %1297 = vmatprep.subr.bf16.mxu1 %v1374_v27 }
  0xa3   : >> { %v341_v31 = vsel %vm340_vm6, %v1365_v24, %v339_v23  ;;  %v342_v32 = vsel %vm340_vm6, %v1364_v25, %v1365_v24  ;;  %v343_v33 = vsel %vm340_vm6, %v339_v23, %v1364_v25  ;;  %649 = vmatpush1.bf16.msra.mxu0 %v1376_v28  ;;  %1300 = vmatpush1.bf16.msra.mxu1 %v1376_v28 }
  0xa4   : >> { %384 = vst [vmem:[#allocation2 + $0x24] sm:$0xcc] %v380_v29  ;;  %385 = vst [vmem:[#allocation2 + $0x2c] sm:$0xc] %v381_v30  ;;  %v1225_v34 = vpack.c.bf16 %v341_v31, %v342_v32  ;;  %v1226_v35 = vpack.c.bf16 %v343_v33, %v343_v33  ;;  %v1368_v36 = vpop.permute.xlu0 %1367  ;;  %v391_v37 = vpop.permute.xlu1 %390 }
  0xa5   : >> { %v1370_v38 = vunpack.i.h.bf16 %v1368_v36  ;;  %v1369_v39 = vunpack.i.l.bf16 %v1368_v36 }
  0xa6   : >> { %357 = vst [vmem:[#allocation2 + $0x24] sm:$0x33] %v1225_v34  ;;  %358 = vst [vmem:[#allocation2 + $0x2c] sm:$0x3] %v1226_v35 }
  0xa7   : >> { %v393_v40 = vsel %vm392_vm7, %v1370_v38, %v391_v37  ;;  %v394_v41 = vsel %vm392_vm7, %v1369_v39, %v1370_v38  ;;  %v395_v42 = vsel %vm392_vm7, %v391_v37, %v1369_v39 }
  0xa8   : >> { %v1229_v43 = vpack.c.bf16 %v393_v40, %v394_v41  ;;  %v1230_v44 = vpack.c.bf16 %v395_v42, %v395_v42 }
  0xaa   : >> { %409 = vst [vmem:[#allocation2 + $0x30] sm:$0x33] %v1229_v43  ;;  %410 = vst [vmem:[#allocation2 + $0x38] sm:$0x3] %v1230_v44 }
  0xad   : >> { %v1377_v45 = vld [vmem:[#allocation2 + $0x1c] ss:$12 sps:$4 sm:$0xff]   ;;  %v1379_v46 = vld [vmem:[#allocation2 + $0x18] ss:$12 sps:$4 sm:$0xff]   ;;  %v1385_v53 = vld [vmem:[#allocation2 + $0x20] ss:$12 sps:$4 sm:$0xff]  }
  0xae   : >> { %650 = vmatprep.subr.bf16.mxu0 %v1377_v45  ;;  %1298 = vmatprep.subr.bf16.mxu1 %v1377_v45 }
  0xaf   : >> { %651 = vmatpush1.bf16.msra.mxu0 %v1379_v46  ;;  %1301 = vmatpush1.bf16.msra.mxu1 %v1379_v46 }
  0xb1   : >> { %v435_v47 = vld [vmem:[#allocation2 + $0x30] sm:$0x33]  ;;  %v1386_v54 = vld [vmem:[#allocation2 + $0x38] ss:$0 sps:$4 sm:$0x33]  }
  0xb2   : >> { %v1158_v26 = vcombine.high %v435_v47, %v435_v47  ;;  %v1157_v48 = vcombine.low %v435_v47, %v435_v47  ;;  %v646_v57 = vsel %vm638_vm8, %v1386_v54, 0 }
  0xb4   : >> { %1160 = vmatprep.subr.msk.bf16.mxu0 %vm638_vm8, %v1158_v26  ;;  %1299 = vmatprep.subr.msk.bf16.mxu1 %vm638_vm8, %v1158_v26  ;;  %v640_v49 = vsel %vm638_vm8, %v1157_v48, 0 }
  0xb5   : >> { %653 = vmatpush1.bf16.msra.mxu0 %v640_v49  ;;  %1302 = vmatpush1.bf16.msra.mxu1 %v640_v49  ;;  %v1588_v62 = vpop.permute.xlu1 %460  ;;  %v1590_v63 = vpop.permute.xlu0 %455 }
  0xb6   : >> { %1275 = vmatprep.subr.bf16.mxu1 %v1382_v50 }
  0xb8   : >> { %1161 = vmatmul.mubr.msk.bf16.vlgmr.msra.gmra.mrb[0].mxu0 %vm613_vm9, %v1383_v51  ;;  %1167 = vmatmul.mubr.msk.bf16.vlgmr.msra.gmra.mrb[0].mxu1 %vm613_vm9, %v1384_v52 }
  0xb9   : >> { %1276 = vmatpush3.bf16.msra.mxu1 %v1382_v50  ;;  %690 = vmatprep.mubr.bf16.mxu0 %v1417_v6  ;;  %v1592_v0 = vpop.permute.xlu1 %465  ;;  %v1594_v1 = vpop.permute.xlu0 %470 }
  0xba   : >> { %1277 = vmatprep.subr.bf16.mxu1 %v1385_v53  ;;  %750 = vmatprep.mubr.bf16.mxu1 %v1417_v6 }
  0xbd   : >> { %1278 = vmatpush3.bf16.msra.mxu1 %v1385_v53  ;;  %v1596_v2 = vpop.permute.xlu1 %475  ;;  %v1598_v3 = vpop.permute.xlu0 %480 }
  0xbe   : >> { %1303 = vmatprep.subr.msk.bf16.mxu1 %vm638_vm8, %v1386_v54 }
  0xc0   : >> { %1162 = vmatmul.mubr.msk.bf16.gmra.mrb[4].mxu0 %vm613_vm9, %v1387_v55  ;;  %1168 = vmatmul.mubr.msk.bf16.gmra.mrb[4].mxu1 %vm613_vm9, %v1388_v56 }
  0xc1   : >> { %1280 = vmatpush3.bf16.msra.mxu1 %v646_v57  ;;  %700 = vmatprep.mubr.bf16.mxu0 %v1417_v6  ;;  %v1602_v4 = vpop.permute.xlu0 %490 }
  0xc2   : >> { %1281 = vmatprep.mubr.msk.bf16.mxu1 %vm613_vm9, %v1383_v51 }
  0xc5   : >> { %v1606_v7 = vpop.permute.xlu0 %500 }
  0xc8   : >> { %1163 = vmatmul.mubr.msk.bf16.gmra.mrb[8].mxu0 %vm613_vm9, %v1389_v58  ;;  %1282 = vmatmul.mubr.msk.bf16.vlgmr.msra.gmra.mrb[8].mxu1 %vm613_vm9, %v1387_v55 }
  0xc9   : >> { %710 = vmatprep.mubr.bf16.mxu0 %v1417_v6  ;;  %1285 = vmatprep.mubr.msk.bf16.mxu1 %vm613_vm9, %v1389_v58  ;;  %v1610_v9 = vpop.permute.xlu0 %510 }
  0xcd   : >> { %v1615_v11 = vpop.permute.xlu0 %520 }
  0xd0   : >> { %1164 = vmatmul.mubr.msk.bf16.gmra.mrb[12].mxu0 %vm613_vm9, %v1390_v59  ;;  %1286 = vmatmul.mubr.msk.bf16.gmra.mrb[12].mxu1 %vm613_vm9, %v1390_v59 }
  0xd1   : >> { %720 = vmatprep.mubr.bf16.mxu0 %v1417_v6  ;;  %1289 = vmatprep.mubr.msk.bf16.mxu1 %vm613_vm9, %v1391_v60  ;;  %v1632_v34 = vpop.permute.xlu0 %530 }
  0xd8   : >> { %1165 = vmatmul.mubr.msk.bf16.gmra.mrb[16].mxu0 %vm613_vm9, %v1391_v60  ;;  %1290 = vmatmul.mubr.msk.bf16.gmra.mrb[16].mxu1 %vm613_vm9, %v1392_v61 }
  0xd9   : >> { %730 = vmatprep.mubr.bf16.mxu0 %v1417_v6  ;;  %1293 = vmatprep.mubr.msk.bf16.mxu1 %vm613_vm9, %v1384_v52  ;;  %v1600_v6 = vpop.permute.xlu1 %485 }
  0xdd   : >> { %v1604_v5 = vpop.permute.xlu1 %495 }
  0xe0   : >> { %1166 = vmatmul.mubr.msk.bf16.gmra.mrb[20].mxu0 %vm613_vm9, %v1392_v61  ;;  %1294 = vmatmul.mubr.msk.bf16.gmra.mrb[20].mxu1 %vm613_vm9, %v1388_v56 }
  0xe1   : >> { %v1608_v8 = vpop.permute.xlu1 %505 }
  0xe5   : >> { %v1612_v10 = vpop.permute.xlu1 %515 }
  0xe9   : >> { %v1630_v33 = vpop.permute.xlu1 %525 }
 0x18b   : >> { %v682_v12 = vpop.f32.mrb[0].mxu0  ;;  %v742_v13 = vpop.f32.mrb[0].mxu1 }
 0x18c   : >> { %v683_v14 = vadd.f32 %v682_v12, %v1590_v63  ;;  %v743_v15 = vadd.f32 %v742_v13, %v1612_v10  ;;  %v684_v16 = vpop.f32.mrb[1].mxu0  ;;  %v744_v17 = vpop.f32.mrb[1].mxu1 }
 0x18d   : >> { %v685_v18 = vadd.f32 %v684_v16, %v1590_v63  ;;  %v745_v19 = vadd.f32 %v744_v17, %v1612_v10  ;;  %v686_v20 = vpop.f32.mrb[2].mxu0  ;;  %v746_v21 = vpop.f32.mrb[2].mxu1 }
 0x18e   : >> { %v687_v22 = vadd.f32 %v686_v20, %v1588_v62  ;;  %v747_v23 = vadd.f32 %v746_v21, %v1615_v11  ;;  %v688_v24 = vpop.f32.mrb[3].mxu0  ;;  %v748_v25 = vpop.f32.mrb[3].mxu1 }
 0x18f   : >> { %v1231_v27 = vpack.c.bf16 %v685_v18, %v683_v14  ;;  %v1255_v28 = vpack.c.bf16 %v745_v19, %v743_v15  ;;  %v689_v29 = vadd.f32 %v688_v24, %v1588_v62  ;;  %v749_v30 = vadd.f32 %v748_v25, %v1615_v11 }
 0x191   : >> { %1021 = vst [vmem:[%s1622_s9] sm:$0xff] %v1231_v27  ;;  %1045 = vst [vmem:[%s1622_s9 + $0x90] sm:$0xff] %v1255_v28  ;;  %v1233_v31 = vpack.c.bf16 %v689_v29, %v687_v22  ;;  %v1257_v32 = vpack.c.bf16 %v749_v30, %v747_v23 }
 0x193   : >> { %1023 = vst [vmem:[%s1622_s9 + $0xc] sm:$0xff] %v1233_v31  ;;  %1047 = vst [vmem:[%s1622_s9 + $0x9c] sm:$0xff] %v1257_v32  ;;  %v692_v35 = vpop.f32.mrb[4].mxu0  ;;  %v752_v36 = vpop.f32.mrb[4].mxu1 }
 0x194   : >> { %v693_v37 = vadd.f32 %v692_v35, %v1592_v0  ;;  %v753_v38 = vadd.f32 %v752_v36, %v1630_v33  ;;  %v694_v39 = vpop.f32.mrb[5].mxu0  ;;  %v754_v40 = vpop.f32.mrb[5].mxu1 }
 0x195   : >> { %v695_v41 = vadd.f32 %v694_v39, %v1592_v0  ;;  %v755_v42 = vadd.f32 %v754_v40, %v1630_v33  ;;  %v696_v43 = vpop.f32.mrb[6].mxu0  ;;  %v756_v44 = vpop.f32.mrb[6].mxu1 }
 0x196   : >> { %v697_v45 = vadd.f32 %v696_v43, %v1594_v1  ;;  %v757_v46 = vadd.f32 %v756_v44, %v1632_v34  ;;  %v698_v47 = vpop.f32.mrb[7].mxu0  ;;  %v758_v26 = vpop.f32.mrb[7].mxu1 }
 0x197   : >> { %v1235_v48 = vpack.c.bf16 %v695_v41, %v693_v37  ;;  %v1259_v49 = vpack.c.bf16 %v755_v42, %v753_v38  ;;  %v699_v50 = vadd.f32 %v698_v47, %v1594_v1  ;;  %v759_v51 = vadd.f32 %v758_v26, %v1632_v34 }
 0x199   : >> { %1025 = vst [vmem:[%s1622_s9 + $0x18] sm:$0xff] %v1235_v48  ;;  %1049 = vst [vmem:[%s1622_s9 + $0xa8] sm:$0xff] %v1259_v49  ;;  %v1237_v52 = vpack.c.bf16 %v699_v50, %v697_v45  ;;  %v1261_v53 = vpack.c.bf16 %v759_v51, %v757_v46 }
 0x19b   : >> { %1027 = vst [vmem:[%s1622_s9 + $0x24] sm:$0xff] %v1237_v52  ;;  %1051 = vst [vmem:[%s1622_s9 + $0xb4] sm:$0xff] %v1261_v53  ;;  %v702_v54 = vpop.f32.mrb[8].mxu0  ;;  %v1283_v55 = vpop.f32.mrb[8].mxu1 }
 0x19c   : >> { %v703_v56 = vadd.f32 %v702_v54, %v1596_v2  ;;  %v804_v57 = vadd.f32 %v1283_v55, %v1592_v0  ;;  %v704_v58 = vpop.f32.mrb[9].mxu0  ;;  %v795_v59 = vpop.f32.mrb[9].mxu1 }
 0x19d   : >> { %v705_v60 = vadd.f32 %v704_v58, %v1596_v2  ;;  %v796_v61 = vadd.f32 %v795_v59, %v1590_v63  ;;  %v706_v12 = vpop.f32.mrb[10].mxu0  ;;  %v1284_v13 = vpop.f32.mrb[10].mxu1 }
 0x19e   : >> { %v1236_v14 = vpack.c.bf16 %v804_v57, %v804_v57  ;;  %v707_v15 = vadd.f32 %v706_v12, %v1598_v3  ;;  %v807_v16 = vadd.f32 %v1284_v13, %v1594_v1  ;;  %v708_v0 = vpop.f32.mrb[11].mxu0  ;;  %v798_v17 = vpop.f32.mrb[11].mxu1 }
 0x19f   : >> { %v1239_v18 = vpack.c.bf16 %v705_v60, %v703_v56  ;;  %v1232_v19 = vpack.c.bf16 %v796_v61, %v796_v61  ;;  %v709_v20 = vadd.f32 %v708_v0, %v1598_v3  ;;  %v799_v21 = vadd.f32 %v798_v17, %v1588_v62 }
 0x1a0   : >> { %1026 = vst [vmem:[%s1622_s9 + $0x20] sm:$0xf] %v1236_v14  ;;  %v1238_v63 = vpack.c.bf16 %v807_v16, %v807_v16 }
 0x1a1   : >> { %1029 = vst [vmem:[%s1622_s9 + $0x30] sm:$0xff] %v1239_v18  ;;  %1022 = vst [vmem:[%s1622_s9 + $0x8] sm:$0xf] %v1232_v19  ;;  %v1241_v22 = vpack.c.bf16 %v709_v20, %v707_v15  ;;  %v1234_v23 = vpack.c.bf16 %v799_v21, %v799_v21 }
 0x1a2   : >> { %1028 = vst [vmem:[%s1622_s9 + $0x2c] sm:$0xf] %v1238_v63 }
 0x1a3   : >> { %1031 = vst [vmem:[%s1622_s9 + $0x3c] sm:$0xff] %v1241_v22  ;;  %1024 = vst [vmem:[%s1622_s9 + $0x14] sm:$0xf] %v1234_v23  ;;  %v712_v24 = vpop.f32.mrb[12].mxu0  ;;  %v1287_v25 = vpop.f32.mrb[12].mxu1 }
 0x1a4   : >> { %v713_v1 = vadd.f32 %v712_v24, %v1600_v6  ;;  %v820_v27 = vadd.f32 %v1287_v25, %v1600_v6  ;;  %v714_v28 = vpop.f32.mrb[13].mxu0  ;;  %v811_v29 = vpop.f32.mrb[13].mxu1 }
 0x1a5   : >> { %v715_v62 = vadd.f32 %v714_v28, %v1600_v6  ;;  %v812_v30 = vadd.f32 %v811_v29, %v1596_v2  ;;  %v716_v31 = vpop.f32.mrb[14].mxu0  ;;  %v1288_v32 = vpop.f32.mrb[14].mxu1 }
 0x1a6   : >> { %v1244_v35 = vpack.c.bf16 %v820_v27, %v820_v27  ;;  %v717_v36 = vadd.f32 %v716_v31, %v1602_v4  ;;  %v823_v37 = vadd.f32 %v1288_v32, %v1602_v4  ;;  %v718_v38 = vpop.f32.mrb[15].mxu0  ;;  %v814_v39 = vpop.f32.mrb[15].mxu1 }
 0x1a7   : >> { %v1243_v40 = vpack.c.bf16 %v715_v62, %v713_v1  ;;  %v1240_v41 = vpack.c.bf16 %v812_v30, %v812_v30  ;;  %v719_v42 = vadd.f32 %v718_v38, %v1602_v4  ;;  %v815_v6 = vadd.f32 %v814_v39, %v1598_v3 }
 0x1a8   : >> { %1034 = vst [vmem:[%s1622_s9 + $0x50] sm:$0xf] %v1244_v35  ;;  %v1246_v2 = vpack.c.bf16 %v823_v37, %v823_v37 }
 0x1a9   : >> { %1033 = vst [vmem:[%s1622_s9 + $0x48] sm:$0xff] %v1243_v40  ;;  %1030 = vst [vmem:[%s1622_s9 + $0x38] sm:$0xf] %v1240_v41  ;;  %v1245_v43 = vpack.c.bf16 %v719_v42, %v717_v36  ;;  %v1242_v44 = vpack.c.bf16 %v815_v6, %v815_v6 }
 0x1aa   : >> { %1036 = vst [vmem:[%s1622_s9 + $0x5c] sm:$0xf] %v1246_v2 }
 0x1ab   : >> { %1035 = vst [vmem:[%s1622_s9 + $0x54] sm:$0xff] %v1245_v43  ;;  %1032 = vst [vmem:[%s1622_s9 + $0x44] sm:$0xf] %v1242_v44  ;;  %v722_v45 = vpop.f32.mrb[16].mxu0  ;;  %v1291_v46 = vpop.f32.mrb[16].mxu1 }
 0x1ac   : >> { %v723_v47 = vadd.f32 %v722_v45, %v1604_v5  ;;  %v836_v26 = vadd.f32 %v1291_v46, %v1608_v8  ;;  %v724_v48 = vpop.f32.mrb[17].mxu0  ;;  %v827_v4 = vpop.f32.mrb[17].mxu1 }
 0x1ad   : >> { %v725_v3 = vadd.f32 %v724_v48, %v1604_v5  ;;  %v828_v49 = vadd.f32 %v827_v4, %v1604_v5  ;;  %v726_v50 = vpop.f32.mrb[18].mxu0  ;;  %v1292_v51 = vpop.f32.mrb[18].mxu1 }
 0x1ae   : >> { %v1252_v52 = vpack.c.bf16 %v836_v26, %v836_v26  ;;  %v727_v53 = vadd.f32 %v726_v50, %v1606_v7  ;;  %v839_v54 = vadd.f32 %v1292_v51, %v1610_v9  ;;  %v728_v55 = vpop.f32.mrb[19].mxu0  ;;  %v830_v56 = vpop.f32.mrb[19].mxu1 }
 0x1af   : >> { %v1247_v57 = vpack.c.bf16 %v725_v3, %v723_v47  ;;  %v1248_v58 = vpack.c.bf16 %v828_v49, %v828_v49  ;;  %v729_v59 = vadd.f32 %v728_v55, %v1606_v7  ;;  %v831_v60 = vadd.f32 %v830_v56, %v1606_v7 }
 0x1b0   : >> { %1042 = vst [vmem:[%s1622_s9 + $0x80] sm:$0xf] %v1252_v52  ;;  %v1254_v5 = vpack.c.bf16 %v839_v54, %v839_v54 }
 0x1b1   : >> { %1037 = vst [vmem:[%s1622_s9 + $0x60] sm:$0xff] %v1247_v57  ;;  %1038 = vst [vmem:[%s1622_s9 + $0x68] sm:$0xf] %v1248_v58  ;;  %v1249_v61 = vpack.c.bf16 %v729_v59, %v727_v53  ;;  %v1250_v12 = vpack.c.bf16 %v831_v60, %v831_v60 }
 0x1b2   : >> { %1044 = vst [vmem:[%s1622_s9 + $0x8c] sm:$0xf] %v1254_v5 }
 0x1b3   : >> { %1039 = vst [vmem:[%s1622_s9 + $0x6c] sm:$0xff] %v1249_v61  ;;  %1040 = vst [vmem:[%s1622_s9 + $0x74] sm:$0xf] %v1250_v12  ;;  %v732_v13 = vpop.f32.mrb[20].mxu0  ;;  %v1295_v14 = vpop.f32.mrb[20].mxu1 }
 0x1b4   : >> { %v733_v15 = vadd.f32 %v732_v13, %v1608_v8  ;;  %v852_v16 = vadd.f32 %v1295_v14, %v1630_v33  ;;  %v734_v0 = vpop.f32.mrb[21].mxu0  ;;  %v843_v17 = vpop.f32.mrb[21].mxu1 }
 0x1b5   : >> { %v735_v7 = vadd.f32 %v734_v0, %v1608_v8  ;;  %v844_v18 = vadd.f32 %v843_v17, %v1612_v10  ;;  %v736_v19 = vpop.f32.mrb[22].mxu0  ;;  %v1296_v20 = vpop.f32.mrb[22].mxu1  ;;  %176 = sbr.rel (!%p174_p4) target bundleno = 18 (0x12), region = 71 }
 0x1b6   : >> { %v1260_v21 = vpack.c.bf16 %v852_v16, %v852_v16  ;;  %v737_v63 = vadd.f32 %v736_v19, %v1610_v9  ;;  %v855_v22 = vadd.f32 %v1296_v20, %v1632_v34  ;;  %v738_v33 = vpop.f32.mrb[23].mxu0  ;;  %v846_v23 = vpop.f32.mrb[23].mxu1 }
 0x1b7   : >> { %v1251_v24 = vpack.c.bf16 %v735_v7, %v733_v15  ;;  %v1256_v25 = vpack.c.bf16 %v844_v18, %v844_v18  ;;  %v739_v1 = vadd.f32 %v738_v33, %v1610_v9  ;;  %v847_v8 = vadd.f32 %v846_v23, %v1615_v11 }
 0x1b8   : >> { %1050 = vst [vmem:[%s1622_s9 + $0xb0] sm:$0xf] %v1260_v21  ;;  %v1262_v10 = vpack.c.bf16 %v855_v22, %v855_v22 }
 0x1b9   : >> { %1041 = vst [vmem:[%s1622_s9 + $0x78] sm:$0xff] %v1251_v24  ;;  %1046 = vst [vmem:[%s1622_s9 + $0x98] sm:$0xf] %v1256_v25  ;;  %v1253_v27 = vpack.c.bf16 %v739_v1, %v737_v63  ;;  %v1258_v28 = vpack.c.bf16 %v847_v8, %v847_v8 }
 0x1ba   : >> { %1052 = vst [vmem:[%s1622_s9 + $0xbc] sm:$0xf] %v1262_v10 }
 0x1bb   : >> { %1043 = vst [vmem:[%s1622_s9 + $0x84] sm:$0xff] %v1253_v27  ;;  %1048 = vst [vmem:[%s1622_s9 + $0xa4] sm:$0xf] %v1258_v28 }
 0x1bc PF: > { %s13_s12 = sadd.s32 1, %s1403_s12  }
 0x1bd   : > { %p10_p5 = scmp.ge.s32.totalorder %s13_s12, 4  }
 0x1bf   :  { %12 = sbr.rel (!%p10_p5) target bundleno = 1 (0x1), region = 82 }

// kernel: convlstm_forward.6
= control target key start
LH: loop header
LB: loop body
LE: loop exit
PB: predicated region body
PF: predicated region fallthrough
CT: control target
= control target key end

     0   :  { %10 = vsyncpa [#allocation4], 0  ;;  %s4109_s0 = inlined_call_operand.vmem [shape: bf16[2,8,128,384], index: 0, kind: input, shape index: {}]   ;;  %s4110_s1 = inlined_call_operand.vmem [shape: bf16[128,288], index: 1, kind: input, shape index: {}]   ;;  %s4111_s2 = inlined_call_operand.vmem [shape: f32[1,384], index: 2, kind: input, shape index: {}]   ;;  %s4112_s3 = inlined_call_operand.vmem [shape: f32[2,8,32,384], index: 3, kind: output, shape index: {0}]   ;;  %s4113_s4 = inlined_call_operand.hbm [shape: f32[2,32,384], index: 4, kind: output, shape index: {1}]  }
   0x1   :  { %12 = vsyncpa [#allocation4 + $0x1], 0  ;;  %s2786_s15 = smov 0   ;;  %s2788_s16 = smov 0  }
   0x2   :  { %s2790_s17 = smov 0   ;;  %s2792_s18 = smov 0  }
   0x3 LB: > { %s2807_s19 = sadd.s32 4294967295, %s2741_s18   ;;  %s1896_s20 = sadd.s32 4294967294, %s2741_s18   ;;  %s2741_s18 = sphi %s2792_s18, %s4190_s18   ;;  %s2737_s17 = sphi %s2790_s17, %s4189_s17   ;;  %s2733_s16 = sphi %s2788_s16, %s4188_s16   ;;  %s2729_s15 = sphi %s2786_s15, %s4187_s15  }
   0x4   : > { %s2811_s21 = sadd.s32 1, %s2741_s18   ;;  %s119_s22 = sadd.s32 1, %s2737_s17 }
   0x5   : > { %s116_s23 = ssub.s32 %s2741_s18, %s2811_s21  ;;  %p129_p0 = scmp.ne.s32.totalorder %s2737_s17, %s2733_s16 }
   0x6   : > { %p117_p1 = scmp.eq.s32.totalorder %s116_s23, 0  ;;  %p130_p2 = scmp.eq.s32.totalorder %s2807_s19, 1 }
   0x7   : > { %p135_p3 = scmp.ne.s32.totalorder %s2733_s16, %s2729_s15  ;;  %p136_p4 = scmp.eq.s32.totalorder %s1896_s20, 1 }
   0x8   : > { %s2822_s24 = scalar_select %p117_p1, %s2737_s17, %s119_s22  }
   0x9   : > { %p2824_p5 = por %p130_p2, %p129_p0  ;;  %p2828_p6 = por %p136_p4, %p135_p3 }
   0xa   : > { %p1899_p7 = scmp.ge.s32.totalorder %s2741_s18, 1  ;;  %p168_p8 = scmp.lt.s32.totalorder %s2741_s18, 3 }
   0xc   : > { %p169_p9 = pnand %p1899_p7, %p168_p8 }
   0xd   : > { %p199_p10 = scmp.lt.s32.totalorder (!%p169_p9), %s2807_s19, 1  ;;  %v2838_v0 = vld [vmem:[%s4111_s2] sm:$0x7] (!%p169_p9)  ;;  %s196_s29 = sand.u32 (!%p169_p9), 1, %s2733_s16   ;;  %v2747_v1 = vmov (!%p169_p9), 0   ;;  %v2748_v2 = vmov (!%p169_p9), 0.0  }
   0xe   : > { %172 = sbr.rel (%p169_p9) target bundleno = 700 (0x2bc), region = 32  ;;  %210 = vst [vmem:[#allocation2] sm:$0xff] (!%p169_p9), %v2747_v1  ;;  %211 = vst [vmem:[#allocation2 + $0x8] sm:$0xff] (!%p169_p9), %v2747_v1  ;;  %s2870_s20 = smov (!%p169_p9), 0  }
   0xf   : > { %212 = vst [vmem:[#allocation2 + $0x10] sm:$0xff] (!%p169_p9), %v2747_v1  ;;  %213 = vst [vmem:[#allocation2 + $0x18] sm:$0xff] (!%p169_p9), %v2747_v1  ;;  %s2147_s30 = smul.u32 (!%p169_p9), 96, %s196_s29 }
  0x10   : > { %214 = vst [vmem:[#allocation2 + $0x20] sm:$0xff] (!%p169_p9), %v2747_v1  ;;  %215 = vst [vmem:[#allocation2 + $0x28] sm:$0xff] (!%p169_p9), %v2747_v1 }
  0x11   : > { %216 = vst [vmem:[#allocation2 + $0x30] sm:$0xff] (!%p169_p9), %v2747_v1  ;;  %217 = vst [vmem:[#allocation2 + $0x38] sm:$0xff] (!%p169_p9), %v2747_v1  ;;  %s2846_s7 = scalar_lea.vmem (!%p169_p9), [#allocation3], %s2147_s30 }
  0x12   : > { %218 = vst [vmem:[#allocation2 + $0x40] sm:$0xff] (!%p169_p9), %v2747_v1  ;;  %219 = vst [vmem:[#allocation2 + $0x48] sm:$0xff] (!%p169_p9), %v2747_v1 }
  0x13   : > { %220 = vst [vmem:[#allocation2 + $0x50] sm:$0xff] (!%p169_p9), %v2747_v1  ;;  %221 = vst [vmem:[#allocation2 + $0x58] sm:$0xff] (!%p169_p9), %v2747_v1 }
  0x14   : > { %222 = vst [vmem:[#allocation2 + $0x60] sm:$0xff] (!%p169_p9), %v2747_v1  ;;  %223 = vst [vmem:[#allocation2 + $0x68] sm:$0xff] (!%p169_p9), %v2747_v1 }
  0x15   : > { %224 = vst [vmem:[#allocation2 + $0x70] sm:$0xff] %v2747_v1  ;;  %225 = vst [vmem:[#allocation2 + $0x78] sm:$0xff] %v2747_v1  ;;  %s200_s5 = scalar_select %p199_p10, %s2807_s19, 1 }
  0x16   : > { %226 = vst [vmem:[#allocation2 + $0x80] sm:$0xff] %v2747_v1  ;;  %227 = vst [vmem:[#allocation2 + $0x88] sm:$0xff] %v2747_v1 }
  0x17   : > { %228 = vst [vmem:[#allocation2 + $0x90] sm:$0xff] %v2747_v1  ;;  %229 = vst [vmem:[#allocation2 + $0x98] sm:$0xff] %v2747_v1  ;;  %s2148_s6 = smul.u32 1536, %s200_s5 }
  0x18   : > { %230 = vst [vmem:[#allocation2 + $0xa0] sm:$0xff] %v2747_v1  ;;  %231 = vst [vmem:[#allocation2 + $0xa8] sm:$0xff] %v2747_v1  ;;  %s2149_s8 = smul.u32 768, %s200_s5 }
  0x19   : > { %232 = vst [vmem:[#allocation2 + $0xb0] sm:$0xff] %v2747_v1  ;;  %233 = vst [vmem:[#allocation2 + $0xb8] sm:$0xff] %v2747_v1  ;;  %s2863_s11 = scalar_lea.vmem %s4109_s0, %s2148_s6 }
  0x1a   : > { %234 = vst [vmem:[#allocation2 + $0xc0] sm:$0xff] %v2747_v1  ;;  %235 = vst [vmem:[#allocation2 + $0xc8] sm:$0xff] %v2747_v1  ;;  %s2868_s14 = scalar_lea.vmem %s4112_s3, %s2149_s8 }
  0x1b   : > { %236 = vst [vmem:[#allocation2 + $0xd0] sm:$0xff] %v2747_v1  ;;  %237 = vst [vmem:[#allocation2 + $0xd8] sm:$0xff] %v2747_v1 }
  0x1c   : > { %238 = vst [vmem:[#allocation2 + $0xe0] sm:$0xff] %v2747_v1  ;;  %239 = vst [vmem:[#allocation2 + $0xe8] sm:$0xff] %v2747_v1 }
  0x1d   : > { %240 = vst [vmem:[#allocation2 + $0xf0] sm:$0xff] %v2747_v1  ;;  %241 = vst [vmem:[#allocation2 + $0xf8] sm:$0xff] %v2747_v1 }
  0x1e   : > { %242 = vst [vmem:[#allocation2 + $0x100] sm:$0xff] %v2747_v1  ;;  %243 = vst [vmem:[#allocation2 + $0x108] sm:$0xff] %v2747_v1 }
  0x1f   : > { %244 = vst [vmem:[#allocation2 + $0x110] sm:$0xff] %v2747_v1  ;;  %245 = vst [vmem:[#allocation2 + $0x118] sm:$0xff] %v2747_v1 }
  0x20   : > { %246 = vst [vmem:[#allocation2 + $0x120] sm:$0xff] %v2747_v1  ;;  %247 = vst [vmem:[#allocation2 + $0x128] sm:$0xff] %v2747_v1 }
  0x21   : > { %248 = vst [vmem:[#allocation2 + $0x130] sm:$0xff] %v2747_v1  ;;  %249 = vst [vmem:[#allocation2 + $0x138] sm:$0xff] %v2747_v1 }
  0x22   : > { %250 = vst [vmem:[#allocation2 + $0x140] sm:$0xff] %v2747_v1  ;;  %251 = vst [vmem:[#allocation2 + $0x148] sm:$0xff] %v2747_v1 }
  0x23   : > { %252 = vst [vmem:[#allocation2 + $0x150] sm:$0xff] %v2747_v1  ;;  %253 = vst [vmem:[#allocation2 + $0x158] sm:$0xff] %v2747_v1 }
  0x24   : > { %254 = vst [vmem:[#allocation2 + $0x160] sm:$0xff] %v2747_v1  ;;  %255 = vst [vmem:[#allocation2 + $0x168] sm:$0xff] %v2747_v1 }
  0x25   : > { %256 = vst [vmem:[#allocation2 + $0x170] sm:$0xff] %v2747_v1  ;;  %257 = vst [vmem:[#allocation2 + $0x178] sm:$0xff] %v2747_v1 }
  0x26   : > { %258 = vst [vmem:[#allocation2 + $0x180] sm:$0xff] %v2747_v1  ;;  %259 = vst [vmem:[#allocation2 + $0x188] sm:$0xff] %v2747_v1 }
  0x27   : > { %260 = vst [vmem:[#allocation2 + $0x190] sm:$0xff] %v2747_v1  ;;  %261 = vst [vmem:[#allocation2 + $0x198] sm:$0xff] %v2747_v1 }
  0x28   : > { %262 = vst [vmem:[#allocation2 + $0x1a0] sm:$0xff] %v2747_v1  ;;  %263 = vst [vmem:[#allocation2 + $0x1a8] sm:$0xff] %v2747_v1 }
  0x29   : > { %264 = vst [vmem:[%s2846_s7] sm:$0xff] %v2748_v2  ;;  %265 = vst [vmem:[%s2846_s7 + $0x8] sm:$0xff] %v2748_v2 }
  0x2a   : > { %266 = vst [vmem:[%s2846_s7 + $0x10] sm:$0xff] %v2748_v2  ;;  %267 = vst [vmem:[%s2846_s7 + $0x18] sm:$0xff] %v2748_v2 }
  0x2b   : > { %268 = vst [vmem:[%s2846_s7 + $0x20] sm:$0xff] %v2748_v2  ;;  %269 = vst [vmem:[%s2846_s7 + $0x28] sm:$0xff] %v2748_v2 }
  0x2c   : > { %270 = vst [vmem:[%s2846_s7 + $0x30] sm:$0xff] %v2748_v2  ;;  %271 = vst [vmem:[%s2846_s7 + $0x38] sm:$0xff] %v2748_v2 }
  0x2d   : > { %272 = vst [vmem:[%s2846_s7 + $0x40] sm:$0xff] %v2748_v2  ;;  %273 = vst [vmem:[%s2846_s7 + $0x48] sm:$0xff] %v2748_v2 }
  0x2e   : > { %274 = vst [vmem:[%s2846_s7 + $0x50] sm:$0xff] %v2748_v2  ;;  %275 = vst [vmem:[%s2846_s7 + $0x58] sm:$0xff] %v2748_v2 }
  0x2f LB: >> { %v316_v3 = vld [vmem:[#allocation2 + $0x8] sm:$0xff]  ;;  %v315_v5 = vld [vmem:[#allocation2] sm:$0xff]  ;;  %v318_v9 = vld [vmem:[#allocation2 + $0x18] sm:$0xff]  ;;  %v2749_v11 = vmov 0   ;;  %vm572_vm0 = vcmask 261120   ;;  %s1983_s22 = smul.u32 192, %s2745_s20  ;;  %s2745_s20 = sphi %s2870_s20, %s282_s20  }
  0x30   : >> { %v2875_v4 = vld [vmem:[#allocation2 + $0x188] sm:$0xff]  ;;  %597 = vmatprep.subr.bf16.mxu0 %v316_v3  ;;  %v2878_v6 = vld [vmem:[#allocation2 + $0x180] sm:$0xff]  ;;  %v2884_v10 = vld [vmem:[#allocation2 + $0x198] sm:$0xff]  ;;  %772 = vmatprep.mubr.bf16.mxu1 %v2749_v11  ;;  %s1984_s27 = smul.u32 96, %s2745_s20  ;;  %s2750_s30 = smov 19  }
  0x31   : >> { %2079 = vmatprep.subr.bf16.mxu1 %v2875_v4  ;;  %v319_v7 = vld [vmem:[#allocation2 + $0x20] sm:$0xff]  ;;  %598 = vmatpush1.bf16.msra.mxu0 %v315_v5  ;;  %v322_v12 = vld [vmem:[#allocation2 + $0x38] sm:$0xff]  ;;  %v341_v13 = vld [vmem:[#allocation2 + $0xd0] sm:$0xff]  ;;  %s3065_s23 = scalar_lea.vmem %s2863_s11, %s1983_s22  ;;  %s2751_s5 = smov 18  }
  0x32   : >> { %v2880_v8 = vld [vmem:[#allocation2 + $0x1a0] sm:$0xff]  ;;  %2081 = vmatpush1.bf16.msra.mxu1 %v2878_v6  ;;  %599 = vmatprep.subr.bf16.mxu0 %v319_v7  ;;  %v2890_v14 = vld [vmem:[%s4110_s1 + $0x50] ss:$12 sps:$4 sm:$0xff]   ;;  %v344_v18 = vld [vmem:[#allocation2 + $0xe8] sm:$0xff]  ;;  %s3365_s28 = scalar_lea.vmem %s2868_s14, %s1984_s27  ;;  %s2752_s6 = smov 17  }
  0x33   : >> { %2080 = vmatprep.subr.bf16.mxu1 %v2880_v8  ;;  %v321_v15 = vld [vmem:[#allocation2 + $0x30] sm:$0xff]  ;;  %v324_v19 = vld [vmem:[#allocation2 + $0x48] sm:$0xff]  ;;  %v347_v22 = vld [vmem:[#allocation2 + $0x100] sm:$0xff]  ;;  %s2753_s8 = smov 1   ;;  %s2754_s9 = smov 127  }
  0x34   : >> { %v317_v16 = vld [vmem:[#allocation2 + $0x10] sm:$0xff]  ;;  %v320_v20 = vld [vmem:[#allocation2 + $0x28] sm:$0xff]  ;;  %v327_v24 = vld [vmem:[#allocation2 + $0x60] sm:$0xff]  ;;  %s2755_s10 = smov 111   ;;  %s2756_s12 = smov 110  }
  0x35   : >> { %600 = vmatpush1.bf16.msra.mxu0 %v318_v9  ;;  %v325_v17 = vld [vmem:[#allocation2 + $0x50] sm:$0xff]  ;;  %v328_v21 = vld [vmem:[#allocation2 + $0x68] sm:$0xff]  ;;  %v323_v25 = vld [vmem:[#allocation2 + $0x40] sm:$0xff]  ;;  %s2757_s13 = smov 109   ;;  %s282_s20 = sadd.s32 1, %s2745_s20  }
  0x36   : >> { %2082 = vmatpush1.bf16.msra.mxu1 %v2884_v10  ;;  %601 = vmatprep.subr.bf16.mxu0 %v322_v12  ;;  %v2899_v23 = vld [vmem:[%s4110_s1 + $0x68] ss:$12 sps:$4 sm:$0xff]   ;;  %v331_v26 = vld [vmem:[#allocation2 + $0x80] sm:$0xff]  ;;  %v350_v27 = vld [vmem:[#allocation2 + $0x118] sm:$0xff]  ;;  %p279_p11 = scmp.ge.s32.totalorder %s282_s20, 8  }
  0x37   : >> { %1985 = vmatprep.subr.bf16.mxu1 %v341_v13  ;;  %v330_v28 = vld [vmem:[#allocation2 + $0x78] sm:$0xff]  ;;  %v353_v31 = vld [vmem:[#allocation2 + $0x130] sm:$0xff]  ;;  %v2907_v32 = vld [vmem:[%s4110_s1 + $0x80] ss:$12 sps:$4 sm:$0xff]   ;;  %s2150_s22 = smul.u32 (%p279_p11), 1536, %s2807_s19  ;;  %s2758_s19 = smov (%p279_p11), [#allocation3]  }
  0x38   : >> { %v326_v29 = vld [vmem:[#allocation2 + $0x58] sm:$0xff]  ;;  %v2458_v33 = vld [vmem:[%s4110_s1 + $0x4] ss:$12 sps:$4 sm:$0xff]   ;;  %v356_v37 = vld [vmem:[#allocation2 + $0x148] sm:$0xff] }
  0x39   : >> { %1930 = vmatmul.mubr.msk.bf16.vlgmr.msra.gmra.mrb[0].mxu1 %vm572_vm0, %v2890_v14  ;;  %602 = vmatpush1.bf16.msra.mxu0 %v321_v15  ;;  %v334_v30 = vld [vmem:[#allocation2 + $0x98] sm:$0xff]  ;;  %v333_v34 = vld [vmem:[#allocation2 + $0x90] sm:$0xff]  ;;  %v336_v38 = vld [vmem:[#allocation2 + $0xa8] sm:$0xff] }
  0x3a   : >> { %1986 = vmatpush3.bf16.msra.mxu1 %v317_v16  ;;  %603 = vmatprep.subr.bf16.mxu0 %v325_v17  ;;  %v329_v35 = vld [vmem:[#allocation2 + $0x70] sm:$0xff]  ;;  %v340_v39 = vld [vmem:[#allocation2 + $0xc8] sm:$0xff]  ;;  %v359_v41 = vld [vmem:[#allocation2 + $0x160] sm:$0xff] }
  0x3b   : >> { %1987 = vmatprep.subr.bf16.mxu1 %v344_v18  ;;  %782 = vmatprep.mubr.bf16.mxu1 %v2749_v11  ;;  %v337_v36 = vld [vmem:[#allocation2 + $0xb0] sm:$0xff]  ;;  %v332_v40 = vld [vmem:[#allocation2 + $0x88] sm:$0xff]  ;;  %v2918_v42 = vld [vmem:[%s4110_s1 + $0x98] ss:$12 sps:$4 sm:$0xff]  }
  0x3c   : >> { %629 = vmatprep.mubr.bf16.mxu0 %v2458_v33  ;;  %v339_v43 = vld [vmem:[#allocation2 + $0xc0] sm:$0xff]  ;;  %v362_v46 = vld [vmem:[#allocation2 + $0x178] sm:$0xff]  ;;  %v365_v51 = vld [vmem:[#allocation2 + $0x190] sm:$0xff] }
  0x3d   : >> { %604 = vmatpush1.bf16.msra.mxu0 %v324_v19  ;;  %v343_v44 = vld [vmem:[#allocation2 + $0xe0] sm:$0xff]  ;;  %v342_v47 = vld [vmem:[#allocation2 + $0xd8] sm:$0xff]  ;;  %v345_v52 = vld [vmem:[#allocation2 + $0xf0] sm:$0xff] }
  0x3e   : >> { %1988 = vmatpush3.bf16.msra.mxu1 %v320_v20  ;;  %605 = vmatprep.subr.bf16.mxu0 %v328_v21  ;;  %v335_v45 = vld [vmem:[#allocation2 + $0xa0] sm:$0xff]  ;;  %v346_v48 = vld [vmem:[#allocation2 + $0xf8] sm:$0xff]  ;;  %v349_v53 = vld [vmem:[#allocation2 + $0x110] sm:$0xff] }
  0x3f   : >> { %1989 = vmatprep.subr.bf16.mxu1 %v347_v22  ;;  %v338_v49 = vld [vmem:[#allocation2 + $0xb8] sm:$0xff]  ;;  %v348_v54 = vld [vmem:[#allocation2 + $0x108] sm:$0xff]  ;;  %v351_v57 = vld [vmem:[#allocation2 + $0x120] sm:$0xff] }
  0x40   : >> { %v2926_v50 = vld [vmem:[%s4110_s1 + $0xb0] ss:$12 sps:$4 sm:$0xff]   ;;  %v352_v55 = vld [vmem:[#allocation2 + $0x128] sm:$0xff]  ;;  %v355_v59 = vld [vmem:[#allocation2 + $0x140] sm:$0xff] }
  0x41   : >> { %1931 = vmatmul.mubr.msk.bf16.gmra.mrb[4].mxu1 %vm572_vm0, %v2899_v23  ;;  %606 = vmatpush1.bf16.msra.mxu0 %v327_v24  ;;  %v2456_v56 = vld [vmem:[%s4110_s1] ss:$12 sps:$4 sm:$0xff]   ;;  %v2459_v58 = vld [vmem:[%s4110_s1 + $0x1c] ss:$12 sps:$4 sm:$0xff]   ;;  %v2461_v63 = vld [vmem:[%s4110_s1 + $0x18] ss:$12 sps:$4 sm:$0xff]  }
  0x42   : >> { %1990 = vmatpush3.bf16.msra.mxu1 %v323_v25  ;;  %607 = vmatprep.subr.bf16.mxu0 %v331_v26  ;;  %v368_v60 = vld [vmem:[#allocation2 + $0x1a8] sm:$0xff]  ;;  %v354_v61 = vld [vmem:[#allocation2 + $0x138] sm:$0xff]  ;;  %v2462_v1 = vld [vmem:[%s4110_s1 + $0x34] ss:$12 sps:$4 sm:$0xff]  }
  0x43   : >> { %792 = vmatprep.mubr.bf16.mxu1 %v2749_v11  ;;  %1991 = vmatprep.subr.bf16.mxu1 %v350_v27  ;;  %v358_v62 = vld [vmem:[#allocation2 + $0x158] sm:$0xff]  ;;  %v357_v2 = vld [vmem:[#allocation2 + $0x150] sm:$0xff]  ;;  %v360_v5 = vld [vmem:[#allocation2 + $0x168] sm:$0xff] }
  0x44   : >> { %v361_v3 = vld [vmem:[#allocation2 + $0x170] sm:$0xff]  ;;  %v2465_v9 = vld [vmem:[%s4110_s1 + $0x4c] ss:$12 sps:$4 sm:$0xff]  }
  0x45   : >> { %608 = vmatpush1.bf16.msra.mxu0 %v330_v28  ;;  %v2464_v7 = vld [vmem:[%s4110_s1 + $0x30] ss:$12 sps:$4 sm:$0xff]   ;;  %v2467_v12 = vld [vmem:[%s4110_s1 + $0x48] ss:$12 sps:$4 sm:$0xff]   ;;  %v2477_v16 = vld [vmem:[%s4110_s1 + $0xac] ss:$12 sps:$4 sm:$0xff]  }
  0x46   : >> { %1992 = vmatpush3.bf16.msra.mxu1 %v326_v29  ;;  %609 = vmatprep.subr.bf16.mxu0 %v334_v30  ;;  %v2468_v13 = vld [vmem:[%s4110_s1 + $0x64] ss:$12 sps:$4 sm:$0xff]   ;;  %v2479_v17 = vld [vmem:[%s4110_s1 + $0xa8] ss:$12 sps:$4 sm:$0xff]   ;;  %v2481_v19 = vld [vmem:[%s4110_s1 + $0x20] ss:$12 sps:$4 sm:$0xff]  }
  0x47   : >> { %1993 = vmatprep.subr.bf16.mxu1 %v353_v31  ;;  %v2476_v15 = vld [vmem:[%s4110_s1 + $0x90] ss:$12 sps:$4 sm:$0xff]   ;;  %v2480_v18 = vld [vmem:[%s4110_s1 + $0x8] ss:$12 sps:$4 sm:$0xff]   ;;  %v2482_v20 = vld [vmem:[%s4110_s1 + $0x38] ss:$12 sps:$4 sm:$0xff]  }
  0x49   : >> { %1932 = vmatmul.mubr.msk.bf16.gmra.mrb[8].mxu1 %vm572_vm0, %v2907_v32  ;;  %610 = vmatpush1.bf16.msra.mxu0 %v333_v34 }
  0x4a   : >> { %1994 = vmatpush3.bf16.msra.mxu1 %v329_v35  ;;  %611 = vmatprep.subr.bf16.mxu0 %v337_v36 }
  0x4b   : >> { %802 = vmatprep.mubr.bf16.mxu1 %v2749_v11  ;;  %1995 = vmatprep.subr.bf16.mxu1 %v356_v37 }
  0x4d   : >> { %612 = vmatpush1.bf16.msra.mxu0 %v336_v38 }
  0x4e   : >> { %1996 = vmatpush3.bf16.msra.mxu1 %v332_v40  ;;  %613 = vmatprep.subr.bf16.mxu0 %v340_v39 }
  0x4f   : >> { %1997 = vmatprep.subr.bf16.mxu1 %v359_v41 }
  0x51   : >> { %1933 = vmatmul.mubr.msk.bf16.gmra.mrb[12].mxu1 %vm572_vm0, %v2918_v42  ;;  %614 = vmatpush1.bf16.msra.mxu0 %v339_v43 }
  0x52   : >> { %812 = vmatprep.mubr.bf16.mxu1 %v2749_v11  ;;  %615 = vmatprep.subr.bf16.mxu0 %v343_v44 }
  0x53   : >> { %1998 = vmatpush3.bf16.msra.mxu1 %v335_v45 }
  0x54   : >> { %1999 = vmatprep.subr.bf16.mxu1 %v362_v46 }
  0x55   : >> { %616 = vmatpush1.bf16.msra.mxu0 %v342_v47 }
  0x56   : >> { %617 = vmatprep.subr.bf16.mxu0 %v346_v48 }
  0x57   : >> { %2000 = vmatpush3.bf16.msra.mxu1 %v338_v49 }
  0x58   : >> { %2059 = vmatprep.subr.bf16.mxu1 %v365_v51 }
  0x59   : >> { %1934 = vmatmul.mubr.msk.bf16.gmra.mrb[16].mxu1 %vm572_vm0, %v2926_v50  ;;  %618 = vmatpush1.bf16.msra.mxu0 %v345_v52 }
  0x5a   : >> { %855 = vmatprep.mubr.bf16.mxu1 %v2458_v33  ;;  %619 = vmatprep.subr.bf16.mxu0 %v349_v53 }
  0x5d   : >> { %620 = vmatpush1.bf16.msra.mxu0 %v348_v54 }
  0x5e   : >> { %621 = vmatprep.subr.bf16.mxu0 %v352_v55 }
  0x61   : >> { %856 = vmatmul.mubr.bf16.vlgmr.msra.gmra.mrb[20].mxu1 %v2456_v56  ;;  %622 = vmatpush1.bf16.msra.mxu0 %v351_v57 }
  0x62   : >> { %2060 = vmatpush3.bf16.msra.mxu1 %v365_v51  ;;  %623 = vmatprep.subr.bf16.mxu0 %v355_v59 }
  0x63   : >> { %863 = vmatprep.mubr.bf16.mxu1 %v2459_v58  ;;  %2061 = vmatprep.subr.bf16.mxu1 %v368_v60 }
  0x65   : >> { %624 = vmatpush1.bf16.msra.mxu0 %v354_v61 }
  0x66   : >> { %2062 = vmatpush3.bf16.msra.mxu1 %v368_v60  ;;  %625 = vmatprep.subr.bf16.mxu0 %v358_v62 }
  0x69   : >> { %864 = vmatmul.mubr.bf16.gmra.mrb[24].mxu1 %v2461_v63  ;;  %626 = vmatpush1.bf16.msra.mxu0 %v357_v2 }
  0x6a   : >> { %871 = vmatprep.mubr.bf16.mxu1 %v2462_v1  ;;  %627 = vmatprep.subr.bf16.mxu0 %v361_v3 }
  0x6d   : >> { %628 = vmatpush1.bf16.msra.mxu0 %v360_v5  ;;  %v384_v5 = vld [vmem:[%s3065_s23 + $0x48] sm:$0xff] }
  0x6e   : >> { %710 = vmatprep.subr.bf16.mxu0 %v2875_v4  ;;  %v2470_v4 = vld [vmem:[%s4110_s1 + $0x60] ss:$12 sps:$4 sm:$0xff]  }
  0x70   : >> { %630 = vmatmul.mubr.bf16.vlgmr.msra.gmra.mrb[0].mxu0 %v2456_v56 }
  0x71   : >> { %872 = vmatmul.mubr.bf16.gmra.mrb[28].mxu1 %v2464_v7  ;;  %639 = vmatprep.mubr.bf16.mxu0 %v2459_v58 }
  0x72   : >> { %879 = vmatprep.mubr.bf16.mxu1 %v2465_v9  ;;  %711 = vmatpush1.bf16.msra.mxu0 %v2878_v6  ;;  %v2471_v6 = vld [vmem:[%s4110_s1 + $0x7c] ss:$12 sps:$4 sm:$0xff]  }
  0x73   : >> { %712 = vmatprep.subr.bf16.mxu0 %v2880_v8  ;;  %v2473_v8 = vld [vmem:[%s4110_s1 + $0x78] ss:$12 sps:$4 sm:$0xff]  }
  0x76   : >> { %713 = vmatpush1.bf16.msra.mxu0 %v2884_v10  ;;  %v2474_v10 = vld [vmem:[%s4110_s1 + $0x94] ss:$12 sps:$4 sm:$0xff]  }
  0x78   : >> { %640 = vmatmul.mubr.bf16.gmra.mrb[4].mxu0 %v2461_v63 }
  0x79   : >> { %880 = vmatmul.mubr.bf16.gmra.mrb[32].mxu1 %v2467_v12  ;;  %649 = vmatprep.mubr.bf16.mxu0 %v2462_v1 }
  0x7a   : >> { %887 = vmatprep.mubr.bf16.mxu1 %v2468_v13 }
  0x80   : >> { %650 = vmatmul.mubr.bf16.gmra.mrb[8].mxu0 %v2464_v7 }
  0x81   : >> { %888 = vmatmul.mubr.bf16.gmra.mrb[36].mxu1 %v2470_v4  ;;  %659 = vmatprep.mubr.bf16.mxu0 %v2465_v9 }
  0x82   : >> { %895 = vmatprep.mubr.bf16.mxu1 %v2471_v6 }
  0x88   : >> { %660 = vmatmul.mubr.bf16.gmra.mrb[12].mxu0 %v2467_v12  ;;  %v386_v12 = vld [vmem:[%s3065_s23 + $0x54] sm:$0xff] }
  0x89   : >> { %896 = vmatmul.mubr.bf16.gmra.mrb[40].mxu1 %v2473_v8  ;;  %669 = vmatprep.mubr.bf16.mxu0 %v2468_v13  ;;  %v422_v13 = vunpack.c.l.bf16 %v384_v5 }
  0x8a   : >> { %903 = vmatprep.mubr.bf16.mxu1 %v2474_v10 }
  0x90   : >> { %670 = vmatmul.mubr.bf16.gmra.mrb[16].mxu0 %v2470_v4  ;;  %v423_v4 = vunpack.c.h.bf16 %v384_v5 }
  0x91   : >> { %904 = vmatmul.mubr.bf16.gmra.mrb[44].mxu1 %v2476_v15  ;;  %679 = vmatprep.mubr.bf16.mxu0 %v2471_v6  ;;  %v425_v6 = vunpack.c.l.bf16 %v386_v12 }
  0x92   : >> { %911 = vmatprep.mubr.bf16.mxu1 %v2477_v16 }
  0x98   : >> { %680 = vmatmul.mubr.bf16.gmra.mrb[20].mxu0 %v2473_v8 }
  0x99   : >> { %912 = vmatmul.mubr.bf16.gmra.mrb[48].mxu1 %v2479_v17  ;;  %689 = vmatprep.mubr.bf16.mxu0 %v2474_v10 }
  0x9a   : >> { %2063 = vmatprep.mubr.msk.bf16.mxu1 %vm572_vm0, %v2480_v18 }
  0xa0   : >> { %690 = vmatmul.mubr.bf16.gmra.mrb[24].mxu0 %v2476_v15  ;;  %v426_v15 = vunpack.c.h.bf16 %v386_v12 }
  0xa1   : >> { %2064 = vmatmul.mubr.msk.bf16.vlgmr.msra.gmra.mrb[52].mxu1 %vm572_vm0, %v2481_v19  ;;  %699 = vmatprep.mubr.bf16.mxu0 %v2477_v16 }
  0xa2   : >> { %2067 = vmatprep.mubr.msk.bf16.mxu1 %vm572_vm0, %v2482_v20 }
  0xa8   : >> { %700 = vmatmul.mubr.bf16.gmra.mrb[28].mxu0 %v2479_v17 }
  0xa9   : >> { %2068 = vmatmul.mubr.msk.bf16.gmra.mrb[56].mxu1 %vm572_vm0, %v2890_v14  ;;  %742 = vmatprep.mubr.bf16.mxu0 %v2749_v11 }
  0xaa   : >> { %2071 = vmatprep.mubr.msk.bf16.mxu1 %vm572_vm0, %v2899_v23 }
  0xb0   : >> { %1927 = vmatmul.mubr.msk.bf16.vlgmr.msra.gmra.mrb[0].mxu0 %vm572_vm0, %v2480_v18 }
  0xb1   : >> { %2072 = vmatmul.mubr.msk.bf16.gmra.mrb[60].mxu1 %vm572_vm0, %v2907_v32  ;;  %752 = vmatprep.mubr.bf16.mxu0 %v2749_v11 }
  0xb2   : >> { %2075 = vmatprep.mubr.msk.bf16.mxu1 %vm572_vm0, %v2918_v42 }
  0xb8   : >> { %1928 = vmatmul.mubr.msk.bf16.gmra.mrb[4].mxu0 %vm572_vm0, %v2481_v19 }
  0xb9   : >> { %2076 = vmatmul.mubr.msk.bf16.gmra.mrb[64].mxu1 %vm572_vm0, %v2926_v50  ;;  %762 = vmatprep.mubr.bf16.mxu0 %v2749_v11 }
  0xc0   : >> { %1929 = vmatmul.mubr.msk.bf16.gmra.mrb[8].mxu0 %vm572_vm0, %v2482_v20 }
 0x10c   : >> { %v3007_v14 = vpop.f32.mrb[0].mxu1 }
 0x10d   : >> { %v3009_v21 = vpop.f32.mrb[1].mxu1 }
 0x10e   : >> { %v3011_v22 = vpop.f32.mrb[2].mxu1 }
 0x10f   : >> { %v3013_v23 = vpop.f32.mrb[3].mxu1 }
 0x114   : >> { %v3015_v24 = vpop.f32.mrb[4].mxu1 }
 0x115   : >> { %v3017_v25 = vpop.f32.mrb[5].mxu1 }
 0x116   : >> { %v3019_v26 = vpop.f32.mrb[6].mxu1 }
 0x117   : >> { %v3021_v27 = vpop.f32.mrb[7].mxu1 }
 0x11c   : >> { %v3023_v28 = vpop.f32.mrb[8].mxu1 }
 0x11d   : >> { %v3025_v11 = vpop.f32.mrb[9].mxu1 }
 0x11e   : >> { %v3027_v29 = vpop.f32.mrb[10].mxu1 }
 0x11f   : >> { %v3029_v30 = vpop.f32.mrb[11].mxu1 }
 0x124   : >> { %v3031_v31 = vpop.f32.mrb[12].mxu1 }
 0x125   : >> { %v3033_v32 = vpop.f32.mrb[13].mxu1 }
 0x126   : >> { %v3035_v33 = vpop.f32.mrb[14].mxu1 }
 0x127   : >> { %v3037_v34 = vpop.f32.mrb[15].mxu1 }
 0x12c   : >> { %v3039_v35 = vpop.f32.mrb[16].mxu1 }
 0x12d   : >> { %v3041_v36 = vpop.f32.mrb[17].mxu1 }
 0x12e   : >> { %v3043_v37 = vpop.f32.mrb[18].mxu1 }
 0x12f   : >> { %v3045_v38 = vpop.f32.mrb[19].mxu1 }
 0x134   : >> { %v2001_v39 = vpop.f32.mrb[20].mxu1 }
 0x135   : >> { %v2002_v40 = vpop.f32.mrb[21].mxu1 }
 0x136   : >> { %v3047_v41 = vadd.f32 %v2002_v40, %v2001_v39  ;;  %v2004_v42 = vpop.f32.mrb[22].mxu1 }
 0x137   : >> { %v2005_v43 = vpop.f32.mrb[23].mxu1 }
 0x138   : >> { %v3049_v44 = vadd.f32 %v2005_v43, %v2004_v42  ;;  %v388_v42 = vld [vmem:[%s3065_s23 + $0x60] sm:$0xff] }
 0x13c   : >> { %v2007_v45 = vpop.f32.mrb[24].mxu1 }
 0x13d   : >> { %v2008_v46 = vpop.f32.mrb[25].mxu1 }
 0x13e   : >> { %v3051_v47 = vadd.f32 %v2008_v46, %v2007_v45  ;;  %v2010_v48 = vpop.f32.mrb[26].mxu1 }
 0x13f   : >> { %v2011_v49 = vpop.f32.mrb[27].mxu1 }
 0x140   : >> { %v3053_v50 = vadd.f32 %v2011_v49, %v2010_v48 }
 0x144   : >> { %v2013_v51 = vpop.f32.mrb[28].mxu1 }
 0x145   : >> { %v2014_v52 = vpop.f32.mrb[29].mxu1 }
 0x146   : >> { %v3055_v53 = vadd.f32 %v2014_v52, %v2013_v51  ;;  %v2016_v54 = vpop.f32.mrb[30].mxu1 }
 0x147   : >> { %v2017_v55 = vpop.f32.mrb[31].mxu1 }
 0x148   : >> { %v3057_v56 = vadd.f32 %v2017_v55, %v2016_v54  ;;  %v390_v54 = vld [vmem:[%s3065_s23 + $0x6c] sm:$0xff] }
 0x14c   : >> { %v2019_v57 = vpop.f32.mrb[32].mxu1 }
 0x14d   : >> { %v2020_v58 = vpop.f32.mrb[33].mxu1 }
 0x14e   : >> { %v3059_v59 = vadd.f32 %v2020_v58, %v2019_v57  ;;  %v2022_v60 = vpop.f32.mrb[34].mxu1  ;;  %v428_v57 = vunpack.c.l.bf16 %v388_v42 }
 0x14f   : >> { %v2023_v61 = vpop.f32.mrb[35].mxu1 }
 0x150   : >> { %v3061_v62 = vadd.f32 %v2023_v61, %v2022_v60  ;;  %v429_v60 = vunpack.c.h.bf16 %v388_v42  ;;  %v431_v61 = vunpack.c.l.bf16 %v390_v54  ;;  %v3092_v42 = vld [vmem:[%s3065_s23 + $0x8] ss:$24 sps:$4 sm:$0xff]  }
 0x154   : >> { %v2025_v63 = vpop.f32.mrb[36].mxu1 }
 0x155   : >> { %v2026_v1 = vpop.f32.mrb[37].mxu1 }
 0x156   : >> { %v3067_v2 = vadd.f32 %v2026_v1, %v2025_v63  ;;  %v2028_v3 = vpop.f32.mrb[38].mxu1 }
 0x157   : >> { %v2029_v7 = vpop.f32.mrb[39].mxu1 }
 0x158   : >> { %v3070_v9 = vadd.f32 %v2029_v7, %v2028_v3 }
 0x15b   : >> { %v661_v8 = vpop.f32.mrb[12].mxu0 }
 0x15c   : >> { %v2031_v10 = vpop.f32.mrb[40].mxu1  ;;  %v662_v16 = vadd.f32 %v661_v8, %v422_v13  ;;  %v663_v17 = vpop.f32.mrb[13].mxu0  ;;  %v392_v8 = vld [vmem:[%s3065_s23 + $0x78] sm:$0xff] }
 0x15d   : >> { %v2032_v18 = vpop.f32.mrb[41].mxu1  ;;  %v664_v19 = vadd.f32 %v663_v17, %v423_v4  ;;  %v665_v39 = vpop.f32.mrb[14].mxu0 }
 0x15e   : >> { %v3073_v20 = vadd.f32 %v2032_v18, %v2031_v10  ;;  %v2034_v40 = vpop.f32.mrb[42].mxu1  ;;  %v775_v43 = vadd.f32 %v3007_v14, %v662_v16  ;;  %v666_v45 = vadd.f32 %v665_v39, %v425_v6  ;;  %v667_v46 = vpop.f32.mrb[15].mxu0  ;;  %v432_v14 = vunpack.c.h.bf16 %v390_v54 }
 0x15f   : >> { %v2035_v48 = vpop.f32.mrb[43].mxu1  ;;  %v777_v49 = vadd.f32 %v3009_v21, %v664_v19  ;;  %v668_v51 = vadd.f32 %v667_v46, %v426_v15  ;;  %v434_v46 = vunpack.c.l.bf16 %v392_v8  ;;  %v406_v54 = vunpack.c.l.bf16 %v3092_v42 }
 0x160   : >> { %v3078_v52 = vadd.f32 %v2035_v48, %v2034_v40  ;;  %v779_v55 = vadd.f32 %v3011_v22, %v666_v45  ;;  %v1961_v3 = vmul.f32 -1.442695, %v775_v43  ;;  %v394_v40 = vld [vmem:[%s3065_s23 + $0x84] sm:$0xff] }
 0x161   : >> { %v781_v58 = vadd.f32 %v3013_v23, %v668_v51  ;;  %v1962_v12 = vmul.f32 -1.442695, %v777_v49  ;;  %v435_v49 = vunpack.c.h.bf16 %v392_v8  ;;  %v437_v51 = vunpack.c.l.bf16 %v394_v40  ;;  %v3117_v8 = vld [vmem:[%s3065_s23 + $0x9c] sm:$0xff] }
 0x162   : >> { %v1964_v23 = vmul.f32 -1.442695, %v779_v55  ;;  %2483 = vpow2.f32 %v1961_v3  ;;  %v3104_v55 = vld [vmem:[%s3065_s23 + $0x44] ss:$24 sps:$4 sm:$0xff]  }
 0x163   : >> { %v671_v63 = vpop.f32.mrb[16].mxu0  ;;  %v1965_v43 = vmul.f32 -1.442695, %v781_v58  ;;  %2485 = vpow2.f32 %v1962_v12 }
 0x164   : >> { %v2037_v1 = vpop.f32.mrb[44].mxu1  ;;  %v672_v5 = vadd.f32 %v671_v63, %v428_v57  ;;  %v673_v7 = vpop.f32.mrb[17].mxu0  ;;  %2487 = vpow2.f32 %v1964_v23  ;;  %v3110_v63 = vld [vmem:[%s3065_s23 + $0x68] ss:$24 sps:$4 sm:$0xff]  }
 0x165   : >> { %v2038_v21 = vpop.f32.mrb[45].mxu1  ;;  %v674_v13 = vadd.f32 %v673_v7, %v429_v60  ;;  %v675_v22 = vpop.f32.mrb[18].mxu0  ;;  %v412_v60 = vunpack.c.h.bf16 %v3092_v42  ;;  %2489 = vpow2.f32 %v1965_v43  ;;  %v396_v7 = vld [vmem:[%s3065_s23 + $0x90] sm:$0xff] }
 0x166   : >> { %v3083_v4 = vadd.f32 %v2038_v21, %v2037_v1  ;;  %v2040_v6 = vpop.f32.mrb[46].mxu1  ;;  %v785_v10 = vadd.f32 %v3015_v24, %v672_v5  ;;  %v676_v15 = vadd.f32 %v675_v22, %v431_v61  ;;  %v677_v16 = vpop.f32.mrb[19].mxu0  ;;  %v3096_v24 = vld [vmem:[%s3065_s23 + $0x14] ss:$24 sps:$4 sm:$0xff]  }
 0x167   : >> { %v2041_v17 = vpop.f32.mrb[47].mxu1  ;;  %v787_v18 = vadd.f32 %v3017_v25, %v674_v13  ;;  %v678_v19 = vadd.f32 %v677_v16, %v432_v14  ;;  %v3100_v25 = vld [vmem:[%s3065_s23 + $0x38] ss:$24 sps:$4 sm:$0xff]  }
 0x168   : >> { %v3088_v39 = vadd.f32 %v2041_v17, %v2040_v6  ;;  %v789_v45 = vadd.f32 %v3019_v26, %v676_v15  ;;  %v438_v26 = vunpack.c.h.bf16 %v394_v40  ;;  %v1967_v1 = vmul.f32 -1.442695, %v785_v10 }
 0x169   : >> { %v791_v48 = vadd.f32 %v3021_v27, %v678_v19 }
 0x16a   : >> { %2491 = vpow2.f32 %v1967_v1 }
 0x16b   : >> { %v681_v57 = vpop.f32.mrb[20].mxu0 }
 0x16c   : >> { %v2043_v58 = vpop.f32.mrb[48].mxu1  ;;  %v682_v14 = vadd.f32 %v681_v57, %v434_v46  ;;  %v683_v3 = vpop.f32.mrb[21].mxu0  ;;  %v441_v57 = vunpack.c.h.bf16 %v396_v7 }
 0x16d   : >> { %v2044_v5 = vpop.f32.mrb[49].mxu1  ;;  %v684_v12 = vadd.f32 %v683_v3, %v435_v49  ;;  %v685_v22 = vpop.f32.mrb[22].mxu0  ;;  %v440_v49 = vunpack.c.l.bf16 %v396_v7  ;;  %v1968_v3 = vmul.f32 -1.442695, %v787_v18  ;;  %v866_v7 = vadd.f32 %v3051_v47, %v412_v60 }
 0x16e   : >> { %v3114_v13 = vadd.f32 %v2044_v5, %v2043_v58  ;;  %v2046_v6 = vpop.f32.mrb[50].mxu1  ;;  %v795_v10 = vadd.f32 %v3023_v28, %v682_v14  ;;  %v686_v16 = vadd.f32 %v685_v22, %v437_v51  ;;  %v687_v17 = vpop.f32.mrb[23].mxu0  ;;  %v3126_v58 = vld [vmem:[%s3065_s23 + $0xa8] sm:$0xff]  ;;  %v443_v28 = vunpack.c.l.bf16 %v3117_v8  ;;  %v3131_v51 = vld [vmem:[%s3065_s23 + $0xb4] sm:$0xff] }
 0x16f   : >> { %v2047_v19 = vpop.f32.mrb[51].mxu1  ;;  %v797_v43 = vadd.f32 %v3025_v11, %v684_v12  ;;  %v688_v46 = vadd.f32 %v687_v17, %v438_v26  ;;  %v1970_v14 = vmul.f32 -1.442695, %v789_v45  ;;  %v444_v11 = vunpack.c.h.bf16 %v3117_v8  ;;  %v2484_v26 = vpop.eup %2483 }
 0x170   : >> { %v799_v5 = vadd.f32 %v3027_v29, %v686_v16  ;;  %v3134_v15 = vadd.f32 %v2047_v19, %v2046_v6  ;;  %v1973_v12 = vmul.f32 -1.442695, %v795_v10  ;;  %v446_v1 = vunpack.c.l.bf16 %v3126_v58  ;;  %v2486_v29 = vpop.eup %2485 }
 0x171   : >> { %v801_v22 = vadd.f32 %v3029_v30, %v688_v46  ;;  %v447_v18 = vunpack.c.h.bf16 %v3126_v58  ;;  %v1974_v16 = vmul.f32 -1.442695, %v797_v43  ;;  %v858_v45 = vadd.f32 %v3047_v41, %v406_v54  ;;  %v2488_v19 = vpop.eup %2487 }
 0x172   : >> { %v449_v30 = vunpack.c.l.bf16 %v3131_v51  ;;  %v450_v6 = vunpack.c.h.bf16 %v3131_v51  ;;  %2493 = vpow2.f32 %v1968_v3  ;;  %v1971_v8 = vmul.f32 -1.442695, %v791_v48  ;;  %v2490_v27 = vpop.eup %2489 }
 0x173   : >> { %v691_v17 = vpop.f32.mrb[24].mxu0  ;;  %v1131_v40 = vadd.f32 1.0, %v2484_v26  ;;  %2495 = vpow2.f32 %v1970_v14  ;;  %v1132_v61 = vadd.f32 1.0, %v2486_v29  ;;  %v4148_v54 = vunpack.c.h.bf16 %v3096_v24 }
 0x174   : >> { %v2065_v42 = vpop.f32.mrb[52].mxu1  ;;  %v692_v10 = vadd.f32 %v691_v17, %v440_v49  ;;  %v693_v47 = vpop.f32.mrb[25].mxu0  ;;  %2497 = vpow2.f32 %v1973_v12 }
 0x175   : >> { %v963_v46 = vadd.f32 %v2065_v42, %v866_v7  ;;  %v954_v60 = vpop.f32.mrb[53].mxu1  ;;  %v694_v58 = vadd.f32 %v693_v47, %v441_v57  ;;  %v695_v43 = vpop.f32.mrb[26].mxu0  ;;  %v869_v3 = vadd.f32 %v3053_v50, %v4148_v54  ;;  %v1134_v42 = vadd.f32 1.0, %v2488_v19 }
 0x176   : >> { %v955_v21 = vadd.f32 %v954_v60, %v858_v45  ;;  %v2066_v23 = vpop.f32.mrb[54].mxu1  ;;  %v805_v41 = vadd.f32 %v3031_v31, %v692_v10  ;;  %v697_v48 = vpop.f32.mrb[27].mxu0  ;;  %2499 = vpow2.f32 %v1974_v16  ;;  %v4149_v57 = vunpack.c.l.bf16 %v3096_v24 }
 0x177   : >> { %v957_v49 = vpop.f32.mrb[55].mxu1  ;;  %v807_v26 = vadd.f32 %v3033_v32, %v694_v58  ;;  %2501 = vpow2.f32 %v1971_v8  ;;  %v1951_v7 = vmul.f32 -1.442695, %v963_v46  ;;  %v696_v29 = vadd.f32 %v695_v43, %v443_v28  ;;  %v2492_v10 = vpop.eup %2491  ;;  %v3164_v46 = vld [vmem:[%s3065_s23 + $0x74] ss:$24 sps:$4 sm:$0xff]  }
 0x178   : >> { %v861_v14 = vadd.f32 %v3049_v44, %v4149_v57  ;;  %v966_v12 = vadd.f32 %v2066_v23, %v869_v3  ;;  %2503 = vrcp.f32 %v1131_v40  ;;  %v1135_v31 = vadd.f32 1.0, %v2490_v27 }
 0x179   : >> { %v698_v17 = vadd.f32 %v697_v48, %v444_v11  ;;  %2505 = vrcp.f32 %v1132_v61  ;;  %v1945_v50 = vmul.f32 -1.442695, %v955_v21  ;;  %v3152_v16 = vadd.f32 %v3035_v33, %v696_v29 }
 0x17a   : >> { %v958_v45 = vadd.f32 %v957_v49, %v861_v14  ;;  %v4150_v32 = vunpack.c.h.bf16 %v3100_v25  ;;  %2507 = vrcp.f32 %v1134_v42  ;;  %v1976_v44 = vmul.f32 -1.442695, %v799_v5 }
 0x17b   : >> { %v3158_v28 = vadd.f32 %v3037_v34, %v698_v17  ;;  %v701_v23 = vpop.f32.mrb[28].mxu0  ;;  %v4151_v40 = vunpack.c.l.bf16 %v3100_v25  ;;  %v1977_v11 = vmul.f32 -1.442695, %v801_v22  ;;  %2509 = vpow2.f32 %v1951_v7 }
 0x17c   : >> { %v882_v24 = vadd.f32 %v3059_v59, %v4150_v32  ;;  %v2069_v27 = vpop.f32.mrb[56].mxu1  ;;  %v702_v21 = vadd.f32 %v701_v23, %v446_v1  ;;  %v703_v19 = vpop.f32.mrb[29].mxu0  ;;  %2511 = vrcp.f32 %v1135_v31  ;;  %v1197_v59 = vadd.f32 1.0, %v2492_v10  ;;  %v401_v23 = vld [vmem:[%s3065_s23 + $0x98] ss:$24 sps:$4 sm:$0xff]  }
 0x17d   : >> { %v874_v61 = vadd.f32 %v3055_v53, %v4151_v40  ;;  %v970_v8 = vpop.f32.mrb[57].mxu1  ;;  %v704_v5 = vadd.f32 %v703_v19, %v447_v18  ;;  %v705_v34 = vpop.f32.mrb[30].mxu0  ;;  %2513 = vpow2.f32 %v1945_v50  ;;  %v4152_v25 = vunpack.c.h.bf16 %v3104_v55 }
 0x17e   : >> { %v979_v33 = vadd.f32 %v2069_v27, %v882_v24  ;;  %v2070_v60 = vpop.f32.mrb[58].mxu1  ;;  %v3168_v58 = vpop.eup %2493  ;;  %v3171_v53 = vadd.f32 %v3039_v35, %v702_v21  ;;  %v436_v54 = vunpack.c.h.bf16 %v3110_v63  ;;  %2515 = vpow2.f32 %v1976_v44 }
 0x17f   : >> { %v3166_v47 = vadd.f32 %v970_v8, %v874_v61  ;;  %v885_v22 = vadd.f32 %v3061_v62, %v4152_v25  ;;  %v707_v1 = vpop.f32.mrb[31].mxu0  ;;  %v973_v43 = vpop.f32.mrb[59].mxu1  ;;  %v3180_v18 = vadd.f32 %v3041_v36, %v704_v5  ;;  %v4153_v48 = vunpack.c.l.bf16 %v3104_v55  ;;  %v3232_v25 = vld [vmem:[%s3065_s23 + $0xc] sm:$0xff] }
 0x180   : >> { %v3177_v3 = vpop.eup %2495  ;;  %v433_v35 = vunpack.c.l.bf16 %v3164_v46  ;;  %2517 = vpow2.f32 %v1977_v11  ;;  %v1954_v57 = vmul.f32 -1.442695, %v966_v12  ;;  %v706_v62 = vadd.f32 %v705_v34, %v449_v30 }
 0x181   : >> { %v877_v49 = vadd.f32 %v3057_v56, %v4153_v48  ;;  %v2498_v42 = vpop.eup %2497  ;;  %v3188_v14 = vadd.f32 %v2070_v60, %v885_v22  ;;  %2519 = vrcp.f32 %v1197_v59  ;;  %v708_v36 = vadd.f32 %v707_v1, %v450_v6  ;;  %v3207_v6 = vld [vmem:[%s3065_s23] sm:$0xff] }
 0x182   : >> { %v2500_v7 = vpop.eup %2499  ;;  %v439_v56 = vunpack.c.h.bf16 %v3164_v46  ;;  %2521 = vtanh.f32 %v805_v41  ;;  %v1948_v31 = vmul.f32 -1.442695, %v958_v45  ;;  %v3198_v12 = vadd.f32 %v3043_v37, %v706_v62  ;;  %v403_v59 = vld [vmem:[%s3065_s23 + $0xa4] ss:$24 sps:$4 sm:$0xff]  }
 0x183   : >> { %v3192_v29 = vadd.f32 %v973_v43, %v877_v49  ;;  %v3195_v55 = vpop.eup %2501  ;;  %v898_v30 = vadd.f32 %v3073_v20, %v436_v54  ;;  %v1203_v10 = vadd.f32 1.0, %v2498_v42  ;;  %2523 = vtanh.f32 %v807_v26  ;;  %v744_v50 = vpop.f32.mrb[0].mxu0 }
 0x184   : >> { %v3201_v17 = vpop.eup %2503  ;;  %v3204_v51 = vadd.f32 %v3045_v38, %v708_v36  ;;  %v2073_v32 = vpop.f32.mrb[60].mxu1  ;;  %v4154_v41 = vunpack.c.l.bf16 %v3110_v63  ;;  %v1204_v24 = vadd.f32 1.0, %v2500_v7  ;;  %2525 = vpow2.f32 %v1954_v57 }
 0x185   : >> { %v3212_v37 = vpop.eup %2505  ;;  %v3214_v20 = vadd.f32 %v2073_v32, %v898_v30  ;;  %v746_v44 = vpop.f32.mrb[1].mxu0  ;;  %2527 = vtanh.f32 %v3152_v16  ;;  %v1963_v27 = vmul.f32 -1.442695, %v979_v33  ;;  %v404_v11 = vunpack.c.l.bf16 %v3207_v6 }
 0x186   : >> { %v890_v45 = vadd.f32 %v3067_v2, %v4154_v41  ;;  %v986_v26 = vpop.f32.mrb[61].mxu1  ;;  %v3217_v38 = vpop.eup %2507  ;;  %2529 = vpow2.f32 %v1948_v31  ;;  %v901_v21 = vadd.f32 %v3078_v52, %v439_v56  ;;  %v448_v46 = vunpack.c.h.bf16 %v401_v23 }
 0x187   : >> { %v748_v63 = vpop.f32.mrb[2].mxu0  ;;  %v2074_v61 = vpop.f32.mrb[62].mxu1  ;;  %2531 = vrcp.f32 %v1203_v10  ;;  %v893_v16 = vadd.f32 %v3070_v9, %v433_v35  ;;  %v442_v33 = vunpack.c.l.bf16 %v401_v23  ;;  %v1957_v60 = vmul.f32 -1.442695, %v3166_v47 }
 0x188   : >> { %v3220_v40 = vadd.f32 %v986_v26, %v890_v45  ;;  %v2510_v2 = vpop.eup %2509  ;;  %v3224_v19 = vpop.f32.mrb[3].mxu0  ;;  %2533 = vrcp.f32 %v1204_v24  ;;  %v3234_v22 = vadd.f32 %v2074_v61, %v901_v21  ;;  %v451_v52 = vunpack.c.h.bf16 %v403_v59 }
 0x189   : >> { %v989_v8 = vpop.f32.mrb[63].mxu1  ;;  %v3227_v5 = vpop.eup %2511  ;;  %v1061_v43 = vadd.f32 1.0, %v2510_v2  ;;  %2535 = vpow2.f32 %v1963_v27  ;;  %v445_v48 = vunpack.c.l.bf16 %v403_v59  ;;  %v2083_v9 = vadd.f32 %v744_v50, %v404_v11 }
 0x18a   : >> { %v2514_v34 = vpop.eup %2513  ;;  %v3238_v54 = vadd.f32 %v989_v8, %v893_v16  ;;  %2537 = vtanh.f32 %v3158_v28  ;;  %v405_v35 = vunpack.c.h.bf16 %v3207_v6  ;;  %v914_v47 = vadd.f32 %v3114_v13, %v448_v46  ;;  %v376_v8 = vld [vmem:[%s3065_s23 + $0x18] sm:$0xff] }
 0x18b   : >> { %v3236_v1 = vpop.eup %2515  ;;  %v1055_v57 = vadd.f32 1.0, %v2514_v34  ;;  %2539 = vtanh.f32 %v3171_v53  ;;  %v407_v62 = vunpack.c.l.bf16 %v3232_v25  ;;  %v754_v7 = vpop.f32.mrb[4].mxu0  ;;  %v906_v56 = vadd.f32 %v3083_v4, %v442_v33 }
 0x18c   : >> { %v3240_v49 = vpop.eup %2517  ;;  %v2077_v36 = vpop.f32.mrb[64].mxu1  ;;  %2541 = vpow2.f32 %v1957_v60  ;;  %v1966_v28 = vmul.f32 -1.442695, %v3188_v14  ;;  %v917_v6 = vadd.f32 %v3134_v15, %v451_v52  ;;  %v909_v41 = vadd.f32 %v3088_v39, %v445_v48 }
 0x18d   : >> { %v3245_v42 = vpop.eup %2519  ;;  %v3253_v30 = vadd.f32 %v2077_v36, %v914_v47  ;;  %v3255_v10 = vpop.f32.mrb[5].mxu0  ;;  %2543 = vrcp.f32 %v1061_v43  ;;  %v1943_v14 = vmul.f32 -1.442695, %v2083_v9  ;;  %v2084_v24 = vadd.f32 %v746_v44, %v405_v35 }
 0x18e   : >> { %v3250_v31 = vpop.eup %2521  ;;  %v1002_v13 = vpop.f32.mrb[65].mxu1  ;;  %2545 = vtanh.f32 %v3180_v18  ;;  %v1960_v61 = vmul.f32 -1.442695, %v3192_v29  ;;  %v2085_v11 = vadd.f32 %v748_v63, %v407_v62  ;;  %v408_v39 = vunpack.c.h.bf16 %v3232_v25 }
 0x18f   : >> { %v3258_v50 = vpop.eup %2523  ;;  %v3260_v53 = vadd.f32 %v1002_v13, %v906_v56  ;;  %v3262_v32 = vpop.f32.mrb[6].mxu0  ;;  %2547 = vrcp.f32 %v1055_v57  ;;  %v1944_v59 = vmul.f32 -1.442695, %v2084_v24  ;;  %v410_v25 = vunpack.c.l.bf16 %v376_v8 }
 0x190   : >> { %v2078_v4 = vpop.f32.mrb[66].mxu1  ;;  %v2526_v45 = vpop.eup %2525  ;;  %2549 = vpow2.f32 %v1966_v28  ;;  %v1946_v34 = vmul.f32 -1.442695, %v2085_v11  ;;  %v2086_v60 = vadd.f32 %v3224_v19, %v408_v39  ;;  %v1975_v43 = vmul.f32 -1.442695, %v3214_v20 }
 0x191   : >> { %v3266_v26 = vadd.f32 %v2078_v4, %v917_v6  ;;  %v3268_v23 = vpop.f32.mrb[7].mxu0  ;;  %v1005_v15 = vpop.f32.mrb[67].mxu1  ;;  %v1064_v44 = vadd.f32 1.0, %v2526_v45  ;;  %2551 = vtanh.f32 %v3198_v12  ;;  %v2087_v36 = vadd.f32 %v754_v7, %v410_v25 }
 0x192   : >> { %v3270_v27 = vpop.eup %2527  ;;  %v3274_v21 = vadd.f32 %v1005_v15, %v909_v41  ;;  %2553 = vpow2.f32 %v1943_v14  ;;  %v1947_v62 = vmul.f32 -1.442695, %v2086_v60  ;;  %v1978_v13 = vmul.f32 -1.442695, %v3234_v22  ;;  %v378_v41 = vld [vmem:[%s3065_s23 + $0x24] sm:$0xff] }
 0x193   : >> { %v2530_v2 = vpop.eup %2529  ;;  %2555 = vpow2.f32 %v1960_v61  ;;  %v3282_v29 = vpop.f32.mrb[8].mxu0  ;;  %v411_v6 = vunpack.c.h.bf16 %v376_v8 }
 0x194   : >> { %v3276_v18 = vpop.eup %2531  ;;  %v1058_v33 = vadd.f32 1.0, %v2530_v2  ;;  %2557 = vtanh.f32 %v3204_v51  ;;  %v3288_v52 = vpop.f32.mrb[9].mxu0  ;;  %v1969_v51 = vmul.f32 -1.442695, %v3220_v40  ;;  %v1949_v40 = vmul.f32 -1.442695, %v2087_v36 }
 0x195   : >> { %v3280_v46 = vpop.eup %2533  ;;  %2559 = vrcp.f32 %v1064_v44  ;;  %v3293_v48 = vpop.f32.mrb[10].mxu0  ;;  %v2088_v61 = vadd.f32 %v3255_v10, %v411_v6  ;;  %v413_v2 = vunpack.c.l.bf16 %v378_v41  ;;  %v414_v10 = vunpack.c.h.bf16 %v378_v41 }
 0x196   : >> { %v2536_v16 = vpop.eup %2535  ;;  %2561 = vpow2.f32 %v1944_v59  ;;  %v3295_v47 = vpop.f32.mrb[11].mxu0  ;;  %v380_v59 = vld [vmem:[%s3065_s23 + $0x30] sm:$0xff] }
 0x197   : >> { %v3284_v63 = vpop.eup %2537  ;;  %v1133_v35 = vadd.f32 1.0, %v2536_v16  ;;  %2563 = vrcp.f32 %v1058_v33  ;;  %v1950_v33 = vmul.f32 -1.442695, %v2088_v61 }
 0x198   : >> { %v3290_v12 = vpop.eup %2539  ;;  %2565 = vpow2.f32 %v1946_v34  ;;  %v2089_v34 = vadd.f32 %v3262_v32, %v413_v2 }
 0x199   : >> { %v2542_v9 = vpop.eup %2541  ;;  %2567 = vpow2.f32 %v1975_v43  ;;  %v1972_v43 = vmul.f32 -1.442695, %v3238_v54 }
 0x19a   : >> { %v3297_v57 = vpop.eup %2543  ;;  %v1127_v20 = vadd.f32 1.0, %v2542_v9  ;;  %2569 = vrcp.f32 %v1133_v35  ;;  %v416_v35 = vunpack.c.l.bf16 %v380_v59 }
 0x19b   : >> { %v3300_v19 = vpop.eup %2545  ;;  %2571 = vpow2.f32 %v1969_v51 }
 0x19c   : >> { %v3302_v56 = vpop.eup %2547  ;;  %2573 = vpow2.f32 %v1947_v62  ;;  %v382_v62 = vld [vmem:[%s3065_s23 + $0x3c] sm:$0xff]  ;;  %v2091_v54 = vadd.f32 %v3282_v29, %v416_v35  ;;  %s1800_s23 = sshll.u32 (%p279_p11), %s2846_s7, 4  ;;  %s4064_s23 = int_to_ptr.vmem [resolvable:$true] %s1800_s23 }
 0x19d   : >> { %v2550_v28 = vpop.eup %2549  ;;  %2575 = vrcp.f32 %v1127_v20  ;;  %v1952_v20 = vmul.f32 -1.442695, %v2089_v34  ;;  %s2675_s20 = scalar_lea.vmem (%p279_p11), %s4064_s23, 1536 }
 0x19e   : >> { %v3305_v4 = vpop.eup %2551  ;;  %v1136_v7 = vadd.f32 1.0, %v2550_v28  ;;  %2577 = vpow2.f32 %v1978_v13  ;;  %v417_v28 = vunpack.c.h.bf16 %v380_v59  ;;  %v1955_v29 = vmul.f32 -1.442695, %v2091_v54  ;;  %v1251_v54 = vld [vmem:[%s2846_s7 + $0x30] sm:$0xff]  ;;  %p2676_p12 = scmp.ne.s32.totalorder (%p279_p11), %s4064_s23, %s2675_s20 }
 0x19f   : >> { %v2554_v45 = vpop.eup %2553 }
 0x1a0   : >> { %v2556_v14 = vpop.eup %2555  ;;  %v1053_v24 = vadd.f32 1.0, %v2554_v45  ;;  %v1253_v45 = vld [vmem:[%s2846_s7 + $0x40] sm:$0xff]  ;;  %v2092_v2 = vadd.f32 %v3288_v52, %v417_v28  ;;  %p2677_p13 = pnand (%p279_p11), %p2676_p12, %p2824_p5 }
 0x1a1   : >> { %v3308_v15 = vpop.eup %2557  ;;  %v1130_v39 = vadd.f32 1.0, %v2556_v14 }
 0x1a2   : >> { %v3311_v22 = vpop.eup %2559  ;;  %2579 = vrcp.f32 %v1053_v24  ;;  %p2678_p0 = pneg (%p279_p11), %p2677_p13 }
 0x1a3   : >> { %v2562_v11 = vpop.eup %2561  ;;  %2581 = vpow2.f32 %v1949_v40  ;;  %v419_v40 = vunpack.c.l.bf16 %v382_v62 }
 0x1a4   : >> { %v3313_v44 = vpop.eup %2563  ;;  %2583 = vrcp.f32 %v1136_v7  ;;  %v1054_v8 = vadd.f32 1.0, %v2562_v11  ;;  %v420_v7 = vunpack.c.h.bf16 %v382_v62 }
 0x1a5   : >> { %v2566_v16 = vpop.eup %2565  ;;  %2585 = vtanh.f32 %v3253_v30  ;;  %v2090_v30 = vadd.f32 %v3268_v23, %v414_v10  ;;  %v2093_v59 = vadd.f32 %v3293_v48, %v419_v40  ;;  %v1247_v10 = vld [vmem:[%s2846_s7 + $0x10] sm:$0xff] }
 0x1a6   : >> { %v2568_v60 = vpop.eup %2567  ;;  %2587 = vrcp.f32 %v1054_v8  ;;  %v1056_v25 = vadd.f32 1.0, %v2566_v16 }
 0x1a7   : >> { %v2570_v9 = vpop.eup %2569  ;;  %2589 = vrcp.f32 %v1130_v39  ;;  %v1205_v13 = vadd.f32 1.0, %v2568_v60  ;;  %v1953_v23 = vmul.f32 -1.442695, %v2090_v30  ;;  %v1318_v60 = vlaneseq }
 0x1a8   : >> { %v2572_v51 = vpop.eup %2571  ;;  %2591 = vrcp.f32 %v1056_v25  ;;  %v1265_v39 = vmul.f32 %v2570_v9, %v1253_v45  ;;  %v1956_v25 = vmul.f32 -1.442695, %v2092_v2 }
 0x1a9   : >> { %v2574_v36 = vpop.eup %2573  ;;  %2593 = vpow2.f32 %v1950_v33  ;;  %v2094_v33 = vadd.f32 %v3295_v47, %v420_v7  ;;  %v1958_v47 = vmul.f32 -1.442695, %v2093_v59  ;;  %v1199_v30 = vadd.f32 1.0, %v2572_v51 }
 0x1aa   : >> { %v2576_v32 = vpop.eup %2575  ;;  %v1057_v6 = vadd.f32 1.0, %v2574_v36  ;;  %2595 = vpow2.f32 %v1972_v43  ;;  %v3343_v28 = vshrl.u32 %v1318_v60, 7 }
 0x1ab   : >> { %v2578_v41 = vpop.eup %2577  ;;  %2597 = vtanh.f32 %v3260_v53  ;;  %v1259_v35 = vmul.f32 %v2576_v32, %v1247_v10  ;;  %v1959_v62 = vmul.f32 -1.442695, %v2094_v33 }
 0x1ac   : >> { %v2580_v14 = vpop.eup %2579  ;;  %2599 = vrcp.f32 %v1057_v6  ;;  %v1208_v6 = vadd.f32 1.0, %v2578_v41 }
 0x1ad   : >> { %v2582_v24 = vpop.eup %2581  ;;  %v3325_v61 = vmul.f32 %v2580_v14, %v3250_v31  ;;  %2601 = vpow2.f32 %v1952_v20  ;;  %v1256_v20 = vld [vmem:[%s2846_s7 + $0x58] sm:$0xff]  ;;  %v1250_v14 = vld [vmem:[%s2846_s7 + $0x28] sm:$0xff] }
 0x1ae   : >> { %v2584_v11 = vpop.eup %2583  ;;  %2603 = vrcp.f32 %v1205_v13  ;;  %v1059_v8 = vadd.f32 1.0, %v2582_v24 }
 0x1af   : >> { %v2586_v53 = vpop.eup %2585  ;;  %2605 = vtanh.f32 %v3266_v26  ;;  %v1268_v40 = vmul.f32 %v2584_v11, %v1256_v20 }
 0x1b0   : >> { %v2588_v16 = vpop.eup %2587  ;;  %2607 = vrcp.f32 %v1059_v8  ;;  %v1277_v31 = vmul.f32 %v2586_v53, %v3297_v57 }
 0x1b1   : >> { %v2590_v34 = vpop.eup %2589  ;;  %v3334_v52 = vmul.f32 %v2588_v16, %v3258_v50  ;;  %2609 = vpow2.f32 %v1953_v23 }
 0x1b2   : >> { %v2592_v26 = vpop.eup %2591  ;;  %v1289_v43 = vadd.f32 %v1277_v31, %v1265_v39  ;;  %2611 = vtanh.f32 %v3274_v21  ;;  %v1263_v39 = vmul.f32 %v3201_v17, %v1251_v54  ;;  %v1262_v11 = vmul.f32 %v2590_v34, %v1250_v14  ;;  %v1252_v34 = vld [vmem:[%s2846_s7 + $0x38] sm:$0xff] }
 0x1b3   : >> { %v2594_v48 = vpop.eup %2593  ;;  %v3338_v9 = vmul.f32 %v2592_v26, %v3270_v27  ;;  %2613 = vpow2.f32 %v1955_v29 }
 0x1b4   : >> { %v2596_v57 = vpop.eup %2595  ;;  %2615 = vtanh.f32 %v1289_v43  ;;  %1353 = vst [vmem:[%s2846_s7 + $0x40] sm:$0xff] %v1289_v43  ;;  %v1060_v50 = vadd.f32 1.0, %v2594_v48 }
 0x1b5   : >> { %v2598_v36 = vpop.eup %2597  ;;  %2617 = vpow2.f32 %v1956_v25  ;;  %v1202_v23 = vadd.f32 1.0, %v2596_v57 }
 0x1b6   : >> { %v2600_v21 = vpop.eup %2599  ;;  %2619 = vrcp.f32 %v1060_v50  ;;  %v1271_v27 = vmul.f32 %v2598_v36, %v3302_v56  ;;  %v1328_v56 = vsub.s32 2, %v3343_v28 }
 0x1b7   : >> { %v2602_v13 = vpop.eup %2601  ;;  %v3347_v32 = vmul.f32 %v2600_v21, %v3284_v63  ;;  %2621 = vpow2.f32 %v1958_v47  ;;  %v1198_v21 = vadd.f32 1.0, %v3168_v58 }
 0x1b8   : >> { %v2604_v45 = vpop.eup %2603  ;;  %v1283_v51 = vadd.f32 %v1271_v27, %v1259_v35  ;;  %v1062_v7 = vadd.f32 1.0, %v2602_v13  ;;  %2623 = vpow2.f32 %v1959_v62  ;;  %v1320_v62 = vsub.s32 0, %v3343_v28 }
 0x1b9   : >> { %v2606_v24 = vpop.eup %2605  ;;  %2625 = vrcp.f32 %v1199_v30  ;;  %v1254_v30 = vld [vmem:[%s2846_s7 + $0x48] sm:$0xff] }
 0x1ba   : >> { %v2608_v2 = vpop.eup %2607  ;;  %2627 = vtanh.f32 %v1283_v51  ;;  %1347 = vst [vmem:[%s2846_s7 + $0x10] sm:$0xff] %v1283_v51  ;;  %v1280_v63 = vmul.f32 %v2606_v24, %v3311_v22  ;;  %v3358_v22 = vrot.slane %v2838_v0, %v1328_v56  ;;  %v1266_v14 = vmul.f32 %v3217_v38, %v1254_v30 }
 0x1bb   : >> { %v2610_v41 = vpop.eup %2609  ;;  %v1275_v8 = vmul.f32 %v2608_v2, %v3290_v12  ;;  %2629 = vrcp.f32 %v1062_v7  ;;  %v1201_v7 = vadd.f32 1.0, %v3195_v55  ;;  %v1207_v38 = vadd.f32 1.0, %v3240_v49 }
 0x1bc   : >> { %v2612_v53 = vpop.eup %2611  ;;  %2631 = vrcp.f32 %v1208_v6  ;;  %v1292_v29 = vadd.f32 %v1280_v63, %v1268_v40  ;;  %v1063_v59 = vadd.f32 1.0, %v2610_v41  ;;  %v1324_v56 = vsub.s32 1, %v3343_v28 }
 0x1bd   : >> { %v2614_v16 = vpop.eup %2613  ;;  %2633 = vrcp.f32 %v1202_v23  ;;  %v1287_v31 = vadd.f32 %v1275_v8, %v1263_v39  ;;  %v1274_v17 = vmul.f32 %v2612_v53, %v3313_v44  ;;  %v1264_v44 = vmul.f32 %v3212_v37, %v1252_v34  ;;  %v1255_v23 = vld [vmem:[%s2846_s7 + $0x50] sm:$0xff]  ;;  %v1245_v39 = vld [vmem:[%s2846_s7] sm:$0xff]  ;;  %v1246_v53 = vld [vmem:[%s2846_s7 + $0x8] sm:$0xff] }
 0x1be   : >> { %v2616_v33 = vpop.eup %2615  ;;  %2635 = vtanh.f32 %v1292_v29  ;;  %1356 = vst [vmem:[%s2846_s7 + $0x58] sm:$0xff] %v1292_v29  ;;  %v1125_v12 = vadd.f32 1.0, %v2614_v16  ;;  %v1267_v8 = vmul.f32 %v3227_v5, %v1255_v23 }
 0x1bf   : >> { %v2618_v10 = vpop.eup %2617  ;;  %2637 = vtanh.f32 %v1287_v31  ;;  %1351 = vst [vmem:[%s2846_s7 + $0x30] sm:$0xff] %v1287_v31  ;;  %v1313_v25 = vmul.f32 %v2616_v33, %v2604_v45  ;;  %v1286_v26 = vadd.f32 %v1274_v17, %v1262_v11  ;;  %v1206_v45 = vadd.f32 1.0, %v3236_v1  ;;  %v1248_v31 = vld [vmem:[%s2846_s7 + $0x18] sm:$0xff] }
 0x1c0   : >> { %v2620_v43 = vpop.eup %2619  ;;  %2639 = vrcp.f32 %v1063_v59  ;;  %v1126_v48 = vadd.f32 1.0, %v2618_v10 }
 0x1c1   : >> { %v2622_v47 = vpop.eup %2621  ;;  %v3369_v57 = vmul.f32 %v3358_v22, %v1313_v25  ;;  %v1276_v35 = vmul.f32 %v2620_v43, %v3300_v19  ;;  %2641 = vtanh.f32 %v1286_v26  ;;  %1350 = vst [vmem:[%s2846_s7 + $0x28] sm:$0xff] %v1286_v26  ;;  %v1200_v19 = vadd.f32 1.0, %v3177_v3  ;;  %v1249_v26 = vld [vmem:[%s2846_s7 + $0x20] sm:$0xff] }
 0x1c2   : >> { %v2624_v50 = vpop.eup %2623  ;;  %2643 = vrcp.f32 %v1125_v12  ;;  %v1128_v36 = vadd.f32 1.0, %v2622_v47  ;;  %v3385_v3 = vrot.slane %v2838_v0, %v1320_v62 }
 0x1c3   : >> { %v2626_v20 = vpop.eup %2625  ;;  %1368 = vst [vmem:[%s3365_s28 + $0x40] sm:$0xff] %v3369_v57  ;;  %v1288_v37 = vadd.f32 %v1276_v35, %v1264_v44  ;;  %2645 = vrcp.f32 %v1126_v48  ;;  %v1129_v27 = vadd.f32 1.0, %v2624_v50 }
 0x1c4   : >> { %v2628_v13 = vpop.eup %2627  ;;  %2647 = vrcp.f32 %v1128_v36 }
 0x1c5   : >> { %v2630_v6 = vpop.eup %2629  ;;  %2649 = vtanh.f32 %v1288_v37  ;;  %1352 = vst [vmem:[%s2846_s7 + $0x38] sm:$0xff] %v1288_v37  ;;  %v1307_v54 = vmul.f32 %v2628_v13, %v2626_v20 }
 0x1c6   : >> { %v2632_v40 = vpop.eup %2631  ;;  %v1278_v58 = vmul.f32 %v2630_v6, %v3305_v4  ;;  %2651 = vrcp.f32 %v1129_v27 }
 0x1c7   : >> { %v2634_v51 = vpop.eup %2633  ;;  %2653 = vrcp.f32 %v1198_v21  ;;  %v1335_v1 = vmul.f32 %v3358_v22, %v1307_v54 }
 0x1c8   : >> { %v2636_v24 = vpop.eup %2635  ;;  %2655 = vrcp.f32 %v1200_v19  ;;  %v1290_v4 = vadd.f32 %v1278_v58, %v1266_v14 }
 0x1c9   : >> { %v2638_v2 = vpop.eup %2637  ;;  %2657 = vrcp.f32 %v1206_v45  ;;  %1362 = vst [vmem:[%s3365_s28 + $0x10] sm:$0xff] %v1335_v1  ;;  %v1316_v55 = vmul.f32 %v2636_v24, %v2632_v40 }
 0x1ca   : >> { %v2640_v63 = vpop.eup %2639  ;;  %v1311_v41 = vmul.f32 %v2638_v2, %v3276_v18  ;;  %2659 = vtanh.f32 %v1290_v4  ;;  %1354 = vst [vmem:[%s2846_s7 + $0x48] sm:$0xff] %v1290_v4  ;;  %v3403_v18 = vrot.slane %v2838_v0, %v1324_v56 }
 0x1cb   : >> { %v2642_v11 = vpop.eup %2641  ;;  %2661 = vrcp.f32 %v1201_v7  ;;  %v1344_v49 = vmul.f32 %v3358_v22, %v1316_v55  ;;  %v1279_v28 = vmul.f32 %v2640_v63, %v3308_v15 }
 0x1cc   : >> { %v2644_v29 = vpop.eup %2643  ;;  %2663 = vrcp.f32 %v1207_v38  ;;  %v3400_v59 = vmul.f32 %v3385_v3, %v1311_v41  ;;  %v1310_v16 = vmul.f32 %v2642_v11, %v2634_v51 }
 0x1cd   : >> { %v2646_v5 = vpop.eup %2645  ;;  %1371 = vst [vmem:[%s3365_s28 + $0x58] sm:$0xff] %v1344_v49  ;;  %v1575_v17 = vpack.c.bf16 %v1344_v49, %v3369_v57  ;;  %v1291_v33 = vadd.f32 %v1279_v28, %v1267_v8  ;;  %v1257_v34 = vmul.f32 %v2644_v29, %v1245_v39  ;;  %v3409_v15 = vpack.i.bf16 %v1344_v49, %v3369_v57 }
 0x1ce   : >> { %v2648_v12 = vpop.eup %2647  ;;  %1366 = vst [vmem:[%s3365_s28 + $0x30] sm:$0xff] %v3400_v59  ;;  %v1338_v10 = vmul.f32 %v3358_v22, %v1310_v16  ;;  %v1258_v25 = vmul.f32 %v2646_v5, %v1246_v53 }
 0x1cf   : >> { %v2650_v43 = vpop.eup %2649  ;;  %1581 = vst [vmem:[#allocation2 + $0xe8] sm:$0xff] %v1575_v17  ;;  %2665 = vtanh.f32 %v1291_v33  ;;  %1355 = vst [vmem:[%s2846_s7 + $0x50] sm:$0xff] %v1291_v33  ;;  %v1281_v48 = vadd.f32 %v3325_v61, %v1257_v34  ;;  %v1260_v47 = vmul.f32 %v2648_v12, %v1248_v31  ;;  %2212 = vrot.lane.b32.xlu1 %v3409_v15, %s2750_s30  ;;  %v3528_v33 = vand.u32 127, %v1318_v60 }
 0x1d0   : >> { %v2652_v44 = vpop.eup %2651  ;;  %v1312_v57 = vmul.f32 %v2650_v43, %v3280_v46  ;;  %1365 = vst [vmem:[%s3365_s28 + $0x28] sm:$0xff] %v1338_v10  ;;  %v1572_v22 = vpack.c.bf16 %v1338_v10, %v1335_v1  ;;  %v1282_v35 = vadd.f32 %v3334_v52, %v1258_v25  ;;  %v3422_v50 = vpack.i.bf16 %v1338_v10, %v1335_v1 }
 0x1d1   : >> { %v2654_v62 = vpop.eup %2653  ;;  %2667 = vtanh.f32 %v1281_v48  ;;  %1345 = vst [vmem:[%s2846_s7] sm:$0xff] %v1281_v48  ;;  %v1284_v61 = vadd.f32 %v3338_v9, %v1260_v47  ;;  %v1261_v36 = vmul.f32 %v2652_v44, %v1249_v26  ;;  %vm1447_vm1 = vcmp.lt.s32.totalorder %v3528_v33, 18 }
 0x1d2   : >> { %v2656_v20 = vpop.eup %2655  ;;  %v1340_v30 = vmul.f32 %v3403_v18, %v1312_v57  ;;  %1578 = vst [vmem:[#allocation2 + $0xd0] sm:$0xff] %v1572_v22  ;;  %2669 = vtanh.f32 %v1282_v35  ;;  %1346 = vst [vmem:[%s2846_s7 + $0x8] sm:$0xff] %v1282_v35  ;;  %2247 = vrot.lane.b32.xlu0 %v3422_v50, %s2750_s30  ;;  %vm1398_vm2 = vcmp.lt.s32.totalorder %v3528_v33, 19  ;;  %vm1496_vm3 = vcmp.lt.s32.totalorder %v3528_v33, 17 }
 0x1d3   : >> { %v2658_v46 = vpop.eup %2657  ;;  %2671 = vtanh.f32 %v1284_v61  ;;  %1348 = vst [vmem:[%s2846_s7 + $0x18] sm:$0xff] %v1284_v61  ;;  %v1285_v52 = vadd.f32 %v3347_v32, %v1261_v36  ;;  %2217 = vrot.lane.b32.xlu1 %v3409_v15, %s2751_s5  ;;  %vm1545_vm4 = vcmp.lt.s32.totalorder %v3528_v33, 1  ;;  %vm1606_vm5 = vcmp.lt.s32.totalorder %v3528_v33, 127 }
 0x1d4   : >> { %v2660_v9 = vpop.eup %2659  ;;  %1367 = vst [vmem:[%s3365_s28 + $0x38] sm:$0xff] %v1340_v30  ;;  %vm1655_vm6 = vcmp.lt.s32.totalorder %v3528_v33, 111  ;;  %vm1704_vm7 = vcmp.lt.s32.totalorder %v3528_v33, 110  ;;  %vm1753_vm8 = vcmp.lt.s32.totalorder %v3528_v33, 109 }
 0x1d5   : >> { %v2662_v21 = vpop.eup %2661  ;;  %v1314_v37 = vmul.f32 %v2660_v9, %v2658_v46  ;;  %2673 = vtanh.f32 %v1285_v52  ;;  %1349 = vst [vmem:[%s2846_s7 + $0x20] sm:$0xff] %v1285_v52  ;;  %s2679_s7 = sshll.u32 (%p279_p11), %s2758_s19, 4  ;;  %s2680_s7 = int_to_ptr.vmem [resolvable:$false] %s2679_s7 }
 0x1d6   : >> { %v2664_v27 = vpop.eup %2663  ;;  %2252 = vrot.lane.b32.xlu0 %v3422_v50, %s2751_s5  ;;  %s2681_s11 = scalar_lea.vmem (%p279_p11), %s2680_s7, 3072  ;;  %p2682_p1 = scmp.lt.s32.totalorder (%p279_p11), %s4064_s23, %s2680_s7 }
 0x1d7   : >> { %v1342_v13 = vmul.f32 %v3385_v3, %v1314_v37  ;;  %2222 = vrot.lane.b32.xlu1 %v3409_v15, %s2752_s6  ;;  %p2683_p2 = scmp.lt.s32.totalorder (%p279_p11), %s2681_s11, %s2675_s20 }
 0x1d9   : >> { %v2666_v32 = vpop.eup %2665  ;;  %1369 = vst [vmem:[%s3365_s28 + $0x48] sm:$0xff] %v1342_v13  ;;  %v1573_v19 = vpack.c.bf16 %v1342_v13, %v3400_v59  ;;  %v2286_v6 = vpack.i.bf16 %v1342_v13, %v3400_v59  ;;  %p2684_p3 = por (%p279_p11), %p2683_p2, %p2682_p1 }
 0x1da   : >> { %v1315_v45 = vmul.f32 %v2666_v32, %v2664_v27  ;;  %2257 = vrot.lane.b32.xlu0 %v3422_v50, %s2752_s6 }
 0x1db   : >> { %v2668_v54 = vpop.eup %2667  ;;  %1579 = vst [vmem:[#allocation2 + $0xd8] sm:$0xff] %v1573_v19  ;;  %2227 = vrot.lane.b32.xlu1 %v3409_v15, %s2753_s8  ;;  %p2685_p4 = pnand (%p279_p11), %p2684_p3, %p2678_p0 }
 0x1dc   : >> { %v2670_v40 = vpop.eup %2669  ;;  %v1343_v14 = vmul.f32 %v3403_v18, %v1315_v45  ;;  %v1305_v58 = vmul.f32 %v2668_v54, %v3245_v42 }
 0x1dd   : >> { %v2672_v51 = vpop.eup %2671  ;;  %v1306_v7 = vmul.f32 %v2670_v40, %v2654_v62 }
 0x1de   : >> { %1370 = vst [vmem:[%s3365_s28 + $0x50] sm:$0xff] %v1343_v14  ;;  %v1574_v1 = vpack.c.bf16 %v1343_v14, %v1340_v30  ;;  %v1333_v24 = vmul.f32 %v3385_v3, %v1305_v58  ;;  %v1308_v23 = vmul.f32 %v2672_v51, %v2656_v20  ;;  %2262 = vrot.lane.b32.xlu0 %v3422_v50, %s2753_s8 }
 0x1df   : >> { %v2321_v38 = vpack.i.bf16 %v1343_v14, %v1340_v30  ;;  %v2674_v56 = vpop.eup %2673  ;;  %v1334_v4 = vmul.f32 %v3403_v18, %v1306_v7  ;;  %2232 = vrot.lane.b32.xlu1 %v3409_v15, %s2754_s9 }
 0x1e0   : >> { %1580 = vst [vmem:[#allocation2 + $0xe0] sm:$0xff] %v1574_v1  ;;  %1360 = vst [vmem:[%s3365_s28] sm:$0xff] %v1333_v24  ;;  %v1336_v42 = vmul.f32 %v3385_v3, %v1308_v23  ;;  %v1309_v2 = vmul.f32 %v2674_v56, %v2662_v21 }
 0x1e1   : >> { %1361 = vst [vmem:[%s3365_s28 + $0x8] sm:$0xff] %v1334_v4 }
 0x1e2   : >> { %1363 = vst [vmem:[%s3365_s28 + $0x18] sm:$0xff] %v1336_v42  ;;  %v1570_v55 = vpack.c.bf16 %v1336_v42, %v1333_v24  ;;  %v1337_v63 = vmul.f32 %v3403_v18, %v1309_v2  ;;  %2267 = vrot.lane.b32.xlu0 %v3422_v50, %s2754_s9  ;;  %v2361_v41 = vpack.i.bf16 %v1336_v42, %v1333_v24 }
 0x1e3   : >> { %2237 = vrot.lane.b32.xlu1 %v3409_v15, %s2755_s10 }
 0x1e4   : >> { %1576 = vst [vmem:[#allocation2 + $0xc0] sm:$0xff] %v1570_v55  ;;  %1364 = vst [vmem:[%s3365_s28 + $0x20] sm:$0xff] %v1337_v63  ;;  %v1571_v39 = vpack.c.bf16 %v1337_v63, %v1334_v4  ;;  %v2406_v11 = vpack.i.bf16 %v1337_v63, %v1334_v4 }
 0x1e6   : >> { %1577 = vst [vmem:[#allocation2 + $0xc8] sm:$0xff] %v1571_v39  ;;  %2272 = vrot.lane.b32.xlu0 %v3422_v50, %s2755_s10 }
 0x1e7   : >> { %2242 = vrot.lane.b32.xlu1 %v3409_v15, %s2756_s12 }
 0x1ea   : >> { %2277 = vrot.lane.b32.xlu0 %v3422_v50, %s2756_s12 }
 0x1eb   : >> { %2287 = vrot.lane.b32.xlu1 %v2286_v6, %s2751_s5 }
 0x1ee   : >> { %2282 = vrot.lane.b32.xlu0 %v2286_v6, %s2750_s30 }
 0x1ef   : >> { %2292 = vrot.lane.b32.xlu1 %v2286_v6, %s2752_s6 }
 0x1f2   : >> { %2362 = vrot.lane.b32.xlu0 %v2361_v41, %s2750_s30 }
 0x1f3   : >> { %2297 = vrot.lane.b32.xlu1 %v2286_v6, %s2753_s8 }
 0x1f6   : >> { %2367 = vrot.lane.b32.xlu0 %v2361_v41, %s2751_s5 }
 0x1f7   : >> { %2302 = vrot.lane.b32.xlu1 %v2286_v6, %s2754_s9 }
 0x1fa   : >> { %2372 = vrot.lane.b32.xlu0 %v2361_v41, %s2752_s6 }
 0x1fb   : >> { %2307 = vrot.lane.b32.xlu1 %v2286_v6, %s2755_s10 }
 0x1fe   : >> { %2377 = vrot.lane.b32.xlu0 %v2361_v41, %s2753_s8 }
 0x1ff   : >> { %2312 = vrot.lane.b32.xlu1 %v2286_v6, %s2756_s12 }
 0x202   : >> { %2382 = vrot.lane.b32.xlu0 %v2361_v41, %s2754_s9 }
 0x203   : >> { %2317 = vrot.lane.b32.xlu1 %v2286_v6, %s2757_s13 }
 0x206   : >> { %2387 = vrot.lane.b32.xlu0 %v2361_v41, %s2755_s10 }
 0x207   : >> { %2322 = vrot.lane.b32.xlu1 %v2321_v38, %s2750_s30 }
 0x20a   : >> { %2392 = vrot.lane.b32.xlu0 %v2361_v41, %s2756_s12 }
 0x20b   : >> { %2327 = vrot.lane.b32.xlu1 %v2321_v38, %s2751_s5 }
 0x20e   : >> { %2397 = vrot.lane.b32.xlu0 %v2361_v41, %s2757_s13 }
 0x20f   : >> { %2332 = vrot.lane.b32.xlu1 %v2321_v38, %s2752_s6 }
 0x212   : >> { %2407 = vrot.lane.b32.xlu0 %v2406_v11, %s2751_s5  ;;  %s4068_s5 = scalar_lea.sflag (%p279_p11), [#allocation4], %s196_s29 }
 0x213   : >> { %2337 = vrot.lane.b32.xlu1 %v2321_v38, %s2753_s8 }
 0x216   : >> { %2412 = vrot.lane.b32.xlu0 %v2406_v11, %s2752_s6 }
 0x217   : >> { %2342 = vrot.lane.b32.xlu1 %v2321_v38, %s2754_s9 }
 0x21a   : >> { %2417 = vrot.lane.b32.xlu0 %v2406_v11, %s2753_s8 }
 0x21b   : >> { %2347 = vrot.lane.b32.xlu1 %v2321_v38, %s2755_s10 }
 0x21e   : >> { %2422 = vrot.lane.b32.xlu0 %v2406_v11, %s2754_s9 }
 0x21f   : >> { %2352 = vrot.lane.b32.xlu1 %v2321_v38, %s2756_s12 }
 0x222   : >> { %2427 = vrot.lane.b32.xlu0 %v2406_v11, %s2755_s10 }
 0x223   : >> { %2357 = vrot.lane.b32.xlu1 %v2321_v38, %s2757_s13 }
 0x226   : >> { %2432 = vrot.lane.b32.xlu0 %v2406_v11, %s2756_s12 }
 0x227   : >> { %2402 = vrot.lane.b32.xlu1 %v2406_v11, %s2750_s30  ;;  %s4062_s30 = scalar_lea.hbm (%p279_p11), %s4113_s4, %s2150_s22 }
 0x22a   : >> { %2437 = vrot.lane.b32.xlu0 %v2406_v11, %s2757_s13 }
 0x22b   : >> { %2447 = vrot.lane.b32.xlu1 %v3409_v15, %s2757_s13 }
 0x22e   : >> { %2442 = vrot.lane.b32.xlu0 %v3422_v50, %s2757_s13 }
 0x241   : >> { %v3503_v3 = vpop.permute.xlu1 %2212 }
 0x242   : >> { %v2215_v60 = vunpack.i.h.bf16 %v3503_v3  ;;  %v2214_v57 = vunpack.i.l.bf16 %v3503_v3 }
 0x244   : >> { %v3505_v8 = vpop.permute.xlu0 %2247 }
 0x245   : >> { %v3507_v49 = vpop.permute.xlu1 %2217  ;;  %v4117_v9 = vunpack.i.h.bf16 %v3505_v8  ;;  %v4116_v32 = vunpack.i.l.bf16 %v3505_v8 }
 0x246   : >> { %v2220_v10 = vunpack.i.h.bf16 %v3507_v49  ;;  %v2219_v25 = vunpack.i.l.bf16 %v3507_v49 }
 0x248   : >> { %v3509_v28 = vpop.permute.xlu0 %2252 }
 0x249   : >> { %v3511_v53 = vpop.permute.xlu1 %2222  ;;  %v2255_v24 = vunpack.i.h.bf16 %v3509_v28  ;;  %v2254_v42 = vunpack.i.l.bf16 %v3509_v28 }
 0x24a   : >> { %v2225_v61 = vunpack.i.h.bf16 %v3511_v53  ;;  %v2224_v36 = vunpack.i.l.bf16 %v3511_v53 }
 0x24c   : >> { %v3513_v29 = vpop.permute.xlu0 %2257 }
 0x24d   : >> { %v3515_v59 = vpop.permute.xlu1 %2227 }
 0x24e   : >> { %v2230_v40 = vunpack.i.h.bf16 %v3515_v59  ;;  %v2229_v14 = vunpack.i.l.bf16 %v3515_v59 }
 0x250   : >> { %v3517_v18 = vpop.permute.xlu0 %2262 }
 0x251   : >> { %v3519_v16 = vpop.permute.xlu1 %2232 }
 0x252   : >> { %v4123_v39 = vunpack.i.h.bf16 %v3519_v16  ;;  %v4120_v11 = vunpack.i.l.bf16 %v3519_v16 }
 0x254   : >> { %v3521_v31 = vpop.permute.xlu0 %2267 }
 0x255   : >> { %v3523_v5 = vpop.permute.xlu1 %2237 }
 0x258   : >> { %v3525_v17 = vpop.permute.xlu0 %2272 }
 0x259   : >> { %v3530_v34 = vpop.permute.xlu1 %2242 }
 0x25c   : >> { %v3532_v15 = vpop.permute.xlu0 %2277 }
 0x25d   : >> { %v3535_v12 = vpop.permute.xlu1 %2287 }
 0x25e   : >> { %v2290_v26 = vunpack.i.h.bf16 %v3535_v12  ;;  %v2289_v43 = vunpack.i.l.bf16 %v3535_v12 }
 0x260   : >> { %v1459_v48 = vsel %vm1447_vm1, %v2220_v10, %v2290_v26  ;;  %v1458_v47 = vsel %vm1447_vm1, %v2219_v25, %v2289_v43  ;;  %v3555_v44 = vpop.permute.xlu0 %2282 }
 0x261   : >> { %v1463_v22 = vpack.c.bf16 %v1459_v48, %v1458_v47  ;;  %v2285_v35 = vunpack.i.h.bf16 %v3555_v44  ;;  %v2284_v50 = vunpack.i.l.bf16 %v3555_v44  ;;  %v3561_v62 = vpop.permute.xlu1 %2292 }
 0x262   : >> { %v2295_v20 = vunpack.i.h.bf16 %v3561_v62  ;;  %v2294_v30 = vunpack.i.l.bf16 %v3561_v62 }
 0x263   : >> { %1469 = vst [vmem:[#allocation2 + $0x48] sm:$0xff] %v1463_v22  ;;  %v1410_v46 = vsel %vm1398_vm2, %v2215_v60, %v2285_v35  ;;  %v1409_v52 = vsel %vm1398_vm2, %v2214_v57, %v2284_v50 }
 0x264   : >> { %v1414_v21 = vpack.c.bf16 %v1410_v46, %v1409_v52  ;;  %v1508_v37 = vsel %vm1496_vm3, %v2225_v61, %v2295_v20  ;;  %v1507_v27 = vsel %vm1496_vm3, %v2224_v36, %v2294_v30  ;;  %v3593_v13 = vpop.permute.xlu0 %2362  ;;  %v4139_v52 = vunpack.i.h.bf16 %v3513_v29 }
 0x265   : >> { %v1512_v19 = vpack.c.bf16 %v1508_v37, %v1507_v27  ;;  %v4114_v6 = vunpack.i.h.bf16 %v3593_v13  ;;  %v4115_v45 = vunpack.i.l.bf16 %v3593_v13  ;;  %v3598_v54 = vpop.permute.xlu1 %2297 }
 0x266   : >> { %1420 = vst [vmem:[#allocation2 + $0x18] sm:$0xff] %v1414_v21  ;;  %v2300_v58 = vunpack.i.h.bf16 %v3598_v54  ;;  %v2299_v51 = vunpack.i.l.bf16 %v3598_v54 }
 0x267   : >> { %1518 = vst [vmem:[#allocation2 + $0x78] sm:$0xff] %v1512_v19  ;;  %v1408_v7 = vsel %vm1398_vm2, %v4117_v9, %v4114_v6  ;;  %v1407_v1 = vsel %vm1398_vm2, %v4116_v32, %v4115_v45 }
 0x268   : >> { %v1411_v23 = vpack.c.bf16 %v1408_v7, %v1407_v1  ;;  %v1557_v38 = vsel %vm1545_vm4, %v2230_v40, %v2300_v58  ;;  %v1556_v56 = vsel %vm1545_vm4, %v2229_v14, %v2299_v51  ;;  %v3630_v4 = vpop.permute.xlu0 %2367  ;;  %v4135_v7 = vunpack.i.l.bf16 %v3513_v29 }
 0x269   : >> { %v1561_v2 = vpack.c.bf16 %v1557_v38, %v1556_v56  ;;  %v2370_v55 = vunpack.i.h.bf16 %v3630_v4  ;;  %v2369_v63 = vunpack.i.l.bf16 %v3630_v4  ;;  %v3635_v41 = vpop.permute.xlu1 %2302 }
 0x26a   : >> { %1417 = vst [vmem:[#allocation2] sm:$0xff] %v1411_v23  ;;  %v4118_v48 = vunpack.i.h.bf16 %v3635_v41  ;;  %v4119_v47 = vunpack.i.l.bf16 %v3635_v41 }
 0x26b   : >> { %1567 = vst [vmem:[#allocation2 + $0xa8] sm:$0xff] %v1561_v2  ;;  %v1457_v22 = vsel %vm1447_vm1, %v2255_v24, %v2370_v55  ;;  %v1456_v46 = vsel %vm1447_vm1, %v2254_v42, %v2369_v63  ;;  %v4122_v2 = vunpack.i.h.bf16 %v3523_v5 }
 0x26c   : >> { %v1460_v21 = vpack.c.bf16 %v1457_v22, %v1456_v46  ;;  %v1618_v37 = vsel %vm1606_vm5, %v4123_v39, %v4118_v48  ;;  %v1617_v27 = vsel %vm1606_vm5, %v4120_v11, %v4119_v47  ;;  %v3667_v19 = vpop.permute.xlu0 %2372  ;;  %v4125_v22 = vunpack.i.l.bf16 %v3523_v5 }
 0x26d   : >> { %v1624_v1 = vpack.c.bf16 %v1618_v37, %v1617_v27  ;;  %v4138_v23 = vunpack.i.h.bf16 %v3667_v19  ;;  %v4130_v38 = vunpack.i.l.bf16 %v3667_v19  ;;  %v3672_v56 = vpop.permute.xlu1 %2307  ;;  %v4129_v48 = vunpack.i.l.bf16 %v3517_v18 }
 0x26e   : >> { %1466 = vst [vmem:[#allocation2 + $0x30] sm:$0xff] %v1460_v21  ;;  %v4121_v46 = vunpack.i.h.bf16 %v3672_v56  ;;  %v4124_v6 = vunpack.i.l.bf16 %v3672_v56  ;;  %v4127_v21 = vunpack.i.h.bf16 %v3517_v18  ;;  %v4156_v54 = vunpack.i.h.bf16 %v3667_v19 }
 0x26f   : >> { %1630 = vst [vmem:[#allocation2 + $0x118] sm:$0xff] %v1624_v1  ;;  %v1506_v37 = vsel %vm1496_vm3, %v4139_v52, %v4138_v23  ;;  %v1505_v27 = vsel %vm1496_vm3, %v4135_v7, %v4130_v38  ;;  %v2280_v23 = vunpack.i.h.bf16 %v3532_v15  ;;  %v2279_v52 = vunpack.i.l.bf16 %v3532_v15 }
 0x270   : >> { %v1509_v45 = vpack.c.bf16 %v1506_v37, %v1505_v27  ;;  %v1667_v1 = vsel %vm1655_vm6, %v4122_v2, %v4121_v46  ;;  %v1666_v32 = vsel %vm1655_vm6, %v4125_v22, %v4124_v6  ;;  %v3704_v9 = vpop.permute.xlu0 %2377  ;;  %v4134_v46 = vunpack.i.h.bf16 %v3530_v34 }
 0x271   : >> { %v1673_v47 = vpack.c.bf16 %v1667_v1, %v1666_v32  ;;  %v4126_v37 = vunpack.i.h.bf16 %v3704_v9  ;;  %v4128_v27 = vunpack.i.l.bf16 %v3704_v9  ;;  %v3709_v11 = vpop.permute.xlu1 %2312  ;;  %v4133_v2 = vunpack.i.l.bf16 %v3530_v34 }
 0x272   : >> { %1515 = vst [vmem:[#allocation2 + $0x60] sm:$0xff] %v1509_v45  ;;  %v4131_v39 = vunpack.i.h.bf16 %v3709_v11  ;;  %v4132_v6 = vunpack.i.l.bf16 %v3709_v11  ;;  %v4137_v45 = vunpack.i.h.bf16 %v3521_v31 }
 0x273   : >> { %1679 = vst [vmem:[#allocation2 + $0x148] sm:$0xff] %v1673_v47  ;;  %v1555_v32 = vsel %vm1545_vm4, %v4127_v21, %v4126_v37  ;;  %v1554_v1 = vsel %vm1545_vm4, %v4129_v48, %v4128_v27  ;;  %v4145_v27 = vunpack.i.l.bf16 %v3521_v31 }
 0x274   : >> { %v1558_v22 = vpack.c.bf16 %v1555_v32, %v1554_v1  ;;  %v1716_v47 = vsel %vm1704_vm7, %v4134_v46, %v4131_v39  ;;  %v1715_v37 = vsel %vm1704_vm7, %v4133_v2, %v4132_v6  ;;  %v3740_v21 = vpop.permute.xlu0 %2382 }
 0x275   : >> { %v1722_v48 = vpack.c.bf16 %v1716_v47, %v1715_v37  ;;  %v4136_v32 = vunpack.i.h.bf16 %v3740_v21  ;;  %v4140_v1 = vunpack.i.l.bf16 %v3740_v21  ;;  %v3745_v38 = vpop.permute.xlu1 %2317 }
 0x276   : >> { %1564 = vst [vmem:[#allocation2 + $0x90] sm:$0xff] %v1558_v22  ;;  %v4142_v22 = vunpack.i.h.bf16 %v3525_v17 }
 0x277   : >> { %1728 = vst [vmem:[#allocation2 + $0x178] sm:$0xff] %v1722_v48  ;;  %v1616_v39 = vsel %vm1606_vm5, %v4137_v45, %v4136_v32  ;;  %v1615_v37 = vsel %vm1606_vm5, %v4145_v27, %v4140_v1  ;;  %v4144_v48 = vunpack.i.l.bf16 %v3525_v17 }
 0x278   : >> { %v1621_v47 = vpack.c.bf16 %v1616_v39, %v1615_v37  ;;  %v3759_v6 = vpop.permute.xlu0 %2387 }
 0x279   : >> { %v4141_v2 = vunpack.i.h.bf16 %v3759_v6  ;;  %v4143_v46 = vunpack.i.l.bf16 %v3759_v6  ;;  %v2323_v7 = vpop.permute.xlu1 %2322 }
 0x27a   : >> { %1627 = vst [vmem:[#allocation2 + $0x100] sm:$0xff] %v1621_v47  ;;  %v2325_v32 = vunpack.i.h.bf16 %v2323_v7  ;;  %v2324_v45 = vunpack.i.l.bf16 %v2323_v7 }
 0x27b   : >> { %v1665_v39 = vsel %vm1655_vm6, %v4142_v22, %v4141_v2  ;;  %v1664_v37 = vsel %vm1655_vm6, %v4144_v48, %v4143_v46 }
 0x27c   : >> { %v1670_v47 = vpack.c.bf16 %v1665_v39, %v1664_v37  ;;  %v1402_v7 = vsel %vm1398_vm2, %v2325_v32, %v2215_v60  ;;  %v1401_v1 = vsel %vm1398_vm2, %v2324_v45, %v2214_v57  ;;  %v1405_v2 = vsel %vm1398_vm2, %v2284_v50, %v2324_v45  ;;  %v3791_v22 = vpop.permute.xlu0 %2392 }
 0x27d   : >> { %v1406_v39 = vsel %vm1398_vm2, %v2285_v35, %v2325_v32  ;;  %v1416_v37 = vpack.c.bf16 %v1402_v7, %v1401_v1  ;;  %v2395_v60 = vunpack.i.h.bf16 %v3791_v22  ;;  %v2394_v3 = vunpack.i.l.bf16 %v3791_v22  ;;  %v2328_v46 = vpop.permute.xlu1 %2327 }
 0x27e   : >> { %1676 = vst [vmem:[#allocation2 + $0x130] sm:$0xff] %v1670_v47  ;;  %v1415_v57 = vpack.c.bf16 %v1406_v39, %v1405_v2  ;;  %v2330_v48 = vunpack.i.h.bf16 %v2328_v46  ;;  %v2329_v27 = vunpack.i.l.bf16 %v2328_v46 }
 0x27f   : >> { %1422 = vst [vmem:[#allocation2 + $0x28] sm:$0xff] %v1416_v37  ;;  %v1714_v44 = vsel %vm1704_vm7, %v2280_v23, %v2395_v60  ;;  %v1713_v35 = vsel %vm1704_vm7, %v2279_v52, %v2394_v3 }
 0x280   : >> { %1421 = vst [vmem:[#allocation2 + $0x20] sm:$0xff] %v1415_v57  ;;  %v1719_v50 = vpack.c.bf16 %v1714_v44, %v1713_v35  ;;  %v1451_v2 = vsel %vm1447_vm1, %v2330_v48, %v2220_v10  ;;  %v1450_v46 = vsel %vm1447_vm1, %v2329_v27, %v2219_v25  ;;  %v1454_v45 = vsel %vm1447_vm1, %v2289_v43, %v2329_v27  ;;  %v3823_v32 = vpop.permute.xlu0 %2397 }
 0x281   : >> { %v1455_v1 = vsel %vm1447_vm1, %v2290_v26, %v2330_v48  ;;  %v1465_v47 = vpack.c.bf16 %v1451_v2, %v1450_v46  ;;  %v2333_v7 = vpop.permute.xlu1 %2332 }
 0x282   : >> { %1725 = vst [vmem:[#allocation2 + $0x160] sm:$0xff] %v1719_v50  ;;  %v1464_v10 = vpack.c.bf16 %v1455_v1, %v1454_v45  ;;  %v2335_v49 = vunpack.i.h.bf16 %v2333_v7  ;;  %v2334_v39 = vunpack.i.l.bf16 %v2333_v7  ;;  %v4157_v7 = vunpack.i.l.bf16 %v3513_v29 }
 0x283   : >> { %1471 = vst [vmem:[#allocation2 + $0x58] sm:$0xff] %v1465_v47  ;;  %v4155_v47 = vunpack.i.h.bf16 %v3513_v29 }
 0x284   : >> { %1470 = vst [vmem:[#allocation2 + $0x50] sm:$0xff] %v1464_v10  ;;  %v1500_v25 = vsel %vm1496_vm3, %v2335_v49, %v2225_v61  ;;  %v1499_v12 = vsel %vm1496_vm3, %v2334_v39, %v2224_v36  ;;  %v1503_v26 = vsel %vm1496_vm3, %v2294_v30, %v2334_v39  ;;  %v1504_v43 = vsel %vm1496_vm3, %v2295_v20, %v2335_v49  ;;  %v2408_v27 = vpop.permute.xlu0 %2407 }
 0x285   : >> { %v1513_v48 = vpack.c.bf16 %v1504_v43, %v1503_v26  ;;  %v1514_v37 = vpack.c.bf16 %v1500_v25, %v1499_v12  ;;  %v2410_v57 = vunpack.i.h.bf16 %v2408_v27  ;;  %v2409_v61 = vunpack.i.l.bf16 %v2408_v27  ;;  %v2338_v44 = vpop.permute.xlu1 %2337 }
 0x286   : >> { %v2340_v53 = vunpack.i.h.bf16 %v2338_v44  ;;  %v2339_v35 = vunpack.i.l.bf16 %v2338_v44  ;;  %v4158_v49 = vunpack.i.l.bf16 %v3667_v19  ;;  %v4159_v25 = vunpack.i.h.bf16 %v3519_v16 }
 0x287   : >> { %1519 = vst [vmem:[#allocation2 + $0x80] sm:$0xff] %v1513_v48  ;;  %1520 = vst [vmem:[#allocation2 + $0x88] sm:$0xff] %v1514_v37  ;;  %v1449_v36 = vsel %vm1447_vm1, %v2410_v57, %v2255_v24  ;;  %v1448_v62 = vsel %vm1447_vm1, %v2409_v61, %v2254_v42  ;;  %v1452_v20 = vsel %vm1447_vm1, %v2369_v63, %v2409_v61  ;;  %v4160_v26 = vunpack.i.l.bf16 %v3519_v16 }
 0x288   : >> { %v1453_v30 = vsel %vm1447_vm1, %v2370_v55, %v2410_v57  ;;  %v1462_v2 = vpack.c.bf16 %v1449_v36, %v1448_v62  ;;  %v1549_v28 = vsel %vm1545_vm4, %v2340_v53, %v2230_v40  ;;  %v1548_v24 = vsel %vm1545_vm4, %v2339_v35, %v2229_v14  ;;  %v2413_v42 = vpop.permute.xlu0 %2412 }
 0x289   : >> { %v1461_v50 = vpack.c.bf16 %v1453_v30, %v1452_v20  ;;  %v1552_v4 = vsel %vm1545_vm4, %v2299_v51, %v2339_v35  ;;  %v1553_v55 = vsel %vm1545_vm4, %v2300_v58, %v2340_v53  ;;  %v1563_v63 = vpack.c.bf16 %v1549_v28, %v1548_v24  ;;  %v2343_v45 = vpop.permute.xlu1 %2342 }
 0x28a   : >> { %v2415_v46 = vunpack.i.h.bf16 %v2413_v42  ;;  %1468 = vst [vmem:[#allocation2 + $0x40] sm:$0xff] %v1462_v2  ;;  %v1562_v59 = vpack.c.bf16 %v1553_v55, %v1552_v4  ;;  %v2414_v40 = vunpack.i.l.bf16 %v2413_v42  ;;  %v2345_v1 = vunpack.i.h.bf16 %v2343_v45 }
 0x28b   : >> { %1467 = vst [vmem:[#allocation2 + $0x38] sm:$0xff] %v1461_v50  ;;  %v2344_v14 = vunpack.i.l.bf16 %v2343_v45  ;;  %1569 = vst [vmem:[#allocation2 + $0xb8] sm:$0xff] %v1563_v63  ;;  %v4161_v37 = vunpack.i.l.bf16 %v3635_v41  ;;  %v4162_v57 = vunpack.i.h.bf16 %v3635_v41  ;;  %v4163_v30 = vunpack.i.h.bf16 %v3517_v18 }
 0x28c   : >> { %v1498_v51 = vsel %vm1496_vm3, %v2415_v46, %v4155_v47  ;;  %v1502_v58 = vsel %vm1496_vm3, %v4156_v54, %v2415_v46  ;;  %1568 = vst [vmem:[#allocation2 + $0xb0] sm:$0xff] %v1562_v59  ;;  %v1497_v10 = vsel %vm1496_vm3, %v2414_v40, %v4157_v7  ;;  %v1501_v39 = vsel %vm1496_vm3, %v4158_v49, %v2414_v40  ;;  %v2418_v27 = vpop.permute.xlu0 %2417 }
 0x28d   : >> { %v1610_v12 = vsel %vm1606_vm5, %v2345_v1, %v4159_v25  ;;  %v1609_v43 = vsel %vm1606_vm5, %v2344_v14, %v4160_v26  ;;  %v1510_v29 = vpack.c.bf16 %v1502_v58, %v1501_v39  ;;  %v1511_v48 = vpack.c.bf16 %v1498_v51, %v1497_v10  ;;  %v2348_v44 = vpop.permute.xlu1 %2347 }
 0x28e   : >> { %v1613_v19 = vsel %vm1606_vm5, %v4161_v37, %v2344_v14  ;;  %v1614_v61 = vsel %vm1606_vm5, %v4162_v57, %v2345_v1  ;;  %v1623_v35 = vpack.c.bf16 %v1610_v12, %v1609_v43  ;;  %v2420_v16 = vunpack.i.h.bf16 %v2418_v27 }
 0x28f   : >> { %v1622_v53 = vpack.c.bf16 %v1614_v61, %v1613_v19  ;;  %v2419_v36 = vunpack.i.l.bf16 %v2418_v27  ;;  %1516 = vst [vmem:[#allocation2 + $0x68] sm:$0xff] %v1510_v29  ;;  %1517 = vst [vmem:[#allocation2 + $0x70] sm:$0xff] %v1511_v48  ;;  %v2350_v62 = vunpack.i.h.bf16 %v2348_v44  ;;  %v2349_v20 = vunpack.i.l.bf16 %v2348_v44 }
 0x290   : >> { %1629 = vst [vmem:[#allocation2 + $0x110] sm:$0xff] %v1623_v35  ;;  %v1547_v50 = vsel %vm1545_vm4, %v2420_v16, %v4163_v30  ;;  %v4164_v41 = vunpack.i.l.bf16 %v3517_v18  ;;  %v4165_v28 = vunpack.i.l.bf16 %v3704_v9  ;;  %v4166_v42 = vunpack.i.h.bf16 %v3704_v9  ;;  %v2423_v55 = vpop.permute.xlu0 %2422 }
 0x291   : >> { %1628 = vst [vmem:[#allocation2 + $0x108] sm:$0xff] %v1622_v53  ;;  %v4167_v45 = vunpack.i.h.bf16 %v3523_v5  ;;  %v4168_v59 = vunpack.i.l.bf16 %v3523_v5  ;;  %v2353_v1 = vpop.permute.xlu1 %2352  ;;  %v4169_v14 = vunpack.i.l.bf16 %v3672_v56  ;;  %v4170_v47 = vunpack.i.h.bf16 %v3672_v56 }
 0x292   : >> { %v1546_v2 = vsel %vm1545_vm4, %v2419_v36, %v4164_v41  ;;  %v1550_v24 = vsel %vm1545_vm4, %v4165_v28, %v2419_v36  ;;  %v1551_v4 = vsel %vm1545_vm4, %v4166_v42, %v2420_v16  ;;  %v2425_v58 = vunpack.i.h.bf16 %v2423_v55 }
 0x293   : >> { %v1559_v63 = vpack.c.bf16 %v1551_v4, %v1550_v24  ;;  %v1560_v46 = vpack.c.bf16 %v1547_v50, %v1546_v2  ;;  %v1659_v18 = vsel %vm1655_vm6, %v2350_v62, %v4167_v45  ;;  %v1658_v40 = vsel %vm1655_vm6, %v2349_v20, %v4168_v59 }
 0x294   : >> { %v1662_v9 = vsel %vm1655_vm6, %v4169_v14, %v2349_v20  ;;  %v1663_v51 = vsel %vm1655_vm6, %v4170_v47, %v2350_v62  ;;  %v1672_v54 = vpack.c.bf16 %v1659_v18, %v1658_v40  ;;  %v2424_v5 = vunpack.i.l.bf16 %v2423_v55  ;;  %v2428_v26 = vpop.permute.xlu0 %2427 }
 0x295   : >> { %1565 = vst [vmem:[#allocation2 + $0x98] sm:$0xff] %v1559_v63  ;;  %1566 = vst [vmem:[#allocation2 + $0xa0] sm:$0xff] %v1560_v46  ;;  %v1671_v7 = vpack.c.bf16 %v1663_v51, %v1662_v9  ;;  %v2355_v10 = vunpack.i.h.bf16 %v2353_v1  ;;  %v2354_v49 = vunpack.i.l.bf16 %v2353_v1  ;;  %v4171_v39 = vunpack.i.h.bf16 %v3521_v31  ;;  %v3966_v44 = vpop.permute.xlu1 %2357 }
 0x296   : >> { %1678 = vst [vmem:[#allocation2 + $0x140] sm:$0xff] %v1672_v54  ;;  %v4172_v12 = vunpack.i.h.bf16 %v3740_v21  ;;  %v4173_v43 = vunpack.i.l.bf16 %v3521_v31  ;;  %v4174_v29 = vunpack.i.l.bf16 %v3740_v21  ;;  %v4175_v37 = vunpack.i.h.bf16 %v3530_v34 }
 0x297   : >> { %v1608_v25 = vsel %vm1606_vm5, %v2425_v58, %v4171_v39  ;;  %1677 = vst [vmem:[#allocation2 + $0x138] sm:$0xff] %v1671_v7  ;;  %v4176_v57 = vunpack.i.l.bf16 %v3530_v34  ;;  %v4177_v35 = vunpack.i.l.bf16 %v3709_v11  ;;  %v4178_v16 = vunpack.i.h.bf16 %v3709_v11 }
 0x298   : >> { %v1612_v56 = vsel %vm1606_vm5, %v4172_v12, %v2425_v58  ;;  %v1607_v27 = vsel %vm1606_vm5, %v2424_v5, %v4173_v43  ;;  %v1611_v48 = vsel %vm1606_vm5, %v4174_v29, %v2424_v5  ;;  %v1708_v19 = vsel %vm1704_vm7, %v2355_v10, %v4175_v37  ;;  %v2433_v24 = vpop.permute.xlu0 %2432 }
 0x299   : >> { %v1707_v61 = vsel %vm1704_vm7, %v2354_v49, %v4176_v57  ;;  %v1619_v31 = vpack.c.bf16 %v1612_v56, %v1611_v48  ;;  %v1620_v53 = vpack.c.bf16 %v1608_v25, %v1607_v27  ;;  %v1711_v21 = vsel %vm1704_vm7, %v4177_v35, %v2354_v49  ;;  %v2403_v18 = vpop.permute.xlu1 %2402 }
 0x29a   : >> { %v1712_v36 = vsel %vm1704_vm7, %v4178_v16, %v2355_v10  ;;  %v1721_v20 = vpack.c.bf16 %v1708_v19, %v1707_v61  ;;  %v2430_v34 = vunpack.i.h.bf16 %v2428_v26  ;;  %v2429_v30 = vunpack.i.l.bf16 %v2428_v26 }
 0x29b   : >> { %v1720_v62 = vpack.c.bf16 %v1712_v36, %v1711_v21  ;;  %v2320_v50 = vunpack.i.h.bf16 %v3745_v38  ;;  %v2319_v41 = vunpack.i.l.bf16 %v3745_v38  ;;  %1625 = vst [vmem:[#allocation2 + $0xf0] sm:$0xff] %v1619_v31  ;;  %1626 = vst [vmem:[#allocation2 + $0xf8] sm:$0xff] %v1620_v53  ;;  %v2360_v2 = vunpack.i.h.bf16 %v3966_v44 }
 0x29c   : >> { %v2359_v28 = vunpack.i.l.bf16 %v3966_v44  ;;  %1727 = vst [vmem:[#allocation2 + $0x170] sm:$0xff] %v1721_v20  ;;  %v4179_v11 = vunpack.i.h.bf16 %v3525_v17  ;;  %v4180_v4 = vunpack.i.l.bf16 %v3525_v17  ;;  %v4181_v38 = vunpack.i.l.bf16 %v3759_v6  ;;  %v2438_v7 = vpop.permute.xlu0 %2437 }
 0x29d   : >> { %1726 = vst [vmem:[#allocation2 + $0x168] sm:$0xff] %v1720_v62  ;;  %v4182_v46 = vunpack.i.h.bf16 %v3759_v6  ;;  %v1761_v17 = vsel %vm1753_vm8, %v2320_v50, %v2360_v2  ;;  %v2435_v9 = vunpack.i.h.bf16 %v2433_v24  ;;  %v2434_v47 = vunpack.i.l.bf16 %v2433_v24  ;;  %v2448_v39 = vpop.permute.xlu1 %2447 }
 0x29e   : >> { %v1657_v42 = vsel %vm1655_vm6, %v2430_v34, %v4179_v11  ;;  %v1656_v55 = vsel %vm1655_vm6, %v2429_v30, %v4180_v4  ;;  %v1660_v63 = vsel %vm1655_vm6, %v4181_v38, %v2429_v30  ;;  %v1760_v1 = vsel %vm1753_vm8, %v2319_v41, %v2359_v28 }
 0x29f   : >> { %v1661_v45 = vsel %vm1655_vm6, %v4182_v46, %v2430_v34  ;;  %v1669_v40 = vpack.c.bf16 %v1657_v42, %v1656_v55  ;;  %v1769_v14 = vpack.c.bf16 %v1761_v17, %v1760_v1  ;;  %v2405_v51 = vunpack.i.h.bf16 %v2403_v18 }
 0x2a0   : >> { %v1668_v59 = vpack.c.bf16 %v1661_v45, %v1660_v63  ;;  %v2400_v54 = vunpack.i.h.bf16 %v3823_v32  ;;  %v2399_v6 = vunpack.i.l.bf16 %v3823_v32  ;;  %v2404_v58 = vunpack.i.l.bf16 %v2403_v18  ;;  %v2443_v19 = vpop.permute.xlu0 %2442 }
 0x2a1   : >> { %1675 = vst [vmem:[#allocation2 + $0x128] sm:$0xff] %v1669_v40  ;;  %1775 = vst [vmem:[#allocation2 + $0x198] sm:$0xff] %v1769_v14  ;;  %v1706_v5 = vsel %vm1704_vm7, %v2435_v9, %v2280_v23  ;;  %v1705_v10 = vsel %vm1704_vm7, %v2434_v47, %v2279_v52  ;;  %v1709_v32 = vsel %vm1704_vm7, %v2394_v3, %v2434_v47  ;;  %v4183_v23 = vunpack.i.h.bf16 %v3505_v8 }
 0x2a2   : >> { %1674 = vst [vmem:[#allocation2 + $0x120] sm:$0xff] %v1668_v59  ;;  %v1710_v49 = vsel %vm1704_vm7, %v2395_v60, %v2435_v9  ;;  %v1718_v12 = vpack.c.bf16 %v1706_v5, %v1705_v10  ;;  %v4184_v52 = vunpack.i.l.bf16 %v3505_v8  ;;  %v4185_v3 = vunpack.i.l.bf16 %v3593_v13 }
 0x2a3   : >> { %v1717_v25 = vpack.c.bf16 %v1710_v49, %v1709_v32  ;;  %v1400_v15 = vsel %vm1398_vm2, %v2405_v51, %v4183_v23  ;;  %v4186_v60 = vunpack.i.h.bf16 %v3593_v13  ;;  %v2440_v27 = vunpack.i.h.bf16 %v2438_v7 }
 0x2a4   : >> { %v1399_v56 = vsel %vm1398_vm2, %v2404_v58, %v4184_v52  ;;  %v1403_v22 = vsel %vm1398_vm2, %v4185_v3, %v2404_v58  ;;  %1724 = vst [vmem:[#allocation2 + $0x158] sm:$0xff] %v1718_v12  ;;  %v2439_v48 = vunpack.i.l.bf16 %v2438_v7  ;;  %v2450_v8 = vunpack.i.h.bf16 %v2448_v39 }
 0x2a5   : >> { %v1404_v26 = vsel %vm1398_vm2, %v4186_v60, %v2405_v51  ;;  %v1413_v43 = vpack.c.bf16 %v1400_v15, %v1399_v56  ;;  %1723 = vst [vmem:[#allocation2 + $0x150] sm:$0xff] %v1717_v25  ;;  %v2449_v37 = vunpack.i.l.bf16 %v2448_v39  ;;  %v1759_v57 = vsel %vm1753_vm8, %v2400_v54, %v2440_v27 }
 0x2a6   : >> { %v1412_v29 = vpack.c.bf16 %v1404_v26, %v1403_v22  ;;  %v2445_v61 = vunpack.i.h.bf16 %v2443_v19  ;;  %v2444_v44 = vunpack.i.l.bf16 %v2443_v19  ;;  %v1758_v13 = vsel %vm1753_vm8, %v2399_v6, %v2439_v48 }
 0x2a7   : >> { %1419 = vst [vmem:[#allocation2 + $0x10] sm:$0xff] %v1413_v43  ;;  %v1757_v31 = vsel %vm1753_vm8, %v2360_v2, %v2450_v8  ;;  %v1765_v53 = vsel %vm1753_vm8, %v2450_v8, %v2320_v50  ;;  %v1756_v35 = vsel %vm1753_vm8, %v2359_v28, %v2449_v37  ;;  %v1766_v21 = vpack.c.bf16 %v1759_v57, %v1758_v13  ;;  %281 = sbr.rel (!%p279_p11) target bundleno = 47 (0x2f), region = 88 }
 0x2a8   : >> { %1418 = vst [vmem:[#allocation2 + $0x8] sm:$0xff] %v1412_v29  ;;  %v1764_v16 = vsel %vm1753_vm8, %v2449_v37, %v2319_v41  ;;  %v1770_v36 = vpack.c.bf16 %v1757_v31, %v1756_v35  ;;  %v1754_v62 = vsel %vm1753_vm8, %v2439_v48, %v2444_v44  ;;  %v1755_v34 = vsel %vm1753_vm8, %v2440_v27, %v2445_v61 }
 0x2a9   : >> { %v1771_v20 = vpack.c.bf16 %v1765_v53, %v1764_v16  ;;  %v1762_v30 = vsel %vm1753_vm8, %v2444_v44, %v2399_v6  ;;  %v1763_v50 = vsel %vm1753_vm8, %v2445_v61, %v2400_v54  ;;  %1772 = vst [vmem:[#allocation2 + $0x180] sm:$0xff] %v1766_v21  ;;  %v1767_v2 = vpack.c.bf16 %v1755_v34, %v1754_v62 }
 0x2aa   : >> { %1776 = vst [vmem:[#allocation2 + $0x1a0] sm:$0xff] %v1770_v36  ;;  %v1768_v28 = vpack.c.bf16 %v1763_v50, %v1762_v30 }
 0x2ab   : >> { %1777 = vst [vmem:[#allocation2 + $0x1a8] sm:$0xff] %v1771_v20  ;;  %1773 = vst [vmem:[#allocation2 + $0x188] sm:$0xff] %v1767_v2 }
 0x2ac   : >> { %1774 = vst [vmem:[#allocation2 + $0x190] sm:$0xff] %v1768_v28 }
 0x2ae   : > { %2688 = shalt.err (!%p2685_p4)
}
 0x2af   : > { %s2689_s29 = scalar_lea.hbm %s4062_s30, 1536  ;;  %s2693_s8 = scalar_lea.hbm %s4113_s4, 3072 }
 0x2b0   : > { %p2690_p7 = scmp.ne.s32.totalorder %s4062_s30, %s2689_s29  ;;  %p2694_p10 = scmp.lt.u32.totalorder %s4062_s30, %s4113_s4 }
 0x2b1   : > { %p2695_p11 = scmp.lt.u32.totalorder %s2693_s8, %s2689_s29  ;;  %p2697_p13 = scmp.lt.u32.totalorder %s2689_s29, %s4062_s30 }
 0x2b2   : > { %p2691_p8 = pnand %p2690_p7, %p2824_p5 }
 0x2b3   : > { %p2696_p12 = por %p2695_p11, %p2694_p10 }
 0x2b4   : > { %p2692_p9 = pneg %p2691_p8 }
 0x2b5   : > { %p2698_p0 = por %p2697_p13, %p2696_p12 }
 0x2b7   : > { %p2699_p1 = pnand %p2698_p0, %p2692_p9 }
 0x2b9   : > { %2702 = shalt.err (!%p2699_p1)
}
 0x2ba   : > { %s2759_s12 = smov 384   ;;  %s2760_s13 = smov 24  }
 0x2bb   : > { %2151 = dma.vmem_to_hbm [thread:$0]  (%p2824_p5), %s4064_s23, 1536, %s4062_s30, %s4068_s5, %s2759_s12, %s2759_s12, %s2760_s13  }
 0x2bc PF: > { %p2157_p2 = scmp.ge.s32.totalorder %s2741_s18, 2  ;;  %s1823_s22 = sand.u32 1, %s2729_s15  }
 0x2bd   : > { %s1824_s27 = scalar_lea.sflag [#allocation4], %s1823_s22 }
 0x2be   : > { %p2154_p3 = pnand %p2157_p2, %p2828_p6 }
 0x2c0   : > { %2724 = dma.done.wait (!%p2154_p3), %s1824_s27, 1536  }
 0x2c1   : > { %2726 = vsyncadd (!%p2154_p3), %s1824_s27, 4294965760  ;;  %p15_p4 = scmp.ge.s32.totalorder %s2811_s21, 4   ;;  %s4187_s15 = smov %s2733_s16 }
 0x2c2   : > { %s4188_s16 = smov %s2737_s17  ;;  %s4189_s17 = smov %s2822_s24 }
 0x2c3   : > { %s4190_s18 = smov %s2811_s21  ;;  %17 = sbr.rel (!%p15_p4) target bundleno = 3 (0x3), region = 99 }
 0x2ca   :  { %1829 = vsyncpa [#allocation4], 1 }
 0x2cb   :  { %1831 = vsyncpa [#allocation4 + $0x1], 1 }

// kernel: convlstm_forward.7
= control target key start
LH: loop header
LB: loop body
LE: loop exit
PB: predicated region body
PF: predicated region fallthrough
CT: control target
= control target key end

     0   :  { %s2230_s12 = smov 0   ;;  %s3196_s0 = inlined_call_operand.vmem [shape: f32[2,8,32,384], index: 0, kind: input, shape index: {}]   ;;  %s3197_s1 = inlined_call_operand.vmem [shape: bf16[128,288], index: 1, kind: input, shape index: {}]   ;;  %s3198_s2 = inlined_call_operand.vmem [shape: f32[128,1], index: 2, kind: input, shape index: {}]   ;;  %s3199_s3 = inlined_call_operand.vmem [shape: bf16[2,8,128,384], index: 3, kind: output, shape index: {}]  }
   0x1 LB: > { %s1605_s13 = sadd.s32 4294967295, %s2195_s12   ;;  %p1609_p0 = scmp.ge.s32.totalorder %s2195_s12, 1  ;;  %s2195_s12 = sphi %s2230_s12, %s13_s12  }
   0x2   : > { %p137_p1 = scmp.lt.s32.totalorder %s2195_s12, 3 }
   0x4   : > { %p138_p2 = pnand %p1609_p0, %p137_p1 }
   0x5   : > { %p161_p3 = scmp.lt.s32.totalorder (!%p138_p2), %s1605_s13, 1  ;;  %s2248_s22 = smov (!%p138_p2), 0  }
   0x6   : > { %141 = sbr.rel (%p138_p2) target bundleno = 545 (0x221), region = 32 }
   0xd   : > { %s3221_s13 = smov (!%p161_p3, %s1605_s13), 1 }
   0xe   : > { %s1884_s14 = smul.u32 768, %s3221_s13 }
   0xf   : > { %s1885_s15 = smul.u32 1536, %s3221_s13 }
  0x10   : > { %s2241_s18 = scalar_lea.vmem %s3196_s0, %s1884_s14 }
  0x11   : > { %s2246_s21 = scalar_lea.vmem %s3199_s3, %s1885_s15 }
  0x12 LB: >> { %s1688_s23 = smul.u32 96, %s2199_s22  ;;  %s2201_s25 = smov 19   ;;  %v2204_v19 = vmov 0   ;;  %v2346_v25 = vld [vmem:[%s3197_s1 + $0x4] ss:$12 sps:$4 sm:$0xff]   ;;  %v217_v26 = vlaneseq  ;;  %vm901_vm4 = vcmask 261120   ;;  %s2199_s22 = sphi %s2248_s22, %s177_s22  }
  0x13   : >> { %s2202_s26 = smov 18   ;;  %s2203_s27 = smov 109   ;;  %1101 = vmatprep.mubr.bf16.mxu1 %v2204_v19  ;;  %2152 = vset.pattern.permute.xlu1 %v2204_v19 }
  0x14   : >> { %s180_s24 = scalar_lea.vmem %s2241_s18, %s1688_s23  ;;  %2151 = vset.pattern.permute.xlu0 %v2204_v19  ;;  %s2205_s28 = smov 17   ;;  %958 = vmatprep.mubr.bf16.mxu0 %v2346_v25  ;;  %v2354_v28 = vand.u32 127, %v217_v26 }
  0x15   : >> { %v2255_v0 = vld [vmem:[%s180_s24 + $0x10] sm:$0xff]  ;;  %v2257_v1 = vld [vmem:[%s180_s24 + $0x28] sm:$0xff]  ;;  %v2259_v2 = vld [vmem:[%s180_s24] sm:$0xff]  ;;  %s2206_s29 = smov 1   ;;  %s2207_s30 = smov 127  }
  0x16   : >> { %v2263_v3 = vpack.i.bf16 %v2257_v1, %v2255_v0  ;;  %v2265_v4 = vld [vmem:[%s180_s24 + $0x18] sm:$0xff]  ;;  %v2267_v5 = vld [vmem:[%s180_s24 + $0x30] sm:$0xff]  ;;  %v2269_v6 = vld [vmem:[%s180_s24 + $0x48] sm:$0xff]  ;;  %v393_v18 = vpack.c.bf16 %v2257_v1, %v2255_v0  ;;  %s2208_s4 = smov 111   ;;  %s2209_s5 = smov 110   ;;  %vm219_vm0 = vcmp.lt.s32.totalorder %v2354_v28, 19 }
  0x17   : >> { %v2273_v7 = vpack.i.bf16 %v2265_v4, %v2259_v2  ;;  %v2275_v8 = vld [vmem:[%s180_s24 + $0x8] sm:$0xff]  ;;  %v2277_v9 = vld [vmem:[%s180_s24 + $0x20] sm:$0xff]  ;;  %v2284_v11 = vpack.i.bf16 %v2269_v6, %v2267_v5  ;;  %v2286_v12 = vld [vmem:[%s180_s24 + $0x58] sm:$0xff]  ;;  %v391_v22 = vpack.c.bf16 %v2265_v4, %v2259_v2  ;;  %vm268_vm1 = vcmp.lt.s32.totalorder %v2354_v28, 18  ;;  %s1721_s19 = smul.u32 192, %s2199_s22  ;;  %s177_s22 = sadd.s32 1, %s2199_s22  }
  0x18   : >> { %v2279_v10 = vld [vmem:[%s180_s24 + $0x40] sm:$0xff]  ;;  %1922 = vrot.lane.b32.xlu1 %v2263_v3, %s2201_s25  ;;  %v2288_v13 = vld [vmem:[%s180_s24 + $0x38] sm:$0xff]  ;;  %v2290_v14 = vld [vmem:[%s180_s24 + $0x50] sm:$0xff]  ;;  %v2295_v15 = vpack.i.bf16 %v2277_v9, %v2275_v8  ;;  %v392_v21 = vpack.c.bf16 %v2277_v9, %v2275_v8  ;;  %vm574_vm2 = vcmp.lt.s32.totalorder %v2354_v28, 109  ;;  %vm317_vm3 = vcmp.lt.s32.totalorder %v2354_v28, 17  ;;  %p174_p4 = scmp.ge.s32.totalorder %s177_s22, 8  }
  0x19   : >> { %1912 = vrot.lane.b32.xlu0 %v2273_v7, %s2201_s25  ;;  %v1936_v16 = vpack.i.bf16 %v2286_v12, %v2279_v10  ;;  %v1931_v17 = vpack.i.bf16 %v2290_v14, %v2288_v13  ;;  %v396_v20 = vpack.c.bf16 %v2286_v12, %v2279_v10  ;;  %v2575_v12 = vld [vmem:[%s3197_s1 + $0x68] ss:$12 sps:$4 sm:$0xff]   ;;  %vm366_vm5 = vcmp.lt.s32.totalorder %v2354_v28, 1  ;;  %v689_v9 = vld [vmem:[%s3198_s2 + $0x20] sm:$0xff]  ;;  %s3050_s20 = scalar_lea.vmem %s2246_s21, %s1721_s19 }
  0x1a   : >> { %vm427_vm6 = vcmp.lt.s32.totalorder %v2354_v28, 127  ;;  %vm476_vm7 = vcmp.lt.s32.totalorder %v2354_v28, 111  ;;  %vm525_vm8 = vcmp.lt.s32.totalorder %v2354_v28, 110  ;;  %v2164_v28 = vld [vmem:[%s3197_s1 + $0x34] ss:$12 sps:$4 sm:$0xff]  }
  0x1c   : >> { %1927 = vrot.lane.b32.xlu1 %v2284_v11, %s2201_s25 }
  0x1d   : >> { %1917 = vrot.lane.b32.xlu0 %v2295_v15, %s2201_s25 }
  0x20   : >> { %1937 = vrot.lane.b32.xlu1 %v1936_v16, %s2201_s25 }
  0x21   : >> { %1932 = vrot.lane.b32.xlu0 %v1931_v17, %s2201_s25 }
  0x24   : >> { %1947 = vrot.lane.b32.xlu1 %v2295_v15, %s2202_s26 }
  0x25   : >> { %1942 = vrot.lane.b32.xlu0 %v2273_v7, %s2202_s26 }
  0x28   : >> { %1957 = vrot.lane.b32.xlu1 %v2263_v3, %s2203_s27 }
  0x29   : >> { %1952 = vrot.lane.b32.xlu0 %v2295_v15, %s2203_s27 }
  0x2c   : >> { %1967 = vrot.lane.b32.xlu1 %v2273_v7, %s2203_s27 }
  0x2d   : >> { %1962 = vrot.lane.b32.xlu0 %v2263_v3, %s2202_s26 }
  0x30   : >> { %1977 = vrot.lane.b32.xlu1 %v1931_v17, %s2202_s26 }
  0x31   : >> { %1972 = vrot.lane.b32.xlu0 %v2284_v11, %s2202_s26 }
  0x34   : >> { %1987 = vrot.lane.b32.xlu1 %v1936_v16, %s2203_s27 }
  0x35   : >> { %1982 = vrot.lane.b32.xlu0 %v1931_v17, %s2203_s27 }
  0x38   : >> { %1997 = vrot.lane.b32.xlu1 %v2284_v11, %s2203_s27 }
  0x39   : >> { %1992 = vrot.lane.b32.xlu0 %v1936_v16, %s2202_s26 }
  0x3c   : >> { %2007 = vrot.lane.b32.xlu1 %v2295_v15, %s2205_s28 }
  0x3d   : >> { %2002 = vrot.lane.b32.xlu0 %v2273_v7, %s2205_s28 }
  0x40   : >> { %2017 = vrot.lane.b32.xlu1 %v2284_v11, %s2205_s28 }
  0x41   : >> { %2012 = vrot.lane.b32.xlu0 %v2263_v3, %s2205_s28 }
  0x44   : >> { %2027 = vrot.lane.b32.xlu1 %v1936_v16, %s2205_s28 }
  0x45   : >> { %2022 = vrot.lane.b32.xlu0 %v1931_v17, %s2205_s28 }
  0x48   : >> { %2037 = vrot.lane.b32.xlu1 %v2295_v15, %s2206_s29 }
  0x49   : >> { %2032 = vrot.lane.b32.xlu0 %v2273_v7, %s2206_s29 }
  0x4c   : >> { %2047 = vrot.lane.b32.xlu1 %v2284_v11, %s2206_s29 }
  0x4d   : >> { %2042 = vrot.lane.b32.xlu0 %v2263_v3, %s2206_s29 }
  0x50   : >> { %2057 = vrot.lane.b32.xlu1 %v1936_v16, %s2206_s29 }
  0x51   : >> { %2052 = vrot.lane.b32.xlu0 %v1931_v17, %s2206_s29 }
  0x54   : >> { %2067 = vrot.lane.b32.xlu1 %v2263_v3, %s2207_s30 }
  0x55   : >> { %2062 = vrot.lane.b32.xlu0 %v2273_v7, %s2207_s30 }
  0x58   : >> { %2077 = vrot.lane.b32.xlu1 %v1936_v16, %s2207_s30 }
  0x59   : >> { %2072 = vrot.lane.b32.xlu0 %v2284_v11, %s2207_s30 }
  0x5c   : >> { %2087 = vrot.lane.b32.xlu1 %v2273_v7, %s2208_s4 }
  0x5d   : >> { %2082 = vrot.lane.b32.xlu0 %v2295_v15, %s2207_s30 }
  0x60   : >> { %2097 = vrot.lane.b32.xlu1 %v1931_v17, %s2207_s30 }
  0x61   : >> { %2092 = vrot.lane.b32.xlu0 %v2263_v3, %s2208_s4 }
  0x64   : >> { %2107 = vrot.lane.b32.xlu1 %v1936_v16, %s2208_s4 }
  0x65   : >> { %2102 = vrot.lane.b32.xlu0 %v2284_v11, %s2208_s4 }
  0x68   : >> { %2117 = vrot.lane.b32.xlu1 %v2273_v7, %s2209_s5 }
  0x69   : >> { %2112 = vrot.lane.b32.xlu0 %v2295_v15, %s2208_s4 }
  0x6c   : >> { %2127 = vrot.lane.b32.xlu1 %v1931_v17, %s2208_s4 }
  0x6d   : >> { %2122 = vrot.lane.b32.xlu0 %v2263_v3, %s2209_s5 }
  0x70   : >> { %2137 = vrot.lane.b32.xlu1 %v1936_v16, %s2209_s5 }
  0x71   : >> { %2132 = vrot.lane.b32.xlu0 %v2284_v11, %s2209_s5 }
  0x74   : >> { %2147 = vrot.lane.b32.xlu1 %v1931_v17, %s2209_s5 }
  0x75   : >> { %2142 = vrot.lane.b32.xlu0 %v2295_v15, %s2209_s5 }
  0x8a   : >> { %v2352_v27 = vpop.permute.xlu1 %1922 }
  0x8b   : >> { %v1913_v29 = vpop.permute.xlu0 %1912  ;;  %v1925_v30 = vunpack.i.h.bf16 %v2352_v27  ;;  %v1924_v31 = vunpack.i.l.bf16 %v2352_v27 }
  0x8c   : >> { %v1915_v32 = vunpack.i.h.bf16 %v1913_v29  ;;  %v1914_v33 = vunpack.i.l.bf16 %v1913_v29 }
  0x8e   : >> { %v1928_v34 = vpop.permute.xlu1 %1927  ;;  %v228_v38 = vsel %vm219_vm0, %v1924_v31, %v1914_v33  ;;  %v229_v39 = vsel %vm219_vm0, %v1925_v30, %v1915_v32 }
  0x8f   : >> { %v2359_v35 = vpop.permute.xlu0 %1917  ;;  %v1930_v40 = vunpack.i.h.bf16 %v1928_v34  ;;  %v1929_v44 = vunpack.i.l.bf16 %v1928_v34  ;;  %v232_v51 = vpack.c.bf16 %v229_v39, %v228_v38 }
  0x90   : >> { %v1920_v36 = vunpack.i.h.bf16 %v2359_v35  ;;  %v1919_v37 = vunpack.i.l.bf16 %v2359_v35 }
  0x92   : >> { %v2371_v41 = vpop.permute.xlu1 %1937  ;;  %v224_v42 = vsel %vm219_vm0, %v1914_v33, %v1919_v37  ;;  %v225_v43 = vsel %vm219_vm0, %v1915_v32, %v1920_v36 }
  0x93   : >> { %v1940_v45 = vunpack.i.h.bf16 %v2371_v41  ;;  %v1939_v46 = vunpack.i.l.bf16 %v2371_v41  ;;  %v2383_v47 = vpop.permute.xlu0 %1932  ;;  %v233_v48 = vpack.c.bf16 %v225_v43, %v224_v42 }
  0x94   : >> { %v1935_v49 = vunpack.i.h.bf16 %v2383_v47  ;;  %v1934_v50 = vunpack.i.l.bf16 %v2383_v47 }
  0x95   : >> { %926 = vmatprep.subr.bf16.mxu0 %v233_v48  ;;  %v230_v52 = vsel %vm219_vm0, %v1939_v46, %v1929_v44  ;;  %v231_v53 = vsel %vm219_vm0, %v1940_v45, %v1930_v40 }
  0x96   : >> { %927 = vmatpush1.bf16.msra.mxu0 %v232_v51  ;;  %v2395_v54 = vpop.permute.xlu1 %1947  ;;  %v226_v55 = vsel %vm219_vm0, %v1929_v44, %v1934_v50  ;;  %v227_v56 = vsel %vm219_vm0, %v1930_v40, %v1935_v49  ;;  %v235_v63 = vpack.c.bf16 %v231_v53, %v230_v52  ;;  %v222_v0 = vsel %vm219_vm0, %v1934_v50, %v1939_v46 }
  0x97   : >> { %v1950_v57 = vunpack.i.h.bf16 %v2395_v54  ;;  %v1949_v58 = vunpack.i.l.bf16 %v2395_v54  ;;  %v1943_v59 = vpop.permute.xlu0 %1942  ;;  %v236_v60 = vpack.c.bf16 %v227_v56, %v226_v55 }
  0x98   : >> { %v1945_v61 = vunpack.i.h.bf16 %v1943_v59  ;;  %v1944_v62 = vunpack.i.l.bf16 %v1943_v59 }
  0x99   : >> { %928 = vmatprep.subr.bf16.mxu0 %v236_v60 }
  0x9a   : >> { %929 = vmatpush1.bf16.msra.mxu0 %v235_v63  ;;  %v1958_v3 = vpop.permute.xlu1 %1957  ;;  %v273_v7 = vsel %vm268_vm1, %v1944_v62, %v1949_v58  ;;  %v274_v11 = vsel %vm268_vm1, %v1945_v61, %v1950_v57 }
  0x9b   : >> { %v1960_v15 = vunpack.i.h.bf16 %v1958_v3  ;;  %v1959_v16 = vunpack.i.l.bf16 %v1958_v3  ;;  %v1953_v17 = vpop.permute.xlu0 %1952  ;;  %v282_v26 = vpack.c.bf16 %v274_v11, %v273_v7 }
  0x9c   : >> { %v1955_v29 = vunpack.i.h.bf16 %v1953_v17  ;;  %v1954_v32 = vunpack.i.l.bf16 %v1953_v17 }
  0x9d   : >> { %930 = vmatprep.subr.bf16.mxu0 %v282_v26 }
  0x9e   : >> { %v1968_v33 = vpop.permute.xlu1 %1967  ;;  %v575_v34 = vsel %vm574_vm2, %v1954_v32, %v1959_v16  ;;  %v576_v38 = vsel %vm574_vm2, %v1955_v29, %v1960_v15 }
  0x9f   : >> { %v1970_v39 = vunpack.i.h.bf16 %v1968_v33  ;;  %v1969_v40 = vunpack.i.l.bf16 %v1968_v33  ;;  %v2421_v42 = vpop.permute.xlu0 %1962  ;;  %v2423_v43 = vpack.c.bf16 %v576_v38, %v575_v34 }
  0xa0   : >> { %v1965_v44 = vunpack.i.h.bf16 %v2421_v42  ;;  %v1964_v48 = vunpack.i.l.bf16 %v2421_v42 }
  0xa1   : >> { %1816 = vmatprep.subr.bf16.mxu1 %v2423_v43  ;;  %v579_v51 = vsel %vm574_vm2, %v1969_v40, %v1954_v32  ;;  %v580_v52 = vsel %vm574_vm2, %v1970_v39, %v1955_v29  ;;  %v583_v53 = vsel %vm574_vm2, %v1959_v16, %v1969_v40  ;;  %v584_v55 = vsel %vm574_vm2, %v1960_v15, %v1970_v39 }
  0xa2   : >> { %v2436_v56 = vpop.permute.xlu1 %1977  ;;  %v277_v59 = vsel %vm268_vm1, %v1964_v48, %v1944_v62  ;;  %v278_v60 = vsel %vm268_vm1, %v1965_v44, %v1945_v61  ;;  %v2448_v17 = vpack.c.bf16 %v580_v52, %v579_v51  ;;  %v2450_v26 = vpack.c.bf16 %v584_v55, %v583_v53 }
  0xa3   : >> { %v1980_v63 = vunpack.i.h.bf16 %v2436_v56  ;;  %v1979_v3 = vunpack.i.l.bf16 %v2436_v56  ;;  %v1973_v7 = vpop.permute.xlu0 %1972  ;;  %v281_v11 = vpack.c.bf16 %v278_v60, %v277_v59 }
  0xa4   : >> { %v1975_v16 = vunpack.i.h.bf16 %v1973_v7  ;;  %v1974_v15 = vunpack.i.l.bf16 %v1973_v7  ;;  %1818 = vmatpush1.bf16.msra.mxu1 %v2448_v17 }
  0xa5   : >> { %931 = vmatpush1.bf16.msra.mxu0 %v281_v11 }
  0xa6   : >> { %v1988_v62 = vpop.permute.xlu1 %1987  ;;  %v275_v61 = vsel %vm268_vm1, %v1974_v15, %v1979_v3  ;;  %v276_v29 = vsel %vm268_vm1, %v1975_v16, %v1980_v63 }
  0xa7   : >> { %v1990_v32 = vunpack.i.h.bf16 %v1988_v62  ;;  %v1989_v33 = vunpack.i.l.bf16 %v1988_v62  ;;  %v1983_v34 = vpop.permute.xlu0 %1982  ;;  %v285_v38 = vpack.c.bf16 %v276_v29, %v275_v61 }
  0xa8   : >> { %v1985_v39 = vunpack.i.h.bf16 %v1983_v34  ;;  %v1984_v40 = vunpack.i.l.bf16 %v1983_v34 }
  0xa9   : >> { %932 = vmatprep.subr.bf16.mxu0 %v285_v38 }
  0xaa   : >> { %v1998_v51 = vpop.permute.xlu1 %1997  ;;  %v577_v52 = vsel %vm574_vm2, %v1984_v40, %v1989_v33  ;;  %v578_v53 = vsel %vm574_vm2, %v1985_v39, %v1990_v32 }
  0xab   : >> { %v2000_v55 = vunpack.i.h.bf16 %v1998_v51  ;;  %v1999_v59 = vunpack.i.l.bf16 %v1998_v51  ;;  %v2465_v60 = vpop.permute.xlu0 %1992  ;;  %v2467_v7 = vpack.c.bf16 %v578_v53, %v577_v52 }
  0xac   : >> { %v1995_v11 = vunpack.i.h.bf16 %v2465_v60  ;;  %v1994_v62 = vunpack.i.l.bf16 %v2465_v60 }
  0xad   : >> { %1817 = vmatprep.subr.bf16.mxu1 %v2467_v7  ;;  %v581_v61 = vsel %vm574_vm2, %v1999_v59, %v1984_v40  ;;  %v582_v29 = vsel %vm574_vm2, %v2000_v55, %v1985_v39  ;;  %v585_v34 = vsel %vm574_vm2, %v1989_v33, %v1999_v59  ;;  %v586_v38 = vsel %vm574_vm2, %v1990_v32, %v2000_v55 }
  0xae   : >> { %v2480_v51 = vpop.permute.xlu1 %2007  ;;  %v279_v52 = vsel %vm268_vm1, %v1994_v62, %v1974_v15  ;;  %v280_v40 = vsel %vm268_vm1, %v1995_v11, %v1975_v16  ;;  %v2493_v24 = vpack.c.bf16 %v582_v29, %v581_v61  ;;  %v2495_v23 = vpack.c.bf16 %v586_v38, %v585_v34  ;;  %v2512_v61 = vld [vmem:[%s3197_s1 + $0x50] ss:$12 sps:$4 sm:$0xff]  }
  0xaf   : >> { %v2010_v39 = vunpack.i.h.bf16 %v2480_v51  ;;  %v2009_v53 = vunpack.i.l.bf16 %v2480_v51  ;;  %v2003_v33 = vpop.permute.xlu0 %2002  ;;  %v284_v59 = vpack.c.bf16 %v280_v40, %v279_v52  ;;  %v221_v16 = vsel %vm219_vm0, %v1920_v36, %v1925_v30 }
  0xb0   : >> { %v2005_v32 = vunpack.i.h.bf16 %v2003_v33  ;;  %v2004_v55 = vunpack.i.l.bf16 %v2003_v33  ;;  %v220_v15 = vsel %vm219_vm0, %v1919_v37, %v1924_v31  ;;  %1819 = vmatpush1.bf16.msra.mxu1 %v2493_v24  ;;  %v223_v38 = vsel %vm219_vm0, %v1935_v49, %v1940_v45 }
  0xb1   : >> { %933 = vmatpush1.bf16.msra.mxu0 %v284_v59  ;;  %1722 = vmatprep.subr.bf16.mxu1 %v393_v18  ;;  %v234_v36 = vpack.c.bf16 %v221_v16, %v220_v15  ;;  %v237_v40 = vpack.c.bf16 %v223_v38, %v222_v0  ;;  %v271_v8 = vsel %vm268_vm1, %v1979_v3, %v1994_v62 }
  0xb2   : >> { %v2018_v29 = vpop.permute.xlu1 %2017  ;;  %v322_v30 = vsel %vm317_vm3, %v2004_v55, %v2009_v53  ;;  %v323_v27 = vsel %vm317_vm3, %v2005_v32, %v2010_v39 }
  0xb3   : >> { %v2523_v31 = vpop.permute.xlu0 %2012  ;;  %v331_v35 = vpack.c.bf16 %v323_v27, %v322_v30  ;;  %1640 = vmatmul.mubr.msk.bf16.vlgmr.msra.gmra.mrb[0].mxu1 %vm901_vm4, %v2512_v61  ;;  %v2020_v1 = vunpack.i.h.bf16 %v2018_v29  ;;  %v2019_v47 = vunpack.i.l.bf16 %v2018_v29 }
  0xb4   : >> { %v2015_v37 = vunpack.i.h.bf16 %v2523_v31  ;;  %v2014_v34 = vunpack.i.l.bf16 %v2523_v31  ;;  %1723 = vmatpush3.bf16.msra.mxu1 %v234_v36  ;;  %1111 = vmatprep.mubr.bf16.mxu1 %v2204_v19  ;;  %v3210_v31 = vpack.c.bf16 %v2269_v6, %v2267_v5  ;;  %v2757_v5 = vld [vmem:[%s3197_s1 + $0xb0] ss:$12 sps:$4 sm:$0xff]  }
  0xb5   : >> { %934 = vmatprep.subr.bf16.mxu0 %v331_v35  ;;  %1724 = vmatprep.subr.bf16.mxu1 %v396_v20 }
  0xb6   : >> { %v2544_v18 = vpop.permute.xlu1 %2027  ;;  %v326_v45 = vsel %vm317_vm3, %v2014_v34, %v2004_v55  ;;  %v327_v41 = vsel %vm317_vm3, %v2015_v37, %v2005_v32 }
  0xb7   : >> { %v2030_v46 = vunpack.i.h.bf16 %v2544_v18  ;;  %v3208_v49 = vunpack.i.l.bf16 %v2544_v18  ;;  %v2556_v50 = vpop.permute.xlu0 %2022  ;;  %v330_v52 = vpack.c.bf16 %v327_v41, %v326_v45 }
  0xb8   : >> { %v2025_v33 = vunpack.i.h.bf16 %v2556_v50  ;;  %v3206_v59 = vunpack.i.l.bf16 %v2556_v50  ;;  %1725 = vmatpush3.bf16.msra.mxu1 %v237_v40 }
  0xb9   : >> { %935 = vmatpush1.bf16.msra.mxu0 %v330_v52  ;;  %v328_v32 = vsel %vm317_vm3, %v3208_v49, %v2019_v47  ;;  %v329_v10 = vsel %vm317_vm3, %v2030_v46, %v2020_v1 }
  0xba   : >> { %v2577_v20 = vpop.permute.xlu1 %2037  ;;  %v324_v55 = vsel %vm317_vm3, %v2019_v47, %v3206_v59  ;;  %v325_v16 = vsel %vm317_vm3, %v2020_v1, %v2025_v33  ;;  %v333_v38 = vpack.c.bf16 %v329_v10, %v328_v32  ;;  %v2608_v32 = vld [vmem:[%s3197_s1 + $0x80] ss:$12 sps:$4 sm:$0xff]  }
  0xbb   : >> { %v3201_v15 = vunpack.i.h.bf16 %v2577_v20  ;;  %v3200_v29 = vunpack.i.l.bf16 %v2577_v20  ;;  %v2033_v30 = vpop.permute.xlu0 %2032  ;;  %v334_v27 = vpack.c.bf16 %v325_v16, %v324_v55  ;;  %1641 = vmatmul.mubr.msk.bf16.gmra.mrb[4].mxu1 %vm901_vm4, %v2575_v12 }
  0xbc   : >> { %v2035_v35 = vunpack.i.h.bf16 %v2033_v30  ;;  %v2034_v36 = vunpack.i.l.bf16 %v2033_v30  ;;  %1121 = vmatprep.mubr.bf16.mxu1 %v2204_v19 }
  0xbd   : >> { %936 = vmatprep.subr.bf16.mxu0 %v334_v27 }
  0xbe   : >> { %937 = vmatpush1.bf16.msra.mxu0 %v333_v38  ;;  %v2048_v0 = vpop.permute.xlu1 %2047  ;;  %v371_v1 = vsel %vm366_vm5, %v2034_v36, %v3200_v29  ;;  %v372_v45 = vsel %vm366_vm5, %v2035_v35, %v3201_v15 }
  0xbf   : >> { %v2601_v41 = vpop.permute.xlu0 %2042  ;;  %v380_v47 = vpack.c.bf16 %v372_v45, %v371_v1  ;;  %v2050_v10 = vunpack.i.h.bf16 %v2048_v0  ;;  %v2049_v27 = vunpack.i.l.bf16 %v2048_v0 }
  0xc0   : >> { %v3205_v52 = vunpack.i.h.bf16 %v2601_v41  ;;  %v3204_v40 = vunpack.i.l.bf16 %v2601_v41 }
  0xc1   : >> { %938 = vmatprep.subr.bf16.mxu0 %v380_v47 }
  0xc2   : >> { %v2610_v55 = vpop.permute.xlu1 %2057  ;;  %v375_v16 = vsel %vm366_vm5, %v3204_v40, %v2034_v36  ;;  %v376_v30 = vsel %vm366_vm5, %v3205_v52, %v2035_v35  ;;  %v685_v36 = vld [vmem:[%s3198_s2] sm:$0xff] }
  0xc3   : >> { %v3203_v38 = vunpack.i.h.bf16 %v2610_v55  ;;  %v3202_v1 = vunpack.i.l.bf16 %v2610_v55  ;;  %v2622_v45 = vpop.permute.xlu0 %2052  ;;  %v379_v47 = vpack.c.bf16 %v376_v30, %v375_v16  ;;  %1642 = vmatmul.mubr.msk.bf16.gmra.mrb[8].mxu1 %vm901_vm4, %v2608_v32  ;;  %v686_v16 = vld [vmem:[%s3198_s2 + $0x8] sm:$0xff]  ;;  %703 = vperm.xlu0 %2151, %v685_v36   ;;  %v269_v36 = vsel %vm268_vm1, %v1949_v58, %v1964_v48 }
  0xc4   : >> { %v2055_v29 = vunpack.i.h.bf16 %v2622_v45  ;;  %v3207_v15 = vunpack.i.l.bf16 %v2622_v45  ;;  %1131 = vmatprep.mubr.bf16.mxu1 %v2204_v19  ;;  %708 = vperm.xlu1 %2152, %v686_v16  }
  0xc5   : >> { %939 = vmatpush1.bf16.msra.mxu0 %v379_v47  ;;  %v377_v35 = vsel %vm366_vm5, %v3202_v1, %v2049_v27  ;;  %v378_v0 = vsel %vm366_vm5, %v3203_v38, %v2050_v10 }
  0xc6   : >> { %v2642_v30 = vpop.permute.xlu1 %2067  ;;  %v373_v47 = vsel %vm366_vm5, %v2049_v27, %v3207_v15  ;;  %v374_v1 = vsel %vm366_vm5, %v2050_v10, %v2055_v29  ;;  %v382_v49 = vpack.c.bf16 %v378_v0, %v377_v35  ;;  %v687_v10 = vld [vmem:[%s3198_s2 + $0x10] sm:$0xff]  ;;  %v688_v35 = vld [vmem:[%s3198_s2 + $0x18] sm:$0xff] }
  0xc7   : >> { %v2070_v38 = vunpack.i.h.bf16 %v2642_v30  ;;  %v2069_v40 = vunpack.i.l.bf16 %v2642_v30  ;;  %v2655_v52 = vpop.permute.xlu0 %2062  ;;  %v383_v59 = vpack.c.bf16 %v374_v1, %v373_v47  ;;  %v270_v1 = vsel %vm268_vm1, %v1950_v57, %v1965_v44  ;;  %718 = vperm.xlu0 %2151, %v688_v35  }
  0xc8   : >> { %v2065_v27 = vunpack.i.h.bf16 %v2655_v52  ;;  %v2064_v15 = vunpack.i.l.bf16 %v2655_v52  ;;  %v2678_v52 = vld [vmem:[%s3197_s1 + $0x98] ss:$12 sps:$4 sm:$0xff]   ;;  %713 = vperm.xlu1 %2152, %v687_v10  }
  0xc9   : >> { %940 = vmatprep.subr.bf16.mxu0 %v383_v59  ;;  %v283_v59 = vpack.c.bf16 %v270_v1, %v269_v36  ;;  %v692_v10 = vld [vmem:[%s3198_s2 + $0x38] sm:$0xff] }
  0xca   : >> { %941 = vmatpush1.bf16.msra.mxu0 %v382_v49  ;;  %v2078_v0 = vpop.permute.xlu1 %2077  ;;  %v436_v57 = vsel %vm427_vm6, %v2069_v40, %v2064_v15  ;;  %v437_v54 = vsel %vm427_vm6, %v2070_v38, %v2065_v27  ;;  %v272_v49 = vsel %vm268_vm1, %v1980_v63, %v1995_v11  ;;  %v3209_v11 = vpack.c.bf16 %v2290_v14, %v2288_v13  ;;  %v691_v14 = vld [vmem:[%s3198_s2 + $0x30] sm:$0xff] }
  0xcb   : >> { %v2080_v42 = vunpack.i.h.bf16 %v2078_v0  ;;  %v2079_v58 = vunpack.i.l.bf16 %v2078_v0  ;;  %v2073_v44 = vpop.permute.xlu0 %2072  ;;  %942 = vmatprep.subr.bf16.mxu0 %v392_v21  ;;  %v442_v48 = vpack.c.bf16 %v437_v54, %v436_v57  ;;  %1643 = vmatmul.mubr.msk.bf16.gmra.mrb[12].mxu1 %vm901_vm4, %v2678_v52  ;;  %v690_v21 = vld [vmem:[%s3198_s2 + $0x28] sm:$0xff]  ;;  %v286_v47 = vpack.c.bf16 %v272_v49, %v271_v8 }
  0xcc   : >> { %v2075_v16 = vunpack.i.h.bf16 %v2073_v44  ;;  %v2074_v30 = vunpack.i.l.bf16 %v2073_v44  ;;  %1141 = vmatprep.mubr.bf16.mxu1 %v2204_v19  ;;  %723 = vperm.xlu1 %2152, %v689_v9   ;;  %v318_v13 = vsel %vm317_vm3, %v2009_v53, %v2014_v34 }
  0xcd   : >> { %1726 = vmatprep.subr.bf16.mxu1 %v442_v48  ;;  %728 = vperm.xlu0 %2151, %v690_v21  }
  0xce   : >> { %943 = vmatpush1.bf16.msra.mxu0 %v391_v22  ;;  %1727 = vmatpush3.bf16.msra.mxu1 %v283_v59  ;;  %v2713_v56 = vpop.permute.xlu1 %2087  ;;  %v438_v63 = vsel %vm427_vm6, %v2079_v58, %v2074_v30  ;;  %v439_v3 = vsel %vm427_vm6, %v2080_v42, %v2075_v16  ;;  %v319_v22 = vsel %vm317_vm3, %v2010_v39, %v2015_v37 }
  0xcf   : >> { %v2083_v60 = vpop.permute.xlu0 %2082  ;;  %944 = vmatprep.subr.bf16.mxu0 %v3209_v11  ;;  %v445_v62 = vpack.c.bf16 %v439_v3, %v438_v63  ;;  %v2090_v39 = vunpack.i.h.bf16 %v2713_v56  ;;  %v2089_v6 = vunpack.i.l.bf16 %v2713_v56  ;;  %v332_v3 = vpack.c.bf16 %v319_v22, %v318_v13  ;;  %v698_v56 = vld [vmem:[%s3198_s2 + $0x68] sm:$0xff] }
  0xd0   : >> { %v2085_v2 = vunpack.i.h.bf16 %v2083_v60  ;;  %v2084_v4 = vunpack.i.l.bf16 %v2083_v60  ;;  %733 = vperm.xlu1 %2152, %v691_v14  }
  0xd1   : >> { %1728 = vmatprep.subr.bf16.mxu1 %v445_v62  ;;  %738 = vperm.xlu0 %2151, %v692_v10   ;;  %v694_v62 = vld [vmem:[%s3198_s2 + $0x48] sm:$0xff] }
  0xd2   : >> { %945 = vmatpush1.bf16.msra.mxu0 %v3210_v31  ;;  %1729 = vmatpush3.bf16.msra.mxu1 %v286_v47  ;;  %v2098_v51 = vpop.permute.xlu1 %2097  ;;  %v428_v53 = vsel %vm427_vm6, %v2084_v4, %v2069_v40  ;;  %v429_v37 = vsel %vm427_vm6, %v2085_v2, %v2070_v38  ;;  %v432_v34 = vsel %vm427_vm6, %v2064_v15, %v2084_v4  ;;  %v3212_v4 = vunpack.i.l.bf16 %v2556_v50 }
  0xd3   : >> { %v2100_v1 = vunpack.i.h.bf16 %v2098_v51  ;;  %v2099_v36 = vunpack.i.l.bf16 %v2098_v51  ;;  %v2093_v35 = vpop.permute.xlu0 %2092  ;;  %v441_v0 = vpack.c.bf16 %v429_v37, %v428_v53  ;;  %v433_v57 = vsel %vm427_vm6, %v2065_v27, %v2085_v2  ;;  %1644 = vmatmul.mubr.msk.bf16.gmra.mrb[16].mxu1 %vm901_vm4, %v2757_v5  ;;  %v696_v51 = vld [vmem:[%s3198_s2 + $0x58] sm:$0xff] }
  0xd4   : >> { %v2095_v40 = vunpack.i.h.bf16 %v2093_v35  ;;  %v2094_v54 = vunpack.i.l.bf16 %v2093_v35  ;;  %v440_v38 = vpack.c.bf16 %v433_v57, %v432_v34  ;;  %1184 = vmatprep.mubr.bf16.mxu1 %v2346_v25  ;;  %v321_v47 = vsel %vm317_vm3, %v2025_v33, %v2030_v46 }
  0xd5   : >> { %946 = vmatprep.subr.bf16.mxu0 %v441_v0  ;;  %v430_v15 = vsel %vm427_vm6, %v2099_v36, %v2079_v58  ;;  %v431_v44 = vsel %vm427_vm6, %v2100_v1, %v2080_v42  ;;  %v434_v27 = vsel %vm427_vm6, %v2074_v30, %v2099_v36  ;;  %v435_v48 = vsel %vm427_vm6, %v2075_v16, %v2100_v1  ;;  %v693_v42 = vld [vmem:[%s3198_s2 + $0x40] sm:$0xff] }
  0xd6   : >> { %947 = vmatpush1.bf16.msra.mxu0 %v440_v38  ;;  %v2108_v59 = vpop.permute.xlu1 %2107  ;;  %v444_v49 = vpack.c.bf16 %v431_v44, %v430_v15  ;;  %v485_v8 = vsel %vm476_vm7, %v2094_v54, %v2089_v6  ;;  %v486_v58 = vsel %vm476_vm7, %v2095_v40, %v2090_v39  ;;  %v443_v9 = vpack.c.bf16 %v435_v48, %v434_v27 }
  0xd7   : >> { %v2110_v30 = vunpack.i.h.bf16 %v2108_v59  ;;  %v2109_v21 = vunpack.i.l.bf16 %v2108_v59  ;;  %v2103_v63 = vpop.permute.xlu0 %2102  ;;  %v491_v16 = vpack.c.bf16 %v486_v58, %v485_v8  ;;  %v3211_v2 = vunpack.i.l.bf16 %v2544_v18  ;;  %743 = vperm.xlu1 %2152, %v693_v42   ;;  %v695_v18 = vld [vmem:[%s3198_s2 + $0x50] sm:$0xff]  ;;  %748 = vperm.xlu0 %2151, %v694_v62  }
  0xd8   : >> { %v2105_v60 = vunpack.i.h.bf16 %v2103_v63  ;;  %v2104_v11 = vunpack.i.l.bf16 %v2103_v63  ;;  %948 = vmatprep.subr.bf16.mxu0 %v444_v49  ;;  %v3213_v53 = vunpack.i.h.bf16 %v2601_v41  ;;  %v3214_v37 = vunpack.i.h.bf16 %v2577_v20 }
  0xd9   : >> { %v320_v22 = vsel %vm317_vm3, %v3212_v4, %v3211_v2  ;;  %1730 = vmatprep.subr.bf16.mxu1 %v491_v16  ;;  %v3215_v1 = vunpack.i.l.bf16 %v2601_v41  ;;  %v3216_v36 = vunpack.i.l.bf16 %v2577_v20 }
  0xda   : >> { %949 = vmatpush1.bf16.msra.mxu0 %v443_v9  ;;  %1731 = vmatpush3.bf16.msra.mxu1 %v332_v3  ;;  %v2795_v25 = vpop.permute.xlu1 %2117  ;;  %v487_v13 = vsel %vm476_vm7, %v2109_v21, %v2104_v11  ;;  %v488_v14 = vsel %vm476_vm7, %v2110_v30, %v2105_v60  ;;  %v335_v33 = vpack.c.bf16 %v321_v47, %v320_v22 }
  0xdb   : >> { %v2113_v46 = vpop.permute.xlu0 %2112  ;;  %v494_v50 = vpack.c.bf16 %v488_v14, %v487_v13  ;;  %v368_v34 = vsel %vm366_vm5, %v3214_v37, %v3213_v53  ;;  %v367_v35 = vsel %vm366_vm5, %v3216_v36, %v3215_v1  ;;  %753 = vperm.xlu1 %2152, %v695_v18   ;;  %758 = vperm.xlu0 %2151, %v696_v51   ;;  %v2120_v49 = vunpack.i.h.bf16 %v2795_v25  ;;  %v700_v13 = vld [vmem:[%s3198_s2 + $0x78] sm:$0xff]  ;;  %v2158_v36 = vld [vmem:[%s3197_s1] ss:$12 sps:$4 sm:$0xff]  }
  0xdc   : >> { %v2115_v10 = vunpack.i.h.bf16 %v2113_v46  ;;  %v2114_v31 = vunpack.i.l.bf16 %v2113_v46  ;;  %v3217_v14 = vunpack.i.h.bf16 %v2610_v55  ;;  %v3218_v46 = vunpack.i.l.bf16 %v2610_v55 }
  0xdd   : >> { %1732 = vmatprep.subr.bf16.mxu1 %v494_v50  ;;  %v3219_v50 = vunpack.i.l.bf16 %v2622_v45 }
  0xde   : >> { %1733 = vmatpush3.bf16.msra.mxu1 %v335_v33  ;;  %v2128_v0 = vpop.permute.xlu1 %2127  ;;  %v477_v57 = vsel %vm476_vm7, %v2114_v31, %v2094_v54  ;;  %v478_v38 = vsel %vm476_vm7, %v2115_v10, %v2095_v40  ;;  %v481_v41 = vsel %vm476_vm7, %v2089_v6, %v2114_v31  ;;  %v482_v20 = vsel %vm476_vm7, %v2090_v39, %v2115_v10  ;;  %v697_v6 = vld [vmem:[%s3198_s2 + $0x60] sm:$0xff] }
  0xdf   : >> { %v2130_v15 = vunpack.i.h.bf16 %v2128_v0  ;;  %v2129_v44 = vunpack.i.l.bf16 %v2128_v0  ;;  %v2123_v27 = vpop.permute.xlu0 %2122  ;;  %v490_v48 = vpack.c.bf16 %v478_v38, %v477_v57  ;;  %v489_v59 = vpack.c.bf16 %v482_v20, %v481_v41  ;;  %763 = vperm.xlu1 %2152, %v697_v6   ;;  %768 = vperm.xlu0 %2151, %v698_v56   ;;  %v2176_v6 = vld [vmem:[%s3197_s1 + $0x94] ss:$12 sps:$4 sm:$0xff]   ;;  %v2178_v56 = vld [vmem:[%s3197_s1 + $0x90] ss:$12 sps:$4 sm:$0xff]  }
  0xe0   : >> { %v2119_v54 = vunpack.i.l.bf16 %v2795_v25  ;;  %v2125_v8 = vunpack.i.h.bf16 %v2123_v27  ;;  %v2124_v40 = vunpack.i.l.bf16 %v2123_v27  ;;  %v370_v18 = vsel %vm366_vm5, %v2055_v29, %v3217_v14  ;;  %v2161_v27 = vld [vmem:[%s3197_s1 + $0x1c] ss:$12 sps:$4 sm:$0xff]  }
  0xe1   : >> { %950 = vmatprep.subr.bf16.mxu0 %v490_v48  ;;  %v479_v39 = vsel %vm476_vm7, %v2129_v44, %v2109_v21  ;;  %v480_v58 = vsel %vm476_vm7, %v2130_v15, %v2110_v30  ;;  %v483_v9 = vsel %vm476_vm7, %v2104_v11, %v2129_v44  ;;  %v484_v42 = vsel %vm476_vm7, %v2105_v60, %v2130_v15  ;;  %v699_v60 = vld [vmem:[%s3198_s2 + $0x70] sm:$0xff] }
  0xe2   : >> { %951 = vmatpush1.bf16.msra.mxu0 %v489_v59  ;;  %v2138_v63 = vpop.permute.xlu1 %2137  ;;  %v493_v16 = vpack.c.bf16 %v480_v58, %v479_v39  ;;  %v534_v3 = vsel %vm525_vm8, %v2124_v40, %v2119_v54  ;;  %v535_v62 = vsel %vm525_vm8, %v2125_v8, %v2120_v49  ;;  %v492_v47 = vpack.c.bf16 %v484_v42, %v483_v9  ;;  %v2179_v39 = vld [vmem:[%s3197_s1 + $0xac] ss:$12 sps:$4 sm:$0xff]   ;;  %v2181_v58 = vld [vmem:[%s3197_s1 + $0xa8] ss:$12 sps:$4 sm:$0xff]  }
  0xe3   : >> { %v2140_v21 = vunpack.i.h.bf16 %v2138_v63  ;;  %v2139_v2 = vunpack.i.l.bf16 %v2138_v63  ;;  %v2133_v4 = vpop.permute.xlu0 %2132  ;;  %v540_v30 = vpack.c.bf16 %v535_v62, %v534_v3  ;;  %v381_v11 = vpack.c.bf16 %v368_v34, %v367_v35  ;;  %773 = vperm.xlu1 %2152, %v699_v60   ;;  %778 = vperm.xlu0 %2151, %v700_v13   ;;  %v2182_v9 = vld [vmem:[%s3197_s1 + $0x8] ss:$12 sps:$4 sm:$0xff]   ;;  %v2183_v42 = vld [vmem:[%s3197_s1 + $0x20] ss:$12 sps:$4 sm:$0xff]   ;;  %v2184_v63 = vld [vmem:[%s3197_s1 + $0x38] ss:$12 sps:$4 sm:$0xff]  }
  0xe4   : >> { %v2135_v22 = vunpack.i.h.bf16 %v2133_v4  ;;  %v2134_v25 = vunpack.i.l.bf16 %v2133_v4  ;;  %952 = vmatprep.subr.bf16.mxu0 %v493_v16  ;;  %v369_v33 = vsel %vm366_vm5, %v3219_v50, %v3218_v46 }
  0xe5   : >> { %1734 = vmatprep.subr.bf16.mxu1 %v540_v30  ;;  %v384_v55 = vpack.c.bf16 %v370_v18, %v369_v33 }
  0xe6   : >> { %953 = vmatpush1.bf16.msra.mxu0 %v492_v47  ;;  %1735 = vmatpush3.bf16.msra.mxu1 %v381_v11  ;;  %v2148_v10 = vpop.permute.xlu1 %2147  ;;  %v536_v31 = vsel %vm525_vm8, %v2139_v2, %v2134_v25  ;;  %v537_v51 = vsel %vm525_vm8, %v2140_v21, %v2135_v22 }
  0xe7   : >> { %v2150_v53 = vunpack.i.h.bf16 %v2148_v10  ;;  %v2149_v37 = vunpack.i.l.bf16 %v2148_v10  ;;  %v2143_v29 = vpop.permute.xlu0 %2142  ;;  %v543_v34 = vpack.c.bf16 %v537_v51, %v536_v31 }
  0xe8   : >> { %v2145_v45 = vunpack.i.h.bf16 %v2143_v29  ;;  %v2144_v1 = vunpack.i.l.bf16 %v2143_v29 }
  0xe9   : >> { %1736 = vmatprep.subr.bf16.mxu1 %v543_v34  ;;  %v528_v35 = vsel %vm525_vm8, %v2149_v37, %v2139_v2  ;;  %v529_v0 = vsel %vm525_vm8, %v2150_v53, %v2140_v21  ;;  %v532_v59 = vsel %vm525_vm8, %v2134_v25, %v2149_v37 }
  0xea   : >> { %1737 = vmatpush3.bf16.msra.mxu1 %v384_v55  ;;  %v526_v57 = vsel %vm525_vm8, %v2144_v1, %v2124_v40  ;;  %v527_v38 = vsel %vm525_vm8, %v2145_v45, %v2125_v8  ;;  %v530_v41 = vsel %vm525_vm8, %v2119_v54, %v2144_v1  ;;  %v531_v20 = vsel %vm525_vm8, %v2120_v49, %v2145_v45  ;;  %v2163_v8 = vld [vmem:[%s3197_s1 + $0x18] ss:$12 sps:$4 sm:$0xff]  }
  0xeb   : >> { %1796 = vmatprep.subr.bf16.mxu1 %v2450_v26  ;;  %v539_v15 = vpack.c.bf16 %v527_v38, %v526_v57  ;;  %v538_v44 = vpack.c.bf16 %v531_v20, %v530_v41  ;;  %v542_v48 = vpack.c.bf16 %v529_v0, %v528_v35  ;;  %v533_v54 = vsel %vm525_vm8, %v2135_v22, %v2150_v53  ;;  %v2175_v40 = vld [vmem:[%s3197_s1 + $0x78] ss:$12 sps:$4 sm:$0xff]  }
  0xec   : >> { %v541_v49 = vpack.c.bf16 %v533_v54, %v532_v59 }
  0xed   : >> { %954 = vmatprep.subr.bf16.mxu0 %v539_v15  ;;  %1185 = vmatmul.mubr.bf16.vlgmr.msra.gmra.mrb[20].mxu1 %v2158_v36 }
  0xee   : >> { %955 = vmatpush1.bf16.msra.mxu0 %v538_v44  ;;  %1797 = vmatpush3.bf16.msra.mxu1 %v2450_v26  ;;  %v2166_v26 = vld [vmem:[%s3197_s1 + $0x30] ss:$12 sps:$4 sm:$0xff]  }
  0xef   : >> { %956 = vmatprep.subr.bf16.mxu0 %v542_v48  ;;  %1798 = vmatprep.subr.bf16.mxu1 %v2495_v23 }
  0xf0   : >> { %1192 = vmatprep.mubr.bf16.mxu1 %v2161_v27 }
  0xf2   : >> { %957 = vmatpush1.bf16.msra.mxu0 %v541_v49  ;;  %1799 = vmatpush3.bf16.msra.mxu1 %v2495_v23  ;;  %v2167_v23 = vld [vmem:[%s3197_s1 + $0x4c] ss:$12 sps:$4 sm:$0xff]  }
  0xf3   : >> { %1039 = vmatprep.subr.bf16.mxu0 %v2423_v43  ;;  %v2169_v43 = vld [vmem:[%s3197_s1 + $0x48] ss:$12 sps:$4 sm:$0xff]  }
  0xf5   : >> { %959 = vmatmul.mubr.bf16.vlgmr.msra.gmra.mrb[0].mxu0 %v2158_v36  ;;  %1193 = vmatmul.mubr.bf16.gmra.mrb[24].mxu1 %v2163_v8 }
  0xf6   : >> { %1040 = vmatpush1.bf16.msra.mxu0 %v2448_v17  ;;  %968 = vmatprep.mubr.bf16.mxu0 %v2161_v27  ;;  %v2170_v17 = vld [vmem:[%s3197_s1 + $0x64] ss:$12 sps:$4 sm:$0xff]  }
  0xf7   : >> { %1041 = vmatprep.subr.bf16.mxu0 %v2467_v7  ;;  %1200 = vmatprep.mubr.bf16.mxu1 %v2164_v28  ;;  %v2173_v7 = vld [vmem:[%s3197_s1 + $0x7c] ss:$12 sps:$4 sm:$0xff]  }
  0xfa   : >> { %1042 = vmatpush1.bf16.msra.mxu0 %v2493_v24  ;;  %v2172_v24 = vld [vmem:[%s3197_s1 + $0x60] ss:$12 sps:$4 sm:$0xff]  }
  0xfd   : >> { %969 = vmatmul.mubr.bf16.gmra.mrb[4].mxu0 %v2163_v8  ;;  %1201 = vmatmul.mubr.bf16.gmra.mrb[28].mxu1 %v2166_v26 }
  0xfe   : >> { %978 = vmatprep.mubr.bf16.mxu0 %v2164_v28  ;;  %1208 = vmatprep.mubr.bf16.mxu1 %v2167_v23 }
 0x105   : >> { %979 = vmatmul.mubr.bf16.gmra.mrb[8].mxu0 %v2166_v26  ;;  %1209 = vmatmul.mubr.bf16.gmra.mrb[32].mxu1 %v2169_v43 }
 0x106   : >> { %988 = vmatprep.mubr.bf16.mxu0 %v2167_v23  ;;  %1216 = vmatprep.mubr.bf16.mxu1 %v2170_v17 }
 0x10d   : >> { %989 = vmatmul.mubr.bf16.gmra.mrb[12].mxu0 %v2169_v43  ;;  %1217 = vmatmul.mubr.bf16.gmra.mrb[36].mxu1 %v2172_v24 }
 0x10e   : >> { %998 = vmatprep.mubr.bf16.mxu0 %v2170_v17  ;;  %1224 = vmatprep.mubr.bf16.mxu1 %v2173_v7 }
 0x115   : >> { %999 = vmatmul.mubr.bf16.gmra.mrb[16].mxu0 %v2172_v24  ;;  %1225 = vmatmul.mubr.bf16.gmra.mrb[40].mxu1 %v2175_v40 }
 0x116   : >> { %1008 = vmatprep.mubr.bf16.mxu0 %v2173_v7  ;;  %1232 = vmatprep.mubr.bf16.mxu1 %v2176_v6 }
 0x11d   : >> { %1009 = vmatmul.mubr.bf16.gmra.mrb[20].mxu0 %v2175_v40  ;;  %1233 = vmatmul.mubr.bf16.gmra.mrb[44].mxu1 %v2178_v56 }
 0x11e   : >> { %1018 = vmatprep.mubr.bf16.mxu0 %v2176_v6  ;;  %1240 = vmatprep.mubr.bf16.mxu1 %v2179_v39 }
 0x125   : >> { %1019 = vmatmul.mubr.bf16.gmra.mrb[24].mxu0 %v2178_v56  ;;  %1241 = vmatmul.mubr.bf16.gmra.mrb[48].mxu1 %v2181_v58 }
 0x126   : >> { %1028 = vmatprep.mubr.bf16.mxu0 %v2179_v39  ;;  %1800 = vmatprep.mubr.msk.bf16.mxu1 %vm901_vm4, %v2182_v9 }
 0x12d   : >> { %1029 = vmatmul.mubr.bf16.gmra.mrb[28].mxu0 %v2181_v58  ;;  %1801 = vmatmul.mubr.msk.bf16.vlgmr.msra.gmra.mrb[52].mxu1 %vm901_vm4, %v2183_v42 }
 0x12e   : >> { %1071 = vmatprep.mubr.bf16.mxu0 %v2204_v19  ;;  %1804 = vmatprep.mubr.msk.bf16.mxu1 %vm901_vm4, %v2184_v63 }
 0x135   : >> { %1637 = vmatmul.mubr.msk.bf16.vlgmr.msra.gmra.mrb[0].mxu0 %vm901_vm4, %v2182_v9  ;;  %1805 = vmatmul.mubr.msk.bf16.gmra.mrb[56].mxu1 %vm901_vm4, %v2512_v61 }
 0x136   : >> { %1081 = vmatprep.mubr.bf16.mxu0 %v2204_v19  ;;  %1808 = vmatprep.mubr.msk.bf16.mxu1 %vm901_vm4, %v2575_v12 }
 0x13d   : >> { %1638 = vmatmul.mubr.msk.bf16.gmra.mrb[4].mxu0 %vm901_vm4, %v2183_v42  ;;  %1809 = vmatmul.mubr.msk.bf16.gmra.mrb[60].mxu1 %vm901_vm4, %v2608_v32 }
 0x13e   : >> { %1091 = vmatprep.mubr.bf16.mxu0 %v2204_v19  ;;  %1812 = vmatprep.mubr.msk.bf16.mxu1 %vm901_vm4, %v2678_v52 }
 0x142   : >> { %v3019_v57 = vpop.permute.xlu0 %703 }
 0x143   : >> { %v3015_v36 = vpop.permute.xlu1 %708 }
 0x145   : >> { %1639 = vmatmul.mubr.msk.bf16.gmra.mrb[8].mxu0 %vm901_vm4, %v2184_v63  ;;  %1813 = vmatmul.mubr.msk.bf16.gmra.mrb[64].mxu1 %vm901_vm4, %v2757_v5 }
 0x146   : >> { %v3025_v15 = vpop.permute.xlu0 %718 }
 0x147   : >> { %v3023_v20 = vpop.permute.xlu1 %713 }
 0x14b   : >> { %v3027_v48 = vpop.permute.xlu1 %723 }
 0x14c   : >> { %v3031_v49 = vpop.permute.xlu0 %728 }
 0x14f   : >> { %v3035_v26 = vpop.permute.xlu1 %733 }
 0x150   : >> { %v3037_v23 = vpop.permute.xlu0 %738 }
 0x186   : >> { %v1103_v61 = vpop.f32.mrb[0].mxu1 }
 0x187   : >> { %v2969_v16 = vpop.f32.mrb[1].mxu1 }
 0x188   : >> { %v2971_v3 = vpop.f32.mrb[2].mxu1 }
 0x189   : >> { %v2973_v12 = vpop.f32.mrb[3].mxu1 }
 0x18e   : >> { %v2975_v62 = vpop.f32.mrb[4].mxu1 }
 0x18f   : >> { %v2977_v32 = vpop.f32.mrb[5].mxu1 }
 0x190   : >> { %v2979_v19 = vpop.f32.mrb[6].mxu1 }
 0x191   : >> { %v2981_v47 = vpop.f32.mrb[7].mxu1 }
 0x196   : >> { %v2983_v52 = vpop.f32.mrb[8].mxu1 }
 0x197   : >> { %v2985_v21 = vpop.f32.mrb[9].mxu1 }
 0x198   : >> { %v2987_v5 = vpop.f32.mrb[10].mxu1 }
 0x199   : >> { %v2989_v2 = vpop.f32.mrb[11].mxu1 }
 0x19e   : >> { %v2991_v4 = vpop.f32.mrb[12].mxu1 }
 0x19f   : >> { %v2993_v30 = vpop.f32.mrb[13].mxu1 }
 0x1a0   : >> { %v2995_v11 = vpop.f32.mrb[14].mxu1 }
 0x1a1   : >> { %v2997_v22 = vpop.f32.mrb[15].mxu1 }
 0x1a6   : >> { %v2999_v25 = vpop.f32.mrb[16].mxu1 }
 0x1a7   : >> { %v3001_v60 = vpop.f32.mrb[17].mxu1 }
 0x1a8   : >> { %v3003_v13 = vpop.f32.mrb[18].mxu1 }
 0x1a9   : >> { %v3005_v14 = vpop.f32.mrb[19].mxu1 }
 0x1c0   : >> { %v1738_v18 = vpop.f32.mrb[20].mxu1 }
 0x1c1   : >> { %v1739_v46 = vpop.f32.mrb[21].mxu1 }
 0x1c2   : >> { %v3007_v50 = vadd.f32 %v1739_v46, %v1738_v18  ;;  %v1741_v33 = vpop.f32.mrb[22].mxu1 }
 0x1c3   : >> { %v1742_v10 = vpop.f32.mrb[23].mxu1 }
 0x1c4   : >> { %v3009_v31 = vadd.f32 %v1742_v10, %v1741_v33 }
 0x1c8   : >> { %v1744_v51 = vpop.f32.mrb[24].mxu1 }
 0x1c9   : >> { %v1745_v53 = vpop.f32.mrb[25].mxu1 }
 0x1ca   : >> { %v3011_v37 = vadd.f32 %v1745_v53, %v1744_v51  ;;  %v1747_v29 = vpop.f32.mrb[26].mxu1 }
 0x1cb   : >> { %v1748_v34 = vpop.f32.mrb[27].mxu1 }
 0x1cc   : >> { %v3013_v55 = vadd.f32 %v1748_v34, %v1747_v29  ;;  %v3056_v34 = vpop.permute.xlu0 %748 }
 0x1d0   : >> { %v1750_v45 = vpop.f32.mrb[28].mxu1 }
 0x1d1   : >> { %v1751_v1 = vpop.f32.mrb[29].mxu1 }
 0x1d2   : >> { %v3017_v35 = vadd.f32 %v1751_v1, %v1750_v45  ;;  %v1753_v0 = vpop.f32.mrb[30].mxu1 }
 0x1d3   : >> { %v1754_v38 = vpop.f32.mrb[31].mxu1 }
 0x1d4   : >> { %v3021_v41 = vadd.f32 %v1754_v38, %v1753_v0 }
 0x1d8   : >> { %v1756_v44 = vpop.f32.mrb[32].mxu1 }
 0x1d9   : >> { %v1757_v27 = vpop.f32.mrb[33].mxu1 }
 0x1da   : >> { %v3029_v59 = vadd.f32 %v1757_v27, %v1756_v44  ;;  %v1759_v54 = vpop.f32.mrb[34].mxu1 }
 0x1db   : >> { %v1760_v8 = vpop.f32.mrb[35].mxu1 }
 0x1dc   : >> { %v3033_v28 = vadd.f32 %v1760_v8, %v1759_v54 }
 0x1e0   : >> { %v990_v43 = vpop.f32.mrb[12].mxu0  ;;  %v1762_v17 = vpop.f32.mrb[36].mxu1 }
 0x1e1   : >> { %v991_v24 = vadd.f32 %v990_v43, %v3035_v26  ;;  %v992_v7 = vpop.f32.mrb[13].mxu0  ;;  %v1763_v40 = vpop.f32.mrb[37].mxu1 }
 0x1e2   : >> { %v993_v6 = vadd.f32 %v992_v7, %v3035_v26  ;;  %v3042_v56 = vadd.f32 %v1763_v40, %v1762_v17  ;;  %v994_v39 = vpop.f32.mrb[14].mxu0  ;;  %v1765_v58 = vpop.f32.mrb[38].mxu1 }
 0x1e3   : >> { %v1104_v9 = vadd.f32 %v1103_v61, %v991_v24  ;;  %v995_v42 = vadd.f32 %v994_v39, %v3037_v23  ;;  %v996_v63 = vpop.f32.mrb[15].mxu0  ;;  %v1766_v18 = vpop.f32.mrb[39].mxu1 }
 0x1e4   : >> { %v1106_v46 = vadd.f32 %v2969_v16, %v993_v6  ;;  %v997_v33 = vadd.f32 %v996_v63, %v3037_v23  ;;  %v3047_v10 = vadd.f32 %v1766_v18, %v1765_v58  ;;  %v3054_v61 = vpop.permute.xlu1 %743  ;;  %v3074_v63 = vpop.permute.xlu0 %758 }
 0x1e5   : >> { %v1108_v51 = vadd.f32 %v2971_v3, %v995_v42 }
 0x1e6   : >> { %v1701_v53 = vpack.c.bf16 %v1106_v46, %v1104_v9  ;;  %v1110_v29 = vadd.f32 %v2973_v12, %v997_v33 }
 0x1e8   : >> { %1521 = vst [vmem:[%s3050_s20 + $0x48] sm:$0xff] %v1701_v53  ;;  %v1703_v45 = vpack.c.bf16 %v1110_v29, %v1108_v51  ;;  %v1000_v16 = vpop.f32.mrb[16].mxu0  ;;  %v1768_v1 = vpop.f32.mrb[40].mxu1 }
 0x1e9   : >> { %v1001_v0 = vadd.f32 %v1000_v16, %v3054_v61  ;;  %v1002_v38 = vpop.f32.mrb[17].mxu0  ;;  %v1769_v44 = vpop.f32.mrb[41].mxu1 }
 0x1ea   : >> { %1523 = vst [vmem:[%s3050_s20 + $0x54] sm:$0xff] %v1703_v45  ;;  %v1003_v27 = vadd.f32 %v1002_v38, %v3054_v61  ;;  %v3062_v3 = vadd.f32 %v1769_v44, %v1768_v1  ;;  %v1004_v54 = vpop.f32.mrb[18].mxu0  ;;  %v1771_v12 = vpop.f32.mrb[42].mxu1 }
 0x1eb   : >> { %v1114_v8 = vadd.f32 %v2975_v62, %v1001_v0  ;;  %v1005_v43 = vadd.f32 %v1004_v54, %v3056_v34  ;;  %v1006_v17 = vpop.f32.mrb[19].mxu0  ;;  %v1772_v24 = vpop.f32.mrb[43].mxu1 }
 0x1ec   : >> { %v1116_v7 = vadd.f32 %v2977_v32, %v1003_v27  ;;  %v1007_v40 = vadd.f32 %v1006_v17, %v3056_v34  ;;  %v3068_v6 = vadd.f32 %v1772_v24, %v1771_v12  ;;  %v3072_v42 = vpop.permute.xlu1 %753  ;;  %v3092_v17 = vpop.permute.xlu0 %768 }
 0x1ed   : >> { %v1118_v39 = vadd.f32 %v2979_v19, %v1005_v43 }
 0x1ee   : >> { %v1705_v58 = vpack.c.bf16 %v1116_v7, %v1114_v8  ;;  %v1120_v9 = vadd.f32 %v2981_v47, %v1007_v40 }
 0x1f0   : >> { %1525 = vst [vmem:[%s3050_s20 + $0x60] sm:$0xff] %v1705_v58  ;;  %v1707_v62 = vpack.c.bf16 %v1120_v9, %v1118_v39  ;;  %v1010_v18 = vpop.f32.mrb[20].mxu0  ;;  %v1774_v46 = vpop.f32.mrb[44].mxu1 }
 0x1f1   : >> { %v1011_v33 = vadd.f32 %v1010_v18, %v3072_v42  ;;  %v1012_v32 = vpop.f32.mrb[21].mxu0  ;;  %v1775_v51 = vpop.f32.mrb[45].mxu1 }
 0x1f2   : >> { %1527 = vst [vmem:[%s3050_s20 + $0x6c] sm:$0xff] %v1707_v62  ;;  %v1013_v53 = vadd.f32 %v1012_v32, %v3072_v42  ;;  %v3080_v19 = vadd.f32 %v1775_v51, %v1774_v46  ;;  %v1014_v29 = vpop.f32.mrb[22].mxu0  ;;  %v1777_v47 = vpop.f32.mrb[46].mxu1 }
 0x1f3   : >> { %v1124_v45 = vadd.f32 %v2983_v52, %v1011_v33  ;;  %v1015_v16 = vadd.f32 %v1014_v29, %v3074_v63  ;;  %v1016_v1 = vpop.f32.mrb[23].mxu0  ;;  %v1778_v0 = vpop.f32.mrb[47].mxu1 }
 0x1f4   : >> { %v1126_v38 = vadd.f32 %v2985_v21, %v1013_v53  ;;  %v1017_v44 = vadd.f32 %v1016_v1, %v3074_v63  ;;  %v3086_v27 = vadd.f32 %v1778_v0, %v1777_v47  ;;  %v3090_v43 = vpop.permute.xlu1 %763  ;;  %v3110_v1 = vpop.permute.xlu0 %778 }
 0x1f5   : >> { %v1128_v54 = vadd.f32 %v2987_v5, %v1015_v16 }
 0x1f6   : >> { %v1709_v12 = vpack.c.bf16 %v1126_v38, %v1124_v45  ;;  %v1130_v8 = vadd.f32 %v2989_v2, %v1017_v44  ;;  %v1187_v44 = vadd.f32 %v3007_v50, %v3019_v57 }
 0x1f8   : >> { %1529 = vst [vmem:[%s3050_s20 + $0x78] sm:$0xff] %v1709_v12  ;;  %v1711_v52 = vpack.c.bf16 %v1130_v8, %v1128_v54  ;;  %v1020_v24 = vpop.f32.mrb[24].mxu0  ;;  %v1780_v7 = vpop.f32.mrb[48].mxu1 }
 0x1f9   : >> { %v1021_v40 = vadd.f32 %v1020_v24, %v3090_v43  ;;  %v1022_v21 = vpop.f32.mrb[25].mxu0  ;;  %v1781_v39 = vpop.f32.mrb[49].mxu1 }
 0x1fa   : >> { %1531 = vst [vmem:[%s3050_s20 + $0x84] sm:$0xff] %v1711_v52  ;;  %v1023_v58 = vadd.f32 %v1022_v21, %v3090_v43  ;;  %v3098_v9 = vadd.f32 %v1781_v39, %v1780_v7  ;;  %v1024_v5 = vpop.f32.mrb[26].mxu0  ;;  %v1783_v2 = vpop.f32.mrb[50].mxu1 }
 0x1fb   : >> { %v1134_v62 = vadd.f32 %v2991_v4, %v1021_v40  ;;  %v1025_v18 = vadd.f32 %v1024_v5, %v3092_v17  ;;  %v1026_v46 = vpop.f32.mrb[27].mxu0  ;;  %v1784_v33 = vpop.f32.mrb[51].mxu1  ;;  %v1195_v4 = vadd.f32 %v3011_v37, %v3023_v20  ;;  %v1190_v40 = vadd.f32 %v3009_v31, %v3015_v36 }
 0x1fc   : >> { %v1136_v32 = vadd.f32 %v2993_v30, %v1023_v58  ;;  %v1027_v51 = vadd.f32 %v1026_v46, %v3092_v17  ;;  %v3104_v53 = vadd.f32 %v1784_v33, %v1783_v2  ;;  %v3108_v16 = vpop.permute.xlu1 %773 }
 0x1fd   : >> { %v1138_v29 = vadd.f32 %v2995_v11, %v1025_v18 }
 0x1fe   : >> { %v1713_v47 = vpack.c.bf16 %v1136_v32, %v1134_v62  ;;  %v1140_v45 = vadd.f32 %v2997_v22, %v1027_v51  ;;  %v1198_v22 = vadd.f32 %v3013_v55, %v3025_v15 }
 0x200   : >> { %1533 = vst [vmem:[%s3050_s20 + $0x90] sm:$0xff] %v1713_v47  ;;  %v1715_v0 = vpack.c.bf16 %v1140_v45, %v1138_v29  ;;  %v1030_v30 = vpop.f32.mrb[28].mxu0  ;;  %v1802_v38 = vpop.f32.mrb[52].mxu1  ;;  %v1211_v29 = vadd.f32 %v3029_v59, %v3035_v26 }
 0x201   : >> { %v1031_v11 = vadd.f32 %v1030_v30, %v3108_v16  ;;  %v1292_v54 = vadd.f32 %v1802_v38, %v1195_v4  ;;  %v1032_v12 = vpop.f32.mrb[29].mxu0  ;;  %v1283_v8 = vpop.f32.mrb[53].mxu1  ;;  %v1203_v4 = vadd.f32 %v3017_v35, %v3027_v48  ;;  %v1206_v35 = vadd.f32 %v3021_v41, %v3031_v49 }
 0x202   : >> { %1535 = vst [vmem:[%s3050_s20 + $0x9c] sm:$0xff] %v1715_v0  ;;  %v1033_v52 = vadd.f32 %v1032_v12, %v3108_v16  ;;  %v1284_v37 = vadd.f32 %v1283_v8, %v1187_v44  ;;  %v1034_v24 = vpop.f32.mrb[30].mxu0  ;;  %v1803_v7 = vpop.f32.mrb[54].mxu1 }
 0x203   : >> { %v1144_v50 = vadd.f32 %v2999_v25, %v1031_v11  ;;  %v1694_v21 = vpack.c.bf16 %v1292_v54, %v1292_v54  ;;  %v1035_v39 = vadd.f32 %v1034_v24, %v3110_v1  ;;  %v1295_v58 = vadd.f32 %v1803_v7, %v1198_v22  ;;  %v1036_v55 = vpop.f32.mrb[31].mxu0  ;;  %v1286_v5 = vpop.f32.mrb[55].mxu1 }
 0x204   : >> { %v1146_v2 = vadd.f32 %v3001_v60, %v1033_v52  ;;  %v1690_v62 = vpack.c.bf16 %v1284_v37, %v1284_v37  ;;  %v1037_v18 = vadd.f32 %v1036_v55, %v3110_v1  ;;  %v1287_v46 = vadd.f32 %v1286_v5, %v1190_v40 }
 0x205   : >> { %1514 = vst [vmem:[%s3050_s20 + $0x20] sm:$0xf] %v1694_v21  ;;  %v1148_v31 = vadd.f32 %v3003_v13, %v1035_v39  ;;  %v1696_v33 = vpack.c.bf16 %v1295_v58, %v1295_v58  ;;  %v1227_v40 = vadd.f32 %v3062_v3, %v3072_v42  ;;  %v1219_v39 = vadd.f32 %v3042_v56, %v3054_v61 }
 0x206   : >> { %v1717_v25 = vpack.c.bf16 %v1146_v2, %v1144_v50  ;;  %1510 = vst [vmem:[%s3050_s20 + $0x8] sm:$0xf] %v1690_v62  ;;  %v1150_v32 = vadd.f32 %v3005_v14, %v1037_v18  ;;  %v1692_v51 = vpack.c.bf16 %v1287_v46, %v1287_v46  ;;  %v1214_v14 = vadd.f32 %v3033_v28, %v3037_v23 }
 0x207   : >> { %1516 = vst [vmem:[%s3050_s20 + $0x2c] sm:$0xf] %v1696_v33  ;;  %v1230_v2 = vadd.f32 %v3068_v6, %v3074_v63  ;;  %v1222_v46 = vadd.f32 %v3047_v10, %v3056_v34  ;;  %v1243_v34 = vadd.f32 %v3098_v9, %v3108_v16 }
 0x208   : >> { %1537 = vst [vmem:[%s3050_s20 + $0xa8] sm:$0xff] %v1717_v25  ;;  %v1719_v60 = vpack.c.bf16 %v1150_v32, %v1148_v31  ;;  %1512 = vst [vmem:[%s3050_s20 + $0x14] sm:$0xf] %v1692_v51  ;;  %v1073_v47 = vpop.f32.mrb[0].mxu0  ;;  %v1806_v45 = vpop.f32.mrb[56].mxu1 }
 0x209   : >> { %v1820_v13 = vadd.f32 %v1073_v47, %v3019_v57  ;;  %v1308_v0 = vadd.f32 %v1806_v45, %v1211_v29  ;;  %v1075_v30 = vpop.f32.mrb[1].mxu0  ;;  %v1299_v38 = vpop.f32.mrb[57].mxu1  ;;  %v1235_v45 = vadd.f32 %v3080_v19, %v3090_v43 }
 0x20a   : >> { %1539 = vst [vmem:[%s3050_s20 + $0xb4] sm:$0xff] %v1719_v60  ;;  %v1821_v59 = vadd.f32 %v1075_v30, %v3019_v57  ;;  %v1300_v26 = vadd.f32 %v1299_v38, %v1203_v4  ;;  %v1077_v44 = vpop.f32.mrb[2].mxu0  ;;  %v1807_v11 = vpop.f32.mrb[58].mxu1 }
 0x20b   : >> { %v1702_v54 = vpack.c.bf16 %v1308_v0, %v1308_v0  ;;  %v1822_v12 = vadd.f32 %v1077_v44, %v3015_v36  ;;  %v1311_v8 = vadd.f32 %v1807_v11, %v1214_v14  ;;  %v1079_v28 = vpop.f32.mrb[3].mxu0  ;;  %v1302_v23 = vpop.f32.mrb[59].mxu1 }
 0x20c   : >> { %v1689_v22 = vpack.c.bf16 %v1821_v59, %v1820_v13  ;;  %v1698_v52 = vpack.c.bf16 %v1300_v26, %v1300_v26  ;;  %v1823_v57 = vadd.f32 %v1079_v28, %v3015_v36  ;;  %v1303_v37 = vadd.f32 %v1302_v23, %v1206_v35 }
 0x20d   : >> { %1522 = vst [vmem:[%s3050_s20 + $0x50] sm:$0xf] %v1702_v54  ;;  %v1704_v24 = vpack.c.bf16 %v1311_v8, %v1311_v8  ;;  %v1238_v59 = vadd.f32 %v3086_v27, %v3092_v17 }
 0x20e   : >> { %1509 = vst [vmem:[%s3050_s20] sm:$0xff] %v1689_v22  ;;  %1518 = vst [vmem:[%s3050_s20 + $0x38] sm:$0xf] %v1698_v52  ;;  %v1691_v7 = vpack.c.bf16 %v1823_v57, %v1822_v12  ;;  %v1700_v41 = vpack.c.bf16 %v1303_v37, %v1303_v37 }
 0x20f   : >> { %1524 = vst [vmem:[%s3050_s20 + $0x5c] sm:$0xf] %v1704_v24 }
 0x210   : >> { %1511 = vst [vmem:[%s3050_s20 + $0xc] sm:$0xff] %v1691_v7  ;;  %1520 = vst [vmem:[%s3050_s20 + $0x44] sm:$0xf] %v1700_v41  ;;  %v1083_v50 = vpop.f32.mrb[4].mxu0  ;;  %v1810_v21 = vpop.f32.mrb[60].mxu1 }
 0x211   : >> { %v1824_v36 = vadd.f32 %v1083_v50, %v3023_v20  ;;  %v1324_v58 = vadd.f32 %v1810_v21, %v1227_v40  ;;  %v1085_v55 = vpop.f32.mrb[5].mxu0  ;;  %v1315_v5 = vpop.f32.mrb[61].mxu1 }
 0x212   : >> { %v1825_v62 = vadd.f32 %v1085_v55, %v3023_v20  ;;  %v1316_v3 = vadd.f32 %v1315_v5, %v1219_v39  ;;  %v1087_v42 = vpop.f32.mrb[6].mxu0  ;;  %v1811_v18 = vpop.f32.mrb[62].mxu1 }
 0x213   : >> { %v1710_v56 = vpack.c.bf16 %v1324_v58, %v1324_v58  ;;  %v1826_v61 = vadd.f32 %v1087_v42, %v3025_v15  ;;  %v1327_v31 = vadd.f32 %v1811_v18, %v1230_v2  ;;  %v1089_v33 = vpop.f32.mrb[7].mxu0  ;;  %v1318_v25 = vpop.f32.mrb[63].mxu1 }
 0x214   : >> { %v1693_v6 = vpack.c.bf16 %v1825_v62, %v1824_v36  ;;  %v1706_v63 = vpack.c.bf16 %v1316_v3, %v1316_v3  ;;  %v1827_v20 = vadd.f32 %v1089_v33, %v3025_v15  ;;  %v1319_v32 = vadd.f32 %v1318_v25, %v1222_v46 }
 0x215   : >> { %1530 = vst [vmem:[%s3050_s20 + $0x80] sm:$0xf] %v1710_v56  ;;  %v1712_v51 = vpack.c.bf16 %v1327_v31, %v1327_v31  ;;  %v1246_v15 = vadd.f32 %v3104_v53, %v3110_v1 }
 0x216   : >> { %1513 = vst [vmem:[%s3050_s20 + $0x18] sm:$0xff] %v1693_v6  ;;  %1526 = vst [vmem:[%s3050_s20 + $0x68] sm:$0xf] %v1706_v63  ;;  %v1695_v29 = vpack.c.bf16 %v1827_v20, %v1826_v61  ;;  %v1708_v10 = vpack.c.bf16 %v1319_v32, %v1319_v32 }
 0x217   : >> { %1532 = vst [vmem:[%s3050_s20 + $0x8c] sm:$0xf] %v1712_v51 }
 0x218   : >> { %1515 = vst [vmem:[%s3050_s20 + $0x24] sm:$0xff] %v1695_v29  ;;  %1528 = vst [vmem:[%s3050_s20 + $0x74] sm:$0xf] %v1708_v10  ;;  %v1093_v60 = vpop.f32.mrb[8].mxu0  ;;  %v1814_v47 = vpop.f32.mrb[64].mxu1 }
 0x219   : >> { %v1828_v4 = vadd.f32 %v1093_v60, %v3027_v48  ;;  %v1340_v13 = vadd.f32 %v1814_v47, %v1243_v34  ;;  %v1095_v0 = vpop.f32.mrb[9].mxu0  ;;  %v1331_v30 = vpop.f32.mrb[65].mxu1 }
 0x21a   : >> { %v1829_v38 = vadd.f32 %v1095_v0, %v3027_v48  ;;  %v1332_v9 = vadd.f32 %v1331_v30, %v1235_v45  ;;  %v1097_v16 = vpop.f32.mrb[10].mxu0  ;;  %v1815_v14 = vpop.f32.mrb[66].mxu1  ;;  %176 = sbr.rel (!%p174_p4) target bundleno = 18 (0x12), region = 71 }
 0x21b   : >> { %v1718_v19 = vpack.c.bf16 %v1340_v13, %v1340_v13  ;;  %v1830_v43 = vadd.f32 %v1097_v16, %v3031_v49  ;;  %v1343_v53 = vadd.f32 %v1815_v14, %v1246_v15  ;;  %v1099_v1 = vpop.f32.mrb[11].mxu0  ;;  %v1334_v26 = vpop.f32.mrb[67].mxu1 }
 0x21c   : >> { %v1697_v44 = vpack.c.bf16 %v1829_v38, %v1828_v4  ;;  %v1714_v11 = vpack.c.bf16 %v1332_v9, %v1332_v9  ;;  %v1831_v48 = vadd.f32 %v1099_v1, %v3031_v49  ;;  %v1335_v35 = vadd.f32 %v1334_v26, %v1238_v59 }
 0x21d   : >> { %1538 = vst [vmem:[%s3050_s20 + $0xb0] sm:$0xf] %v1718_v19  ;;  %v1720_v54 = vpack.c.bf16 %v1343_v53, %v1343_v53 }
 0x21e   : >> { %1517 = vst [vmem:[%s3050_s20 + $0x30] sm:$0xff] %v1697_v44  ;;  %1534 = vst [vmem:[%s3050_s20 + $0x98] sm:$0xf] %v1714_v11  ;;  %v1699_v12 = vpack.c.bf16 %v1831_v48, %v1830_v43  ;;  %v1716_v27 = vpack.c.bf16 %v1335_v35, %v1335_v35 }
 0x21f   : >> { %1540 = vst [vmem:[%s3050_s20 + $0xbc] sm:$0xf] %v1720_v54 }
 0x220   : >> { %1519 = vst [vmem:[%s3050_s20 + $0x3c] sm:$0xff] %v1699_v12  ;;  %1536 = vst [vmem:[%s3050_s20 + $0xa4] sm:$0xf] %v1716_v27 }
 0x221 PF: > { %s13_s12 = sadd.s32 1, %s2195_s12  }
 0x222   : > { %p10_p5 = scmp.ge.s32.totalorder %s13_s12, 4  }
 0x224   :  { %12 = sbr.rel (!%p10_p5) target bundleno = 1 (0x1), region = 82 }

// kernel: convlstm_forward.8
= control target key start
LH: loop header
LB: loop body
LE: loop exit
PB: predicated region body
PF: predicated region fallthrough
CT: control target
= control target key end

     0   :  { %s2675_s15 = smov 0   ;;  %s3915_s0 = inlined_call_operand.vmem [shape: bf16[2,8,128,384], index: 0, kind: input, shape index: {}]   ;;  %s3916_s1 = inlined_call_operand.vmem [shape: bf16[128,288], index: 1, kind: input, shape index: {}]   ;;  %s3917_s2 = inlined_call_operand.vmem [shape: f32[1,384], index: 2, kind: input, shape index: {}]   ;;  %s3918_s3 = inlined_call_operand.vmem [shape: f32[2,8,32,384], index: 3, kind: output, shape index: {0}]   ;;  %s3919_s4 = inlined_call_operand.vmem [shape: f32[2,32,384], index: 4, kind: output, shape index: {1}]  }
   0x1 LB: > { %s1877_s16 = sadd.s32 4294967295, %s2633_s15   ;;  %p1881_p0 = scmp.ge.s32.totalorder %s2633_s15, 1  ;;  %s2633_s15 = sphi %s2675_s15, %s15_s15  }
   0x2   : > { %p165_p1 = scmp.lt.s32.totalorder %s2633_s15, 3 }
   0x4   : > { %p166_p2 = pnand %p1881_p0, %p165_p1 }
   0x5   : > { %v2686_v0 = vld [vmem:[%s3917_s2] sm:$0x7] (!%p166_p2)  ;;  %p2690_p3 = scmp.lt.s32.totalorder (!%p166_p2), %s1877_s16, 1  ;;  %v2639_v1 = vmov (!%p166_p2), 0   ;;  %v2640_v2 = vmov (!%p166_p2), 0.0   ;;  %s2725_s6 = smov (!%p166_p2), 0  }
   0x6   : > { %169 = sbr.rel (%p166_p2) target bundleno = 678 (0x2a6), region = 32  ;;  %212 = vst [vmem:[#allocation2] sm:$0xff] (!%p166_p2), %v2639_v1  ;;  %213 = vst [vmem:[#allocation2 + $0x8] sm:$0xff] (!%p166_p2), %v2639_v1 }
   0x7   : > { %214 = vst [vmem:[#allocation2 + $0x10] sm:$0xff] (!%p166_p2), %v2639_v1  ;;  %215 = vst [vmem:[#allocation2 + $0x18] sm:$0xff] (!%p166_p2), %v2639_v1 }
   0x8   : > { %216 = vst [vmem:[#allocation2 + $0x20] sm:$0xff] (!%p166_p2), %v2639_v1  ;;  %217 = vst [vmem:[#allocation2 + $0x28] sm:$0xff] (!%p166_p2), %v2639_v1 }
   0x9   : > { %218 = vst [vmem:[#allocation2 + $0x30] sm:$0xff] (!%p166_p2), %v2639_v1  ;;  %219 = vst [vmem:[#allocation2 + $0x38] sm:$0xff] (!%p166_p2), %v2639_v1 }
   0xa   : > { %220 = vst [vmem:[#allocation2 + $0x40] sm:$0xff] (!%p166_p2), %v2639_v1  ;;  %221 = vst [vmem:[#allocation2 + $0x48] sm:$0xff] (!%p166_p2), %v2639_v1 }
   0xb   : > { %222 = vst [vmem:[#allocation2 + $0x50] sm:$0xff] (!%p166_p2), %v2639_v1  ;;  %223 = vst [vmem:[#allocation2 + $0x58] sm:$0xff] (!%p166_p2), %v2639_v1 }
   0xc   : > { %224 = vst [vmem:[#allocation2 + $0x60] sm:$0xff] (!%p166_p2), %v2639_v1  ;;  %225 = vst [vmem:[#allocation2 + $0x68] sm:$0xff] (!%p166_p2), %v2639_v1 }
   0xd   : > { %226 = vst [vmem:[#allocation2 + $0x70] sm:$0xff] %v2639_v1  ;;  %227 = vst [vmem:[#allocation2 + $0x78] sm:$0xff] %v2639_v1  ;;  %s3993_s16 = smov (!%p2690_p3, %s1877_s16), 1 }
   0xe   : > { %228 = vst [vmem:[#allocation2 + $0x80] sm:$0xff] %v2639_v1  ;;  %229 = vst [vmem:[#allocation2 + $0x88] sm:$0xff] %v2639_v1  ;;  %s2129_s20 = smul.u32 1536, %s3993_s16 }
   0xf   : > { %230 = vst [vmem:[#allocation2 + $0x90] sm:$0xff] %v2639_v1  ;;  %231 = vst [vmem:[#allocation2 + $0x98] sm:$0xff] %v2639_v1  ;;  %s2130_s21 = smul.u32 768, %s3993_s16 }
  0x10   : > { %232 = vst [vmem:[#allocation2 + $0xa0] sm:$0xff] %v2639_v1  ;;  %233 = vst [vmem:[#allocation2 + $0xa8] sm:$0xff] %v2639_v1  ;;  %s2701_s24 = scalar_lea.vmem %s3915_s0, %s2129_s20  ;;  %s2131_s25 = smul.u32 96, %s3993_s16 }
  0x11   : > { %234 = vst [vmem:[#allocation2 + $0xb0] sm:$0xff] %v2639_v1  ;;  %235 = vst [vmem:[#allocation2 + $0xb8] sm:$0xff] %v2639_v1  ;;  %s2706_s28 = scalar_lea.vmem %s3918_s3, %s2130_s21 }
  0x12   : > { %236 = vst [vmem:[#allocation2 + $0xc0] sm:$0xff] %v2639_v1  ;;  %237 = vst [vmem:[#allocation2 + $0xc8] sm:$0xff] %v2639_v1  ;;  %s2711_s5 = scalar_lea.vmem %s3919_s4, %s2131_s25 }
  0x13   : > { %238 = vst [vmem:[#allocation2 + $0xd0] sm:$0xff] %v2639_v1  ;;  %239 = vst [vmem:[#allocation2 + $0xd8] sm:$0xff] %v2639_v1 }
  0x14   : > { %240 = vst [vmem:[#allocation2 + $0xe0] sm:$0xff] %v2639_v1  ;;  %241 = vst [vmem:[#allocation2 + $0xe8] sm:$0xff] %v2639_v1 }
  0x15   : > { %242 = vst [vmem:[#allocation2 + $0xf0] sm:$0xff] %v2639_v1  ;;  %243 = vst [vmem:[#allocation2 + $0xf8] sm:$0xff] %v2639_v1 }
  0x16   : > { %244 = vst [vmem:[#allocation2 + $0x100] sm:$0xff] %v2639_v1  ;;  %245 = vst [vmem:[#allocation2 + $0x108] sm:$0xff] %v2639_v1 }
  0x17   : > { %246 = vst [vmem:[#allocation2 + $0x110] sm:$0xff] %v2639_v1  ;;  %247 = vst [vmem:[#allocation2 + $0x118] sm:$0xff] %v2639_v1 }
  0x18   : > { %248 = vst [vmem:[#allocation2 + $0x120] sm:$0xff] %v2639_v1  ;;  %249 = vst [vmem:[#allocation2 + $0x128] sm:$0xff] %v2639_v1 }
  0x19   : > { %250 = vst [vmem:[#allocation2 + $0x130] sm:$0xff] %v2639_v1  ;;  %251 = vst [vmem:[#allocation2 + $0x138] sm:$0xff] %v2639_v1 }
  0x1a   : > { %252 = vst [vmem:[#allocation2 + $0x140] sm:$0xff] %v2639_v1  ;;  %253 = vst [vmem:[#allocation2 + $0x148] sm:$0xff] %v2639_v1 }
  0x1b   : > { %254 = vst [vmem:[#allocation2 + $0x150] sm:$0xff] %v2639_v1  ;;  %255 = vst [vmem:[#allocation2 + $0x158] sm:$0xff] %v2639_v1 }
  0x1c   : > { %256 = vst [vmem:[#allocation2 + $0x160] sm:$0xff] %v2639_v1  ;;  %257 = vst [vmem:[#allocation2 + $0x168] sm:$0xff] %v2639_v1 }
  0x1d   : > { %258 = vst [vmem:[#allocation2 + $0x170] sm:$0xff] %v2639_v1  ;;  %259 = vst [vmem:[#allocation2 + $0x178] sm:$0xff] %v2639_v1 }
  0x1e   : > { %260 = vst [vmem:[#allocation2 + $0x180] sm:$0xff] %v2639_v1  ;;  %261 = vst [vmem:[#allocation2 + $0x188] sm:$0xff] %v2639_v1 }
  0x1f   : > { %262 = vst [vmem:[#allocation2 + $0x190] sm:$0xff] %v2639_v1  ;;  %263 = vst [vmem:[#allocation2 + $0x198] sm:$0xff] %v2639_v1 }
  0x20   : > { %264 = vst [vmem:[#allocation2 + $0x1a0] sm:$0xff] %v2639_v1  ;;  %265 = vst [vmem:[#allocation2 + $0x1a8] sm:$0xff] %v2639_v1 }
  0x21   : > { %266 = vst [vmem:[%s2711_s5] sm:$0xff] %v2640_v2  ;;  %267 = vst [vmem:[%s2711_s5 + $0x8] sm:$0xff] %v2640_v2 }
  0x22   : > { %268 = vst [vmem:[%s2711_s5 + $0x10] sm:$0xff] %v2640_v2  ;;  %269 = vst [vmem:[%s2711_s5 + $0x18] sm:$0xff] %v2640_v2 }
  0x23   : > { %270 = vst [vmem:[%s2711_s5 + $0x20] sm:$0xff] %v2640_v2  ;;  %271 = vst [vmem:[%s2711_s5 + $0x28] sm:$0xff] %v2640_v2 }
  0x24   : > { %272 = vst [vmem:[%s2711_s5 + $0x30] sm:$0xff] %v2640_v2  ;;  %273 = vst [vmem:[%s2711_s5 + $0x38] sm:$0xff] %v2640_v2 }
  0x25   : > { %274 = vst [vmem:[%s2711_s5 + $0x40] sm:$0xff] %v2640_v2  ;;  %275 = vst [vmem:[%s2711_s5 + $0x48] sm:$0xff] %v2640_v2 }
  0x26   : > { %276 = vst [vmem:[%s2711_s5 + $0x50] sm:$0xff] %v2640_v2  ;;  %277 = vst [vmem:[%s2711_s5 + $0x58] sm:$0xff] %v2640_v2 }
  0x27 LB: >> { %v318_v3 = vld [vmem:[#allocation2 + $0x8] sm:$0xff]  ;;  %v317_v5 = vld [vmem:[#allocation2] sm:$0xff]  ;;  %v320_v9 = vld [vmem:[#allocation2 + $0x18] sm:$0xff]  ;;  %v2641_v11 = vmov 0   ;;  %vm574_vm0 = vcmask 261120   ;;  %s1965_s13 = smul.u32 192, %s2637_s6  ;;  %s2637_s6 = sphi %s2725_s6, %s284_s6  }
  0x28   : >> { %v2730_v4 = vld [vmem:[#allocation2 + $0x188] sm:$0xff]  ;;  %599 = vmatprep.subr.bf16.mxu0 %v318_v3  ;;  %v2733_v6 = vld [vmem:[#allocation2 + $0x180] sm:$0xff]  ;;  %v2739_v10 = vld [vmem:[#allocation2 + $0x198] sm:$0xff]  ;;  %774 = vmatprep.mubr.bf16.mxu1 %v2641_v11  ;;  %s1966_s16 = smul.u32 96, %s2637_s6  ;;  %s2642_s18 = smov 19  }
  0x29   : >> { %2061 = vmatprep.subr.bf16.mxu1 %v2730_v4  ;;  %v321_v7 = vld [vmem:[#allocation2 + $0x20] sm:$0xff]  ;;  %600 = vmatpush1.bf16.msra.mxu0 %v317_v5  ;;  %v324_v12 = vld [vmem:[#allocation2 + $0x38] sm:$0xff]  ;;  %v343_v13 = vld [vmem:[#allocation2 + $0xd0] sm:$0xff]  ;;  %s2920_s14 = scalar_lea.vmem %s2701_s24, %s1965_s13  ;;  %s2643_s19 = smov 18  }
  0x2a   : >> { %v2735_v8 = vld [vmem:[#allocation2 + $0x1a0] sm:$0xff]  ;;  %2063 = vmatpush1.bf16.msra.mxu1 %v2733_v6  ;;  %601 = vmatprep.subr.bf16.mxu0 %v321_v7  ;;  %v2745_v14 = vld [vmem:[%s3916_s1 + $0x50] ss:$12 sps:$4 sm:$0xff]   ;;  %v346_v18 = vld [vmem:[#allocation2 + $0xe8] sm:$0xff]  ;;  %s3220_s17 = scalar_lea.vmem %s2706_s28, %s1966_s16  ;;  %s2644_s20 = smov 17  }
  0x2b   : >> { %2062 = vmatprep.subr.bf16.mxu1 %v2735_v8  ;;  %v323_v15 = vld [vmem:[#allocation2 + $0x30] sm:$0xff]  ;;  %v326_v19 = vld [vmem:[#allocation2 + $0x48] sm:$0xff]  ;;  %v349_v22 = vld [vmem:[#allocation2 + $0x100] sm:$0xff]  ;;  %s2645_s21 = smov 1   ;;  %s2646_s22 = smov 127  }
  0x2c   : >> { %v319_v16 = vld [vmem:[#allocation2 + $0x10] sm:$0xff]  ;;  %v322_v20 = vld [vmem:[#allocation2 + $0x28] sm:$0xff]  ;;  %v329_v24 = vld [vmem:[#allocation2 + $0x60] sm:$0xff]  ;;  %s2647_s23 = smov 111   ;;  %s2648_s25 = smov 110  }
  0x2d   : >> { %602 = vmatpush1.bf16.msra.mxu0 %v320_v9  ;;  %v327_v17 = vld [vmem:[#allocation2 + $0x50] sm:$0xff]  ;;  %v330_v21 = vld [vmem:[#allocation2 + $0x68] sm:$0xff]  ;;  %v325_v25 = vld [vmem:[#allocation2 + $0x40] sm:$0xff]  ;;  %s2649_s26 = smov 109   ;;  %s284_s6 = sadd.s32 1, %s2637_s6  }
  0x2e   : >> { %2064 = vmatpush1.bf16.msra.mxu1 %v2739_v10  ;;  %603 = vmatprep.subr.bf16.mxu0 %v324_v12  ;;  %v2754_v23 = vld [vmem:[%s3916_s1 + $0x68] ss:$12 sps:$4 sm:$0xff]   ;;  %v333_v26 = vld [vmem:[#allocation2 + $0x80] sm:$0xff]  ;;  %v352_v27 = vld [vmem:[#allocation2 + $0x118] sm:$0xff]  ;;  %p281_p4 = scmp.ge.s32.totalorder %s284_s6, 8  }
  0x2f   : >> { %1967 = vmatprep.subr.bf16.mxu1 %v343_v13  ;;  %v332_v28 = vld [vmem:[#allocation2 + $0x78] sm:$0xff]  ;;  %v355_v31 = vld [vmem:[#allocation2 + $0x130] sm:$0xff]  ;;  %v2762_v32 = vld [vmem:[%s3916_s1 + $0x80] ss:$12 sps:$4 sm:$0xff]  }
  0x30   : >> { %v328_v29 = vld [vmem:[#allocation2 + $0x58] sm:$0xff]  ;;  %v2406_v33 = vld [vmem:[%s3916_s1 + $0x4] ss:$12 sps:$4 sm:$0xff]   ;;  %v358_v37 = vld [vmem:[#allocation2 + $0x148] sm:$0xff] }
  0x31   : >> { %1913 = vmatmul.mubr.msk.bf16.vlgmr.msra.gmra.mrb[0].mxu1 %vm574_vm0, %v2745_v14  ;;  %604 = vmatpush1.bf16.msra.mxu0 %v323_v15  ;;  %v336_v30 = vld [vmem:[#allocation2 + $0x98] sm:$0xff]  ;;  %v335_v34 = vld [vmem:[#allocation2 + $0x90] sm:$0xff]  ;;  %v338_v38 = vld [vmem:[#allocation2 + $0xa8] sm:$0xff] }
  0x32   : >> { %1968 = vmatpush3.bf16.msra.mxu1 %v319_v16  ;;  %605 = vmatprep.subr.bf16.mxu0 %v327_v17  ;;  %v331_v35 = vld [vmem:[#allocation2 + $0x70] sm:$0xff]  ;;  %v342_v39 = vld [vmem:[#allocation2 + $0xc8] sm:$0xff]  ;;  %v361_v41 = vld [vmem:[#allocation2 + $0x160] sm:$0xff] }
  0x33   : >> { %1969 = vmatprep.subr.bf16.mxu1 %v346_v18  ;;  %784 = vmatprep.mubr.bf16.mxu1 %v2641_v11  ;;  %v339_v36 = vld [vmem:[#allocation2 + $0xb0] sm:$0xff]  ;;  %v334_v40 = vld [vmem:[#allocation2 + $0x88] sm:$0xff]  ;;  %v2773_v42 = vld [vmem:[%s3916_s1 + $0x98] ss:$12 sps:$4 sm:$0xff]  }
  0x34   : >> { %631 = vmatprep.mubr.bf16.mxu0 %v2406_v33  ;;  %v341_v43 = vld [vmem:[#allocation2 + $0xc0] sm:$0xff]  ;;  %v364_v46 = vld [vmem:[#allocation2 + $0x178] sm:$0xff]  ;;  %v367_v51 = vld [vmem:[#allocation2 + $0x190] sm:$0xff] }
  0x35   : >> { %606 = vmatpush1.bf16.msra.mxu0 %v326_v19  ;;  %v345_v44 = vld [vmem:[#allocation2 + $0xe0] sm:$0xff]  ;;  %v344_v47 = vld [vmem:[#allocation2 + $0xd8] sm:$0xff]  ;;  %v347_v52 = vld [vmem:[#allocation2 + $0xf0] sm:$0xff] }
  0x36   : >> { %1970 = vmatpush3.bf16.msra.mxu1 %v322_v20  ;;  %607 = vmatprep.subr.bf16.mxu0 %v330_v21  ;;  %v337_v45 = vld [vmem:[#allocation2 + $0xa0] sm:$0xff]  ;;  %v348_v48 = vld [vmem:[#allocation2 + $0xf8] sm:$0xff]  ;;  %v351_v53 = vld [vmem:[#allocation2 + $0x110] sm:$0xff] }
  0x37   : >> { %1971 = vmatprep.subr.bf16.mxu1 %v349_v22  ;;  %v340_v49 = vld [vmem:[#allocation2 + $0xb8] sm:$0xff]  ;;  %v350_v54 = vld [vmem:[#allocation2 + $0x108] sm:$0xff]  ;;  %v353_v57 = vld [vmem:[#allocation2 + $0x120] sm:$0xff] }
  0x38   : >> { %v2781_v50 = vld [vmem:[%s3916_s1 + $0xb0] ss:$12 sps:$4 sm:$0xff]   ;;  %v354_v55 = vld [vmem:[#allocation2 + $0x128] sm:$0xff]  ;;  %v357_v59 = vld [vmem:[#allocation2 + $0x140] sm:$0xff] }
  0x39   : >> { %1914 = vmatmul.mubr.msk.bf16.gmra.mrb[4].mxu1 %vm574_vm0, %v2754_v23  ;;  %608 = vmatpush1.bf16.msra.mxu0 %v329_v24  ;;  %v2404_v56 = vld [vmem:[%s3916_s1] ss:$12 sps:$4 sm:$0xff]   ;;  %v2407_v58 = vld [vmem:[%s3916_s1 + $0x1c] ss:$12 sps:$4 sm:$0xff]   ;;  %v2409_v63 = vld [vmem:[%s3916_s1 + $0x18] ss:$12 sps:$4 sm:$0xff]  }
  0x3a   : >> { %1972 = vmatpush3.bf16.msra.mxu1 %v325_v25  ;;  %609 = vmatprep.subr.bf16.mxu0 %v333_v26  ;;  %v370_v60 = vld [vmem:[#allocation2 + $0x1a8] sm:$0xff]  ;;  %v356_v61 = vld [vmem:[#allocation2 + $0x138] sm:$0xff]  ;;  %v2410_v1 = vld [vmem:[%s3916_s1 + $0x34] ss:$12 sps:$4 sm:$0xff]  }
  0x3b   : >> { %794 = vmatprep.mubr.bf16.mxu1 %v2641_v11  ;;  %1973 = vmatprep.subr.bf16.mxu1 %v352_v27  ;;  %v360_v62 = vld [vmem:[#allocation2 + $0x158] sm:$0xff]  ;;  %v359_v2 = vld [vmem:[#allocation2 + $0x150] sm:$0xff]  ;;  %v362_v5 = vld [vmem:[#allocation2 + $0x168] sm:$0xff] }
  0x3c   : >> { %v363_v3 = vld [vmem:[#allocation2 + $0x170] sm:$0xff]  ;;  %v2413_v9 = vld [vmem:[%s3916_s1 + $0x4c] ss:$12 sps:$4 sm:$0xff]  }
  0x3d   : >> { %610 = vmatpush1.bf16.msra.mxu0 %v332_v28  ;;  %v2412_v7 = vld [vmem:[%s3916_s1 + $0x30] ss:$12 sps:$4 sm:$0xff]   ;;  %v2415_v12 = vld [vmem:[%s3916_s1 + $0x48] ss:$12 sps:$4 sm:$0xff]   ;;  %v2425_v16 = vld [vmem:[%s3916_s1 + $0xac] ss:$12 sps:$4 sm:$0xff]  }
  0x3e   : >> { %1974 = vmatpush3.bf16.msra.mxu1 %v328_v29  ;;  %611 = vmatprep.subr.bf16.mxu0 %v336_v30  ;;  %v2416_v13 = vld [vmem:[%s3916_s1 + $0x64] ss:$12 sps:$4 sm:$0xff]   ;;  %v2427_v17 = vld [vmem:[%s3916_s1 + $0xa8] ss:$12 sps:$4 sm:$0xff]   ;;  %v2429_v19 = vld [vmem:[%s3916_s1 + $0x20] ss:$12 sps:$4 sm:$0xff]  }
  0x3f   : >> { %1975 = vmatprep.subr.bf16.mxu1 %v355_v31  ;;  %v2424_v15 = vld [vmem:[%s3916_s1 + $0x90] ss:$12 sps:$4 sm:$0xff]   ;;  %v2428_v18 = vld [vmem:[%s3916_s1 + $0x8] ss:$12 sps:$4 sm:$0xff]   ;;  %v2430_v20 = vld [vmem:[%s3916_s1 + $0x38] ss:$12 sps:$4 sm:$0xff]  }
  0x41   : >> { %1915 = vmatmul.mubr.msk.bf16.gmra.mrb[8].mxu1 %vm574_vm0, %v2762_v32  ;;  %612 = vmatpush1.bf16.msra.mxu0 %v335_v34 }
  0x42   : >> { %1976 = vmatpush3.bf16.msra.mxu1 %v331_v35  ;;  %613 = vmatprep.subr.bf16.mxu0 %v339_v36 }
  0x43   : >> { %804 = vmatprep.mubr.bf16.mxu1 %v2641_v11  ;;  %1977 = vmatprep.subr.bf16.mxu1 %v358_v37 }
  0x45   : >> { %614 = vmatpush1.bf16.msra.mxu0 %v338_v38 }
  0x46   : >> { %1978 = vmatpush3.bf16.msra.mxu1 %v334_v40  ;;  %615 = vmatprep.subr.bf16.mxu0 %v342_v39 }
  0x47   : >> { %1979 = vmatprep.subr.bf16.mxu1 %v361_v41 }
  0x49   : >> { %1916 = vmatmul.mubr.msk.bf16.gmra.mrb[12].mxu1 %vm574_vm0, %v2773_v42  ;;  %616 = vmatpush1.bf16.msra.mxu0 %v341_v43 }
  0x4a   : >> { %814 = vmatprep.mubr.bf16.mxu1 %v2641_v11  ;;  %617 = vmatprep.subr.bf16.mxu0 %v345_v44 }
  0x4b   : >> { %1980 = vmatpush3.bf16.msra.mxu1 %v337_v45 }
  0x4c   : >> { %1981 = vmatprep.subr.bf16.mxu1 %v364_v46 }
  0x4d   : >> { %618 = vmatpush1.bf16.msra.mxu0 %v344_v47 }
  0x4e   : >> { %619 = vmatprep.subr.bf16.mxu0 %v348_v48 }
  0x4f   : >> { %1982 = vmatpush3.bf16.msra.mxu1 %v340_v49 }
  0x50   : >> { %2041 = vmatprep.subr.bf16.mxu1 %v367_v51 }
  0x51   : >> { %1917 = vmatmul.mubr.msk.bf16.gmra.mrb[16].mxu1 %vm574_vm0, %v2781_v50  ;;  %620 = vmatpush1.bf16.msra.mxu0 %v347_v52 }
  0x52   : >> { %857 = vmatprep.mubr.bf16.mxu1 %v2406_v33  ;;  %621 = vmatprep.subr.bf16.mxu0 %v351_v53 }
  0x55   : >> { %622 = vmatpush1.bf16.msra.mxu0 %v350_v54 }
  0x56   : >> { %623 = vmatprep.subr.bf16.mxu0 %v354_v55 }
  0x59   : >> { %858 = vmatmul.mubr.bf16.vlgmr.msra.gmra.mrb[20].mxu1 %v2404_v56  ;;  %624 = vmatpush1.bf16.msra.mxu0 %v353_v57 }
  0x5a   : >> { %2042 = vmatpush3.bf16.msra.mxu1 %v367_v51  ;;  %625 = vmatprep.subr.bf16.mxu0 %v357_v59 }
  0x5b   : >> { %865 = vmatprep.mubr.bf16.mxu1 %v2407_v58  ;;  %2043 = vmatprep.subr.bf16.mxu1 %v370_v60 }
  0x5d   : >> { %626 = vmatpush1.bf16.msra.mxu0 %v356_v61 }
  0x5e   : >> { %2044 = vmatpush3.bf16.msra.mxu1 %v370_v60  ;;  %627 = vmatprep.subr.bf16.mxu0 %v360_v62 }
  0x61   : >> { %866 = vmatmul.mubr.bf16.gmra.mrb[24].mxu1 %v2409_v63  ;;  %628 = vmatpush1.bf16.msra.mxu0 %v359_v2 }
  0x62   : >> { %873 = vmatprep.mubr.bf16.mxu1 %v2410_v1  ;;  %629 = vmatprep.subr.bf16.mxu0 %v363_v3 }
  0x65   : >> { %630 = vmatpush1.bf16.msra.mxu0 %v362_v5  ;;  %v386_v5 = vld [vmem:[%s2920_s14 + $0x48] sm:$0xff] }
  0x66   : >> { %712 = vmatprep.subr.bf16.mxu0 %v2730_v4  ;;  %v2418_v4 = vld [vmem:[%s3916_s1 + $0x60] ss:$12 sps:$4 sm:$0xff]  }
  0x68   : >> { %632 = vmatmul.mubr.bf16.vlgmr.msra.gmra.mrb[0].mxu0 %v2404_v56 }
  0x69   : >> { %874 = vmatmul.mubr.bf16.gmra.mrb[28].mxu1 %v2412_v7  ;;  %641 = vmatprep.mubr.bf16.mxu0 %v2407_v58 }
  0x6a   : >> { %881 = vmatprep.mubr.bf16.mxu1 %v2413_v9  ;;  %713 = vmatpush1.bf16.msra.mxu0 %v2733_v6  ;;  %v2419_v6 = vld [vmem:[%s3916_s1 + $0x7c] ss:$12 sps:$4 sm:$0xff]  }
  0x6b   : >> { %714 = vmatprep.subr.bf16.mxu0 %v2735_v8  ;;  %v2421_v8 = vld [vmem:[%s3916_s1 + $0x78] ss:$12 sps:$4 sm:$0xff]  }
  0x6e   : >> { %715 = vmatpush1.bf16.msra.mxu0 %v2739_v10  ;;  %v2422_v10 = vld [vmem:[%s3916_s1 + $0x94] ss:$12 sps:$4 sm:$0xff]  }
  0x70   : >> { %642 = vmatmul.mubr.bf16.gmra.mrb[4].mxu0 %v2409_v63 }
  0x71   : >> { %882 = vmatmul.mubr.bf16.gmra.mrb[32].mxu1 %v2415_v12  ;;  %651 = vmatprep.mubr.bf16.mxu0 %v2410_v1 }
  0x72   : >> { %889 = vmatprep.mubr.bf16.mxu1 %v2416_v13 }
  0x78   : >> { %652 = vmatmul.mubr.bf16.gmra.mrb[8].mxu0 %v2412_v7 }
  0x79   : >> { %890 = vmatmul.mubr.bf16.gmra.mrb[36].mxu1 %v2418_v4  ;;  %661 = vmatprep.mubr.bf16.mxu0 %v2413_v9 }
  0x7a   : >> { %897 = vmatprep.mubr.bf16.mxu1 %v2419_v6 }
  0x80   : >> { %662 = vmatmul.mubr.bf16.gmra.mrb[12].mxu0 %v2415_v12  ;;  %v388_v12 = vld [vmem:[%s2920_s14 + $0x54] sm:$0xff] }
  0x81   : >> { %898 = vmatmul.mubr.bf16.gmra.mrb[40].mxu1 %v2421_v8  ;;  %671 = vmatprep.mubr.bf16.mxu0 %v2416_v13  ;;  %v424_v13 = vunpack.c.l.bf16 %v386_v5 }
  0x82   : >> { %905 = vmatprep.mubr.bf16.mxu1 %v2422_v10 }
  0x88   : >> { %672 = vmatmul.mubr.bf16.gmra.mrb[16].mxu0 %v2418_v4  ;;  %v425_v4 = vunpack.c.h.bf16 %v386_v5 }
  0x89   : >> { %906 = vmatmul.mubr.bf16.gmra.mrb[44].mxu1 %v2424_v15  ;;  %681 = vmatprep.mubr.bf16.mxu0 %v2419_v6  ;;  %v427_v6 = vunpack.c.l.bf16 %v388_v12 }
  0x8a   : >> { %913 = vmatprep.mubr.bf16.mxu1 %v2425_v16 }
  0x90   : >> { %682 = vmatmul.mubr.bf16.gmra.mrb[20].mxu0 %v2421_v8 }
  0x91   : >> { %914 = vmatmul.mubr.bf16.gmra.mrb[48].mxu1 %v2427_v17  ;;  %691 = vmatprep.mubr.bf16.mxu0 %v2422_v10 }
  0x92   : >> { %2045 = vmatprep.mubr.msk.bf16.mxu1 %vm574_vm0, %v2428_v18 }
  0x98   : >> { %692 = vmatmul.mubr.bf16.gmra.mrb[24].mxu0 %v2424_v15  ;;  %v428_v15 = vunpack.c.h.bf16 %v388_v12 }
  0x99   : >> { %2046 = vmatmul.mubr.msk.bf16.vlgmr.msra.gmra.mrb[52].mxu1 %vm574_vm0, %v2429_v19  ;;  %701 = vmatprep.mubr.bf16.mxu0 %v2425_v16 }
  0x9a   : >> { %2049 = vmatprep.mubr.msk.bf16.mxu1 %vm574_vm0, %v2430_v20 }
  0xa0   : >> { %702 = vmatmul.mubr.bf16.gmra.mrb[28].mxu0 %v2427_v17 }
  0xa1   : >> { %2050 = vmatmul.mubr.msk.bf16.gmra.mrb[56].mxu1 %vm574_vm0, %v2745_v14  ;;  %744 = vmatprep.mubr.bf16.mxu0 %v2641_v11 }
  0xa2   : >> { %2053 = vmatprep.mubr.msk.bf16.mxu1 %vm574_vm0, %v2754_v23 }
  0xa8   : >> { %1910 = vmatmul.mubr.msk.bf16.vlgmr.msra.gmra.mrb[0].mxu0 %vm574_vm0, %v2428_v18 }
  0xa9   : >> { %2054 = vmatmul.mubr.msk.bf16.gmra.mrb[60].mxu1 %vm574_vm0, %v2762_v32  ;;  %754 = vmatprep.mubr.bf16.mxu0 %v2641_v11 }
  0xaa   : >> { %2057 = vmatprep.mubr.msk.bf16.mxu1 %vm574_vm0, %v2773_v42 }
  0xb0   : >> { %1911 = vmatmul.mubr.msk.bf16.gmra.mrb[4].mxu0 %vm574_vm0, %v2429_v19 }
  0xb1   : >> { %2058 = vmatmul.mubr.msk.bf16.gmra.mrb[64].mxu1 %vm574_vm0, %v2781_v50  ;;  %764 = vmatprep.mubr.bf16.mxu0 %v2641_v11 }
  0xb8   : >> { %1912 = vmatmul.mubr.msk.bf16.gmra.mrb[8].mxu0 %vm574_vm0, %v2430_v20 }
 0x104   : >> { %v2862_v14 = vpop.f32.mrb[0].mxu1 }
 0x105   : >> { %v2864_v21 = vpop.f32.mrb[1].mxu1 }
 0x106   : >> { %v2866_v22 = vpop.f32.mrb[2].mxu1 }
 0x107   : >> { %v2868_v23 = vpop.f32.mrb[3].mxu1 }
 0x10c   : >> { %v2870_v24 = vpop.f32.mrb[4].mxu1 }
 0x10d   : >> { %v2872_v25 = vpop.f32.mrb[5].mxu1 }
 0x10e   : >> { %v2874_v26 = vpop.f32.mrb[6].mxu1 }
 0x10f   : >> { %v2876_v27 = vpop.f32.mrb[7].mxu1 }
 0x114   : >> { %v2878_v28 = vpop.f32.mrb[8].mxu1 }
 0x115   : >> { %v2880_v11 = vpop.f32.mrb[9].mxu1 }
 0x116   : >> { %v2882_v29 = vpop.f32.mrb[10].mxu1 }
 0x117   : >> { %v2884_v30 = vpop.f32.mrb[11].mxu1 }
 0x11c   : >> { %v2886_v31 = vpop.f32.mrb[12].mxu1 }
 0x11d   : >> { %v2888_v32 = vpop.f32.mrb[13].mxu1 }
 0x11e   : >> { %v2890_v33 = vpop.f32.mrb[14].mxu1 }
 0x11f   : >> { %v2892_v34 = vpop.f32.mrb[15].mxu1 }
 0x124   : >> { %v2894_v35 = vpop.f32.mrb[16].mxu1 }
 0x125   : >> { %v2896_v36 = vpop.f32.mrb[17].mxu1 }
 0x126   : >> { %v2898_v37 = vpop.f32.mrb[18].mxu1 }
 0x127   : >> { %v2900_v38 = vpop.f32.mrb[19].mxu1 }
 0x12c   : >> { %v1983_v39 = vpop.f32.mrb[20].mxu1 }
 0x12d   : >> { %v1984_v40 = vpop.f32.mrb[21].mxu1 }
 0x12e   : >> { %v2902_v41 = vadd.f32 %v1984_v40, %v1983_v39  ;;  %v1986_v42 = vpop.f32.mrb[22].mxu1 }
 0x12f   : >> { %v1987_v43 = vpop.f32.mrb[23].mxu1 }
 0x130   : >> { %v2904_v44 = vadd.f32 %v1987_v43, %v1986_v42  ;;  %v390_v42 = vld [vmem:[%s2920_s14 + $0x60] sm:$0xff] }
 0x134   : >> { %v1989_v45 = vpop.f32.mrb[24].mxu1 }
 0x135   : >> { %v1990_v46 = vpop.f32.mrb[25].mxu1 }
 0x136   : >> { %v2906_v47 = vadd.f32 %v1990_v46, %v1989_v45  ;;  %v1992_v48 = vpop.f32.mrb[26].mxu1 }
 0x137   : >> { %v1993_v49 = vpop.f32.mrb[27].mxu1 }
 0x138   : >> { %v2908_v50 = vadd.f32 %v1993_v49, %v1992_v48 }
 0x13c   : >> { %v1995_v51 = vpop.f32.mrb[28].mxu1 }
 0x13d   : >> { %v1996_v52 = vpop.f32.mrb[29].mxu1 }
 0x13e   : >> { %v2910_v53 = vadd.f32 %v1996_v52, %v1995_v51  ;;  %v1998_v54 = vpop.f32.mrb[30].mxu1 }
 0x13f   : >> { %v1999_v55 = vpop.f32.mrb[31].mxu1 }
 0x140   : >> { %v2912_v56 = vadd.f32 %v1999_v55, %v1998_v54  ;;  %v392_v54 = vld [vmem:[%s2920_s14 + $0x6c] sm:$0xff] }
 0x144   : >> { %v2001_v57 = vpop.f32.mrb[32].mxu1 }
 0x145   : >> { %v2002_v58 = vpop.f32.mrb[33].mxu1 }
 0x146   : >> { %v2914_v59 = vadd.f32 %v2002_v58, %v2001_v57  ;;  %v2004_v60 = vpop.f32.mrb[34].mxu1  ;;  %v430_v57 = vunpack.c.l.bf16 %v390_v42 }
 0x147   : >> { %v2005_v61 = vpop.f32.mrb[35].mxu1 }
 0x148   : >> { %v2916_v62 = vadd.f32 %v2005_v61, %v2004_v60  ;;  %v431_v60 = vunpack.c.h.bf16 %v390_v42  ;;  %v433_v61 = vunpack.c.l.bf16 %v392_v54  ;;  %v2947_v42 = vld [vmem:[%s2920_s14 + $0x8] ss:$24 sps:$4 sm:$0xff]  }
 0x14c   : >> { %v2007_v63 = vpop.f32.mrb[36].mxu1 }
 0x14d   : >> { %v2008_v1 = vpop.f32.mrb[37].mxu1 }
 0x14e   : >> { %v2922_v2 = vadd.f32 %v2008_v1, %v2007_v63  ;;  %v2010_v3 = vpop.f32.mrb[38].mxu1 }
 0x14f   : >> { %v2011_v7 = vpop.f32.mrb[39].mxu1 }
 0x150   : >> { %v2925_v9 = vadd.f32 %v2011_v7, %v2010_v3 }
 0x153   : >> { %v663_v8 = vpop.f32.mrb[12].mxu0 }
 0x154   : >> { %v2013_v10 = vpop.f32.mrb[40].mxu1  ;;  %v664_v16 = vadd.f32 %v663_v8, %v424_v13  ;;  %v665_v17 = vpop.f32.mrb[13].mxu0  ;;  %v394_v8 = vld [vmem:[%s2920_s14 + $0x78] sm:$0xff] }
 0x155   : >> { %v2014_v18 = vpop.f32.mrb[41].mxu1  ;;  %v666_v19 = vadd.f32 %v665_v17, %v425_v4  ;;  %v667_v39 = vpop.f32.mrb[14].mxu0 }
 0x156   : >> { %v2928_v20 = vadd.f32 %v2014_v18, %v2013_v10  ;;  %v2016_v40 = vpop.f32.mrb[42].mxu1  ;;  %v777_v43 = vadd.f32 %v2862_v14, %v664_v16  ;;  %v668_v45 = vadd.f32 %v667_v39, %v427_v6  ;;  %v669_v46 = vpop.f32.mrb[15].mxu0  ;;  %v434_v14 = vunpack.c.h.bf16 %v392_v54 }
 0x157   : >> { %v2017_v48 = vpop.f32.mrb[43].mxu1  ;;  %v779_v49 = vadd.f32 %v2864_v21, %v666_v19  ;;  %v670_v51 = vadd.f32 %v669_v46, %v428_v15  ;;  %v436_v46 = vunpack.c.l.bf16 %v394_v8  ;;  %v408_v54 = vunpack.c.l.bf16 %v2947_v42 }
 0x158   : >> { %v2933_v52 = vadd.f32 %v2017_v48, %v2016_v40  ;;  %v781_v55 = vadd.f32 %v2866_v22, %v668_v45  ;;  %v1944_v3 = vmul.f32 -1.442695, %v777_v43  ;;  %v396_v40 = vld [vmem:[%s2920_s14 + $0x84] sm:$0xff] }
 0x159   : >> { %v783_v58 = vadd.f32 %v2868_v23, %v670_v51  ;;  %v1945_v12 = vmul.f32 -1.442695, %v779_v49  ;;  %v437_v49 = vunpack.c.h.bf16 %v394_v8  ;;  %v439_v51 = vunpack.c.l.bf16 %v396_v40  ;;  %v2972_v8 = vld [vmem:[%s2920_s14 + $0x9c] sm:$0xff] }
 0x15a   : >> { %v1947_v23 = vmul.f32 -1.442695, %v781_v55  ;;  %2431 = vpow2.f32 %v1944_v3  ;;  %v2959_v55 = vld [vmem:[%s2920_s14 + $0x44] ss:$24 sps:$4 sm:$0xff]  }
 0x15b   : >> { %v673_v63 = vpop.f32.mrb[16].mxu0  ;;  %v1948_v43 = vmul.f32 -1.442695, %v783_v58  ;;  %2433 = vpow2.f32 %v1945_v12 }
 0x15c   : >> { %v2019_v1 = vpop.f32.mrb[44].mxu1  ;;  %v674_v5 = vadd.f32 %v673_v63, %v430_v57  ;;  %v675_v7 = vpop.f32.mrb[17].mxu0  ;;  %2435 = vpow2.f32 %v1947_v23  ;;  %v2965_v63 = vld [vmem:[%s2920_s14 + $0x68] ss:$24 sps:$4 sm:$0xff]  }
 0x15d   : >> { %v2020_v21 = vpop.f32.mrb[45].mxu1  ;;  %v676_v13 = vadd.f32 %v675_v7, %v431_v60  ;;  %v677_v22 = vpop.f32.mrb[18].mxu0  ;;  %v414_v60 = vunpack.c.h.bf16 %v2947_v42  ;;  %2437 = vpow2.f32 %v1948_v43  ;;  %v398_v7 = vld [vmem:[%s2920_s14 + $0x90] sm:$0xff] }
 0x15e   : >> { %v2938_v4 = vadd.f32 %v2020_v21, %v2019_v1  ;;  %v2022_v6 = vpop.f32.mrb[46].mxu1  ;;  %v787_v10 = vadd.f32 %v2870_v24, %v674_v5  ;;  %v678_v15 = vadd.f32 %v677_v22, %v433_v61  ;;  %v679_v16 = vpop.f32.mrb[19].mxu0  ;;  %v2951_v24 = vld [vmem:[%s2920_s14 + $0x14] ss:$24 sps:$4 sm:$0xff]  }
 0x15f   : >> { %v2023_v17 = vpop.f32.mrb[47].mxu1  ;;  %v789_v18 = vadd.f32 %v2872_v25, %v676_v13  ;;  %v680_v19 = vadd.f32 %v679_v16, %v434_v14  ;;  %v2955_v25 = vld [vmem:[%s2920_s14 + $0x38] ss:$24 sps:$4 sm:$0xff]  }
 0x160   : >> { %v2943_v39 = vadd.f32 %v2023_v17, %v2022_v6  ;;  %v791_v45 = vadd.f32 %v2874_v26, %v678_v15  ;;  %v440_v26 = vunpack.c.h.bf16 %v396_v40  ;;  %v1950_v1 = vmul.f32 -1.442695, %v787_v10 }
 0x161   : >> { %v793_v48 = vadd.f32 %v2876_v27, %v680_v19 }
 0x162   : >> { %2439 = vpow2.f32 %v1950_v1 }
 0x163   : >> { %v683_v57 = vpop.f32.mrb[20].mxu0 }
 0x164   : >> { %v2025_v58 = vpop.f32.mrb[48].mxu1  ;;  %v684_v14 = vadd.f32 %v683_v57, %v436_v46  ;;  %v685_v3 = vpop.f32.mrb[21].mxu0  ;;  %v443_v57 = vunpack.c.h.bf16 %v398_v7 }
 0x165   : >> { %v2026_v5 = vpop.f32.mrb[49].mxu1  ;;  %v686_v12 = vadd.f32 %v685_v3, %v437_v49  ;;  %v687_v22 = vpop.f32.mrb[22].mxu0  ;;  %v442_v49 = vunpack.c.l.bf16 %v398_v7  ;;  %v1951_v3 = vmul.f32 -1.442695, %v789_v18  ;;  %v868_v7 = vadd.f32 %v2906_v47, %v414_v60 }
 0x166   : >> { %v2969_v13 = vadd.f32 %v2026_v5, %v2025_v58  ;;  %v2028_v6 = vpop.f32.mrb[50].mxu1  ;;  %v797_v10 = vadd.f32 %v2878_v28, %v684_v14  ;;  %v688_v16 = vadd.f32 %v687_v22, %v439_v51  ;;  %v689_v17 = vpop.f32.mrb[23].mxu0  ;;  %v2981_v58 = vld [vmem:[%s2920_s14 + $0xa8] sm:$0xff]  ;;  %v445_v28 = vunpack.c.l.bf16 %v2972_v8  ;;  %v2986_v51 = vld [vmem:[%s2920_s14 + $0xb4] sm:$0xff] }
 0x167   : >> { %v2029_v19 = vpop.f32.mrb[51].mxu1  ;;  %v799_v43 = vadd.f32 %v2880_v11, %v686_v12  ;;  %v690_v46 = vadd.f32 %v689_v17, %v440_v26  ;;  %v1953_v14 = vmul.f32 -1.442695, %v791_v45  ;;  %v446_v11 = vunpack.c.h.bf16 %v2972_v8  ;;  %v2432_v26 = vpop.eup %2431 }
 0x168   : >> { %v801_v5 = vadd.f32 %v2882_v29, %v688_v16  ;;  %v2989_v15 = vadd.f32 %v2029_v19, %v2028_v6  ;;  %v1956_v12 = vmul.f32 -1.442695, %v797_v10  ;;  %v448_v1 = vunpack.c.l.bf16 %v2981_v58  ;;  %v2434_v29 = vpop.eup %2433 }
 0x169   : >> { %v803_v22 = vadd.f32 %v2884_v30, %v690_v46  ;;  %v449_v18 = vunpack.c.h.bf16 %v2981_v58  ;;  %v1957_v16 = vmul.f32 -1.442695, %v799_v43  ;;  %v860_v45 = vadd.f32 %v2902_v41, %v408_v54  ;;  %v2436_v19 = vpop.eup %2435 }
 0x16a   : >> { %v451_v30 = vunpack.c.l.bf16 %v2986_v51  ;;  %v452_v6 = vunpack.c.h.bf16 %v2986_v51  ;;  %2441 = vpow2.f32 %v1951_v3  ;;  %v1954_v8 = vmul.f32 -1.442695, %v793_v48  ;;  %v2438_v27 = vpop.eup %2437 }
 0x16b   : >> { %v693_v17 = vpop.f32.mrb[24].mxu0  ;;  %v1133_v40 = vadd.f32 1.0, %v2432_v26  ;;  %2443 = vpow2.f32 %v1953_v14  ;;  %v1134_v61 = vadd.f32 1.0, %v2434_v29  ;;  %v3953_v54 = vunpack.c.h.bf16 %v2951_v24 }
 0x16c   : >> { %v2047_v42 = vpop.f32.mrb[52].mxu1  ;;  %v694_v10 = vadd.f32 %v693_v17, %v442_v49  ;;  %v695_v47 = vpop.f32.mrb[25].mxu0  ;;  %2445 = vpow2.f32 %v1956_v12 }
 0x16d   : >> { %v965_v46 = vadd.f32 %v2047_v42, %v868_v7  ;;  %v956_v60 = vpop.f32.mrb[53].mxu1  ;;  %v696_v58 = vadd.f32 %v695_v47, %v443_v57  ;;  %v697_v43 = vpop.f32.mrb[26].mxu0  ;;  %v871_v3 = vadd.f32 %v2908_v50, %v3953_v54  ;;  %v1136_v42 = vadd.f32 1.0, %v2436_v19 }
 0x16e   : >> { %v957_v21 = vadd.f32 %v956_v60, %v860_v45  ;;  %v2048_v23 = vpop.f32.mrb[54].mxu1  ;;  %v807_v41 = vadd.f32 %v2886_v31, %v694_v10  ;;  %v699_v48 = vpop.f32.mrb[27].mxu0  ;;  %2447 = vpow2.f32 %v1957_v16  ;;  %v3954_v57 = vunpack.c.l.bf16 %v2951_v24 }
 0x16f   : >> { %v959_v49 = vpop.f32.mrb[55].mxu1  ;;  %v809_v26 = vadd.f32 %v2888_v32, %v696_v58  ;;  %2449 = vpow2.f32 %v1954_v8  ;;  %v1934_v7 = vmul.f32 -1.442695, %v965_v46  ;;  %v698_v29 = vadd.f32 %v697_v43, %v445_v28  ;;  %v2440_v10 = vpop.eup %2439  ;;  %v3019_v46 = vld [vmem:[%s2920_s14 + $0x74] ss:$24 sps:$4 sm:$0xff]  }
 0x170   : >> { %v863_v14 = vadd.f32 %v2904_v44, %v3954_v57  ;;  %v968_v12 = vadd.f32 %v2048_v23, %v871_v3  ;;  %2451 = vrcp.f32 %v1133_v40  ;;  %v1137_v31 = vadd.f32 1.0, %v2438_v27 }
 0x171   : >> { %v700_v17 = vadd.f32 %v699_v48, %v446_v11  ;;  %2453 = vrcp.f32 %v1134_v61  ;;  %v1928_v50 = vmul.f32 -1.442695, %v957_v21  ;;  %v3007_v16 = vadd.f32 %v2890_v33, %v698_v29 }
 0x172   : >> { %v960_v45 = vadd.f32 %v959_v49, %v863_v14  ;;  %v3955_v32 = vunpack.c.h.bf16 %v2955_v25  ;;  %2455 = vrcp.f32 %v1136_v42  ;;  %v1959_v44 = vmul.f32 -1.442695, %v801_v5 }
 0x173   : >> { %v3013_v28 = vadd.f32 %v2892_v34, %v700_v17  ;;  %v703_v23 = vpop.f32.mrb[28].mxu0  ;;  %v3956_v40 = vunpack.c.l.bf16 %v2955_v25  ;;  %v1960_v11 = vmul.f32 -1.442695, %v803_v22  ;;  %2457 = vpow2.f32 %v1934_v7 }
 0x174   : >> { %v884_v24 = vadd.f32 %v2914_v59, %v3955_v32  ;;  %v2051_v27 = vpop.f32.mrb[56].mxu1  ;;  %v704_v21 = vadd.f32 %v703_v23, %v448_v1  ;;  %v705_v19 = vpop.f32.mrb[29].mxu0  ;;  %2459 = vrcp.f32 %v1137_v31  ;;  %v1199_v59 = vadd.f32 1.0, %v2440_v10  ;;  %v403_v23 = vld [vmem:[%s2920_s14 + $0x98] ss:$24 sps:$4 sm:$0xff]  }
 0x175   : >> { %v876_v61 = vadd.f32 %v2910_v53, %v3956_v40  ;;  %v972_v8 = vpop.f32.mrb[57].mxu1  ;;  %v706_v5 = vadd.f32 %v705_v19, %v449_v18  ;;  %v707_v34 = vpop.f32.mrb[30].mxu0  ;;  %2461 = vpow2.f32 %v1928_v50  ;;  %v3957_v25 = vunpack.c.h.bf16 %v2959_v55 }
 0x176   : >> { %v981_v33 = vadd.f32 %v2051_v27, %v884_v24  ;;  %v2052_v60 = vpop.f32.mrb[58].mxu1  ;;  %v3023_v58 = vpop.eup %2441  ;;  %v3026_v53 = vadd.f32 %v2894_v35, %v704_v21  ;;  %v438_v54 = vunpack.c.h.bf16 %v2965_v63  ;;  %2463 = vpow2.f32 %v1959_v44 }
 0x177   : >> { %v3021_v47 = vadd.f32 %v972_v8, %v876_v61  ;;  %v887_v22 = vadd.f32 %v2916_v62, %v3957_v25  ;;  %v709_v1 = vpop.f32.mrb[31].mxu0  ;;  %v975_v43 = vpop.f32.mrb[59].mxu1  ;;  %v3035_v18 = vadd.f32 %v2896_v36, %v706_v5  ;;  %v3958_v48 = vunpack.c.l.bf16 %v2959_v55  ;;  %v3087_v25 = vld [vmem:[%s2920_s14 + $0xc] sm:$0xff] }
 0x178   : >> { %v3032_v3 = vpop.eup %2443  ;;  %v435_v35 = vunpack.c.l.bf16 %v3019_v46  ;;  %2465 = vpow2.f32 %v1960_v11  ;;  %v1937_v57 = vmul.f32 -1.442695, %v968_v12  ;;  %v708_v62 = vadd.f32 %v707_v34, %v451_v30 }
 0x179   : >> { %v879_v49 = vadd.f32 %v2912_v56, %v3958_v48  ;;  %v2446_v42 = vpop.eup %2445  ;;  %v3043_v14 = vadd.f32 %v2052_v60, %v887_v22  ;;  %2467 = vrcp.f32 %v1199_v59  ;;  %v710_v36 = vadd.f32 %v709_v1, %v452_v6  ;;  %v3062_v6 = vld [vmem:[%s2920_s14] sm:$0xff] }
 0x17a   : >> { %v2448_v7 = vpop.eup %2447  ;;  %v441_v56 = vunpack.c.h.bf16 %v3019_v46  ;;  %2469 = vtanh.f32 %v807_v41  ;;  %v1931_v31 = vmul.f32 -1.442695, %v960_v45  ;;  %v3053_v12 = vadd.f32 %v2898_v37, %v708_v62  ;;  %v405_v59 = vld [vmem:[%s2920_s14 + $0xa4] ss:$24 sps:$4 sm:$0xff]  }
 0x17b   : >> { %v3047_v29 = vadd.f32 %v975_v43, %v879_v49  ;;  %v3050_v55 = vpop.eup %2449  ;;  %v900_v30 = vadd.f32 %v2928_v20, %v438_v54  ;;  %v1205_v10 = vadd.f32 1.0, %v2446_v42  ;;  %2471 = vtanh.f32 %v809_v26  ;;  %v746_v50 = vpop.f32.mrb[0].mxu0 }
 0x17c   : >> { %v3056_v17 = vpop.eup %2451  ;;  %v3059_v51 = vadd.f32 %v2900_v38, %v710_v36  ;;  %v2055_v32 = vpop.f32.mrb[60].mxu1  ;;  %v3959_v41 = vunpack.c.l.bf16 %v2965_v63  ;;  %v1206_v24 = vadd.f32 1.0, %v2448_v7  ;;  %2473 = vpow2.f32 %v1937_v57 }
 0x17d   : >> { %v3067_v37 = vpop.eup %2453  ;;  %v3069_v20 = vadd.f32 %v2055_v32, %v900_v30  ;;  %v748_v44 = vpop.f32.mrb[1].mxu0  ;;  %2475 = vtanh.f32 %v3007_v16  ;;  %v1946_v27 = vmul.f32 -1.442695, %v981_v33  ;;  %v406_v11 = vunpack.c.l.bf16 %v3062_v6 }
 0x17e   : >> { %v892_v45 = vadd.f32 %v2922_v2, %v3959_v41  ;;  %v988_v26 = vpop.f32.mrb[61].mxu1  ;;  %v3072_v38 = vpop.eup %2455  ;;  %2477 = vpow2.f32 %v1931_v31  ;;  %v903_v21 = vadd.f32 %v2933_v52, %v441_v56  ;;  %v450_v46 = vunpack.c.h.bf16 %v403_v23 }
 0x17f   : >> { %v750_v63 = vpop.f32.mrb[2].mxu0  ;;  %v2056_v61 = vpop.f32.mrb[62].mxu1  ;;  %2479 = vrcp.f32 %v1205_v10  ;;  %v895_v16 = vadd.f32 %v2925_v9, %v435_v35  ;;  %v444_v33 = vunpack.c.l.bf16 %v403_v23  ;;  %v1940_v60 = vmul.f32 -1.442695, %v3021_v47 }
 0x180   : >> { %v3075_v40 = vadd.f32 %v988_v26, %v892_v45  ;;  %v2458_v2 = vpop.eup %2457  ;;  %v3079_v19 = vpop.f32.mrb[3].mxu0  ;;  %2481 = vrcp.f32 %v1206_v24  ;;  %v3089_v22 = vadd.f32 %v2056_v61, %v903_v21  ;;  %v453_v52 = vunpack.c.h.bf16 %v405_v59 }
 0x181   : >> { %v991_v8 = vpop.f32.mrb[63].mxu1  ;;  %v3082_v5 = vpop.eup %2459  ;;  %v1063_v43 = vadd.f32 1.0, %v2458_v2  ;;  %2483 = vpow2.f32 %v1946_v27  ;;  %v447_v48 = vunpack.c.l.bf16 %v405_v59  ;;  %v2065_v9 = vadd.f32 %v746_v50, %v406_v11 }
 0x182   : >> { %v2462_v34 = vpop.eup %2461  ;;  %v3093_v54 = vadd.f32 %v991_v8, %v895_v16  ;;  %2485 = vtanh.f32 %v3013_v28  ;;  %v407_v35 = vunpack.c.h.bf16 %v3062_v6  ;;  %v916_v47 = vadd.f32 %v2969_v13, %v450_v46  ;;  %v378_v8 = vld [vmem:[%s2920_s14 + $0x18] sm:$0xff] }
 0x183   : >> { %v3091_v1 = vpop.eup %2463  ;;  %v1057_v57 = vadd.f32 1.0, %v2462_v34  ;;  %2487 = vtanh.f32 %v3026_v53  ;;  %v409_v62 = vunpack.c.l.bf16 %v3087_v25  ;;  %v756_v7 = vpop.f32.mrb[4].mxu0  ;;  %v908_v56 = vadd.f32 %v2938_v4, %v444_v33 }
 0x184   : >> { %v3095_v49 = vpop.eup %2465  ;;  %v2059_v36 = vpop.f32.mrb[64].mxu1  ;;  %2489 = vpow2.f32 %v1940_v60  ;;  %v1949_v28 = vmul.f32 -1.442695, %v3043_v14  ;;  %v919_v6 = vadd.f32 %v2989_v15, %v453_v52  ;;  %v911_v41 = vadd.f32 %v2943_v39, %v447_v48 }
 0x185   : >> { %v3100_v42 = vpop.eup %2467  ;;  %v3108_v30 = vadd.f32 %v2059_v36, %v916_v47  ;;  %v3110_v10 = vpop.f32.mrb[5].mxu0  ;;  %2491 = vrcp.f32 %v1063_v43  ;;  %v1926_v14 = vmul.f32 -1.442695, %v2065_v9  ;;  %v2066_v24 = vadd.f32 %v748_v44, %v407_v35 }
 0x186   : >> { %v3105_v31 = vpop.eup %2469  ;;  %v1004_v13 = vpop.f32.mrb[65].mxu1  ;;  %2493 = vtanh.f32 %v3035_v18  ;;  %v1943_v61 = vmul.f32 -1.442695, %v3047_v29  ;;  %v2067_v11 = vadd.f32 %v750_v63, %v409_v62  ;;  %v410_v39 = vunpack.c.h.bf16 %v3087_v25 }
 0x187   : >> { %v3113_v50 = vpop.eup %2471  ;;  %v3115_v53 = vadd.f32 %v1004_v13, %v908_v56  ;;  %v3117_v32 = vpop.f32.mrb[6].mxu0  ;;  %2495 = vrcp.f32 %v1057_v57  ;;  %v1927_v59 = vmul.f32 -1.442695, %v2066_v24  ;;  %v412_v25 = vunpack.c.l.bf16 %v378_v8 }
 0x188   : >> { %v2060_v4 = vpop.f32.mrb[66].mxu1  ;;  %v2474_v45 = vpop.eup %2473  ;;  %2497 = vpow2.f32 %v1949_v28  ;;  %v1929_v34 = vmul.f32 -1.442695, %v2067_v11  ;;  %v2068_v60 = vadd.f32 %v3079_v19, %v410_v39  ;;  %v1958_v43 = vmul.f32 -1.442695, %v3069_v20 }
 0x189   : >> { %v3121_v26 = vadd.f32 %v2060_v4, %v919_v6  ;;  %v3123_v23 = vpop.f32.mrb[7].mxu0  ;;  %v1007_v15 = vpop.f32.mrb[67].mxu1  ;;  %v1066_v44 = vadd.f32 1.0, %v2474_v45  ;;  %2499 = vtanh.f32 %v3053_v12  ;;  %v2069_v36 = vadd.f32 %v756_v7, %v412_v25 }
 0x18a   : >> { %v3125_v27 = vpop.eup %2475  ;;  %v3129_v21 = vadd.f32 %v1007_v15, %v911_v41  ;;  %2501 = vpow2.f32 %v1926_v14  ;;  %v1930_v62 = vmul.f32 -1.442695, %v2068_v60  ;;  %v1961_v13 = vmul.f32 -1.442695, %v3089_v22  ;;  %v380_v41 = vld [vmem:[%s2920_s14 + $0x24] sm:$0xff] }
 0x18b   : >> { %v2478_v2 = vpop.eup %2477  ;;  %2503 = vpow2.f32 %v1943_v61  ;;  %v3137_v29 = vpop.f32.mrb[8].mxu0  ;;  %v413_v6 = vunpack.c.h.bf16 %v378_v8 }
 0x18c   : >> { %v3131_v18 = vpop.eup %2479  ;;  %v1060_v33 = vadd.f32 1.0, %v2478_v2  ;;  %2505 = vtanh.f32 %v3059_v51  ;;  %v3143_v52 = vpop.f32.mrb[9].mxu0  ;;  %v1952_v51 = vmul.f32 -1.442695, %v3075_v40  ;;  %v1932_v40 = vmul.f32 -1.442695, %v2069_v36 }
 0x18d   : >> { %v3135_v46 = vpop.eup %2481  ;;  %2507 = vrcp.f32 %v1066_v44  ;;  %v3148_v48 = vpop.f32.mrb[10].mxu0  ;;  %v2070_v61 = vadd.f32 %v3110_v10, %v413_v6  ;;  %v415_v2 = vunpack.c.l.bf16 %v380_v41  ;;  %v416_v10 = vunpack.c.h.bf16 %v380_v41 }
 0x18e   : >> { %v2484_v16 = vpop.eup %2483  ;;  %2509 = vpow2.f32 %v1927_v59  ;;  %v3150_v47 = vpop.f32.mrb[11].mxu0  ;;  %v382_v59 = vld [vmem:[%s2920_s14 + $0x30] sm:$0xff] }
 0x18f   : >> { %v3139_v63 = vpop.eup %2485  ;;  %v1135_v35 = vadd.f32 1.0, %v2484_v16  ;;  %2511 = vrcp.f32 %v1060_v33  ;;  %v1933_v33 = vmul.f32 -1.442695, %v2070_v61 }
 0x190   : >> { %v3145_v12 = vpop.eup %2487  ;;  %2513 = vpow2.f32 %v1929_v34  ;;  %v2071_v34 = vadd.f32 %v3117_v32, %v415_v2 }
 0x191   : >> { %v2490_v9 = vpop.eup %2489  ;;  %2515 = vpow2.f32 %v1958_v43  ;;  %v1955_v43 = vmul.f32 -1.442695, %v3093_v54 }
 0x192   : >> { %v3152_v57 = vpop.eup %2491  ;;  %v1129_v20 = vadd.f32 1.0, %v2490_v9  ;;  %2517 = vrcp.f32 %v1135_v35  ;;  %v418_v35 = vunpack.c.l.bf16 %v382_v59 }
 0x193   : >> { %v3155_v19 = vpop.eup %2493  ;;  %2519 = vpow2.f32 %v1952_v51 }
 0x194   : >> { %v3157_v56 = vpop.eup %2495  ;;  %2521 = vpow2.f32 %v1930_v62  ;;  %v384_v62 = vld [vmem:[%s2920_s14 + $0x3c] sm:$0xff]  ;;  %v2073_v54 = vadd.f32 %v3137_v29, %v418_v35 }
 0x195   : >> { %v2498_v28 = vpop.eup %2497  ;;  %2523 = vrcp.f32 %v1129_v20  ;;  %v1935_v20 = vmul.f32 -1.442695, %v2071_v34 }
 0x196   : >> { %v3160_v4 = vpop.eup %2499  ;;  %v1138_v7 = vadd.f32 1.0, %v2498_v28  ;;  %2525 = vpow2.f32 %v1961_v13  ;;  %v419_v28 = vunpack.c.h.bf16 %v382_v59  ;;  %v1938_v29 = vmul.f32 -1.442695, %v2073_v54  ;;  %v1253_v54 = vld [vmem:[%s2711_s5 + $0x30] sm:$0xff] }
 0x197   : >> { %v2502_v45 = vpop.eup %2501 }
 0x198   : >> { %v2504_v14 = vpop.eup %2503  ;;  %v1055_v24 = vadd.f32 1.0, %v2502_v45  ;;  %v1255_v45 = vld [vmem:[%s2711_s5 + $0x40] sm:$0xff]  ;;  %v2074_v2 = vadd.f32 %v3143_v52, %v419_v28 }
 0x199   : >> { %v3163_v15 = vpop.eup %2505  ;;  %v1132_v39 = vadd.f32 1.0, %v2504_v14 }
 0x19a   : >> { %v3166_v22 = vpop.eup %2507  ;;  %2527 = vrcp.f32 %v1055_v24 }
 0x19b   : >> { %v2510_v11 = vpop.eup %2509  ;;  %2529 = vpow2.f32 %v1932_v40  ;;  %v421_v40 = vunpack.c.l.bf16 %v384_v62 }
 0x19c   : >> { %v3168_v44 = vpop.eup %2511  ;;  %2531 = vrcp.f32 %v1138_v7  ;;  %v1056_v8 = vadd.f32 1.0, %v2510_v11  ;;  %v422_v7 = vunpack.c.h.bf16 %v384_v62 }
 0x19d   : >> { %v2514_v16 = vpop.eup %2513  ;;  %2533 = vtanh.f32 %v3108_v30  ;;  %v2072_v30 = vadd.f32 %v3123_v23, %v416_v10  ;;  %v2075_v59 = vadd.f32 %v3148_v48, %v421_v40  ;;  %v1249_v10 = vld [vmem:[%s2711_s5 + $0x10] sm:$0xff] }
 0x19e   : >> { %v2516_v60 = vpop.eup %2515  ;;  %2535 = vrcp.f32 %v1056_v8  ;;  %v1058_v25 = vadd.f32 1.0, %v2514_v16 }
 0x19f   : >> { %v2518_v9 = vpop.eup %2517  ;;  %2537 = vrcp.f32 %v1132_v39  ;;  %v1207_v13 = vadd.f32 1.0, %v2516_v60  ;;  %v1936_v23 = vmul.f32 -1.442695, %v2072_v30  ;;  %v1320_v60 = vlaneseq }
 0x1a0   : >> { %v2520_v51 = vpop.eup %2519  ;;  %2539 = vrcp.f32 %v1058_v25  ;;  %v1267_v39 = vmul.f32 %v2518_v9, %v1255_v45  ;;  %v1939_v25 = vmul.f32 -1.442695, %v2074_v2 }
 0x1a1   : >> { %v2522_v36 = vpop.eup %2521  ;;  %2541 = vpow2.f32 %v1933_v33  ;;  %v2076_v33 = vadd.f32 %v3150_v47, %v422_v7  ;;  %v1941_v47 = vmul.f32 -1.442695, %v2075_v59  ;;  %v1201_v30 = vadd.f32 1.0, %v2520_v51 }
 0x1a2   : >> { %v2524_v32 = vpop.eup %2523  ;;  %v1059_v6 = vadd.f32 1.0, %v2522_v36  ;;  %2543 = vpow2.f32 %v1955_v43  ;;  %v3198_v28 = vshrl.u32 %v1320_v60, 7 }
 0x1a3   : >> { %v2526_v41 = vpop.eup %2525  ;;  %2545 = vtanh.f32 %v3115_v53  ;;  %v1261_v35 = vmul.f32 %v2524_v32, %v1249_v10  ;;  %v1942_v62 = vmul.f32 -1.442695, %v2076_v33 }
 0x1a4   : >> { %v2528_v14 = vpop.eup %2527  ;;  %2547 = vrcp.f32 %v1059_v6  ;;  %v1210_v6 = vadd.f32 1.0, %v2526_v41 }
 0x1a5   : >> { %v2530_v24 = vpop.eup %2529  ;;  %v3180_v61 = vmul.f32 %v2528_v14, %v3105_v31  ;;  %2549 = vpow2.f32 %v1935_v20  ;;  %v1258_v20 = vld [vmem:[%s2711_s5 + $0x58] sm:$0xff]  ;;  %v1252_v14 = vld [vmem:[%s2711_s5 + $0x28] sm:$0xff] }
 0x1a6   : >> { %v2532_v11 = vpop.eup %2531  ;;  %2551 = vrcp.f32 %v1207_v13  ;;  %v1061_v8 = vadd.f32 1.0, %v2530_v24 }
 0x1a7   : >> { %v2534_v53 = vpop.eup %2533  ;;  %2553 = vtanh.f32 %v3121_v26  ;;  %v1270_v40 = vmul.f32 %v2532_v11, %v1258_v20 }
 0x1a8   : >> { %v2536_v16 = vpop.eup %2535  ;;  %2555 = vrcp.f32 %v1061_v8  ;;  %v1279_v31 = vmul.f32 %v2534_v53, %v3152_v57 }
 0x1a9   : >> { %v2538_v34 = vpop.eup %2537  ;;  %v3189_v52 = vmul.f32 %v2536_v16, %v3113_v50  ;;  %2557 = vpow2.f32 %v1936_v23 }
 0x1aa   : >> { %v2540_v26 = vpop.eup %2539  ;;  %v1291_v43 = vadd.f32 %v1279_v31, %v1267_v39  ;;  %2559 = vtanh.f32 %v3129_v21  ;;  %v1265_v39 = vmul.f32 %v3056_v17, %v1253_v54  ;;  %v1264_v11 = vmul.f32 %v2538_v34, %v1252_v14  ;;  %v1254_v34 = vld [vmem:[%s2711_s5 + $0x38] sm:$0xff] }
 0x1ab   : >> { %v2542_v48 = vpop.eup %2541  ;;  %v3193_v9 = vmul.f32 %v2540_v26, %v3125_v27  ;;  %2561 = vpow2.f32 %v1938_v29 }
 0x1ac   : >> { %v2544_v57 = vpop.eup %2543  ;;  %2563 = vtanh.f32 %v1291_v43  ;;  %1355 = vst [vmem:[%s2711_s5 + $0x40] sm:$0xff] %v1291_v43  ;;  %v1062_v50 = vadd.f32 1.0, %v2542_v48 }
 0x1ad   : >> { %v2546_v36 = vpop.eup %2545  ;;  %2565 = vpow2.f32 %v1939_v25  ;;  %v1204_v23 = vadd.f32 1.0, %v2544_v57 }
 0x1ae   : >> { %v2548_v21 = vpop.eup %2547  ;;  %2567 = vrcp.f32 %v1062_v50  ;;  %v1273_v27 = vmul.f32 %v2546_v36, %v3157_v56  ;;  %v1330_v56 = vsub.s32 2, %v3198_v28 }
 0x1af   : >> { %v2550_v13 = vpop.eup %2549  ;;  %v3202_v32 = vmul.f32 %v2548_v21, %v3139_v63  ;;  %2569 = vpow2.f32 %v1941_v47  ;;  %v1200_v21 = vadd.f32 1.0, %v3023_v58 }
 0x1b0   : >> { %v2552_v45 = vpop.eup %2551  ;;  %v1285_v51 = vadd.f32 %v1273_v27, %v1261_v35  ;;  %v1064_v7 = vadd.f32 1.0, %v2550_v13  ;;  %2571 = vpow2.f32 %v1942_v62  ;;  %v1322_v62 = vsub.s32 0, %v3198_v28 }
 0x1b1   : >> { %v2554_v24 = vpop.eup %2553  ;;  %2573 = vrcp.f32 %v1201_v30  ;;  %v1256_v30 = vld [vmem:[%s2711_s5 + $0x48] sm:$0xff] }
 0x1b2   : >> { %v2556_v2 = vpop.eup %2555  ;;  %2575 = vtanh.f32 %v1285_v51  ;;  %1349 = vst [vmem:[%s2711_s5 + $0x10] sm:$0xff] %v1285_v51  ;;  %v1282_v63 = vmul.f32 %v2554_v24, %v3166_v22  ;;  %v3213_v22 = vrot.slane %v2686_v0, %v1330_v56  ;;  %v1268_v14 = vmul.f32 %v3072_v38, %v1256_v30 }
 0x1b3   : >> { %v2558_v41 = vpop.eup %2557  ;;  %v1277_v8 = vmul.f32 %v2556_v2, %v3145_v12  ;;  %2577 = vrcp.f32 %v1064_v7  ;;  %v1203_v7 = vadd.f32 1.0, %v3050_v55  ;;  %v1209_v38 = vadd.f32 1.0, %v3095_v49 }
 0x1b4   : >> { %v2560_v53 = vpop.eup %2559  ;;  %2579 = vrcp.f32 %v1210_v6  ;;  %v1294_v29 = vadd.f32 %v1282_v63, %v1270_v40  ;;  %v1065_v59 = vadd.f32 1.0, %v2558_v41  ;;  %v1326_v56 = vsub.s32 1, %v3198_v28 }
 0x1b5   : >> { %v2562_v16 = vpop.eup %2561  ;;  %2581 = vrcp.f32 %v1204_v23  ;;  %v1289_v31 = vadd.f32 %v1277_v8, %v1265_v39  ;;  %v1276_v17 = vmul.f32 %v2560_v53, %v3168_v44  ;;  %v1266_v44 = vmul.f32 %v3067_v37, %v1254_v34  ;;  %v1257_v23 = vld [vmem:[%s2711_s5 + $0x50] sm:$0xff]  ;;  %v1247_v39 = vld [vmem:[%s2711_s5] sm:$0xff]  ;;  %v1248_v53 = vld [vmem:[%s2711_s5 + $0x8] sm:$0xff] }
 0x1b6   : >> { %v2564_v33 = vpop.eup %2563  ;;  %2583 = vtanh.f32 %v1294_v29  ;;  %1358 = vst [vmem:[%s2711_s5 + $0x58] sm:$0xff] %v1294_v29  ;;  %v1127_v12 = vadd.f32 1.0, %v2562_v16  ;;  %v1269_v8 = vmul.f32 %v3082_v5, %v1257_v23 }
 0x1b7   : >> { %v2566_v10 = vpop.eup %2565  ;;  %2585 = vtanh.f32 %v1289_v31  ;;  %1353 = vst [vmem:[%s2711_s5 + $0x30] sm:$0xff] %v1289_v31  ;;  %v1315_v25 = vmul.f32 %v2564_v33, %v2552_v45  ;;  %v1288_v26 = vadd.f32 %v1276_v17, %v1264_v11  ;;  %v1208_v45 = vadd.f32 1.0, %v3091_v1  ;;  %v1250_v31 = vld [vmem:[%s2711_s5 + $0x18] sm:$0xff] }
 0x1b8   : >> { %v2568_v43 = vpop.eup %2567  ;;  %2587 = vrcp.f32 %v1065_v59  ;;  %v1128_v48 = vadd.f32 1.0, %v2566_v10 }
 0x1b9   : >> { %v2570_v47 = vpop.eup %2569  ;;  %v3224_v57 = vmul.f32 %v3213_v22, %v1315_v25  ;;  %v1278_v35 = vmul.f32 %v2568_v43, %v3155_v19  ;;  %2589 = vtanh.f32 %v1288_v26  ;;  %1352 = vst [vmem:[%s2711_s5 + $0x28] sm:$0xff] %v1288_v26  ;;  %v1202_v19 = vadd.f32 1.0, %v3032_v3  ;;  %v1251_v26 = vld [vmem:[%s2711_s5 + $0x20] sm:$0xff] }
 0x1ba   : >> { %v2572_v50 = vpop.eup %2571  ;;  %2591 = vrcp.f32 %v1127_v12  ;;  %v1130_v36 = vadd.f32 1.0, %v2570_v47  ;;  %v3240_v3 = vrot.slane %v2686_v0, %v1322_v62 }
 0x1bb   : >> { %v2574_v20 = vpop.eup %2573  ;;  %1370 = vst [vmem:[%s3220_s17 + $0x40] sm:$0xff] %v3224_v57  ;;  %v1290_v37 = vadd.f32 %v1278_v35, %v1266_v44  ;;  %2593 = vrcp.f32 %v1128_v48  ;;  %v1131_v27 = vadd.f32 1.0, %v2572_v50 }
 0x1bc   : >> { %v2576_v13 = vpop.eup %2575  ;;  %2595 = vrcp.f32 %v1130_v36 }
 0x1bd   : >> { %v2578_v6 = vpop.eup %2577  ;;  %2597 = vtanh.f32 %v1290_v37  ;;  %1354 = vst [vmem:[%s2711_s5 + $0x38] sm:$0xff] %v1290_v37  ;;  %v1309_v54 = vmul.f32 %v2576_v13, %v2574_v20 }
 0x1be   : >> { %v2580_v40 = vpop.eup %2579  ;;  %v1280_v58 = vmul.f32 %v2578_v6, %v3160_v4  ;;  %2599 = vrcp.f32 %v1131_v27 }
 0x1bf   : >> { %v2582_v51 = vpop.eup %2581  ;;  %2601 = vrcp.f32 %v1200_v21  ;;  %v1337_v1 = vmul.f32 %v3213_v22, %v1309_v54 }
 0x1c0   : >> { %v2584_v24 = vpop.eup %2583  ;;  %2603 = vrcp.f32 %v1202_v19  ;;  %v1292_v4 = vadd.f32 %v1280_v58, %v1268_v14 }
 0x1c1   : >> { %v2586_v2 = vpop.eup %2585  ;;  %2605 = vrcp.f32 %v1208_v45  ;;  %1364 = vst [vmem:[%s3220_s17 + $0x10] sm:$0xff] %v1337_v1  ;;  %v1318_v55 = vmul.f32 %v2584_v24, %v2580_v40 }
 0x1c2   : >> { %v2588_v63 = vpop.eup %2587  ;;  %v1313_v41 = vmul.f32 %v2586_v2, %v3131_v18  ;;  %2607 = vtanh.f32 %v1292_v4  ;;  %1356 = vst [vmem:[%s2711_s5 + $0x48] sm:$0xff] %v1292_v4  ;;  %v3258_v18 = vrot.slane %v2686_v0, %v1326_v56 }
 0x1c3   : >> { %v2590_v11 = vpop.eup %2589  ;;  %2609 = vrcp.f32 %v1203_v7  ;;  %v1346_v49 = vmul.f32 %v3213_v22, %v1318_v55  ;;  %v1281_v28 = vmul.f32 %v2588_v63, %v3163_v15 }
 0x1c4   : >> { %v2592_v29 = vpop.eup %2591  ;;  %2611 = vrcp.f32 %v1209_v38  ;;  %v3255_v59 = vmul.f32 %v3240_v3, %v1313_v41  ;;  %v1312_v16 = vmul.f32 %v2590_v11, %v2582_v51 }
 0x1c5   : >> { %v2594_v5 = vpop.eup %2593  ;;  %1373 = vst [vmem:[%s3220_s17 + $0x58] sm:$0xff] %v1346_v49  ;;  %v1577_v17 = vpack.c.bf16 %v1346_v49, %v3224_v57  ;;  %v1293_v33 = vadd.f32 %v1281_v28, %v1269_v8  ;;  %v1259_v34 = vmul.f32 %v2592_v29, %v1247_v39  ;;  %v3264_v15 = vpack.i.bf16 %v1346_v49, %v3224_v57 }
 0x1c6   : >> { %v2596_v12 = vpop.eup %2595  ;;  %1368 = vst [vmem:[%s3220_s17 + $0x30] sm:$0xff] %v3255_v59  ;;  %v1340_v10 = vmul.f32 %v3213_v22, %v1312_v16  ;;  %v1260_v25 = vmul.f32 %v2594_v5, %v1248_v53 }
 0x1c7   : >> { %v2598_v43 = vpop.eup %2597  ;;  %1583 = vst [vmem:[#allocation2 + $0xe8] sm:$0xff] %v1577_v17  ;;  %2613 = vtanh.f32 %v1293_v33  ;;  %1357 = vst [vmem:[%s2711_s5 + $0x50] sm:$0xff] %v1293_v33  ;;  %v1283_v48 = vadd.f32 %v3180_v61, %v1259_v34  ;;  %v1262_v47 = vmul.f32 %v2596_v12, %v1250_v31  ;;  %2160 = vrot.lane.b32.xlu1 %v3264_v15, %s2642_s18  ;;  %v3383_v33 = vand.u32 127, %v1320_v60 }
 0x1c8   : >> { %v2600_v44 = vpop.eup %2599  ;;  %v1314_v57 = vmul.f32 %v2598_v43, %v3135_v46  ;;  %1367 = vst [vmem:[%s3220_s17 + $0x28] sm:$0xff] %v1340_v10  ;;  %v1574_v22 = vpack.c.bf16 %v1340_v10, %v1337_v1  ;;  %v1284_v35 = vadd.f32 %v3189_v52, %v1260_v25  ;;  %v3277_v50 = vpack.i.bf16 %v1340_v10, %v1337_v1 }
 0x1c9   : >> { %v2602_v62 = vpop.eup %2601  ;;  %2615 = vtanh.f32 %v1283_v48  ;;  %1347 = vst [vmem:[%s2711_s5] sm:$0xff] %v1283_v48  ;;  %v1286_v61 = vadd.f32 %v3193_v9, %v1262_v47  ;;  %v1263_v36 = vmul.f32 %v2600_v44, %v1251_v26  ;;  %vm1449_vm1 = vcmp.lt.s32.totalorder %v3383_v33, 18 }
 0x1ca   : >> { %v2604_v20 = vpop.eup %2603  ;;  %v1342_v30 = vmul.f32 %v3258_v18, %v1314_v57  ;;  %1580 = vst [vmem:[#allocation2 + $0xd0] sm:$0xff] %v1574_v22  ;;  %2617 = vtanh.f32 %v1284_v35  ;;  %1348 = vst [vmem:[%s2711_s5 + $0x8] sm:$0xff] %v1284_v35  ;;  %2195 = vrot.lane.b32.xlu0 %v3277_v50, %s2642_s18  ;;  %vm1400_vm2 = vcmp.lt.s32.totalorder %v3383_v33, 19  ;;  %vm1498_vm3 = vcmp.lt.s32.totalorder %v3383_v33, 17 }
 0x1cb   : >> { %v2606_v46 = vpop.eup %2605  ;;  %2619 = vtanh.f32 %v1286_v61  ;;  %1350 = vst [vmem:[%s2711_s5 + $0x18] sm:$0xff] %v1286_v61  ;;  %v1287_v52 = vadd.f32 %v3202_v32, %v1263_v36  ;;  %2165 = vrot.lane.b32.xlu1 %v3264_v15, %s2643_s19  ;;  %vm1547_vm4 = vcmp.lt.s32.totalorder %v3383_v33, 1  ;;  %vm1608_vm5 = vcmp.lt.s32.totalorder %v3383_v33, 127 }
 0x1cc   : >> { %v2608_v9 = vpop.eup %2607  ;;  %1369 = vst [vmem:[%s3220_s17 + $0x38] sm:$0xff] %v1342_v30  ;;  %vm1657_vm6 = vcmp.lt.s32.totalorder %v3383_v33, 111  ;;  %vm1706_vm7 = vcmp.lt.s32.totalorder %v3383_v33, 110  ;;  %vm1755_vm8 = vcmp.lt.s32.totalorder %v3383_v33, 109 }
 0x1cd   : >> { %v2610_v21 = vpop.eup %2609  ;;  %v1316_v37 = vmul.f32 %v2608_v9, %v2606_v46  ;;  %2621 = vtanh.f32 %v1287_v52  ;;  %1351 = vst [vmem:[%s2711_s5 + $0x20] sm:$0xff] %v1287_v52 }
 0x1ce   : >> { %v2612_v27 = vpop.eup %2611  ;;  %2200 = vrot.lane.b32.xlu0 %v3277_v50, %s2643_s19 }
 0x1cf   : >> { %v1344_v13 = vmul.f32 %v3240_v3, %v1316_v37  ;;  %2170 = vrot.lane.b32.xlu1 %v3264_v15, %s2644_s20 }
 0x1d1   : >> { %v2614_v32 = vpop.eup %2613  ;;  %1371 = vst [vmem:[%s3220_s17 + $0x48] sm:$0xff] %v1344_v13  ;;  %v1575_v19 = vpack.c.bf16 %v1344_v13, %v3255_v59  ;;  %v2234_v6 = vpack.i.bf16 %v1344_v13, %v3255_v59 }
 0x1d2   : >> { %v1317_v45 = vmul.f32 %v2614_v32, %v2612_v27  ;;  %2205 = vrot.lane.b32.xlu0 %v3277_v50, %s2644_s20 }
 0x1d3   : >> { %v2616_v54 = vpop.eup %2615  ;;  %1581 = vst [vmem:[#allocation2 + $0xd8] sm:$0xff] %v1575_v19  ;;  %2175 = vrot.lane.b32.xlu1 %v3264_v15, %s2645_s21 }
 0x1d4   : >> { %v2618_v40 = vpop.eup %2617  ;;  %v1345_v14 = vmul.f32 %v3258_v18, %v1317_v45  ;;  %v1307_v58 = vmul.f32 %v2616_v54, %v3100_v42 }
 0x1d5   : >> { %v2620_v51 = vpop.eup %2619  ;;  %v1308_v7 = vmul.f32 %v2618_v40, %v2602_v62 }
 0x1d6   : >> { %1372 = vst [vmem:[%s3220_s17 + $0x50] sm:$0xff] %v1345_v14  ;;  %v1576_v1 = vpack.c.bf16 %v1345_v14, %v1342_v30  ;;  %v1335_v24 = vmul.f32 %v3240_v3, %v1307_v58  ;;  %v1310_v23 = vmul.f32 %v2620_v51, %v2604_v20  ;;  %2210 = vrot.lane.b32.xlu0 %v3277_v50, %s2645_s21 }
 0x1d7   : >> { %v2269_v38 = vpack.i.bf16 %v1345_v14, %v1342_v30  ;;  %v2622_v56 = vpop.eup %2621  ;;  %v1336_v4 = vmul.f32 %v3258_v18, %v1308_v7  ;;  %2180 = vrot.lane.b32.xlu1 %v3264_v15, %s2646_s22 }
 0x1d8   : >> { %1582 = vst [vmem:[#allocation2 + $0xe0] sm:$0xff] %v1576_v1  ;;  %1362 = vst [vmem:[%s3220_s17] sm:$0xff] %v1335_v24  ;;  %v1338_v42 = vmul.f32 %v3240_v3, %v1310_v23  ;;  %v1311_v2 = vmul.f32 %v2622_v56, %v2610_v21 }
 0x1d9   : >> { %1363 = vst [vmem:[%s3220_s17 + $0x8] sm:$0xff] %v1336_v4 }
 0x1da   : >> { %1365 = vst [vmem:[%s3220_s17 + $0x18] sm:$0xff] %v1338_v42  ;;  %v1572_v55 = vpack.c.bf16 %v1338_v42, %v1335_v24  ;;  %v1339_v63 = vmul.f32 %v3258_v18, %v1311_v2  ;;  %2215 = vrot.lane.b32.xlu0 %v3277_v50, %s2646_s22  ;;  %v2309_v41 = vpack.i.bf16 %v1338_v42, %v1335_v24 }
 0x1db   : >> { %2185 = vrot.lane.b32.xlu1 %v3264_v15, %s2647_s23 }
 0x1dc   : >> { %1578 = vst [vmem:[#allocation2 + $0xc0] sm:$0xff] %v1572_v55  ;;  %1366 = vst [vmem:[%s3220_s17 + $0x20] sm:$0xff] %v1339_v63  ;;  %v1573_v39 = vpack.c.bf16 %v1339_v63, %v1336_v4  ;;  %v2354_v11 = vpack.i.bf16 %v1339_v63, %v1336_v4 }
 0x1de   : >> { %1579 = vst [vmem:[#allocation2 + $0xc8] sm:$0xff] %v1573_v39  ;;  %2220 = vrot.lane.b32.xlu0 %v3277_v50, %s2647_s23 }
 0x1df   : >> { %2190 = vrot.lane.b32.xlu1 %v3264_v15, %s2648_s25 }
 0x1e2   : >> { %2225 = vrot.lane.b32.xlu0 %v3277_v50, %s2648_s25 }
 0x1e3   : >> { %2235 = vrot.lane.b32.xlu1 %v2234_v6, %s2643_s19 }
 0x1e6   : >> { %2230 = vrot.lane.b32.xlu0 %v2234_v6, %s2642_s18 }
 0x1e7   : >> { %2240 = vrot.lane.b32.xlu1 %v2234_v6, %s2644_s20 }
 0x1ea   : >> { %2310 = vrot.lane.b32.xlu0 %v2309_v41, %s2642_s18 }
 0x1eb   : >> { %2245 = vrot.lane.b32.xlu1 %v2234_v6, %s2645_s21 }
 0x1ee   : >> { %2315 = vrot.lane.b32.xlu0 %v2309_v41, %s2643_s19 }
 0x1ef   : >> { %2250 = vrot.lane.b32.xlu1 %v2234_v6, %s2646_s22 }
 0x1f2   : >> { %2320 = vrot.lane.b32.xlu0 %v2309_v41, %s2644_s20 }
 0x1f3   : >> { %2255 = vrot.lane.b32.xlu1 %v2234_v6, %s2647_s23 }
 0x1f6   : >> { %2325 = vrot.lane.b32.xlu0 %v2309_v41, %s2645_s21 }
 0x1f7   : >> { %2260 = vrot.lane.b32.xlu1 %v2234_v6, %s2648_s25 }
 0x1fa   : >> { %2330 = vrot.lane.b32.xlu0 %v2309_v41, %s2646_s22 }
 0x1fb   : >> { %2265 = vrot.lane.b32.xlu1 %v2234_v6, %s2649_s26 }
 0x1fe   : >> { %2335 = vrot.lane.b32.xlu0 %v2309_v41, %s2647_s23 }
 0x1ff   : >> { %2270 = vrot.lane.b32.xlu1 %v2269_v38, %s2642_s18 }
 0x202   : >> { %2340 = vrot.lane.b32.xlu0 %v2309_v41, %s2648_s25 }
 0x203   : >> { %2275 = vrot.lane.b32.xlu1 %v2269_v38, %s2643_s19 }
 0x206   : >> { %2345 = vrot.lane.b32.xlu0 %v2309_v41, %s2649_s26 }
 0x207   : >> { %2280 = vrot.lane.b32.xlu1 %v2269_v38, %s2644_s20 }
 0x20a   : >> { %2355 = vrot.lane.b32.xlu0 %v2354_v11, %s2643_s19 }
 0x20b   : >> { %2285 = vrot.lane.b32.xlu1 %v2269_v38, %s2645_s21 }
 0x20e   : >> { %2360 = vrot.lane.b32.xlu0 %v2354_v11, %s2644_s20 }
 0x20f   : >> { %2290 = vrot.lane.b32.xlu1 %v2269_v38, %s2646_s22 }
 0x212   : >> { %2365 = vrot.lane.b32.xlu0 %v2354_v11, %s2645_s21 }
 0x213   : >> { %2295 = vrot.lane.b32.xlu1 %v2269_v38, %s2647_s23 }
 0x216   : >> { %2370 = vrot.lane.b32.xlu0 %v2354_v11, %s2646_s22 }
 0x217   : >> { %2300 = vrot.lane.b32.xlu1 %v2269_v38, %s2648_s25 }
 0x21a   : >> { %2375 = vrot.lane.b32.xlu0 %v2354_v11, %s2647_s23 }
 0x21b   : >> { %2305 = vrot.lane.b32.xlu1 %v2269_v38, %s2649_s26 }
 0x21e   : >> { %2380 = vrot.lane.b32.xlu0 %v2354_v11, %s2648_s25 }
 0x21f   : >> { %2350 = vrot.lane.b32.xlu1 %v2354_v11, %s2642_s18 }
 0x222   : >> { %2385 = vrot.lane.b32.xlu0 %v2354_v11, %s2649_s26 }
 0x223   : >> { %2395 = vrot.lane.b32.xlu1 %v3264_v15, %s2649_s26 }
 0x226   : >> { %2390 = vrot.lane.b32.xlu0 %v3277_v50, %s2649_s26 }
 0x239   : >> { %v3358_v3 = vpop.permute.xlu1 %2160 }
 0x23a   : >> { %v2163_v60 = vunpack.i.h.bf16 %v3358_v3  ;;  %v2162_v57 = vunpack.i.l.bf16 %v3358_v3 }
 0x23c   : >> { %v3360_v8 = vpop.permute.xlu0 %2195 }
 0x23d   : >> { %v3362_v49 = vpop.permute.xlu1 %2165  ;;  %v3923_v9 = vunpack.i.h.bf16 %v3360_v8  ;;  %v3922_v32 = vunpack.i.l.bf16 %v3360_v8 }
 0x23e   : >> { %v2168_v10 = vunpack.i.h.bf16 %v3362_v49  ;;  %v2167_v25 = vunpack.i.l.bf16 %v3362_v49 }
 0x240   : >> { %v3364_v28 = vpop.permute.xlu0 %2200 }
 0x241   : >> { %v3366_v53 = vpop.permute.xlu1 %2170  ;;  %v2203_v24 = vunpack.i.h.bf16 %v3364_v28  ;;  %v2202_v42 = vunpack.i.l.bf16 %v3364_v28 }
 0x242   : >> { %v2173_v61 = vunpack.i.h.bf16 %v3366_v53  ;;  %v2172_v36 = vunpack.i.l.bf16 %v3366_v53 }
 0x244   : >> { %v3368_v29 = vpop.permute.xlu0 %2205 }
 0x245   : >> { %v3370_v59 = vpop.permute.xlu1 %2175 }
 0x246   : >> { %v2178_v40 = vunpack.i.h.bf16 %v3370_v59  ;;  %v2177_v14 = vunpack.i.l.bf16 %v3370_v59 }
 0x248   : >> { %v3372_v18 = vpop.permute.xlu0 %2210 }
 0x249   : >> { %v3374_v16 = vpop.permute.xlu1 %2180 }
 0x24a   : >> { %v3929_v39 = vunpack.i.h.bf16 %v3374_v16  ;;  %v3926_v11 = vunpack.i.l.bf16 %v3374_v16 }
 0x24c   : >> { %v3376_v31 = vpop.permute.xlu0 %2215 }
 0x24d   : >> { %v3378_v5 = vpop.permute.xlu1 %2185 }
 0x250   : >> { %v3380_v17 = vpop.permute.xlu0 %2220 }
 0x251   : >> { %v3385_v34 = vpop.permute.xlu1 %2190 }
 0x254   : >> { %v3387_v15 = vpop.permute.xlu0 %2225 }
 0x255   : >> { %v3390_v12 = vpop.permute.xlu1 %2235 }
 0x256   : >> { %v2238_v26 = vunpack.i.h.bf16 %v3390_v12  ;;  %v2237_v43 = vunpack.i.l.bf16 %v3390_v12 }
 0x258   : >> { %v1461_v48 = vsel %vm1449_vm1, %v2168_v10, %v2238_v26  ;;  %v1460_v47 = vsel %vm1449_vm1, %v2167_v25, %v2237_v43  ;;  %v3410_v44 = vpop.permute.xlu0 %2230 }
 0x259   : >> { %v1465_v22 = vpack.c.bf16 %v1461_v48, %v1460_v47  ;;  %v2233_v35 = vunpack.i.h.bf16 %v3410_v44  ;;  %v2232_v50 = vunpack.i.l.bf16 %v3410_v44  ;;  %v3416_v62 = vpop.permute.xlu1 %2240 }
 0x25a   : >> { %v2243_v20 = vunpack.i.h.bf16 %v3416_v62  ;;  %v2242_v30 = vunpack.i.l.bf16 %v3416_v62 }
 0x25b   : >> { %1471 = vst [vmem:[#allocation2 + $0x48] sm:$0xff] %v1465_v22  ;;  %v1412_v46 = vsel %vm1400_vm2, %v2163_v60, %v2233_v35  ;;  %v1411_v52 = vsel %vm1400_vm2, %v2162_v57, %v2232_v50 }
 0x25c   : >> { %v1416_v21 = vpack.c.bf16 %v1412_v46, %v1411_v52  ;;  %v1510_v37 = vsel %vm1498_vm3, %v2173_v61, %v2243_v20  ;;  %v1509_v27 = vsel %vm1498_vm3, %v2172_v36, %v2242_v30  ;;  %v3448_v13 = vpop.permute.xlu0 %2310  ;;  %v3945_v52 = vunpack.i.h.bf16 %v3368_v29 }
 0x25d   : >> { %v1514_v19 = vpack.c.bf16 %v1510_v37, %v1509_v27  ;;  %v3920_v6 = vunpack.i.h.bf16 %v3448_v13  ;;  %v3921_v45 = vunpack.i.l.bf16 %v3448_v13  ;;  %v3453_v54 = vpop.permute.xlu1 %2245 }
 0x25e   : >> { %1422 = vst [vmem:[#allocation2 + $0x18] sm:$0xff] %v1416_v21  ;;  %v2248_v58 = vunpack.i.h.bf16 %v3453_v54  ;;  %v2247_v51 = vunpack.i.l.bf16 %v3453_v54 }
 0x25f   : >> { %1520 = vst [vmem:[#allocation2 + $0x78] sm:$0xff] %v1514_v19  ;;  %v1410_v7 = vsel %vm1400_vm2, %v3923_v9, %v3920_v6  ;;  %v1409_v1 = vsel %vm1400_vm2, %v3922_v32, %v3921_v45 }
 0x260   : >> { %v1413_v23 = vpack.c.bf16 %v1410_v7, %v1409_v1  ;;  %v1559_v38 = vsel %vm1547_vm4, %v2178_v40, %v2248_v58  ;;  %v1558_v56 = vsel %vm1547_vm4, %v2177_v14, %v2247_v51  ;;  %v3485_v4 = vpop.permute.xlu0 %2315  ;;  %v3941_v7 = vunpack.i.l.bf16 %v3368_v29 }
 0x261   : >> { %v1563_v2 = vpack.c.bf16 %v1559_v38, %v1558_v56  ;;  %v2318_v55 = vunpack.i.h.bf16 %v3485_v4  ;;  %v2317_v63 = vunpack.i.l.bf16 %v3485_v4  ;;  %v3490_v41 = vpop.permute.xlu1 %2250 }
 0x262   : >> { %1419 = vst [vmem:[#allocation2] sm:$0xff] %v1413_v23  ;;  %v3924_v48 = vunpack.i.h.bf16 %v3490_v41  ;;  %v3925_v47 = vunpack.i.l.bf16 %v3490_v41 }
 0x263   : >> { %1569 = vst [vmem:[#allocation2 + $0xa8] sm:$0xff] %v1563_v2  ;;  %v1459_v22 = vsel %vm1449_vm1, %v2203_v24, %v2318_v55  ;;  %v1458_v46 = vsel %vm1449_vm1, %v2202_v42, %v2317_v63  ;;  %v3928_v2 = vunpack.i.h.bf16 %v3378_v5 }
 0x264   : >> { %v1462_v21 = vpack.c.bf16 %v1459_v22, %v1458_v46  ;;  %v1620_v37 = vsel %vm1608_vm5, %v3929_v39, %v3924_v48  ;;  %v1619_v27 = vsel %vm1608_vm5, %v3926_v11, %v3925_v47  ;;  %v3522_v19 = vpop.permute.xlu0 %2320  ;;  %v3931_v22 = vunpack.i.l.bf16 %v3378_v5 }
 0x265   : >> { %v1626_v1 = vpack.c.bf16 %v1620_v37, %v1619_v27  ;;  %v3944_v23 = vunpack.i.h.bf16 %v3522_v19  ;;  %v3936_v38 = vunpack.i.l.bf16 %v3522_v19  ;;  %v3527_v56 = vpop.permute.xlu1 %2255  ;;  %v3935_v48 = vunpack.i.l.bf16 %v3372_v18 }
 0x266   : >> { %1468 = vst [vmem:[#allocation2 + $0x30] sm:$0xff] %v1462_v21  ;;  %v3927_v46 = vunpack.i.h.bf16 %v3527_v56  ;;  %v3930_v6 = vunpack.i.l.bf16 %v3527_v56  ;;  %v3933_v21 = vunpack.i.h.bf16 %v3372_v18  ;;  %v3961_v54 = vunpack.i.h.bf16 %v3522_v19 }
 0x267   : >> { %1632 = vst [vmem:[#allocation2 + $0x118] sm:$0xff] %v1626_v1  ;;  %v1508_v37 = vsel %vm1498_vm3, %v3945_v52, %v3944_v23  ;;  %v1507_v27 = vsel %vm1498_vm3, %v3941_v7, %v3936_v38  ;;  %v2228_v23 = vunpack.i.h.bf16 %v3387_v15  ;;  %v2227_v52 = vunpack.i.l.bf16 %v3387_v15 }
 0x268   : >> { %v1511_v45 = vpack.c.bf16 %v1508_v37, %v1507_v27  ;;  %v1669_v1 = vsel %vm1657_vm6, %v3928_v2, %v3927_v46  ;;  %v1668_v32 = vsel %vm1657_vm6, %v3931_v22, %v3930_v6  ;;  %v3559_v9 = vpop.permute.xlu0 %2325  ;;  %v3940_v46 = vunpack.i.h.bf16 %v3385_v34 }
 0x269   : >> { %v1675_v47 = vpack.c.bf16 %v1669_v1, %v1668_v32  ;;  %v3932_v37 = vunpack.i.h.bf16 %v3559_v9  ;;  %v3934_v27 = vunpack.i.l.bf16 %v3559_v9  ;;  %v3564_v11 = vpop.permute.xlu1 %2260  ;;  %v3939_v2 = vunpack.i.l.bf16 %v3385_v34 }
 0x26a   : >> { %1517 = vst [vmem:[#allocation2 + $0x60] sm:$0xff] %v1511_v45  ;;  %v3937_v39 = vunpack.i.h.bf16 %v3564_v11  ;;  %v3938_v6 = vunpack.i.l.bf16 %v3564_v11  ;;  %v3943_v45 = vunpack.i.h.bf16 %v3376_v31 }
 0x26b   : >> { %1681 = vst [vmem:[#allocation2 + $0x148] sm:$0xff] %v1675_v47  ;;  %v1557_v32 = vsel %vm1547_vm4, %v3933_v21, %v3932_v37  ;;  %v1556_v1 = vsel %vm1547_vm4, %v3935_v48, %v3934_v27  ;;  %v3951_v27 = vunpack.i.l.bf16 %v3376_v31 }
 0x26c   : >> { %v1560_v22 = vpack.c.bf16 %v1557_v32, %v1556_v1  ;;  %v1718_v47 = vsel %vm1706_vm7, %v3940_v46, %v3937_v39  ;;  %v1717_v37 = vsel %vm1706_vm7, %v3939_v2, %v3938_v6  ;;  %v3595_v21 = vpop.permute.xlu0 %2330 }
 0x26d   : >> { %v1724_v48 = vpack.c.bf16 %v1718_v47, %v1717_v37  ;;  %v3942_v32 = vunpack.i.h.bf16 %v3595_v21  ;;  %v3946_v1 = vunpack.i.l.bf16 %v3595_v21  ;;  %v3600_v38 = vpop.permute.xlu1 %2265 }
 0x26e   : >> { %1566 = vst [vmem:[#allocation2 + $0x90] sm:$0xff] %v1560_v22  ;;  %v3948_v22 = vunpack.i.h.bf16 %v3380_v17 }
 0x26f   : >> { %1730 = vst [vmem:[#allocation2 + $0x178] sm:$0xff] %v1724_v48  ;;  %v1618_v39 = vsel %vm1608_vm5, %v3943_v45, %v3942_v32  ;;  %v1617_v37 = vsel %vm1608_vm5, %v3951_v27, %v3946_v1  ;;  %v3950_v48 = vunpack.i.l.bf16 %v3380_v17 }
 0x270   : >> { %v1623_v47 = vpack.c.bf16 %v1618_v39, %v1617_v37  ;;  %v3614_v6 = vpop.permute.xlu0 %2335 }
 0x271   : >> { %v3947_v2 = vunpack.i.h.bf16 %v3614_v6  ;;  %v3949_v46 = vunpack.i.l.bf16 %v3614_v6  ;;  %v2271_v7 = vpop.permute.xlu1 %2270 }
 0x272   : >> { %1629 = vst [vmem:[#allocation2 + $0x100] sm:$0xff] %v1623_v47  ;;  %v2273_v32 = vunpack.i.h.bf16 %v2271_v7  ;;  %v2272_v45 = vunpack.i.l.bf16 %v2271_v7 }
 0x273   : >> { %v1667_v39 = vsel %vm1657_vm6, %v3948_v22, %v3947_v2  ;;  %v1666_v37 = vsel %vm1657_vm6, %v3950_v48, %v3949_v46 }
 0x274   : >> { %v1672_v47 = vpack.c.bf16 %v1667_v39, %v1666_v37  ;;  %v1404_v7 = vsel %vm1400_vm2, %v2273_v32, %v2163_v60  ;;  %v1403_v1 = vsel %vm1400_vm2, %v2272_v45, %v2162_v57  ;;  %v1407_v2 = vsel %vm1400_vm2, %v2232_v50, %v2272_v45  ;;  %v3646_v22 = vpop.permute.xlu0 %2340 }
 0x275   : >> { %v1408_v39 = vsel %vm1400_vm2, %v2233_v35, %v2273_v32  ;;  %v1418_v37 = vpack.c.bf16 %v1404_v7, %v1403_v1  ;;  %v2343_v60 = vunpack.i.h.bf16 %v3646_v22  ;;  %v2342_v3 = vunpack.i.l.bf16 %v3646_v22  ;;  %v2276_v46 = vpop.permute.xlu1 %2275 }
 0x276   : >> { %1678 = vst [vmem:[#allocation2 + $0x130] sm:$0xff] %v1672_v47  ;;  %v1417_v57 = vpack.c.bf16 %v1408_v39, %v1407_v2  ;;  %v2278_v48 = vunpack.i.h.bf16 %v2276_v46  ;;  %v2277_v27 = vunpack.i.l.bf16 %v2276_v46 }
 0x277   : >> { %1424 = vst [vmem:[#allocation2 + $0x28] sm:$0xff] %v1418_v37  ;;  %v1716_v44 = vsel %vm1706_vm7, %v2228_v23, %v2343_v60  ;;  %v1715_v35 = vsel %vm1706_vm7, %v2227_v52, %v2342_v3 }
 0x278   : >> { %1423 = vst [vmem:[#allocation2 + $0x20] sm:$0xff] %v1417_v57  ;;  %v1721_v50 = vpack.c.bf16 %v1716_v44, %v1715_v35  ;;  %v1453_v2 = vsel %vm1449_vm1, %v2278_v48, %v2168_v10  ;;  %v1452_v46 = vsel %vm1449_vm1, %v2277_v27, %v2167_v25  ;;  %v1456_v45 = vsel %vm1449_vm1, %v2237_v43, %v2277_v27  ;;  %v3678_v32 = vpop.permute.xlu0 %2345 }
 0x279   : >> { %v1457_v1 = vsel %vm1449_vm1, %v2238_v26, %v2278_v48  ;;  %v1467_v47 = vpack.c.bf16 %v1453_v2, %v1452_v46  ;;  %v2281_v7 = vpop.permute.xlu1 %2280 }
 0x27a   : >> { %1727 = vst [vmem:[#allocation2 + $0x160] sm:$0xff] %v1721_v50  ;;  %v1466_v10 = vpack.c.bf16 %v1457_v1, %v1456_v45  ;;  %v2283_v49 = vunpack.i.h.bf16 %v2281_v7  ;;  %v2282_v39 = vunpack.i.l.bf16 %v2281_v7  ;;  %v3962_v7 = vunpack.i.l.bf16 %v3368_v29 }
 0x27b   : >> { %1473 = vst [vmem:[#allocation2 + $0x58] sm:$0xff] %v1467_v47  ;;  %v3960_v47 = vunpack.i.h.bf16 %v3368_v29 }
 0x27c   : >> { %1472 = vst [vmem:[#allocation2 + $0x50] sm:$0xff] %v1466_v10  ;;  %v1502_v25 = vsel %vm1498_vm3, %v2283_v49, %v2173_v61  ;;  %v1501_v12 = vsel %vm1498_vm3, %v2282_v39, %v2172_v36  ;;  %v1505_v26 = vsel %vm1498_vm3, %v2242_v30, %v2282_v39  ;;  %v1506_v43 = vsel %vm1498_vm3, %v2243_v20, %v2283_v49  ;;  %v2356_v27 = vpop.permute.xlu0 %2355 }
 0x27d   : >> { %v1515_v48 = vpack.c.bf16 %v1506_v43, %v1505_v26  ;;  %v1516_v37 = vpack.c.bf16 %v1502_v25, %v1501_v12  ;;  %v2358_v57 = vunpack.i.h.bf16 %v2356_v27  ;;  %v2357_v61 = vunpack.i.l.bf16 %v2356_v27  ;;  %v2286_v44 = vpop.permute.xlu1 %2285 }
 0x27e   : >> { %v2288_v53 = vunpack.i.h.bf16 %v2286_v44  ;;  %v2287_v35 = vunpack.i.l.bf16 %v2286_v44  ;;  %v3963_v49 = vunpack.i.l.bf16 %v3522_v19  ;;  %v3964_v25 = vunpack.i.h.bf16 %v3374_v16 }
 0x27f   : >> { %1521 = vst [vmem:[#allocation2 + $0x80] sm:$0xff] %v1515_v48  ;;  %1522 = vst [vmem:[#allocation2 + $0x88] sm:$0xff] %v1516_v37  ;;  %v1451_v36 = vsel %vm1449_vm1, %v2358_v57, %v2203_v24  ;;  %v1450_v62 = vsel %vm1449_vm1, %v2357_v61, %v2202_v42  ;;  %v1454_v20 = vsel %vm1449_vm1, %v2317_v63, %v2357_v61  ;;  %v3965_v26 = vunpack.i.l.bf16 %v3374_v16 }
 0x280   : >> { %v1455_v30 = vsel %vm1449_vm1, %v2318_v55, %v2358_v57  ;;  %v1464_v2 = vpack.c.bf16 %v1451_v36, %v1450_v62  ;;  %v1551_v28 = vsel %vm1547_vm4, %v2288_v53, %v2178_v40  ;;  %v1550_v24 = vsel %vm1547_vm4, %v2287_v35, %v2177_v14  ;;  %v2361_v42 = vpop.permute.xlu0 %2360 }
 0x281   : >> { %v1463_v50 = vpack.c.bf16 %v1455_v30, %v1454_v20  ;;  %v1554_v4 = vsel %vm1547_vm4, %v2247_v51, %v2287_v35  ;;  %v1555_v55 = vsel %vm1547_vm4, %v2248_v58, %v2288_v53  ;;  %v1565_v63 = vpack.c.bf16 %v1551_v28, %v1550_v24  ;;  %v2291_v45 = vpop.permute.xlu1 %2290 }
 0x282   : >> { %v2363_v46 = vunpack.i.h.bf16 %v2361_v42  ;;  %1470 = vst [vmem:[#allocation2 + $0x40] sm:$0xff] %v1464_v2  ;;  %v1564_v59 = vpack.c.bf16 %v1555_v55, %v1554_v4  ;;  %v2362_v40 = vunpack.i.l.bf16 %v2361_v42  ;;  %v2293_v1 = vunpack.i.h.bf16 %v2291_v45 }
 0x283   : >> { %1469 = vst [vmem:[#allocation2 + $0x38] sm:$0xff] %v1463_v50  ;;  %v2292_v14 = vunpack.i.l.bf16 %v2291_v45  ;;  %1571 = vst [vmem:[#allocation2 + $0xb8] sm:$0xff] %v1565_v63  ;;  %v3966_v37 = vunpack.i.l.bf16 %v3490_v41  ;;  %v3967_v57 = vunpack.i.h.bf16 %v3490_v41  ;;  %v3968_v30 = vunpack.i.h.bf16 %v3372_v18 }
 0x284   : >> { %v1500_v51 = vsel %vm1498_vm3, %v2363_v46, %v3960_v47  ;;  %v1504_v58 = vsel %vm1498_vm3, %v3961_v54, %v2363_v46  ;;  %1570 = vst [vmem:[#allocation2 + $0xb0] sm:$0xff] %v1564_v59  ;;  %v1499_v10 = vsel %vm1498_vm3, %v2362_v40, %v3962_v7  ;;  %v1503_v39 = vsel %vm1498_vm3, %v3963_v49, %v2362_v40  ;;  %v2366_v27 = vpop.permute.xlu0 %2365 }
 0x285   : >> { %v1612_v12 = vsel %vm1608_vm5, %v2293_v1, %v3964_v25  ;;  %v1611_v43 = vsel %vm1608_vm5, %v2292_v14, %v3965_v26  ;;  %v1512_v29 = vpack.c.bf16 %v1504_v58, %v1503_v39  ;;  %v1513_v48 = vpack.c.bf16 %v1500_v51, %v1499_v10  ;;  %v2296_v44 = vpop.permute.xlu1 %2295 }
 0x286   : >> { %v1615_v19 = vsel %vm1608_vm5, %v3966_v37, %v2292_v14  ;;  %v1616_v61 = vsel %vm1608_vm5, %v3967_v57, %v2293_v1  ;;  %v1625_v35 = vpack.c.bf16 %v1612_v12, %v1611_v43  ;;  %v2368_v16 = vunpack.i.h.bf16 %v2366_v27 }
 0x287   : >> { %v1624_v53 = vpack.c.bf16 %v1616_v61, %v1615_v19  ;;  %v2367_v36 = vunpack.i.l.bf16 %v2366_v27  ;;  %1518 = vst [vmem:[#allocation2 + $0x68] sm:$0xff] %v1512_v29  ;;  %1519 = vst [vmem:[#allocation2 + $0x70] sm:$0xff] %v1513_v48  ;;  %v2298_v62 = vunpack.i.h.bf16 %v2296_v44  ;;  %v2297_v20 = vunpack.i.l.bf16 %v2296_v44 }
 0x288   : >> { %1631 = vst [vmem:[#allocation2 + $0x110] sm:$0xff] %v1625_v35  ;;  %v1549_v50 = vsel %vm1547_vm4, %v2368_v16, %v3968_v30  ;;  %v3969_v41 = vunpack.i.l.bf16 %v3372_v18  ;;  %v3970_v28 = vunpack.i.l.bf16 %v3559_v9  ;;  %v3971_v42 = vunpack.i.h.bf16 %v3559_v9  ;;  %v2371_v55 = vpop.permute.xlu0 %2370 }
 0x289   : >> { %1630 = vst [vmem:[#allocation2 + $0x108] sm:$0xff] %v1624_v53  ;;  %v3972_v45 = vunpack.i.h.bf16 %v3378_v5  ;;  %v3973_v59 = vunpack.i.l.bf16 %v3378_v5  ;;  %v2301_v1 = vpop.permute.xlu1 %2300  ;;  %v3974_v14 = vunpack.i.l.bf16 %v3527_v56  ;;  %v3975_v47 = vunpack.i.h.bf16 %v3527_v56 }
 0x28a   : >> { %v1548_v2 = vsel %vm1547_vm4, %v2367_v36, %v3969_v41  ;;  %v1552_v24 = vsel %vm1547_vm4, %v3970_v28, %v2367_v36  ;;  %v1553_v4 = vsel %vm1547_vm4, %v3971_v42, %v2368_v16  ;;  %v2373_v58 = vunpack.i.h.bf16 %v2371_v55 }
 0x28b   : >> { %v1561_v63 = vpack.c.bf16 %v1553_v4, %v1552_v24  ;;  %v1562_v46 = vpack.c.bf16 %v1549_v50, %v1548_v2  ;;  %v1661_v18 = vsel %vm1657_vm6, %v2298_v62, %v3972_v45  ;;  %v1660_v40 = vsel %vm1657_vm6, %v2297_v20, %v3973_v59 }
 0x28c   : >> { %v1664_v9 = vsel %vm1657_vm6, %v3974_v14, %v2297_v20  ;;  %v1665_v51 = vsel %vm1657_vm6, %v3975_v47, %v2298_v62  ;;  %v1674_v54 = vpack.c.bf16 %v1661_v18, %v1660_v40  ;;  %v2372_v5 = vunpack.i.l.bf16 %v2371_v55  ;;  %v2376_v26 = vpop.permute.xlu0 %2375 }
 0x28d   : >> { %1567 = vst [vmem:[#allocation2 + $0x98] sm:$0xff] %v1561_v63  ;;  %1568 = vst [vmem:[#allocation2 + $0xa0] sm:$0xff] %v1562_v46  ;;  %v1673_v7 = vpack.c.bf16 %v1665_v51, %v1664_v9  ;;  %v2303_v10 = vunpack.i.h.bf16 %v2301_v1  ;;  %v2302_v49 = vunpack.i.l.bf16 %v2301_v1  ;;  %v3976_v39 = vunpack.i.h.bf16 %v3376_v31  ;;  %v3821_v44 = vpop.permute.xlu1 %2305 }
 0x28e   : >> { %1680 = vst [vmem:[#allocation2 + $0x140] sm:$0xff] %v1674_v54  ;;  %v3977_v12 = vunpack.i.h.bf16 %v3595_v21  ;;  %v3978_v43 = vunpack.i.l.bf16 %v3376_v31  ;;  %v3979_v29 = vunpack.i.l.bf16 %v3595_v21  ;;  %v3980_v37 = vunpack.i.h.bf16 %v3385_v34 }
 0x28f   : >> { %v1610_v25 = vsel %vm1608_vm5, %v2373_v58, %v3976_v39  ;;  %1679 = vst [vmem:[#allocation2 + $0x138] sm:$0xff] %v1673_v7  ;;  %v3981_v57 = vunpack.i.l.bf16 %v3385_v34  ;;  %v3982_v35 = vunpack.i.l.bf16 %v3564_v11  ;;  %v3983_v16 = vunpack.i.h.bf16 %v3564_v11 }
 0x290   : >> { %v1614_v56 = vsel %vm1608_vm5, %v3977_v12, %v2373_v58  ;;  %v1609_v27 = vsel %vm1608_vm5, %v2372_v5, %v3978_v43  ;;  %v1613_v48 = vsel %vm1608_vm5, %v3979_v29, %v2372_v5  ;;  %v1710_v19 = vsel %vm1706_vm7, %v2303_v10, %v3980_v37  ;;  %v2381_v24 = vpop.permute.xlu0 %2380 }
 0x291   : >> { %v1709_v61 = vsel %vm1706_vm7, %v2302_v49, %v3981_v57  ;;  %v1621_v31 = vpack.c.bf16 %v1614_v56, %v1613_v48  ;;  %v1622_v53 = vpack.c.bf16 %v1610_v25, %v1609_v27  ;;  %v1713_v21 = vsel %vm1706_vm7, %v3982_v35, %v2302_v49  ;;  %v2351_v18 = vpop.permute.xlu1 %2350 }
 0x292   : >> { %v1714_v36 = vsel %vm1706_vm7, %v3983_v16, %v2303_v10  ;;  %v1723_v20 = vpack.c.bf16 %v1710_v19, %v1709_v61  ;;  %v2378_v34 = vunpack.i.h.bf16 %v2376_v26  ;;  %v2377_v30 = vunpack.i.l.bf16 %v2376_v26 }
 0x293   : >> { %v1722_v62 = vpack.c.bf16 %v1714_v36, %v1713_v21  ;;  %v2268_v50 = vunpack.i.h.bf16 %v3600_v38  ;;  %v2267_v41 = vunpack.i.l.bf16 %v3600_v38  ;;  %1627 = vst [vmem:[#allocation2 + $0xf0] sm:$0xff] %v1621_v31  ;;  %1628 = vst [vmem:[#allocation2 + $0xf8] sm:$0xff] %v1622_v53  ;;  %v2308_v2 = vunpack.i.h.bf16 %v3821_v44 }
 0x294   : >> { %v2307_v28 = vunpack.i.l.bf16 %v3821_v44  ;;  %1729 = vst [vmem:[#allocation2 + $0x170] sm:$0xff] %v1723_v20  ;;  %v3984_v11 = vunpack.i.h.bf16 %v3380_v17  ;;  %v3985_v4 = vunpack.i.l.bf16 %v3380_v17  ;;  %v3986_v38 = vunpack.i.l.bf16 %v3614_v6  ;;  %v2386_v7 = vpop.permute.xlu0 %2385 }
 0x295   : >> { %1728 = vst [vmem:[#allocation2 + $0x168] sm:$0xff] %v1722_v62  ;;  %v3987_v46 = vunpack.i.h.bf16 %v3614_v6  ;;  %v1763_v17 = vsel %vm1755_vm8, %v2268_v50, %v2308_v2  ;;  %v2383_v9 = vunpack.i.h.bf16 %v2381_v24  ;;  %v2382_v47 = vunpack.i.l.bf16 %v2381_v24  ;;  %v2396_v39 = vpop.permute.xlu1 %2395 }
 0x296   : >> { %v1659_v42 = vsel %vm1657_vm6, %v2378_v34, %v3984_v11  ;;  %v1658_v55 = vsel %vm1657_vm6, %v2377_v30, %v3985_v4  ;;  %v1662_v63 = vsel %vm1657_vm6, %v3986_v38, %v2377_v30  ;;  %v1762_v1 = vsel %vm1755_vm8, %v2267_v41, %v2307_v28 }
 0x297   : >> { %v1663_v45 = vsel %vm1657_vm6, %v3987_v46, %v2378_v34  ;;  %v1671_v40 = vpack.c.bf16 %v1659_v42, %v1658_v55  ;;  %v1771_v14 = vpack.c.bf16 %v1763_v17, %v1762_v1  ;;  %v2353_v51 = vunpack.i.h.bf16 %v2351_v18 }
 0x298   : >> { %v1670_v59 = vpack.c.bf16 %v1663_v45, %v1662_v63  ;;  %v2348_v54 = vunpack.i.h.bf16 %v3678_v32  ;;  %v2347_v6 = vunpack.i.l.bf16 %v3678_v32  ;;  %v2352_v58 = vunpack.i.l.bf16 %v2351_v18  ;;  %v2391_v19 = vpop.permute.xlu0 %2390 }
 0x299   : >> { %1677 = vst [vmem:[#allocation2 + $0x128] sm:$0xff] %v1671_v40  ;;  %1777 = vst [vmem:[#allocation2 + $0x198] sm:$0xff] %v1771_v14  ;;  %v1708_v5 = vsel %vm1706_vm7, %v2383_v9, %v2228_v23  ;;  %v1707_v10 = vsel %vm1706_vm7, %v2382_v47, %v2227_v52  ;;  %v1711_v32 = vsel %vm1706_vm7, %v2342_v3, %v2382_v47  ;;  %v3988_v23 = vunpack.i.h.bf16 %v3360_v8 }
 0x29a   : >> { %1676 = vst [vmem:[#allocation2 + $0x120] sm:$0xff] %v1670_v59  ;;  %v1712_v49 = vsel %vm1706_vm7, %v2343_v60, %v2383_v9  ;;  %v1720_v12 = vpack.c.bf16 %v1708_v5, %v1707_v10  ;;  %v3989_v52 = vunpack.i.l.bf16 %v3360_v8  ;;  %v3990_v3 = vunpack.i.l.bf16 %v3448_v13 }
 0x29b   : >> { %v1719_v25 = vpack.c.bf16 %v1712_v49, %v1711_v32  ;;  %v1402_v15 = vsel %vm1400_vm2, %v2353_v51, %v3988_v23  ;;  %v3991_v60 = vunpack.i.h.bf16 %v3448_v13  ;;  %v2388_v27 = vunpack.i.h.bf16 %v2386_v7 }
 0x29c   : >> { %v1401_v56 = vsel %vm1400_vm2, %v2352_v58, %v3989_v52  ;;  %v1405_v22 = vsel %vm1400_vm2, %v3990_v3, %v2352_v58  ;;  %1726 = vst [vmem:[#allocation2 + $0x158] sm:$0xff] %v1720_v12  ;;  %v2387_v48 = vunpack.i.l.bf16 %v2386_v7  ;;  %v2398_v8 = vunpack.i.h.bf16 %v2396_v39 }
 0x29d   : >> { %v1406_v26 = vsel %vm1400_vm2, %v3991_v60, %v2353_v51  ;;  %v1415_v43 = vpack.c.bf16 %v1402_v15, %v1401_v56  ;;  %1725 = vst [vmem:[#allocation2 + $0x150] sm:$0xff] %v1719_v25  ;;  %v2397_v37 = vunpack.i.l.bf16 %v2396_v39  ;;  %v1761_v57 = vsel %vm1755_vm8, %v2348_v54, %v2388_v27 }
 0x29e   : >> { %v1414_v29 = vpack.c.bf16 %v1406_v26, %v1405_v22  ;;  %v2393_v61 = vunpack.i.h.bf16 %v2391_v19  ;;  %v2392_v44 = vunpack.i.l.bf16 %v2391_v19  ;;  %v1760_v13 = vsel %vm1755_vm8, %v2347_v6, %v2387_v48 }
 0x29f   : >> { %1421 = vst [vmem:[#allocation2 + $0x10] sm:$0xff] %v1415_v43  ;;  %v1759_v31 = vsel %vm1755_vm8, %v2308_v2, %v2398_v8  ;;  %v1767_v53 = vsel %vm1755_vm8, %v2398_v8, %v2268_v50  ;;  %v1758_v35 = vsel %vm1755_vm8, %v2307_v28, %v2397_v37  ;;  %v1768_v21 = vpack.c.bf16 %v1761_v57, %v1760_v13  ;;  %283 = sbr.rel (!%p281_p4) target bundleno = 39 (0x27), region = 83 }
 0x2a0   : >> { %1420 = vst [vmem:[#allocation2 + $0x8] sm:$0xff] %v1414_v29  ;;  %v1766_v16 = vsel %vm1755_vm8, %v2397_v37, %v2267_v41  ;;  %v1772_v36 = vpack.c.bf16 %v1759_v31, %v1758_v35  ;;  %v1756_v62 = vsel %vm1755_vm8, %v2387_v48, %v2392_v44  ;;  %v1757_v34 = vsel %vm1755_vm8, %v2388_v27, %v2393_v61 }
 0x2a1   : >> { %v1773_v20 = vpack.c.bf16 %v1767_v53, %v1766_v16  ;;  %v1764_v30 = vsel %vm1755_vm8, %v2392_v44, %v2347_v6  ;;  %v1765_v50 = vsel %vm1755_vm8, %v2393_v61, %v2348_v54  ;;  %1774 = vst [vmem:[#allocation2 + $0x180] sm:$0xff] %v1768_v21  ;;  %v1769_v2 = vpack.c.bf16 %v1757_v34, %v1756_v62 }
 0x2a2   : >> { %1778 = vst [vmem:[#allocation2 + $0x1a0] sm:$0xff] %v1772_v36  ;;  %v1770_v28 = vpack.c.bf16 %v1765_v50, %v1764_v30 }
 0x2a3   : >> { %1779 = vst [vmem:[#allocation2 + $0x1a8] sm:$0xff] %v1773_v20  ;;  %1775 = vst [vmem:[#allocation2 + $0x188] sm:$0xff] %v1769_v2 }
 0x2a4   : >> { %1776 = vst [vmem:[#allocation2 + $0x190] sm:$0xff] %v1770_v28 }
 0x2a6 PF: > { %s15_s15 = sadd.s32 1, %s2633_s15  }
 0x2a7   : > { %p12_p5 = scmp.ge.s32.totalorder %s15_s15, 4  }
 0x2a9   :  { %14 = sbr.rel (!%p12_p5) target bundleno = 1 (0x1), region = 94 }

// kernel: convlstm_forward.9
= control target key start
LH: loop header
LB: loop body
LE: loop exit
PB: predicated region body
PF: predicated region fallthrough
CT: control target
= control target key end

     0   :  { %s1323_s12 = smov 0   ;;  %s1946_s0 = inlined_call_operand.vmem [shape: f32[2,8,32,384], index: 0, kind: input, shape index: {}]   ;;  %s1947_s1 = inlined_call_operand.vmem [shape: bf16[4,288], index: 1, kind: input, shape index: {}]   ;;  %s1948_s2 = inlined_call_operand.vmem [shape: f32[4,1], index: 2, kind: input, shape index: {}]   ;;  %s1949_s3 = inlined_call_operand.vmem [shape: f32[2,8,4,384], index: 3, kind: output, shape index: {}]  }
   0x1 LB: > { %s936_s13 = sadd.s32 4294967295, %s1285_s12   ;;  %p940_p0 = scmp.ge.s32.totalorder %s1285_s12, 1  ;;  %s1285_s12 = sphi %s1323_s12, %s13_s12  }
   0x2   : > { %p137_p1 = scmp.lt.s32.totalorder %s1285_s12, 3 }
   0x4   : > { %p138_p2 = pnand %p940_p0, %p137_p1 }
   0x5   : > { %p161_p3 = scmp.lt.s32.totalorder (!%p138_p2), %s936_s13, 1  ;;  %s1341_s22 = smov (!%p138_p2), 0  }
   0x6   : > { %141 = sbr.rel (%p138_p2) target bundleno = 490 (0x1ea), region = 32 }
   0xd   : > { %s1996_s13 = smov (!%p161_p3, %s936_s13), 1 }
   0xe   : > { %s991_s14 = smul.u32 768, %s1996_s13 }
   0xf   : > { %s992_s15 = smul.u32 96, %s1996_s13 }
  0x10   : > { %s1334_s18 = scalar_lea.vmem %s1946_s0, %s991_s14 }
  0x11   : > { %s1339_s21 = scalar_lea.vmem %s1949_s3, %s992_s15 }
  0x12 LB: >> { %s952_s23 = smul.u32 96, %s1289_s22  ;;  %s1291_s25 = smov 19   ;;  %v217_v18 = vlaneseq  ;;  %v1296_v19 = vmov 1983009808   ;;  %v599_v23 = vld [vmem:[%s1947_s1] sm:$0x3f]  ;;  %s1289_s22 = sphi %s1341_s22, %s177_s22  }
  0x13   : >> { %s1292_s26 = smov 18   ;;  %s1293_s27 = smov 17   ;;  %v663_v20 = vunpack.c.l.s4 %v1296_v19  ;;  %v661_v24 = vcombine.high %v599_v23, %v599_v23  ;;  %v1297_v28 = vmov 0   ;;  %v654_v36 = vld [vmem:[%s1948_s2] sm:$0xf]  ;;  %vm679_vm5 = vcmask 261120  }
  0x14   : >> { %s180_s24 = scalar_lea.vmem %s1334_s18, %s952_s23  ;;  %s1294_s28 = smov 109   ;;  %v666_v22 = vshrl.u32 %v217_v18, 7  ;;  %756 = vmatprep.mubr.bf16.mxu1 %v1297_v28  ;;  %1261 = vset.pattern.permute.xlu0 %v1297_v28  ;;  %v1473_v38 = vand.u32 127, %v217_v18  ;;  %vm1302_vm9 = vmmov 0  }
  0x15   : >> { %v1348_v0 = vld [vmem:[%s180_s24 + $0x10] sm:$0xff]  ;;  %v1350_v1 = vld [vmem:[%s180_s24 + $0x28] sm:$0xff]  ;;  %v1352_v2 = vld [vmem:[%s180_s24] sm:$0xff]  ;;  %s1295_s29 = smov 1   ;;  %v664_v21 = vunpack.c.0.s8 %v663_v20  ;;  %s1298_s5 = smov 127  }
  0x16   : >> { %v1356_v3 = vpack.i.bf16 %v1350_v1, %v1348_v0  ;;  %v1358_v4 = vld [vmem:[%s180_s24 + $0x18] sm:$0xff]  ;;  %v1360_v5 = vld [vmem:[%s180_s24 + $0x30] sm:$0xff]  ;;  %v1362_v6 = vld [vmem:[%s180_s24 + $0x48] sm:$0xff]  ;;  %v393_v26 = vpack.c.bf16 %v1350_v1, %v1348_v0  ;;  %s1299_s6 = smov 111   ;;  %s1300_s7 = smov 110   ;;  %vm219_vm0 = vcmp.lt.s32.totalorder %v1473_v38, 19 }
  0x17   : >> { %v1366_v7 = vpack.i.bf16 %v1358_v4, %v1352_v2  ;;  %v1368_v8 = vld [vmem:[%s180_s24 + $0x8] sm:$0xff]  ;;  %v1370_v9 = vld [vmem:[%s180_s24 + $0x20] sm:$0xff]  ;;  %v1375_v10 = vpack.i.bf16 %v1362_v6, %v1360_v5  ;;  %v1384_v13 = vld [vmem:[%s180_s24 + $0x58] sm:$0xff]  ;;  %v667_v25 = vsub.s32 %v664_v21, %v666_v22  ;;  %vm268_vm1 = vcmp.lt.s32.totalorder %v1473_v38, 18  ;;  %s953_s10 = smul.u32 12, %s1289_s22  ;;  %s177_s22 = sadd.s32 1, %s1289_s22  }
  0x18   : >> { %1032 = vrot.lane.b32.xlu1 %v1356_v3, %s1291_s25  ;;  %v1380_v11 = vpack.i.bf16 %v1370_v9, %v1368_v8  ;;  %v1382_v12 = vld [vmem:[%s180_s24 + $0x40] sm:$0xff]  ;;  %v1386_v14 = vld [vmem:[%s180_s24 + $0x38] sm:$0xff]  ;;  %v1388_v15 = vld [vmem:[%s180_s24 + $0x50] sm:$0xff]  ;;  %v392_v30 = vpack.c.bf16 %v1370_v9, %v1368_v8  ;;  %vm317_vm2 = vcmp.lt.s32.totalorder %v1473_v38, 17  ;;  %vm574_vm3 = vcmp.lt.s32.totalorder %v1473_v38, 109  ;;  %p174_p4 = scmp.ge.s32.totalorder %s177_s22, 8  }
  0x19   : >> { %1022 = vrot.lane.b32.xlu0 %v1366_v7, %s1291_s25  ;;  %v1393_v16 = vpack.i.bf16 %v1384_v13, %v1382_v12  ;;  %v1398_v17 = vpack.i.bf16 %v1388_v15, %v1386_v14  ;;  %v1426_v27 = vrot.slane %v661_v24, %v667_v25  ;;  %v396_v29 = vpack.c.bf16 %v1384_v13, %v1382_v12  ;;  %s869_s11 = scalar_lea.vmem %s1339_s21, %s953_s10 }
  0x1a   : >> { %v1457_v34 = vrot.slane %v599_v23, %v667_v25  ;;  %vm366_vm4 = vcmp.lt.s32.totalorder %v1473_v38, 1  ;;  %vm427_vm6 = vcmp.lt.s32.totalorder %v1473_v38, 127  ;;  %vm476_vm7 = vcmp.lt.s32.totalorder %v1473_v38, 111 }
  0x1b   : >> { %vm525_vm8 = vcmp.lt.s32.totalorder %v1473_v38, 110 }
  0x1c   : >> { %1037 = vrot.lane.b32.xlu1 %v1375_v10, %s1291_s25  ;;  %v1461_v35 = vcombine.high %v1457_v34, %v1457_v34 }
  0x1d   : >> { %1027 = vrot.lane.b32.xlu0 %v1380_v11, %s1291_s25 }
  0x1e   : >> { %715 = vmatprep.mubr.bf16.mxu0 %v1461_v35 }
  0x20   : >> { %1047 = vrot.lane.b32.xlu1 %v1393_v16, %s1291_s25 }
  0x21   : >> { %1042 = vrot.lane.b32.xlu0 %v1398_v17, %s1291_s25 }
  0x24   : >> { %1057 = vrot.lane.b32.xlu1 %v1380_v11, %s1292_s26 }
  0x25   : >> { %1052 = vrot.lane.b32.xlu0 %v1366_v7, %s1292_s26 }
  0x28   : >> { %1067 = vrot.lane.b32.xlu1 %v1375_v10, %s1292_s26 }
  0x29   : >> { %1062 = vrot.lane.b32.xlu0 %v1356_v3, %s1292_s26 }
  0x2c   : >> { %1077 = vrot.lane.b32.xlu1 %v1393_v16, %s1292_s26 }
  0x2d   : >> { %1072 = vrot.lane.b32.xlu0 %v1398_v17, %s1292_s26 }
  0x30   : >> { %1087 = vrot.lane.b32.xlu1 %v1380_v11, %s1293_s27 }
  0x31   : >> { %1082 = vrot.lane.b32.xlu0 %v1366_v7, %s1293_s27 }
  0x34   : >> { %1097 = vrot.lane.b32.xlu1 %v1375_v10, %s1293_s27 }
  0x35   : >> { %1092 = vrot.lane.b32.xlu0 %v1356_v3, %s1293_s27 }
  0x38   : >> { %1107 = vrot.lane.b32.xlu1 %v1393_v16, %s1293_s27 }
  0x39   : >> { %1102 = vrot.lane.b32.xlu0 %v1398_v17, %s1293_s27 }
  0x3c   : >> { %1117 = vrot.lane.b32.xlu1 %v1356_v3, %s1294_s28 }
  0x3d   : >> { %1112 = vrot.lane.b32.xlu0 %v1380_v11, %s1294_s28 }
  0x40   : >> { %1127 = vrot.lane.b32.xlu1 %v1366_v7, %s1295_s29 }
  0x41   : >> { %1122 = vrot.lane.b32.xlu0 %v1366_v7, %s1294_s28 }
  0x44   : >> { %1137 = vrot.lane.b32.xlu1 %v1356_v3, %s1295_s29 }
  0x45   : >> { %1132 = vrot.lane.b32.xlu0 %v1380_v11, %s1295_s29 }
  0x48   : >> { %1147 = vrot.lane.b32.xlu1 %v1393_v16, %s1294_s28 }
  0x49   : >> { %1142 = vrot.lane.b32.xlu0 %v1398_v17, %s1294_s28 }
  0x4c   : >> { %1157 = vrot.lane.b32.xlu1 %v1375_v10, %s1295_s29 }
  0x4d   : >> { %1152 = vrot.lane.b32.xlu0 %v1375_v10, %s1294_s28 }
  0x50   : >> { %1167 = vrot.lane.b32.xlu1 %v1393_v16, %s1295_s29 }
  0x51   : >> { %1162 = vrot.lane.b32.xlu0 %v1398_v17, %s1295_s29 }
  0x54   : >> { %1177 = vrot.lane.b32.xlu1 %v1356_v3, %s1298_s5 }
  0x55   : >> { %1172 = vrot.lane.b32.xlu0 %v1366_v7, %s1298_s5 }
  0x58   : >> { %1187 = vrot.lane.b32.xlu1 %v1375_v10, %s1298_s5 }
  0x59   : >> { %1182 = vrot.lane.b32.xlu0 %v1380_v11, %s1298_s5 }
  0x5c   : >> { %1197 = vrot.lane.b32.xlu1 %v1398_v17, %s1298_s5 }
  0x5d   : >> { %1192 = vrot.lane.b32.xlu0 %v1393_v16, %s1298_s5 }
  0x60   : >> { %1207 = vrot.lane.b32.xlu1 %v1356_v3, %s1299_s6 }
  0x61   : >> { %1202 = vrot.lane.b32.xlu0 %v1366_v7, %s1299_s6 }
  0x64   : >> { %1217 = vrot.lane.b32.xlu1 %v1375_v10, %s1299_s6 }
  0x65   : >> { %1212 = vrot.lane.b32.xlu0 %v1380_v11, %s1299_s6 }
  0x68   : >> { %1227 = vrot.lane.b32.xlu1 %v1398_v17, %s1299_s6 }
  0x69   : >> { %1222 = vrot.lane.b32.xlu0 %v1393_v16, %s1299_s6 }
  0x6c   : >> { %1237 = vrot.lane.b32.xlu1 %v1356_v3, %s1300_s7 }
  0x6d   : >> { %1232 = vrot.lane.b32.xlu0 %v1366_v7, %s1300_s7 }
  0x70   : >> { %1247 = vrot.lane.b32.xlu1 %v1375_v10, %s1300_s7 }
  0x71   : >> { %1242 = vrot.lane.b32.xlu0 %v1380_v11, %s1300_s7 }
  0x74   : >> { %1257 = vrot.lane.b32.xlu1 %v1398_v17, %s1300_s7 }
  0x75   : >> { %1252 = vrot.lane.b32.xlu0 %v1393_v16, %s1300_s7 }
  0x79   : >> { %657 = vperm.xlu0 %1261, %v654_v36  }
  0x8a   : >> { %v1471_v37 = vpop.permute.xlu1 %1032 }
  0x8b   : >> { %v1023_v39 = vpop.permute.xlu0 %1022  ;;  %v1035_v40 = vunpack.i.h.bf16 %v1471_v37  ;;  %v1034_v41 = vunpack.i.l.bf16 %v1471_v37 }
  0x8c   : >> { %v1025_v42 = vunpack.i.h.bf16 %v1023_v39  ;;  %v1024_v43 = vunpack.i.l.bf16 %v1023_v39 }
  0x8e   : >> { %v1038_v44 = vpop.permute.xlu1 %1037  ;;  %v228_v50 = vsel %vm219_vm0, %v1034_v41, %v1024_v43  ;;  %v229_v51 = vsel %vm219_vm0, %v1035_v40, %v1025_v42 }
  0x8f   : >> { %v1478_v45 = vpop.permute.xlu0 %1027  ;;  %v1040_v48 = vunpack.i.h.bf16 %v1038_v44  ;;  %v1039_v49 = vunpack.i.l.bf16 %v1038_v44  ;;  %v232_v61 = vpack.c.bf16 %v229_v51, %v228_v50 }
  0x90   : >> { %v1030_v46 = vunpack.i.h.bf16 %v1478_v45  ;;  %v1029_v47 = vunpack.i.l.bf16 %v1478_v45 }
  0x92   : >> { %v1490_v52 = vpop.permute.xlu1 %1047  ;;  %v224_v53 = vsel %vm219_vm0, %v1024_v43, %v1029_v47  ;;  %v225_v54 = vsel %vm219_vm0, %v1025_v42, %v1030_v46 }
  0x93   : >> { %v1050_v55 = vunpack.i.h.bf16 %v1490_v52  ;;  %v1049_v56 = vunpack.i.l.bf16 %v1490_v52  ;;  %v1502_v57 = vpop.permute.xlu0 %1042  ;;  %v233_v58 = vpack.c.bf16 %v225_v54, %v224_v53 }
  0x94   : >> { %v1045_v59 = vunpack.i.h.bf16 %v1502_v57  ;;  %v1044_v60 = vunpack.i.l.bf16 %v1502_v57 }
  0x95   : >> { %683 = vmatprep.subr.bf16.mxu0 %v233_v58  ;;  %v230_v62 = vsel %vm219_vm0, %v1049_v56, %v1039_v49  ;;  %v231_v63 = vsel %vm219_vm0, %v1050_v55, %v1040_v48 }
  0x96   : >> { %684 = vmatpush1.bf16.msra.mxu0 %v232_v61  ;;  %v1514_v3 = vpop.permute.xlu1 %1057  ;;  %v226_v7 = vsel %vm219_vm0, %v1039_v49, %v1044_v60  ;;  %v227_v10 = vsel %vm219_vm0, %v1040_v48, %v1045_v59  ;;  %v235_v21 = vpack.c.bf16 %v231_v63, %v230_v62  ;;  %v223_v0 = vsel %vm219_vm0, %v1045_v59, %v1050_v55 }
  0x97   : >> { %v1060_v11 = vunpack.i.h.bf16 %v1514_v3  ;;  %v1059_v16 = vunpack.i.l.bf16 %v1514_v3  ;;  %v1053_v17 = vpop.permute.xlu0 %1052  ;;  %v236_v18 = vpack.c.bf16 %v227_v10, %v226_v7 }
  0x98   : >> { %v1055_v19 = vunpack.i.h.bf16 %v1053_v17  ;;  %v1054_v20 = vunpack.i.l.bf16 %v1053_v17 }
  0x99   : >> { %685 = vmatprep.subr.bf16.mxu0 %v236_v18 }
  0x9a   : >> { %686 = vmatpush1.bf16.msra.mxu0 %v235_v21  ;;  %v1068_v22 = vpop.permute.xlu1 %1067  ;;  %v273_v23 = vsel %vm268_vm1, %v1054_v20, %v1059_v16  ;;  %v274_v24 = vsel %vm268_vm1, %v1055_v19, %v1060_v11 }
  0x9b   : >> { %v1535_v25 = vpop.permute.xlu0 %1062  ;;  %v282_v28 = vpack.c.bf16 %v274_v24, %v273_v23  ;;  %v1070_v42 = vunpack.i.h.bf16 %v1068_v22  ;;  %v1069_v43 = vunpack.i.l.bf16 %v1068_v22 }
  0x9c   : >> { %v1065_v36 = vunpack.i.h.bf16 %v1535_v25  ;;  %v1064_v39 = vunpack.i.l.bf16 %v1535_v25 }
  0x9d   : >> { %687 = vmatprep.subr.bf16.mxu0 %v282_v28 }
  0x9e   : >> { %v1539_v44 = vpop.permute.xlu1 %1077  ;;  %v277_v48 = vsel %vm268_vm1, %v1064_v39, %v1054_v20  ;;  %v278_v49 = vsel %vm268_vm1, %v1065_v36, %v1055_v19  ;;  %v270_v12 = vsel %vm268_vm1, %v1060_v11, %v1065_v36  ;;  %v269_v13 = vsel %vm268_vm1, %v1059_v16, %v1064_v39 }
  0x9f   : >> { %v1966_v50 = vunpack.i.h.bf16 %v1539_v44  ;;  %v1957_v51 = vunpack.i.l.bf16 %v1539_v44  ;;  %v1551_v53 = vpop.permute.xlu0 %1072  ;;  %v281_v54 = vpack.c.bf16 %v278_v49, %v277_v48  ;;  %v283_v25 = vpack.c.bf16 %v270_v12, %v269_v13 }
  0xa0   : >> { %v1965_v58 = vunpack.i.h.bf16 %v1551_v53  ;;  %v1956_v61 = vunpack.i.l.bf16 %v1551_v53 }
  0xa1   : >> { %688 = vmatpush1.bf16.msra.mxu0 %v281_v54  ;;  %v279_v62 = vsel %vm268_vm1, %v1957_v51, %v1069_v43  ;;  %v280_v63 = vsel %vm268_vm1, %v1966_v50, %v1070_v42 }
  0xa2   : >> { %v1563_v7 = vpop.permute.xlu1 %1087  ;;  %v275_v10 = vsel %vm268_vm1, %v1069_v43, %v1956_v61  ;;  %v276_v17 = vsel %vm268_vm1, %v1070_v42, %v1965_v58  ;;  %v284_v24 = vpack.c.bf16 %v280_v63, %v279_v62 }
  0xa3   : >> { %v1953_v18 = vunpack.i.h.bf16 %v1563_v7  ;;  %v1950_v19 = vunpack.i.l.bf16 %v1563_v7  ;;  %v1083_v20 = vpop.permute.xlu0 %1082  ;;  %v285_v21 = vpack.c.bf16 %v276_v17, %v275_v10 }
  0xa4   : >> { %v1085_v22 = vunpack.i.h.bf16 %v1083_v20  ;;  %v1084_v23 = vunpack.i.l.bf16 %v1083_v20 }
  0xa5   : >> { %689 = vmatprep.subr.bf16.mxu0 %v285_v21 }
  0xa6   : >> { %690 = vmatpush1.bf16.msra.mxu0 %v284_v24  ;;  %v1098_v28 = vpop.permute.xlu1 %1097  ;;  %v322_v43 = vsel %vm317_vm2, %v1084_v23, %v1950_v19  ;;  %v323_v42 = vsel %vm317_vm2, %v1085_v22, %v1953_v18 }
  0xa7   : >> { %v1584_v48 = vpop.permute.xlu0 %1092  ;;  %v331_v49 = vpack.c.bf16 %v323_v42, %v322_v43  ;;  %v1100_v63 = vunpack.i.h.bf16 %v1098_v28  ;;  %v1099_v10 = vunpack.i.l.bf16 %v1098_v28 }
  0xa8   : >> { %v1954_v54 = vunpack.i.h.bf16 %v1584_v48  ;;  %v1951_v62 = vunpack.i.l.bf16 %v1584_v48  ;;  %v1980_v13 = vunpack.i.l.bf16 %v1584_v48 }
  0xa9   : >> { %691 = vmatprep.subr.bf16.mxu0 %v331_v49 }
  0xaa   : >> { %v1588_v17 = vpop.permute.xlu1 %1107  ;;  %v326_v20 = vsel %vm317_vm2, %v1951_v62, %v1084_v23  ;;  %v327_v21 = vsel %vm317_vm2, %v1954_v54, %v1085_v22 }
  0xab   : >> { %v1955_v24 = vunpack.i.h.bf16 %v1588_v17  ;;  %v1952_v43 = vunpack.i.l.bf16 %v1588_v17  ;;  %v1600_v42 = vpop.permute.xlu0 %1102  ;;  %v330_v28 = vpack.c.bf16 %v327_v21, %v326_v20 }
  0xac   : >> { %v1961_v49 = vunpack.i.h.bf16 %v1600_v42  ;;  %v1958_v19 = vunpack.i.l.bf16 %v1600_v42 }
  0xad   : >> { %692 = vmatpush1.bf16.msra.mxu0 %v330_v28  ;;  %v328_v23 = vsel %vm317_vm2, %v1952_v43, %v1099_v10  ;;  %v329_v22 = vsel %vm317_vm2, %v1955_v24, %v1100_v63 }
  0xae   : >> { %v1612_v62 = vpop.permute.xlu1 %1117  ;;  %v324_v20 = vsel %vm317_vm2, %v1099_v10, %v1958_v19  ;;  %v325_v21 = vsel %vm317_vm2, %v1100_v63, %v1961_v49  ;;  %v333_v61 = vpack.c.bf16 %v329_v22, %v328_v23 }
  0xaf   : >> { %v1960_v28 = vunpack.i.h.bf16 %v1612_v62  ;;  %v1959_v43 = vunpack.i.l.bf16 %v1612_v62  ;;  %v1113_v18 = vpop.permute.xlu0 %1112  ;;  %v334_v54 = vpack.c.bf16 %v325_v21, %v324_v20 }
  0xb0   : >> { %v1115_v24 = vunpack.i.h.bf16 %v1113_v18  ;;  %v1114_v33 = vunpack.i.l.bf16 %v1113_v18 }
  0xb1   : >> { %693 = vmatprep.subr.bf16.mxu0 %v334_v54 }
  0xb2   : >> { %694 = vmatpush1.bf16.msra.mxu0 %v333_v61  ;;  %v1128_v51 = vpop.permute.xlu1 %1127  ;;  %v575_v10 = vsel %vm574_vm3, %v1114_v33, %v1959_v43  ;;  %v576_v63 = vsel %vm574_vm3, %v1115_v24, %v1960_v28 }
  0xb3   : >> { %v1633_v19 = vpop.permute.xlu0 %1122  ;;  %v588_v20 = vpack.c.bf16 %v576_v63, %v575_v10  ;;  %v1130_v54 = vunpack.i.h.bf16 %v1128_v51  ;;  %v1129_v61 = vunpack.i.l.bf16 %v1128_v51 }
  0xb4   : >> { %v1963_v21 = vunpack.i.h.bf16 %v1633_v19  ;;  %v1962_v18 = vunpack.i.l.bf16 %v1633_v19 }
  0xb5   : >> { %724 = vmatprep.subr.bf16.mxu1 %v588_v20 }
  0xb6   : >> { %v1637_v23 = vpop.permute.xlu1 %1137  ;;  %v579_v22 = vsel %vm574_vm3, %v1962_v18, %v1114_v33  ;;  %v580_v10 = vsel %vm574_vm3, %v1963_v21, %v1115_v24 }
  0xb7   : >> { %v1967_v63 = vunpack.i.h.bf16 %v1637_v23  ;;  %v1964_v43 = vunpack.i.l.bf16 %v1637_v23  ;;  %v1650_v51 = vpop.permute.xlu0 %1132  ;;  %v587_v20 = vpack.c.bf16 %v580_v10, %v579_v22 }
  0xb8   : >> { %v1969_v28 = vunpack.i.h.bf16 %v1650_v51  ;;  %v1968_v49 = vunpack.i.l.bf16 %v1650_v51 }
  0xb9   : >> { %725 = vmatpush1.bf16.msra.mxu1 %v587_v20  ;;  %v375_v33 = vsel %vm366_vm4, %v1964_v43, %v1129_v61  ;;  %v376_v24 = vsel %vm366_vm4, %v1967_v63, %v1130_v54 }
  0xba   : >> { %v1662_v18 = vpop.permute.xlu1 %1147  ;;  %v371_v22 = vsel %vm366_vm4, %v1129_v61, %v1968_v49  ;;  %v372_v10 = vsel %vm366_vm4, %v1130_v54, %v1969_v28  ;;  %v379_v32 = vpack.c.bf16 %v376_v24, %v375_v33  ;;  %v221_v33 = vsel %vm219_vm0, %v1030_v46, %v1035_v40 }
  0xbb   : >> { %v1150_v20 = vunpack.i.h.bf16 %v1662_v18  ;;  %v1970_v21 = vunpack.i.l.bf16 %v1662_v18  ;;  %v1143_v43 = vpop.permute.xlu0 %1142  ;;  %v380_v58 = vpack.c.bf16 %v372_v10, %v371_v22 }
  0xbc   : >> { %v1145_v50 = vunpack.i.h.bf16 %v1143_v43  ;;  %v1144_v63 = vunpack.i.l.bf16 %v1143_v43 }
  0xbd   : >> { %695 = vmatprep.subr.bf16.mxu0 %v380_v58 }
  0xbe   : >> { %696 = vmatpush1.bf16.msra.mxu0 %v379_v32  ;;  %v1158_v31 = vpop.permute.xlu1 %1157  ;;  %v577_v61 = vsel %vm574_vm3, %v1144_v63, %v1970_v21  ;;  %v578_v54 = vsel %vm574_vm3, %v1145_v50, %v1150_v20 }
  0xbf   : >> { %v1682_v49 = vpop.permute.xlu0 %1152  ;;  %v591_v28 = vpack.c.bf16 %v578_v54, %v577_v61  ;;  %v1160_v58 = vunpack.i.h.bf16 %v1158_v31  ;;  %v1159_v32 = vunpack.i.l.bf16 %v1158_v31 }
  0xc0   : >> { %v1155_v22 = vunpack.i.h.bf16 %v1682_v49  ;;  %v1154_v43 = vunpack.i.l.bf16 %v1682_v49 }
  0xc1   : >> { %726 = vmatprep.subr.bf16.mxu1 %v591_v28  ;;  %v220_v28 = vsel %vm219_vm0, %v1029_v47, %v1034_v41 }
  0xc2   : >> { %v1692_v24 = vpop.permute.xlu1 %1167  ;;  %v581_v10 = vsel %vm574_vm3, %v1154_v43, %v1144_v63  ;;  %v582_v31 = vsel %vm574_vm3, %v1155_v22, %v1145_v50  ;;  %v234_v45 = vpack.c.bf16 %v221_v33, %v220_v28 }
  0xc3   : >> { %v1170_v40 = vunpack.i.h.bf16 %v1692_v24  ;;  %v1169_v46 = vunpack.i.l.bf16 %v1692_v24  ;;  %v1710_v61 = vpop.permute.xlu0 %1162  ;;  %v590_v54 = vpack.c.bf16 %v582_v31, %v581_v10 }
  0xc4   : >> { %v1165_v63 = vunpack.i.h.bf16 %v1710_v61  ;;  %v1164_v21 = vunpack.i.l.bf16 %v1710_v61 }
  0xc5   : >> { %727 = vmatpush1.bf16.msra.mxu1 %v590_v54  ;;  %v377_v37 = vsel %vm366_vm4, %v1169_v46, %v1159_v32  ;;  %v378_v41 = vsel %vm366_vm4, %v1170_v40, %v1160_v58 }
  0xc6   : >> { %v1178_v47 = vpop.permute.xlu1 %1177  ;;  %954 = vmatprep.subr.bf16.mxu1 %v393_v26  ;;  %v373_v50 = vsel %vm366_vm4, %v1159_v32, %v1164_v21  ;;  %v374_v10 = vsel %vm366_vm4, %v1160_v58, %v1165_v63  ;;  %v222_v58 = vsel %vm219_vm0, %v1044_v60, %v1049_v56  ;;  %v382_v54 = vpack.c.bf16 %v378_v41, %v377_v37 }
  0xc7   : >> { %v1180_v1 = vunpack.i.h.bf16 %v1178_v47  ;;  %v1179_v26 = vunpack.i.l.bf16 %v1178_v47  ;;  %v1173_v33 = vpop.permute.xlu0 %1172  ;;  %v383_v31 = vpack.c.bf16 %v374_v10, %v373_v50  ;;  %v237_v57 = vpack.c.bf16 %v223_v0, %v222_v58 }
  0xc8   : >> { %v1175_v32 = vunpack.i.h.bf16 %v1173_v33  ;;  %v1174_v28 = vunpack.i.l.bf16 %v1173_v33  ;;  %944 = vmatmul.mubr.msk.bf16.vlgmr.msra.gmra.mrb[0].mxu1 %vm679_vm5, %v1426_v27  ;;  %v1972_v41 = vpack.c.bf16 %v1388_v15, %v1386_v14  ;;  %v1975_v47 = vunpack.i.l.bf16 %v1539_v44 }
  0xc9   : >> { %697 = vmatprep.subr.bf16.mxu0 %v383_v31  ;;  %955 = vmatpush3.bf16.msra.mxu1 %v234_v45  ;;  %v1973_v45 = vunpack.i.h.bf16 %v1539_v44  ;;  %v1976_v50 = vunpack.i.l.bf16 %v1551_v53  ;;  %v1977_v44 = vpack.c.bf16 %v1362_v6, %v1360_v5  ;;  %v1978_v6 = vunpack.i.h.bf16 %v1584_v48 }
  0xca   : >> { %698 = vmatpush1.bf16.msra.mxu0 %v382_v54  ;;  %v1188_v55 = vpop.permute.xlu1 %1187  ;;  %956 = vmatprep.subr.bf16.mxu1 %v396_v29  ;;  %v436_v52 = vsel %vm427_vm6, %v1179_v26, %v1174_v28  ;;  %v437_v56 = vsel %vm427_vm6, %v1180_v1, %v1175_v32 }
  0xcb   : >> { %v1183_v59 = vpop.permute.xlu0 %1182  ;;  %699 = vmatprep.subr.bf16.mxu0 %v392_v30  ;;  %v442_v60 = vpack.c.bf16 %v437_v56, %v436_v52  ;;  %797 = vmatprep.mubr.bf16.mxu1 %v1461_v35  ;;  %v1190_v9 = vunpack.i.h.bf16 %v1188_v55  ;;  %v1189_v30 = vunpack.i.l.bf16 %v1188_v55  ;;  %v1971_v35 = vpack.c.bf16 %v1358_v4, %v1352_v2 }
  0xcc   : >> { %v1185_v29 = vunpack.i.h.bf16 %v1183_v59  ;;  %v1184_v8 = vunpack.i.l.bf16 %v1183_v59  ;;  %v1974_v2 = vunpack.i.h.bf16 %v1551_v53  ;;  %v271_v10 = vsel %vm268_vm1, %v1976_v50, %v1975_v47 }
  0xcd   : >> { %957 = vmatpush3.bf16.msra.mxu1 %v237_v57  ;;  %v1979_v56 = vunpack.i.h.bf16 %v1563_v7 }
  0xce   : >> { %700 = vmatpush1.bf16.msra.mxu0 %v1971_v35  ;;  %958 = vmatprep.subr.bf16.mxu1 %v442_v60  ;;  %v1198_v37 = vpop.permute.xlu1 %1197  ;;  %v428_v11 = vsel %vm427_vm6, %v1184_v8, %v1179_v26  ;;  %v429_v3 = vsel %vm427_vm6, %v1185_v29, %v1180_v1  ;;  %v272_v4 = vsel %vm268_vm1, %v1974_v2, %v1973_v45 }
  0xcf   : >> { %v1200_v36 = vunpack.i.h.bf16 %v1198_v37  ;;  %v1199_v16 = vunpack.i.l.bf16 %v1198_v37  ;;  %v1193_v39 = vpop.permute.xlu0 %1192  ;;  %701 = vmatprep.subr.bf16.mxu0 %v1972_v41  ;;  %v441_v26 = vpack.c.bf16 %v429_v3, %v428_v11  ;;  %v432_v14 = vsel %vm427_vm6, %v1174_v28, %v1184_v8 }
  0xd0   : >> { %v1195_v0 = vunpack.i.h.bf16 %v1193_v39  ;;  %v1194_v1 = vunpack.i.l.bf16 %v1193_v39  ;;  %v433_v15 = vsel %vm427_vm6, %v1175_v32, %v1185_v29  ;;  %v286_v32 = vpack.c.bf16 %v272_v4, %v271_v10 }
  0xd1   : >> { %959 = vmatpush3.bf16.msra.mxu1 %v283_v25  ;;  %v319_v57 = vsel %vm317_vm2, %v1979_v56, %v1978_v6  ;;  %v440_v12 = vpack.c.bf16 %v433_v15, %v432_v14  ;;  %v1981_v29 = vunpack.i.l.bf16 %v1563_v7  ;;  %v434_v37 = vsel %vm427_vm6, %v1189_v30, %v1199_v16 }
  0xd2   : >> { %702 = vmatpush1.bf16.msra.mxu0 %v1977_v44  ;;  %v1208_v53 = vpop.permute.xlu1 %1207  ;;  %v438_v33 = vsel %vm427_vm6, %v1194_v1, %v1189_v30  ;;  %v439_v31 = vsel %vm427_vm6, %v1195_v0, %v1190_v9  ;;  %v430_v58 = vsel %vm427_vm6, %v1199_v16, %v1194_v1  ;;  %v431_v28 = vsel %vm427_vm6, %v1200_v36, %v1195_v0 }
  0xd3   : >> { %v1210_v54 = vunpack.i.h.bf16 %v1208_v53  ;;  %v1209_v55 = vunpack.i.l.bf16 %v1208_v53  ;;  %v1203_v52 = vpop.permute.xlu0 %1202  ;;  %703 = vmatprep.subr.bf16.mxu0 %v441_v26  ;;  %v445_v5 = vpack.c.bf16 %v439_v31, %v438_v33  ;;  %v318_v8 = vsel %vm317_vm2, %v1981_v29, %v1980_v13 }
  0xd4   : >> { %v1205_v59 = vunpack.i.h.bf16 %v1203_v52  ;;  %v1204_v60 = vunpack.i.l.bf16 %v1203_v52  ;;  %v444_v35 = vpack.c.bf16 %v431_v28, %v430_v58  ;;  %v435_v11 = vsel %vm427_vm6, %v1190_v9, %v1200_v36 }
  0xd5   : >> { %960 = vmatprep.subr.bf16.mxu1 %v445_v5  ;;  %v332_v41 = vpack.c.bf16 %v319_v57, %v318_v8  ;;  %v443_v4 = vpack.c.bf16 %v435_v11, %v434_v37  ;;  %v1982_v33 = vunpack.i.h.bf16 %v1588_v17  ;;  %v1983_v31 = vunpack.i.h.bf16 %v1600_v42 }
  0xd6   : >> { %704 = vmatpush1.bf16.msra.mxu0 %v440_v12  ;;  %961 = vmatpush3.bf16.msra.mxu1 %v286_v32  ;;  %v1218_v3 = vpop.permute.xlu1 %1217  ;;  %v485_v25 = vsel %vm476_vm7, %v1209_v55, %v1204_v60  ;;  %v486_v7 = vsel %vm476_vm7, %v1210_v54, %v1205_v59  ;;  %v1984_v28 = vunpack.i.l.bf16 %v1588_v17  ;;  %v1985_v32 = vunpack.i.l.bf16 %v1600_v42 }
  0xd7   : >> { %v1213_v48 = vpop.permute.xlu0 %1212  ;;  %705 = vmatprep.subr.bf16.mxu0 %v444_v35  ;;  %v491_v39 = vpack.c.bf16 %v486_v7, %v485_v25  ;;  %v1220_v30 = vunpack.i.h.bf16 %v1218_v3  ;;  %v1219_v16 = vunpack.i.l.bf16 %v1218_v3  ;;  %v321_v58 = vsel %vm317_vm2, %v1983_v31, %v1982_v33 }
  0xd8   : >> { %v1215_v45 = vunpack.i.h.bf16 %v1213_v48  ;;  %v1214_v2 = vunpack.i.l.bf16 %v1213_v48  ;;  %v1986_v11 = vunpack.i.h.bf16 %v1637_v23  ;;  %v1987_v3 = vunpack.i.h.bf16 %v1650_v51 }
  0xd9   : >> { %962 = vmatprep.subr.bf16.mxu1 %v491_v39  ;;  %v1988_v7 = vunpack.i.l.bf16 %v1637_v23  ;;  %v1989_v48 = vunpack.i.l.bf16 %v1650_v51 }
  0xda   : >> { %706 = vmatpush1.bf16.msra.mxu0 %v443_v4  ;;  %963 = vmatpush3.bf16.msra.mxu1 %v332_v41  ;;  %v1228_v9 = vpop.permute.xlu1 %1227  ;;  %v477_v36 = vsel %vm476_vm7, %v1214_v2, %v1209_v55  ;;  %v478_v47 = vsel %vm476_vm7, %v1215_v45, %v1210_v54  ;;  %v481_v50 = vsel %vm476_vm7, %v1204_v60, %v1214_v2 }
  0xdb   : >> { %v1230_v10 = vunpack.i.h.bf16 %v1228_v9  ;;  %v1229_v0 = vunpack.i.l.bf16 %v1228_v9  ;;  %v1223_v1 = vpop.permute.xlu0 %1222  ;;  %v490_v26 = vpack.c.bf16 %v478_v47, %v477_v36  ;;  %v482_v14 = vsel %vm476_vm7, %v1205_v59, %v1215_v45 }
  0xdc   : >> { %v1225_v15 = vunpack.i.h.bf16 %v1223_v1  ;;  %v1224_v44 = vunpack.i.l.bf16 %v1223_v1  ;;  %v489_v53 = vpack.c.bf16 %v482_v14, %v481_v50  ;;  %v320_v54 = vsel %vm317_vm2, %v1985_v32, %v1984_v28 }
  0xdd   : >> { %707 = vmatprep.subr.bf16.mxu0 %v490_v26  ;;  %v483_v55 = vsel %vm476_vm7, %v1219_v16, %v1229_v0  ;;  %v484_v52 = vsel %vm476_vm7, %v1220_v30, %v1230_v10  ;;  %v335_v29 = vpack.c.bf16 %v321_v58, %v320_v54  ;;  %v368_v25 = vsel %vm366_vm4, %v1987_v3, %v1986_v11 }
  0xde   : >> { %708 = vmatpush1.bf16.msra.mxu0 %v489_v53  ;;  %v1238_v5 = vpop.permute.xlu1 %1237  ;;  %v479_v6 = vsel %vm476_vm7, %v1229_v0, %v1224_v44  ;;  %v480_v17 = vsel %vm476_vm7, %v1230_v10, %v1225_v15  ;;  %v487_v42 = vsel %vm476_vm7, %v1224_v44, %v1219_v16  ;;  %v488_v56 = vsel %vm476_vm7, %v1225_v15, %v1220_v30 }
  0xdf   : >> { %v1240_v57 = vunpack.i.h.bf16 %v1238_v5  ;;  %v1239_v59 = vunpack.i.l.bf16 %v1238_v5  ;;  %v1233_v60 = vpop.permute.xlu0 %1232  ;;  %v493_v12 = vpack.c.bf16 %v480_v17, %v479_v6  ;;  %v494_v13 = vpack.c.bf16 %v488_v56, %v487_v42 }
  0xe0   : >> { %v1235_v8 = vunpack.i.h.bf16 %v1233_v60  ;;  %v1234_v35 = vunpack.i.l.bf16 %v1233_v60  ;;  %v492_v37 = vpack.c.bf16 %v484_v52, %v483_v55  ;;  %v367_v39 = vsel %vm366_vm4, %v1989_v48, %v1988_v7 }
  0xe1   : >> { %709 = vmatprep.subr.bf16.mxu0 %v493_v12  ;;  %964 = vmatprep.subr.bf16.mxu1 %v494_v13  ;;  %v381_v16 = vpack.c.bf16 %v368_v25, %v367_v39  ;;  %v370_v58 = vsel %vm366_vm4, %v1165_v63, %v1170_v40  ;;  %v369_v28 = vsel %vm366_vm4, %v1164_v21, %v1169_v46  ;;  %v1990_v5 = vunpack.i.h.bf16 %v1633_v19 }
  0xe2   : >> { %710 = vmatpush1.bf16.msra.mxu0 %v492_v37  ;;  %965 = vmatpush3.bf16.msra.mxu1 %v335_v29  ;;  %v1248_v41 = vpop.permute.xlu1 %1247  ;;  %v534_v45 = vsel %vm525_vm8, %v1239_v59, %v1234_v35  ;;  %v535_v2 = vsel %vm525_vm8, %v1240_v57, %v1235_v8  ;;  %v384_v52 = vpack.c.bf16 %v370_v58, %v369_v28  ;;  %v1991_v6 = vunpack.i.h.bf16 %v1612_v62 }
  0xe3   : >> { %v1243_v4 = vpop.permute.xlu0 %1242  ;;  %v540_v30 = vpack.c.bf16 %v535_v2, %v534_v45  ;;  %v1250_v51 = vunpack.i.h.bf16 %v1248_v41  ;;  %v1249_v36 = vunpack.i.l.bf16 %v1248_v41  ;;  %v1992_v42 = vunpack.i.l.bf16 %v1633_v19 }
  0xe4   : >> { %v1245_v23 = vunpack.i.h.bf16 %v1243_v4  ;;  %v1244_v9 = vunpack.i.l.bf16 %v1243_v4  ;;  %v584_v17 = vsel %vm574_vm3, %v1991_v6, %v1990_v5  ;;  %v1993_v56 = vunpack.i.l.bf16 %v1612_v62 }
  0xe5   : >> { %966 = vmatprep.subr.bf16.mxu1 %v540_v30  ;;  %v586_v12 = vsel %vm574_vm3, %v1150_v20, %v1155_v22  ;;  %v1994_v19 = vunpack.i.l.bf16 %v1662_v18 }
  0xe6   : >> { %967 = vmatpush3.bf16.msra.mxu1 %v381_v16  ;;  %v1258_v47 = vpop.permute.xlu1 %1257  ;;  %v526_v50 = vsel %vm525_vm8, %v1244_v9, %v1239_v59  ;;  %v527_v10 = vsel %vm525_vm8, %v1245_v23, %v1240_v57  ;;  %v530_v0 = vsel %vm525_vm8, %v1234_v35, %v1244_v9  ;;  %v531_v1 = vsel %vm525_vm8, %v1235_v8, %v1245_v23 }
  0xe7   : >> { %v1260_v26 = vunpack.i.h.bf16 %v1258_v47  ;;  %v1259_v14 = vunpack.i.l.bf16 %v1258_v47  ;;  %v1253_v15 = vpop.permute.xlu0 %1252  ;;  %v539_v44 = vpack.c.bf16 %v527_v10, %v526_v50  ;;  %v538_v53 = vpack.c.bf16 %v531_v1, %v530_v0 }
  0xe8   : >> { %v1255_v33 = vunpack.i.h.bf16 %v1253_v15  ;;  %v1254_v31 = vunpack.i.l.bf16 %v1253_v15  ;;  %v583_v57 = vsel %vm574_vm3, %v1993_v56, %v1992_v42  ;;  %v1301_v59 = vmov 0.0  }
  0xe9   : >> { %711 = vmatprep.subr.bf16.mxu0 %v539_v44  ;;  %v532_v32 = vsel %vm525_vm8, %v1249_v36, %v1259_v14  ;;  %v533_v54 = vsel %vm525_vm8, %v1250_v51, %v1260_v26  ;;  %v589_v60 = vpack.c.bf16 %v584_v17, %v583_v57  ;;  %v585_v62 = vsel %vm574_vm3, %v1994_v19, %v1154_v43 }
  0xea   : >> { %712 = vmatpush1.bf16.msra.mxu0 %v538_v53  ;;  %v528_v55 = vsel %vm525_vm8, %v1259_v14, %v1254_v31  ;;  %v529_v40 = vsel %vm525_vm8, %v1260_v26, %v1255_v33  ;;  %v536_v24 = vsel %vm525_vm8, %v1254_v31, %v1249_v36  ;;  %v537_v21 = vsel %vm525_vm8, %v1255_v33, %v1250_v51 }
  0xeb   : >> { %v542_v46 = vpack.c.bf16 %v529_v40, %v528_v55  ;;  %v543_v61 = vpack.c.bf16 %v537_v21, %v536_v24  ;;  %v541_v63 = vpack.c.bf16 %v533_v54, %v532_v32  ;;  %v592_v13 = vpack.c.bf16 %v586_v12, %v585_v62 }
  0xed   : >> { %713 = vmatprep.subr.bf16.mxu0 %v542_v46  ;;  %968 = vmatprep.subr.bf16.mxu1 %v543_v61 }
  0xee   : >> { %714 = vmatpush1.bf16.msra.mxu0 %v541_v63  ;;  %969 = vmatpush3.bf16.msra.mxu1 %v384_v52 }
  0xef   : >> { %979 = vmatprep.subr.bf16.mxu1 %v1301_v59 }
  0xf1   : >> { %716 = vmatmul.mubr.bf16.vlgmr.msra.gmra.mrb[0].mxu0 %v1457_v34  ;;  %798 = vmatmul.mubr.bf16.vlgmr.msra.gmra.mrb[4].mxu1 %v1457_v34 }
  0xf2   : >> { %980 = vmatpush3.bf16.msra.mxu1 %v589_v60  ;;  %983 = vmatprep.mubr.msk.bf16.mxu1 %vm1302_vm9, %v1301_v59 }
  0xf3   : >> { %981 = vmatprep.subr.bf16.mxu1 %v1301_v59 }
  0xf6   : >> { %982 = vmatpush3.bf16.msra.mxu1 %v592_v13 }
  0xf8   : >> { %v658_v29 = vpop.permute.xlu0 %657 }
  0xf9   : >> { %984 = vmatmul.mubr.msk.bf16.vlgmr.msra.gmra.mrb[8].mxu1 %vm679_vm5, %v1426_v27 }
 0x19b   : >> { %v758_v20 = vpop.f32.mrb[0].mxu1 }
 0x19c   : >> { %v760_v49 = vpop.f32.mrb[1].mxu1 }
 0x19d   : >> { %v762_v22 = vpop.f32.mrb[2].mxu1 }
 0x19e   : >> { %v763_v18 = vpop.f32.mrb[3].mxu1 }
 0x1c4   : >> { %v717_v38 = vpop.f32.mrb[0].mxu0  ;;  %v970_v43 = vpop.f32.mrb[4].mxu1 }
 0x1c5   : >> { %v718_v8 = vadd.f32 %v717_v38, %v658_v29  ;;  %v719_v35 = vpop.f32.mrb[1].mxu0  ;;  %v971_v37 = vpop.f32.mrb[5].mxu1 }
 0x1c6   : >> { %v720_v34 = vadd.f32 %v719_v35, %v658_v29  ;;  %v972_v11 = vadd.f32 %v971_v37, %v970_v43  ;;  %v973_v3 = vpop.f32.mrb[6].mxu1  ;;  %v721_v25 = vpop.f32.mrb[2].mxu0 }
 0x1c7   : >> { %v759_v7 = vadd.f32 %v758_v20, %v718_v8  ;;  %v974_v48 = vpop.f32.mrb[7].mxu1  ;;  %v722_v39 = vpop.f32.mrb[3].mxu0 }
 0x1c8   : >> { %v761_v41 = vadd.f32 %v760_v49, %v720_v34  ;;  %v800_v2 = vadd.f32 %v972_v11, %v658_v29 }
 0x1c9   : >> { %v946_v45 = vmul.f32 -1.442695, %v759_v7 }
 0x1ca   : >> { %v947_v27 = vmul.f32 -1.442695, %v761_v41 }
 0x1cb   : >> { %1263 = vpow2.f32 %v946_v45 }
 0x1cc   : >> { %1265 = vpow2.f32 %v947_v27  ;;  %v839_v4 = vpop.f32.mrb[8].mxu1 }
 0x1cd   : >> { %v840_v30 = vadd.f32 %v839_v4, %v800_v2  ;;  %v985_v16 = vpop.f32.mrb[9].mxu1 }
 0x1ce   : >> { %v842_v23 = vpop.f32.mrb[10].mxu1 }
 0x1cf   : >> { %v948_v9 = vmul.f32 -1.442695, %v840_v30  ;;  %v986_v51 = vpop.f32.mrb[11].mxu1 }
 0x1d1   : >> { %1267 = vpow2.f32 %v948_v9 }
 0x1d5   : >> { %v1264_v36 = vpop.eup %1263 }
 0x1d6   : >> { %v1266_v47 = vpop.eup %1265  ;;  %v854_v50 = vadd.f32 1.0, %v1264_v36 }
 0x1d7   : >> { %v855_v10 = vadd.f32 1.0, %v1266_v47 }
 0x1d8   : >> { %1269 = vrcp.f32 %v854_v50 }
 0x1d9   : >> { %1271 = vrcp.f32 %v855_v10 }
 0x1db   : >> { %v1268_v0 = vpop.eup %1267 }
 0x1dc   : >> { %v856_v1 = vadd.f32 1.0, %v1268_v0 }
 0x1de   : >> { %1273 = vrcp.f32 %v856_v1 }
 0x1e2   : >> { %v1270_v26 = vpop.eup %1269 }
 0x1e3   : >> { %v1272_v14 = vpop.eup %1271  ;;  %176 = sbr.rel (!%p174_p4) target bundleno = 18 (0x12), region = 71 }
 0x1e4   : >> { %v865_v15 = vcombine.low %v1270_v26, %v1272_v14 }
 0x1e6   : >> { %870 = vst [vmem:[%s869_s11] sm:$0xff] %v865_v15 }
 0x1e8   : >> { %v1274_v44 = vpop.eup %1273 }
 0x1e9   : >> { %871 = vst [vmem:[%s869_s11 + $0x8] sm:$0xf] %v1274_v44 }
 0x1ea PF: > { %s13_s12 = sadd.s32 1, %s1285_s12  }
 0x1eb   : > { %p10_p5 = scmp.ge.s32.totalorder %s13_s12, 4  }
 0x1ed   :  { %12 = sbr.rel (!%p10_p5) target bundleno = 1 (0x1), region = 82 }

</bundles_post_ra>
